<compile_context>
chip_gen: v6e
topology: v6e:2x2x1
jax: 0.10.0
libtpu: 0.0.40
codegen_flags: <defaults>
</compile_context>

<pallas_src>
import jax
import jax.numpy as jnp
from jax.experimental import pallas as pl
from jax.experimental.pallas import tpu as pltpu

NEG_SLOPE = 0.01
BN_EPS = 1e-5

# Storage / MXU-input dtype for activations + conv weights.  Set to
# jnp.bfloat16 on v6e/v7x for ~2x DMA reduction and native bf16 MXU; all
# accumulation and epilogue math stays f32 (safe on v5e as well).
ACT_DTYPE = jnp.float32


# ---------------------------------------------------------------------------
# Kernel 1: conv1 (Cin=1) as a small patches-matmul + shift + leaky_relu.
#   BN + conv bias are already folded into wmat / shift by the wrapper.
# ---------------------------------------------------------------------------
def _conv1_kernel(p_ref, w_ref, s_ref, o_ref):
    # p_ref: (bt, P, K)  im2col patches (K = 9*Cin, unpadded)
    # w_ref: (K, Cout)   BN-scaled conv weights
    # s_ref: (1, Cout)   folded shift  ((b_conv - mean)*inv + beta)
    # o_ref: (bt, H, W, Cout)
    bt, P, K = p_ref.shape
    x = p_ref[...].reshape(bt * P, K)
    y = jnp.dot(x, w_ref[...], preferred_element_type=jnp.float32)
    y = y + s_ref[...]
    y = jnp.where(y >= 0.0, y, NEG_SLOPE * y)          # leaky_relu(0.01)
    o_ref[...] = y.reshape(o_ref.shape).astype(o_ref.dtype)


# ---------------------------------------------------------------------------
# Shared body: 3x3 / stride 1 conv via 9 shifted matmuls on a padded NHWC tile,
# with folded BN shift + leaky_relu.  Returns post-activation (bt*H*W, Cout) f32.
# ---------------------------------------------------------------------------
def _conv3x3_accumulate(x_ref, w_ref, s_ref):
    # x_ref: (bt, H+2, W+2, Cin)  zero-padded activations
    # w_ref: (9, Cin, Cout)       BN-scaled conv weights, tap-major
    # s_ref: (1, Cout)            folded shift
    bt, hp, wp, cin = x_ref.shape
    H, W = hp - 2, wp - 2
    cout = w_ref.shape[2]
    acc = None
    for dh in range(3):
        for dw in range(3):
            xs = x_ref[:, dh:dh + H, dw:dw + W, :].reshape(bt * H * W, cin)
            d = jnp.dot(xs, w_ref[dh * 3 + dw],
                        preferred_element_type=jnp.float32)
            acc = d if acc is None else acc + d
    y = acc + s_ref[...]
    y = jnp.where(y >= 0.0, y, NEG_SLOPE * y)          # leaky_relu(0.01)
    return y, (bt, H, W, cout)


# ---------------------------------------------------------------------------
# Kernel 2: conv2 (+ BN + leaky_relu), writes compact NHWC activations.
# ---------------------------------------------------------------------------
def _conv3x3_kernel(x_ref, w_ref, s_ref, o_ref):
    y, (bt, H, W, cout) = _conv3x3_accumulate(x_ref, w_ref, s_ref)
    o_ref[...] = y.reshape(bt, H, W, cout).astype(o_ref.dtype)


# ---------------------------------------------------------------------------
# Kernel 3: conv3 (+ BN + leaky_relu) with fused head:
#   max_pool2d(2,2) -> (dropout2d == identity) -> global avg -> Linear -> sigmoid
# ---------------------------------------------------------------------------
def _conv3x3_head_kernel(x_ref, w_ref, s_ref, wfc_ref, bfc_ref, o_ref):
    y, (bt, H, W, cout) = _conv3x3_accumulate(x_ref, w_ref, s_ref)

    # --- vectorized 2x2 max-pool + global average (all f32) ---
    y = y.reshape(bt, H // 2, 2, W, cout)              # split rows into pairs
    rm = jnp.maximum(y[:, :, 0], y[:, :, 1])           # (bt, H/2, W, C) row-pair max
    # column-pair max via two contiguous shifted views + even-column mask
    m2 = jnp.maximum(rm[:, :, 0:W - 1, :], rm[:, :, 1:W, :])  # (bt, H/2, W-1, C)
    col = jax.lax.broadcasted_iota(jnp.int32, (W - 1, cout), 0)
    even = (col % 2) == 0
    pooled_sum = jnp.sum(jnp.where(even, m2, 0.0), axis=(1, 2))   # (bt, C)
    avg = pooled_sum * (1.0 / ((H // 2) * (W // 2)))              # global avg pool

    # dropout2d(p=0.25) -> identity (inference); see TODO at top of file.

    logit = jnp.dot(avg, wfc_ref[...], preferred_element_type=jnp.float32)
    logit = logit + bfc_ref[...]
    prob = 1.0 / (1.0 + jnp.exp(-logit))               # sigmoid
    o_ref[:, 0, :] = prob.astype(o_ref.dtype)


# ---------------------------------------------------------------------------
# Wrappers (plain-JAX glue: layout, padding, BN folding)
# ---------------------------------------------------------------------------
def _fold_bn(conv_b, bn_g, bn_b, bn_m, bn_v):
    inv = bn_g / jnp.sqrt(bn_v + BN_EPS)               # gamma / sqrt(var+eps)
    shift = (conv_b - bn_m) * inv + bn_b
    return inv, shift


def _pick_bt(batch):
    # Multiple images per grid step (amortize ~0.35us/step, raise MXU M),
    # but keep >= 2 grid steps so v7x's two TensorCores both get work.
    for bt in (4, 2, 1):
        if batch % bt == 0 and batch // bt >= 2:
            return bt
    return 1


def conv1_bn_lrelu(x_nhwc, conv_w, conv_b, bn_g, bn_b, bn_m, bn_v, bt):
    """First conv (Cin small): tiny im2col glue + Pallas matmul kernel."""
    B, H, W, Cin = x_nhwc.shape
    Cout = conv_w.shape[0]
    P, K = H * W, 9 * Cin

    xp = jnp.pad(x_nhwc, ((0, 0), (1, 1), (1, 1), (0, 0)))
    cols = [xp[:, dh:dh + H, dw:dw + W, :] for dh in range(3) for dw in range(3)]
    patches = jnp.concatenate(cols, axis=-1).reshape(B, P, K)   # K stays unpadded

    inv, shift = _fold_bn(conv_b, bn_g, bn_b, bn_m, bn_v)
    wmat = jnp.transpose(conv_w, (2, 3, 1, 0)).reshape(K, Cout) * inv[None, :]

    return pl.pallas_call(
        _conv1_kernel,
        out_shape=jax.ShapeDtypeStruct((B, H, W, Cout), ACT_DTYPE),
        grid_spec=pltpu.PrefetchScalarGridSpec(
            num_scalar_prefetch=0,
            grid=(B // bt,),
            in_specs=[
                pl.BlockSpec((bt, P, K), lambda i: (i, 0, 0)),
                pl.BlockSpec((K, Cout), lambda i: (0, 0)),
                pl.BlockSpec((1, Cout), lambda i: (0, 0)),
            ],
            out_specs=pl.BlockSpec((bt, H, W, Cout), lambda i: (i, 0, 0, 0)),
        ),
        compiler_params=pltpu.CompilerParams(dimension_semantics=("parallel",)),
    )(patches.astype(ACT_DTYPE), wmat.astype(ACT_DTYPE),
      shift.reshape(1, Cout).astype(jnp.float32))


def conv3x3_bn_lrelu(x_nhwc, conv_w, conv_b, bn_g, bn_b, bn_m, bn_v, bt):
    """3x3 conv + folded BN + leaky_relu, conv done inside the kernel."""
    B, H, W, Cin = x_nhwc.shape
    Cout = conv_w.shape[0]
    xp = jnp.pad(x_nhwc, ((0, 0), (1, 1), (1, 1), (0, 0)))
    inv, shift = _fold_bn(conv_b, bn_g, bn_b, bn_m, bn_v)
    w9 = jnp.transpose(conv_w, (2, 3, 1, 0)).reshape(9, Cin, Cout) * inv[None, None, :]

    return pl.pallas_call(
        _conv3x3_kernel,
        out_shape=jax.ShapeDtypeStruct((B, H, W, Cout), ACT_DTYPE),
        grid_spec=pltpu.PrefetchScalarGridSpec(
            num_scalar_prefetch=0,
            grid=(B // bt,),
            in_specs=[
                pl.BlockSpec((bt, H + 2, W + 2, Cin), lambda i: (i, 0, 0, 0)),
                pl.BlockSpec((9, Cin, Cout), lambda i: (0, 0, 0)),
                pl.BlockSpec((1, Cout), lambda i: (0, 0)),
            ],
            out_specs=pl.BlockSpec((bt, H, W, Cout), lambda i: (i, 0, 0, 0)),
        ),
        compiler_params=pltpu.CompilerParams(dimension_semantics=("parallel",)),
    )(xp.astype(ACT_DTYPE), w9.astype(ACT_DTYPE),
      shift.reshape(1, Cout).astype(jnp.float32))


def conv3x3_bn_lrelu_head(x_nhwc, conv_w, conv_b, bn_g, bn_b, bn_m, bn_v,
                          fc_w, fc_b, bt):
    """conv3 + BN + leaky_relu fused with maxpool/avgpool/Linear/sigmoid head."""
    B, H, W, Cin = x_nhwc.shape
    Cout = conv_w.shape[0]
    n_out = fc_w.shape[0]
    xp = jnp.pad(x_nhwc, ((0, 0), (1, 1), (1, 1), (0, 0)))
    inv, shift = _fold_bn(conv_b, bn_g, bn_b, bn_m, bn_v)
    w9 = jnp.transpose(conv_w, (2, 3, 1, 0)).reshape(9, Cin, Cout) * inv[None, None, :]

    out = pl.pallas_call(
        _conv3x3_head_kernel,
        out_shape=jax.ShapeDtypeStruct((B, 1, n_out), jnp.float32),
        grid_spec=pltpu.PrefetchScalarGridSpec(
            num_scalar_prefetch=0,
            grid=(B // bt,),
            in_specs=[
                pl.BlockSpec((bt, H + 2, W + 2, Cin), lambda i: (i, 0, 0, 0)),
                pl.BlockSpec((9, Cin, Cout), lambda i: (0, 0, 0)),
                pl.BlockSpec((1, Cout), lambda i: (0, 0)),
                pl.BlockSpec((Cout, n_out), lambda i: (0, 0)),
                pl.BlockSpec((1, n_out), lambda i: (0, 0)),
            ],
            out_specs=pl.BlockSpec((bt, 1, n_out), lambda i: (i, 0, 0)),
        ),
        compiler_params=pltpu.CompilerParams(dimension_semantics=("parallel",)),
    )(xp.astype(ACT_DTYPE), w9.astype(ACT_DTYPE),
      shift.reshape(1, Cout).astype(jnp.float32),
      jnp.transpose(fc_w).astype(jnp.float32),
      fc_b.reshape(1, n_out).astype(jnp.float32))
    return out.reshape(B, n_out)


# ---------------------------------------------------------------------------
# Full forward pass
# ---------------------------------------------------------------------------
def cnn_forward(x_nchw, p):
    x = jnp.transpose(x_nchw, (0, 2, 3, 1))            # NCHW -> NHWC (lanes = C)
    B = x.shape[0]
    bt = _pick_bt(B)
    h = conv1_bn_lrelu(x, p["c1_w"], p["c1_b"],
                       p["bn1_g"], p["bn1_b"], p["bn1_m"], p["bn1_v"], bt)
    h = conv3x3_bn_lrelu(h, p["c2_w"], p["c2_b"],
                         p["bn2_g"], p["bn2_b"], p["bn2_m"], p["bn2_v"], bt)
    return conv3x3_bn_lrelu_head(h, p["c3_w"], p["c3_b"],
                                 p["bn3_g"], p["bn3_b"], p["bn3_m"], p["bn3_v"],
                                 p["fc_w"], p["fc_b"], bt)


def init_params(key, input_channel=1, n_outputs=10, width=128):
    ks = list(jax.random.split(key, 32))
    k_iter = iter(ks)

    def conv_init(cout, cin):
        fan_in = cin * 9
        w = jax.random.normal(next(k_iter), (cout, cin, 3, 3), jnp.float32)
        w = w / jnp.sqrt(float(fan_in))
        b = 0.1 * jax.random.normal(next(k_iter), (cout,), jnp.float32)
        return w, b

    def bn_init(c):
        g = 1.0 + 0.1 * jax.random.normal(next(k_iter), (c,), jnp.float32)
        b = 0.1 * jax.random.normal(next(k_iter), (c,), jnp.float32)
        m = 0.1 * jax.random.normal(next(k_iter), (c,), jnp.float32)
        v = 1.0 + 0.5 * jax.random.uniform(next(k_iter), (c,), jnp.float32)
        return g, b, m, v

    p = {}
    p["c1_w"], p["c1_b"] = conv_init(width, input_channel)
    p["c2_w"], p["c2_b"] = conv_init(width, width)
    p["c3_w"], p["c3_b"] = conv_init(width, width)
    p["bn1_g"], p["bn1_b"], p["bn1_m"], p["bn1_v"] = bn_init(width)
    p["bn2_g"], p["bn2_b"], p["bn2_m"], p["bn2_v"] = bn_init(width)
    p["bn3_g"], p["bn3_b"], p["bn3_m"], p["bn3_v"] = bn_init(width)
    p["fc_w"] = jax.random.normal(next(k_iter), (n_outputs, width),
                                  jnp.float32) / jnp.sqrt(float(width))
    p["fc_b"] = 0.1 * jax.random.normal(next(k_iter), (n_outputs,), jnp.float32)
    return p


if __name__ == "__main__":
    key = jax.random.PRNGKey(0)
    kx, kp = jax.random.split(key)

    B, Cin, H, W = 2, 1, 16, 16     # MNIST-style single-channel input
    n_out = 10

    x = jax.random.normal(kx, (B, Cin, H, W), jnp.float32)   # PyTorch NCHW
    params = init_params(kp, input_channel=Cin, n_outputs=n_out)

    fwd = jax.jit(cnn_forward)
    y = jax.block_until_ready(fwd(x, params))

    assert y.shape == (B, n_out), y.shape
    assert bool(jnp.all(jnp.isfinite(y))), "non-finite output"
    assert bool(jnp.all((y >= 0.0) & (y <= 1.0))), "sigmoid range violated"
    print("KERNEL_OK")
</pallas_src>

<mosaic_0001>
module attributes {stable_mosaic.version = 11 : i64} {
  func.func @_conv1_kernel(%arg0: i32, %arg1: memref<1x256x9xf32, #tpu.memory_space<vmem>>, %arg2: memref<9x128xf32, #tpu.memory_space<vmem>>, %arg3: memref<1x128xf32, #tpu.memory_space<vmem>>, %arg4: memref<1x16x16x128xf32, #tpu.memory_space<vmem>>) attributes {dimension_semantics = [#tpu.dimension_semantics<parallel>], iteration_bounds = array<i64: 2>, scalar_prefetch = 0 : i64, scratch_operands = 0 : i64, tpu.core_type = #tpu.core_type<tc>, window_params = [{transform_indices = @transform_0, window_bounds = array<i64: 1, 256, 9>}, {pipeline_mode = #tpu.pipeline_mode<synchronous>, transform_indices = @transform_1, window_bounds = array<i64: 9, 128>}, {pipeline_mode = #tpu.pipeline_mode<synchronous>, transform_indices = @transform_2, window_bounds = array<i64: 1, 128>}, {transform_indices = @transform_3, window_bounds = array<i64: 1, 16, 16, 128>}]} {
    %c0 = arith.constant 0 : index
    %c0_0 = arith.constant 0 : index
    %c0_1 = arith.constant 0 : index
    %0 = vector.load %arg1[%c0, %c0_0, %c0_1] : memref<1x256x9xf32, #tpu.memory_space<vmem>>, vector<1x256x9xf32>
    %1 = vector.shape_cast %0 : vector<1x256x9xf32> to vector<256x9xf32>
    %c0_2 = arith.constant 0 : index
    %c0_3 = arith.constant 0 : index
    %2 = vector.load %arg2[%c0_2, %c0_3] : memref<9x128xf32, #tpu.memory_space<vmem>>, vector<9x128xf32>
    %cst = arith.constant dense<0.000000e+00> : vector<256x128xf32>
    %3 = tpu.matmul %1, %2, %cst {dimension_numbers = #tpu.dot_dimension_numbers<[1], [0], [0], [1], [0, 0, 1, 1], [], []>} : vector<256x9xf32>, vector<9x128xf32>, vector<256x128xf32> -> vector<256x128xf32>
    %c0_4 = arith.constant 0 : index
    %c0_5 = arith.constant 0 : index
    %4 = vector.load %arg3[%c0_4, %c0_5] : memref<1x128xf32, #tpu.memory_space<vmem>>, vector<1x128xf32>
    %5 = vector.broadcast %4 : vector<1x128xf32> to vector<256x128xf32>
    %6 = arith.addf %3, %5 : vector<256x128xf32>
    %cst_6 = arith.constant 0.000000e+00 : f32
    %7 = vector.broadcast %cst_6 : f32 to vector<256x128xf32>
    %8 = arith.cmpf oge, %6, %7 : vector<256x128xf32>
    %cst_7 = arith.constant 0.00999999977 : f32
    %9 = vector.broadcast %cst_7 : f32 to vector<256x128xf32>
    %10 = arith.mulf %9, %6 : vector<256x128xf32>
    %11 = arith.select %8, %6, %10 : vector<256x128xi1>, vector<256x128xf32>
    %12 = vector.shape_cast %11 : vector<256x128xf32> to vector<1x16x16x128xf32>
    %c0_8 = arith.constant 0 : index
    %c0_9 = arith.constant 0 : index
    %c0_10 = arith.constant 0 : index
    %c0_11 = arith.constant 0 : index
    %13 = vector.load %arg4[%c0_8, %c0_9, %c0_10, %c0_11] : memref<1x16x16x128xf32, #tpu.memory_space<vmem>>, vector<1x16x16x128xf32>
    tpu.vector_store %arg4[%c0_8, %c0_9, %c0_10, %c0_11], %12 {strides = array<i32>} : memref<1x16x16x128xf32, #tpu.memory_space<vmem>>, vector<1x16x16x128xf32>,
    return
  }
  func.func @transform_0(%arg0: i32) -> (i32, i32, i32) {
    %c0_i32 = arith.constant 0 : i32
    %c0_i32_0 = arith.constant 0 : i32
    %c0_i32_1 = arith.constant 0 : i32
    return %arg0, %c0_i32, %c0_i32_0 : i32, i32, i32
  }
  func.func @transform_1(%arg0: i32) -> (i32, i32) {
    %c0_i32 = arith.constant 0 : i32
    %c0_i32_0 = arith.constant 0 : i32
    %c0_i32_1 = arith.constant 0 : i32
    return %c0_i32, %c0_i32_0 : i32, i32
  }
  func.func @transform_2(%arg0: i32) -> (i32, i32) {
    %c0_i32 = arith.constant 0 : i32
    %c0_i32_0 = arith.constant 0 : i32
    %c0_i32_1 = arith.constant 0 : i32
    return %c0_i32, %c0_i32_0 : i32, i32
  }
  func.func @transform_3(%arg0: i32) -> (i32, i32, i32, i32) {
    %c0_i32 = arith.constant 0 : i32
    %c0_i32_0 = arith.constant 0 : i32
    %c0_i32_1 = arith.constant 0 : i32
    %c0_i32_2 = arith.constant 0 : i32
    return %arg0, %c0_i32, %c0_i32_0, %c0_i32_1 : i32, i32, i32, i32
  }
}

module attributes {stable_mosaic.version = 11 : i64} {
  func.func @_conv3x3_kernel(%arg0: i32, %arg1: memref<1x18x18x128xf32, #tpu.memory_space<vmem>>, %arg2: memref<9x128x128xf32, #tpu.memory_space<vmem>>, %arg3: memref<1x128xf32, #tpu.memory_space<vmem>>, %arg4: memref<1x16x16x128xf32, #tpu.memory_space<vmem>>) attributes {dimension_semantics = [#tpu.dimension_semantics<parallel>], iteration_bounds = array<i64: 2>, scalar_prefetch = 0 : i64, scratch_operands = 0 : i64, tpu.core_type = #tpu.core_type<tc>, window_params = [{transform_indices = @transform_0, window_bounds = array<i64: 1, 18, 18, 128>}, {pipeline_mode = #tpu.pipeline_mode<synchronous>, transform_indices = @transform_1, window_bounds = array<i64: 9, 128, 128>}, {pipeline_mode = #tpu.pipeline_mode<synchronous>, transform_indices = @transform_2, window_bounds = array<i64: 1, 128>}, {transform_indices = @transform_3, window_bounds = array<i64: 1, 16, 16, 128>}]} {
    %c0 = arith.constant 0 : index
    %c0_0 = arith.constant 0 : index
    %c0_1 = arith.constant 0 : index
    %c0_2 = arith.constant 0 : index
    %0 = vector.load %arg1[%c0, %c0_0, %c0_1, %c0_2] : memref<1x18x18x128xf32, #tpu.memory_space<vmem>>, vector<1x16x16x128xf32>
    %1 = vector.shape_cast %0 : vector<1x16x16x128xf32> to vector<256x128xf32>
    %c0_3 = arith.constant 0 : index
    %c0_4 = arith.constant 0 : index
    %c0_5 = arith.constant 0 : index
    %2 = vector.load %arg2[%c0_3, %c0_4, %c0_5] : memref<9x128x128xf32, #tpu.memory_space<vmem>>, vector<1x128x128xf32>
    %3 = vector.shape_cast %2 : vector<1x128x128xf32> to vector<128x128xf32>
    %cst = arith.constant dense<0.000000e+00> : vector<256x128xf32>
    %4 = tpu.matmul %1, %3, %cst {dimension_numbers = #tpu.dot_dimension_numbers<[1], [0], [0], [1], [0, 0, 1, 1], [], []>} : vector<256x128xf32>, vector<128x128xf32>, vector<256x128xf32> -> vector<256x128xf32>
    %c0_6 = arith.constant 0 : index
    %c0_7 = arith.constant 0 : index
    %c1 = arith.constant 1 : index
    %c0_8 = arith.constant 0 : index
    %5 = vector.load %arg1[%c0_6, %c0_7, %c1, %c0_8] : memref<1x18x18x128xf32, #tpu.memory_space<vmem>>, vector<1x16x16x128xf32>
    %6 = vector.shape_cast %5 : vector<1x16x16x128xf32> to vector<256x128xf32>
    %c1_9 = arith.constant 1 : index
    %c0_10 = arith.constant 0 : index
    %c0_11 = arith.constant 0 : index
    %7 = vector.load %arg2[%c1_9, %c0_10, %c0_11] : memref<9x128x128xf32, #tpu.memory_space<vmem>>, vector<1x128x128xf32>
    %8 = vector.shape_cast %7 : vector<1x128x128xf32> to vector<128x128xf32>
    %cst_12 = arith.constant dense<0.000000e+00> : vector<256x128xf32>
    %9 = tpu.matmul %6, %8, %cst_12 {dimension_numbers = #tpu.dot_dimension_numbers<[1], [0], [0], [1], [0, 0, 1, 1], [], []>} : vector<256x128xf32>, vector<128x128xf32>, vector<256x128xf32> -> vector<256x128xf32>
    %10 = arith.addf %4, %9 : vector<256x128xf32>
    %c0_13 = arith.constant 0 : index
    %c0_14 = arith.constant 0 : index
    %c2 = arith.constant 2 : index
    %c0_15 = arith.constant 0 : index
    %11 = vector.load %arg1[%c0_13, %c0_14, %c2, %c0_15] : memref<1x18x18x128xf32, #tpu.memory_space<vmem>>, vector<1x16x16x128xf32>
    %12 = vector.shape_cast %11 : vector<1x16x16x128xf32> to vector<256x128xf32>
    %c2_16 = arith.constant 2 : index
    %c0_17 = arith.constant 0 : index
    %c0_18 = arith.constant 0 : index
    %13 = vector.load %arg2[%c2_16, %c0_17, %c0_18] : memref<9x128x128xf32, #tpu.memory_space<vmem>>, vector<1x128x128xf32>
    %14 = vector.shape_cast %13 : vector<1x128x128xf32> to vector<128x128xf32>
    %cst_19 = arith.constant dense<0.000000e+00> : vector<256x128xf32>
    %15 = tpu.matmul %12, %14, %cst_19 {dimension_numbers = #tpu.dot_dimension_numbers<[1], [0], [0], [1], [0, 0, 1, 1], [], []>} : vector<256x128xf32>, vector<128x128xf32>, vector<256x128xf32> -> vector<256x128xf32>
    %16 = arith.addf %10, %15 : vector<256x128xf32>
    %c0_20 = arith.constant 0 : index
    %c1_21 = arith.constant 1 : index
    %c0_22 = arith.constant 0 : index
    %c0_23 = arith.constant 0 : index
    %17 = vector.load %arg1[%c0_20, %c1_21, %c0_22, %c0_23] : memref<1x18x18x128xf32, #tpu.memory_space<vmem>>, vector<1x16x16x128xf32>
    %18 = vector.shape_cast %17 : vector<1x16x16x128xf32> to vector<256x128xf32>
    %c3 = arith.constant 3 : index
    %c0_24 = arith.constant 0 : index
    %c0_25 = arith.constant 0 : index
    %19 = vector.load %arg2[%c3, %c0_24, %c0_25] : memref<9x128x128xf32, #tpu.memory_space<vmem>>, vector<1x128x128xf32>
    %20 = vector.shape_cast %19 : vector<1x128x128xf32> to vector<128x128xf32>
    %cst_26 = arith.constant dense<0.000000e+00> : vector<256x128xf32>
    %21 = tpu.matmul %18, %20, %cst_26 {dimension_numbers = #tpu.dot_dimension_numbers<[1], [0], [0], [1], [0, 0, 1, 1], [], []>} : vector<256x128xf32>, vector<128x128xf32>, vector<256x128xf32> -> vector<256x128xf32>
    %22 = arith.addf %16, %21 : vector<256x128xf32>
    %c0_27 = arith.constant 0 : index
    %c1_28 = arith.constant 1 : index
    %c1_29 = arith.constant 1 : index
    %c0_30 = arith.constant 0 : index
    %23 = vector.load %arg1[%c0_27, %c1_28, %c1_29, %c0_30] : memref<1x18x18x128xf32, #tpu.memory_space<vmem>>, vector<1x16x16x128xf32>
    %24 = vector.shape_cast %23 : vector<1x16x16x128xf32> to vector<256x128xf32>
    %c4 = arith.constant 4 : index
    %c0_31 = arith.constant 0 : index
    %c0_32 = arith.constant 0 : index
    %25 = vector.load %arg2[%c4, %c0_31, %c0_32] : memref<9x128x128xf32, #tpu.memory_space<vmem>>, vector<1x128x128xf32>
    %26 = vector.shape_cast %25 : vector<1x128x128xf32> to vector<128x128xf32>
    %cst_33 = arith.constant dense<0.000000e+00> : vector<256x128xf32>
    %27 = tpu.matmul %24, %26, %cst_33 {dimension_numbers = #tpu.dot_dimension_numbers<[1], [0], [0], [1], [0, 0, 1, 1], [], []>} : vector<256x128xf32>, vector<128x128xf32>, vector<256x128xf32> -> vector<256x128xf32>
    %28 = arith.addf %22, %27 : vector<256x128xf32>
    %c0_34 = arith.constant 0 : index
    %c1_35 = arith.constant 1 : index
    %c2_36 = arith.constant 2 : index
    %c0_37 = arith.constant 0 : index
    %29 = vector.load %arg1[%c0_34, %c1_35, %c2_36, %c0_37] : memref<1x18x18x128xf32, #tpu.memory_space<vmem>>, vector<1x16x16x128xf32>
    %30 = vector.shape_cast %29 : vector<1x16x16x128xf32> to vector<256x128xf32>
    %c5 = arith.constant 5 : index
    %c0_38 = arith.constant 0 : index
    %c0_39 = arith.constant 0 : index
    %31 = vector.load %arg2[%c5, %c0_38, %c0_39] : memref<9x128x128xf32, #tpu.memory_space<vmem>>, vector<1x128x128xf32>
    %32 = vector.shape_cast %31 : vector<1x128x128xf32> to vector<128x128xf32>
    %cst_40 = arith.constant dense<0.000000e+00> : vector<256x128xf32>
    %33 = tpu.matmul %30, %32, %cst_40 {dimension_numbers = #tpu.dot_dimension_numbers<[1], [0], [0], [1], [0, 0, 1, 1], [], []>} : vector<256x128xf32>, vector<128x128xf32>, vector<256x128xf32> -> vector<256x128xf32>
    %34 = arith.addf %28, %33 : vector<256x128xf32>
    %c0_41 = arith.constant 0 : index
    %c2_42 = arith.constant 2 : index
    %c0_43 = arith.constant 0 : index
    %c0_44 = arith.constant 0 : index
    %35 = vector.load %arg1[%c0_41, %c2_42, %c0_43, %c0_44] : memref<1x18x18x128xf32, #tpu.memory_space<vmem>>, vector<1x16x16x128xf32>
    %36 = vector.shape_cast %35 : vector<1x16x16x128xf32> to vector<256x128xf32>
    %c6 = arith.constant 6 : index
    %c0_45 = arith.constant 0 : index
    %c0_46 = arith.constant 0 : index
    %37 = vector.load %arg2[%c6, %c0_45, %c0_46] : memref<9x128x128xf32, #tpu.memory_space<vmem>>, vector<1x128x128xf32>
    %38 = vector.shape_cast %37 : vector<1x128x128xf32> to vector<128x128xf32>
    %cst_47 = arith.constant dense<0.000000e+00> : vector<256x128xf32>
    %39 = tpu.matmul %36, %38, %cst_47 {dimension_numbers = #tpu.dot_dimension_numbers<[1], [0], [0], [1], [0, 0, 1, 1], [], []>} : vector<256x128xf32>, vector<128x128xf32>, vector<256x128xf32> -> vector<256x128xf32>
    %40 = arith.addf %34, %39 : vector<256x128xf32>
    %c0_48 = arith.constant 0 : index
    %c2_49 = arith.constant 2 : index
    %c1_50 = arith.constant 1 : index
    %c0_51 = arith.constant 0 : index
    %41 = vector.load %arg1[%c0_48, %c2_49, %c1_50, %c0_51] : memref<1x18x18x128xf32, #tpu.memory_space<vmem>>, vector<1x16x16x128xf32>
    %42 = vector.shape_cast %41 : vector<1x16x16x128xf32> to vector<256x128xf32>
    %c7 = arith.constant 7 : index
    %c0_52 = arith.constant 0 : index
    %c0_53 = arith.constant 0 : index
    %43 = vector.load %arg2[%c7, %c0_52, %c0_53] : memref<9x128x128xf32, #tpu.memory_space<vmem>>, vector<1x128x128xf32>
    %44 = vector.shape_cast %43 : vector<1x128x128xf32> to vector<128x128xf32>
    %cst_54 = arith.constant dense<0.000000e+00> : vector<256x128xf32>
    %45 = tpu.matmul %42, %44, %cst_54 {dimension_numbers = #tpu.dot_dimension_numbers<[1], [0], [0], [1], [0, 0, 1, 1], [], []>} : vector<256x128xf32>, vector<128x128xf32>, vector<256x128xf32> -> vector<256x128xf32>
    %46 = arith.addf %40, %45 : vector<256x128xf32>
    %c0_55 = arith.constant 0 : index
    %c2_56 = arith.constant 2 : index
    %c2_57 = arith.constant 2 : index
    %c0_58 = arith.constant 0 : index
    %47 = vector.load %arg1[%c0_55, %c2_56, %c2_57, %c0_58] : memref<1x18x18x128xf32, #tpu.memory_space<vmem>>, vector<1x16x16x128xf32>
    %48 = vector.shape_cast %47 : vector<1x16x16x128xf32> to vector<256x128xf32>
    %c8 = arith.constant 8 : index
    %c0_59 = arith.constant 0 : index
    %c0_60 = arith.constant 0 : index
    %49 = vector.load %arg2[%c8, %c0_59, %c0_60] : memref<9x128x128xf32, #tpu.memory_space<vmem>>, vector<1x128x128xf32>
    %50 = vector.shape_cast %49 : vector<1x128x128xf32> to vector<128x128xf32>
    %cst_61 = arith.constant dense<0.000000e+00> : vector<256x128xf32>
    %51 = tpu.matmul %48, %50, %cst_61 {dimension_numbers = #tpu.dot_dimension_numbers<[1], [0], [0], [1], [0, 0, 1, 1], [], []>} : vector<256x128xf32>, vector<128x128xf32>, vector<256x128xf32> -> vector<256x128xf32>
    %52 = arith.addf %46, %51 : vector<256x128xf32>
    %c0_62 = arith.constant 0 : index
    %c0_63 = arith.constant 0 : index
    %53 = vector.load %arg3[%c0_62, %c0_63] : memref<1x128xf32, #tpu.memory_space<vmem>>, vector<1x128xf32>
    %54 = vector.broadcast %53 : vector<1x128xf32> to vector<256x128xf32>
    %55 = arith.addf %52, %54 : vector<256x128xf32>
    %cst_64 = arith.constant 0.000000e+00 : f32
    %56 = vector.broadcast %cst_64 : f32 to vector<256x128xf32>
    %57 = arith.cmpf oge, %55, %56 : vector<256x128xf32>
    %cst_65 = arith.constant 0.00999999977 : f32
    %58 = vector.broadcast %cst_65 : f32 to vector<256x128xf32>
    %59 = arith.mulf %58, %55 : vector<256x128xf32>
    %60 = arith.select %57, %55, %59 : vector<256x128xi1>, vector<256x128xf32>
    %61 = vector.shape_cast %60 : vector<256x128xf32> to vector<1x16x16x128xf32>
    %c0_66 = arith.constant 0 : index
    %c0_67 = arith.constant 0 : index
    %c0_68 = arith.constant 0 : index
    %c0_69 = arith.constant 0 : index
    %62 = vector.load %arg4[%c0_66, %c0_67, %c0_68, %c0_69] : memref<1x16x16x128xf32, #tpu.memory_space<vmem>>, vector<1x16x16x128xf32>
    tpu.vector_store %arg4[%c0_66, %c0_67, %c0_68, %c0_69], %61 {strides = array<i32>} : memref<1x16x16x128xf32, #tpu.memory_space<vmem>>, vector<1x16x16x128xf32>,
    return
  }
  func.func @transform_0(%arg0: i32) -> (i32, i32, i32, i32) {
    %c0_i32 = arith.constant 0 : i32
    %c0_i32_0 = arith.constant 0 : i32
    %c0_i32_1 = arith.constant 0 : i32
    %c0_i32_2 = arith.constant 0 : i32
    return %arg0, %c0_i32, %c0_i32_0, %c0_i32_1 : i32, i32, i32, i32
  }
  func.func @transform_1(%arg0: i32) -> (i32, i32, i32) {
    %c0_i32 = arith.constant 0 : i32
    %c0_i32_0 = arith.constant 0 : i32
    %c0_i32_1 = arith.constant 0 : i32
    %c0_i32_2 = arith.constant 0 : i32
    return %c0_i32, %c0_i32_0, %c0_i32_1 : i32, i32, i32
  }
  func.func @transform_2(%arg0: i32) -> (i32, i32) {
    %c0_i32 = arith.constant 0 : i32
    %c0_i32_0 = arith.constant 0 : i32
    %c0_i32_1 = arith.constant 0 : i32
    return %c0_i32, %c0_i32_0 : i32, i32
  }
  func.func @transform_3(%arg0: i32) -> (i32, i32, i32, i32) {
    %c0_i32 = arith.constant 0 : i32
    %c0_i32_0 = arith.constant 0 : i32
    %c0_i32_1 = arith.constant 0 : i32
    %c0_i32_2 = arith.constant 0 : i32
    return %arg0, %c0_i32, %c0_i32_0, %c0_i32_1 : i32, i32, i32, i32
  }
}

module attributes {stable_mosaic.version = 11 : i64} {
  func.func @_conv3x3_head_kernel(%arg0: i32, %arg1: memref<1x18x18x128xf32, #tpu.memory_space<vmem>>, %arg2: memref<9x128x128xf32, #tpu.memory_space<vmem>>, %arg3: memref<1x128xf32, #tpu.memory_space<vmem>>, %arg4: memref<128x10xf32, #tpu.memory_space<vmem>>, %arg5: memref<1x10xf32, #tpu.memory_space<vmem>>, %arg6: memref<1x1x10xf32, #tpu.memory_space<vmem>>) attributes {dimension_semantics = [#tpu.dimension_semantics<parallel>], iteration_bounds = array<i64: 2>, scalar_prefetch = 0 : i64, scratch_operands = 0 : i64, tpu.core_type = #tpu.core_type<tc>, window_params = [{transform_indices = @transform_0, window_bounds = array<i64: 1, 18, 18, 128>}, {pipeline_mode = #tpu.pipeline_mode<synchronous>, transform_indices = @transform_1, window_bounds = array<i64: 9, 128, 128>}, {pipeline_mode = #tpu.pipeline_mode<synchronous>, transform_indices = @transform_2, window_bounds = array<i64: 1, 128>}, {pipeline_mode = #tpu.pipeline_mode<synchronous>, transform_indices = @transform_3, window_bounds = array<i64: 128, 10>}, {pipeline_mode = #tpu.pipeline_mode<synchronous>, transform_indices = @transform_4, window_bounds = array<i64: 1, 10>}, {transform_indices = @transform_5, window_bounds = array<i64: 1, 1, 10>}]} {
    %c0 = arith.constant 0 : index
    %c0_0 = arith.constant 0 : index
    %c0_1 = arith.constant 0 : index
    %c0_2 = arith.constant 0 : index
    %0 = vector.load %arg1[%c0, %c0_0, %c0_1, %c0_2] : memref<1x18x18x128xf32, #tpu.memory_space<vmem>>, vector<1x16x16x128xf32>
    %1 = vector.shape_cast %0 : vector<1x16x16x128xf32> to vector<256x128xf32>
    %c0_3 = arith.constant 0 : index
    %c0_4 = arith.constant 0 : index
    %c0_5 = arith.constant 0 : index
    %2 = vector.load %arg2[%c0_3, %c0_4, %c0_5] : memref<9x128x128xf32, #tpu.memory_space<vmem>>, vector<1x128x128xf32>
    %3 = vector.shape_cast %2 : vector<1x128x128xf32> to vector<128x128xf32>
    %cst = arith.constant dense<0.000000e+00> : vector<256x128xf32>
    %4 = tpu.matmul %1, %3, %cst {dimension_numbers = #tpu.dot_dimension_numbers<[1], [0], [0], [1], [0, 0, 1, 1], [], []>} : vector<256x128xf32>, vector<128x128xf32>, vector<256x128xf32> -> vector<256x128xf32>
    %c0_6 = arith.constant 0 : index
    %c0_7 = arith.constant 0 : index
    %c1 = arith.constant 1 : index
    %c0_8 = arith.constant 0 : index
    %5 = vector.load %arg1[%c0_6, %c0_7, %c1, %c0_8] : memref<1x18x18x128xf32, #tpu.memory_space<vmem>>, vector<1x16x16x128xf32>
    %6 = vector.shape_cast %5 : vector<1x16x16x128xf32> to vector<256x128xf32>
    %c1_9 = arith.constant 1 : index
    %c0_10 = arith.constant 0 : index
    %c0_11 = arith.constant 0 : index
    %7 = vector.load %arg2[%c1_9, %c0_10, %c0_11] : memref<9x128x128xf32, #tpu.memory_space<vmem>>, vector<1x128x128xf32>
    %8 = vector.shape_cast %7 : vector<1x128x128xf32> to vector<128x128xf32>
    %cst_12 = arith.constant dense<0.000000e+00> : vector<256x128xf32>
    %9 = tpu.matmul %6, %8, %cst_12 {dimension_numbers = #tpu.dot_dimension_numbers<[1], [0], [0], [1], [0, 0, 1, 1], [], []>} : vector<256x128xf32>, vector<128x128xf32>, vector<256x128xf32> -> vector<256x128xf32>
    %10 = arith.addf %4, %9 : vector<256x128xf32>
    %c0_13 = arith.constant 0 : index
    %c0_14 = arith.constant 0 : index
    %c2 = arith.constant 2 : index
    %c0_15 = arith.constant 0 : index
    %11 = vector.load %arg1[%c0_13, %c0_14, %c2, %c0_15] : memref<1x18x18x128xf32, #tpu.memory_space<vmem>>, vector<1x16x16x128xf32>
    %12 = vector.shape_cast %11 : vector<1x16x16x128xf32> to vector<256x128xf32>
    %c2_16 = arith.constant 2 : index
    %c0_17 = arith.constant 0 : index
    %c0_18 = arith.constant 0 : index
    %13 = vector.load %arg2[%c2_16, %c0_17, %c0_18] : memref<9x128x128xf32, #tpu.memory_space<vmem>>, vector<1x128x128xf32>
    %14 = vector.shape_cast %13 : vector<1x128x128xf32> to vector<128x128xf32>
    %cst_19 = arith.constant dense<0.000000e+00> : vector<256x128xf32>
    %15 = tpu.matmul %12, %14, %cst_19 {dimension_numbers = #tpu.dot_dimension_numbers<[1], [0], [0], [1], [0, 0, 1, 1], [], []>} : vector<256x128xf32>, vector<128x128xf32>, vector<256x128xf32> -> vector<256x128xf32>
    %16 = arith.addf %10, %15 : vector<256x128xf32>
    %c0_20 = arith.constant 0 : index
    %c1_21 = arith.constant 1 : index
    %c0_22 = arith.constant 0 : index
    %c0_23 = arith.constant 0 : index
    %17 = vector.load %arg1[%c0_20, %c1_21, %c0_22, %c0_23] : memref<1x18x18x128xf32, #tpu.memory_space<vmem>>, vector<1x16x16x128xf32>
    %18 = vector.shape_cast %17 : vector<1x16x16x128xf32> to vector<256x128xf32>
    %c3 = arith.constant 3 : index
    %c0_24 = arith.constant 0 : index
    %c0_25 = arith.constant 0 : index
    %19 = vector.load %arg2[%c3, %c0_24, %c0_25] : memref<9x128x128xf32, #tpu.memory_space<vmem>>, vector<1x128x128xf32>
    %20 = vector.shape_cast %19 : vector<1x128x128xf32> to vector<128x128xf32>
    %cst_26 = arith.constant dense<0.000000e+00> : vector<256x128xf32>
    %21 = tpu.matmul %18, %20, %cst_26 {dimension_numbers = #tpu.dot_dimension_numbers<[1], [0], [0], [1], [0, 0, 1, 1], [], []>} : vector<256x128xf32>, vector<128x128xf32>, vector<256x128xf32> -> vector<256x128xf32>
    %22 = arith.addf %16, %21 : vector<256x128xf32>
    %c0_27 = arith.constant 0 : index
    %c1_28 = arith.constant 1 : index
    %c1_29 = arith.constant 1 : index
    %c0_30 = arith.constant 0 : index
    %23 = vector.load %arg1[%c0_27, %c1_28, %c1_29, %c0_30] : memref<1x18x18x128xf32, #tpu.memory_space<vmem>>, vector<1x16x16x128xf32>
    %24 = vector.shape_cast %23 : vector<1x16x16x128xf32> to vector<256x128xf32>
    %c4 = arith.constant 4 : index
    %c0_31 = arith.constant 0 : index
    %c0_32 = arith.constant 0 : index
    %25 = vector.load %arg2[%c4, %c0_31, %c0_32] : memref<9x128x128xf32, #tpu.memory_space<vmem>>, vector<1x128x128xf32>
    %26 = vector.shape_cast %25 : vector<1x128x128xf32> to vector<128x128xf32>
    %cst_33 = arith.constant dense<0.000000e+00> : vector<256x128xf32>
    %27 = tpu.matmul %24, %26, %cst_33 {dimension_numbers = #tpu.dot_dimension_numbers<[1], [0], [0], [1], [0, 0, 1, 1], [], []>} : vector<256x128xf32>, vector<128x128xf32>, vector<256x128xf32> -> vector<256x128xf32>
    %28 = arith.addf %22, %27 : vector<256x128xf32>
    %c0_34 = arith.constant 0 : index
    %c1_35 = arith.constant 1 : index
    %c2_36 = arith.constant 2 : index
    %c0_37 = arith.constant 0 : index
    %29 = vector.load %arg1[%c0_34, %c1_35, %c2_36, %c0_37] : memref<1x18x18x128xf32, #tpu.memory_space<vmem>>, vector<1x16x16x128xf32>
    %30 = vector.shape_cast %29 : vector<1x16x16x128xf32> to vector<256x128xf32>
    %c5 = arith.constant 5 : index
    %c0_38 = arith.constant 0 : index
    %c0_39 = arith.constant 0 : index
    %31 = vector.load %arg2[%c5, %c0_38, %c0_39] : memref<9x128x128xf32, #tpu.memory_space<vmem>>, vector<1x128x128xf32>
    %32 = vector.shape_cast %31 : vector<1x128x128xf32> to vector<128x128xf32>
    %cst_40 = arith.constant dense<0.000000e+00> : vector<256x128xf32>
    %33 = tpu.matmul %30, %32, %cst_40 {dimension_numbers = #tpu.dot_dimension_numbers<[1], [0], [0], [1], [0, 0, 1, 1], [], []>} : vector<256x128xf32>, vector<128x128xf32>, vector<256x128xf32> -> vector<256x128xf32>
    %34 = arith.addf %28, %33 : vector<256x128xf32>
    %c0_41 = arith.constant 0 : index
    %c2_42 = arith.constant 2 : index
    %c0_43 = arith.constant 0 : index
    %c0_44 = arith.constant 0 : index
    %35 = vector.load %arg1[%c0_41, %c2_42, %c0_43, %c0_44] : memref<1x18x18x128xf32, #tpu.memory_space<vmem>>, vector<1x16x16x128xf32>
    %36 = vector.shape_cast %35 : vector<1x16x16x128xf32> to vector<256x128xf32>
    %c6 = arith.constant 6 : index
    %c0_45 = arith.constant 0 : index
    %c0_46 = arith.constant 0 : index
    %37 = vector.load %arg2[%c6, %c0_45, %c0_46] : memref<9x128x128xf32, #tpu.memory_space<vmem>>, vector<1x128x128xf32>
    %38 = vector.shape_cast %37 : vector<1x128x128xf32> to vector<128x128xf32>
    %cst_47 = arith.constant dense<0.000000e+00> : vector<256x128xf32>
    %39 = tpu.matmul %36, %38, %cst_47 {dimension_numbers = #tpu.dot_dimension_numbers<[1], [0], [0], [1], [0, 0, 1, 1], [], []>} : vector<256x128xf32>, vector<128x128xf32>, vector<256x128xf32> -> vector<256x128xf32>
    %40 = arith.addf %34, %39 : vector<256x128xf32>
    %c0_48 = arith.constant 0 : index
    %c2_49 = arith.constant 2 : index
    %c1_50 = arith.constant 1 : index
    %c0_51 = arith.constant 0 : index
    %41 = vector.load %arg1[%c0_48, %c2_49, %c1_50, %c0_51] : memref<1x18x18x128xf32, #tpu.memory_space<vmem>>, vector<1x16x16x128xf32>
    %42 = vector.shape_cast %41 : vector<1x16x16x128xf32> to vector<256x128xf32>
    %c7 = arith.constant 7 : index
    %c0_52 = arith.constant 0 : index
    %c0_53 = arith.constant 0 : index
    %43 = vector.load %arg2[%c7, %c0_52, %c0_53] : memref<9x128x128xf32, #tpu.memory_space<vmem>>, vector<1x128x128xf32>
    %44 = vector.shape_cast %43 : vector<1x128x128xf32> to vector<128x128xf32>
    %cst_54 = arith.constant dense<0.000000e+00> : vector<256x128xf32>
    %45 = tpu.matmul %42, %44, %cst_54 {dimension_numbers = #tpu.dot_dimension_numbers<[1], [0], [0], [1], [0, 0, 1, 1], [], []>} : vector<256x128xf32>, vector<128x128xf32>, vector<256x128xf32> -> vector<256x128xf32>
    %46 = arith.addf %40, %45 : vector<256x128xf32>
    %c0_55 = arith.constant 0 : index
    %c2_56 = arith.constant 2 : index
    %c2_57 = arith.constant 2 : index
    %c0_58 = arith.constant 0 : index
    %47 = vector.load %arg1[%c0_55, %c2_56, %c2_57, %c0_58] : memref<1x18x18x128xf32, #tpu.memory_space<vmem>>, vector<1x16x16x128xf32>
    %48 = vector.shape_cast %47 : vector<1x16x16x128xf32> to vector<256x128xf32>
    %c8 = arith.constant 8 : index
    %c0_59 = arith.constant 0 : index
    %c0_60 = arith.constant 0 : index
    %49 = vector.load %arg2[%c8, %c0_59, %c0_60] : memref<9x128x128xf32, #tpu.memory_space<vmem>>, vector<1x128x128xf32>
    %50 = vector.shape_cast %49 : vector<1x128x128xf32> to vector<128x128xf32>
    %cst_61 = arith.constant dense<0.000000e+00> : vector<256x128xf32>
    %51 = tpu.matmul %48, %50, %cst_61 {dimension_numbers = #tpu.dot_dimension_numbers<[1], [0], [0], [1], [0, 0, 1, 1], [], []>} : vector<256x128xf32>, vector<128x128xf32>, vector<256x128xf32> -> vector<256x128xf32>
    %52 = arith.addf %46, %51 : vector<256x128xf32>
    %c0_62 = arith.constant 0 : index
    %c0_63 = arith.constant 0 : index
    %53 = vector.load %arg3[%c0_62, %c0_63] : memref<1x128xf32, #tpu.memory_space<vmem>>, vector<1x128xf32>
    %54 = vector.broadcast %53 : vector<1x128xf32> to vector<256x128xf32>
    %55 = arith.addf %52, %54 : vector<256x128xf32>
    %cst_64 = arith.constant 0.000000e+00 : f32
    %56 = vector.broadcast %cst_64 : f32 to vector<256x128xf32>
    %57 = arith.cmpf oge, %55, %56 : vector<256x128xf32>
    %cst_65 = arith.constant 0.00999999977 : f32
    %58 = vector.broadcast %cst_65 : f32 to vector<256x128xf32>
    %59 = arith.mulf %58, %55 : vector<256x128xf32>
    %60 = arith.select %57, %55, %59 : vector<256x128xi1>, vector<256x128xf32>
    %61 = vector.shape_cast %60 : vector<256x128xf32> to vector<1x8x2x16x128xf32>
    %62 = vector.extract_strided_slice %61 {offsets = [0, 0, 0, 0, 0], sizes = [1, 8, 1, 16, 128], strides = [1, 1, 1, 1, 1]} : vector<1x8x2x16x128xf32> to vector<1x8x1x16x128xf32>
    %63 = vector.shape_cast %62 : vector<1x8x1x16x128xf32> to vector<1x8x16x128xf32>
    %64 = vector.extract_strided_slice %61 {offsets = [0, 0, 1, 0, 0], sizes = [1, 8, 1, 16, 128], strides = [1, 1, 1, 1, 1]} : vector<1x8x2x16x128xf32> to vector<1x8x1x16x128xf32>
    %65 = vector.shape_cast %64 : vector<1x8x1x16x128xf32> to vector<1x8x16x128xf32>
    %66 = arith.maximumf %63, %65 : vector<1x8x16x128xf32>
    %67 = vector.extract_strided_slice %66 {offsets = [0, 0, 0, 0], sizes = [1, 8, 15, 128], strides = [1, 1, 1, 1]} : vector<1x8x16x128xf32> to vector<1x8x15x128xf32>
    %68 = vector.extract_strided_slice %66 {offsets = [0, 0, 1, 0], sizes = [1, 8, 15, 128], strides = [1, 1, 1, 1]} : vector<1x8x16x128xf32> to vector<1x8x15x128xf32>
    %69 = arith.maximumf %67, %68 : vector<1x8x15x128xf32>
    %70 = tpu.iota {dimensions = array<i32: 0>} : vector<15x128xi32>
    %c2_i32 = arith.constant 2 : i32
    %c0_i32 = arith.constant 0 : i32
    %71 = arith.cmpi eq, %c2_i32, %c0_i32 : i32
    %c1_i32 = arith.constant 1 : i32
    %72 = arith.select %71, %c1_i32, %c2_i32 : i32
    %73 = vector.broadcast %72 : i32 to vector<15x128xi32>
    %74 = arith.remsi %70, %73 : vector<15x128xi32>
    %c0_i32_66 = arith.constant 0 : i32
    %75 = vector.broadcast %c0_i32_66 : i32 to vector<15x128xi32>
    %76 = arith.cmpi ne, %74, %75 : vector<15x128xi32>
    %c0_i32_67 = arith.constant 0 : i32
    %77 = vector.broadcast %c0_i32_67 : i32 to vector<15x128xi32>
    %78 = arith.cmpi slt, %74, %77 : vector<15x128xi32>
    %c0_i32_68 = arith.constant 0 : i32
    %79 = arith.cmpi slt, %72, %c0_i32_68 : i32
    %80 = vector.broadcast %79 : i1 to vector<15x128xi1>
    %81 = vector.broadcast %80 : vector<15x128xi1> to vector<15x128xi1>
    %82 = arith.xori %78, %81 : vector<15x128xi1>
    %83 = arith.andi %82, %76 : vector<15x128xi1>
    %84 = vector.broadcast %72 : i32 to vector<15x128xi32>
    %85 = arith.addi %74, %84 : vector<15x128xi32>
    %86 = arith.select %83, %85, %74 : vector<15x128xi1>, vector<15x128xi32>
    %c0_i32_69 = arith.constant 0 : i32
    %87 = vector.broadcast %c0_i32_69 : i32 to vector<15x128xi32>
    %88 = arith.cmpi eq, %86, %87 : vector<15x128xi32>
    %cst_70 = arith.constant 0.000000e+00 : f32
    %89 = vector.shape_cast %88 : vector<15x128xi1> to vector<1x1x15x128xi1>
    %90 = vector.broadcast %89 : vector<1x1x15x128xi1> to vector<1x8x15x128xi1>
    %91 = vector.broadcast %cst_70 : f32 to vector<1x8x15x128xf32>
    %92 = arith.select %90, %69, %91 : vector<1x8x15x128xi1>, vector<1x8x15x128xf32>
    %cst_71 = arith.constant dense<0.000000e+00> : vector<1x128xf32>
    %93 = vector.multi_reduction <add>, %92, %cst_71 [1, 2] : vector<1x8x15x128xf32> to vector<1x128xf32>
    %cst_72 = arith.constant 1.562500e-02 : f32
    %94 = vector.broadcast %cst_72 : f32 to vector<1x128xf32>
    %95 = arith.mulf %93, %94 : vector<1x128xf32>
    %c0_73 = arith.constant 0 : index
    %c0_74 = arith.constant 0 : index
    %96 = vector.load %arg4[%c0_73, %c0_74] : memref<128x10xf32, #tpu.memory_space<vmem>>, vector<128x10xf32>
    %cst_75 = arith.constant dense<0.000000e+00> : vector<1x10xf32>
    %97 = tpu.matmul %95, %96, %cst_75 {dimension_numbers = #tpu.dot_dimension_numbers<[1], [0], [0], [1], [0, 0, 1, 1], [], []>} : vector<1x128xf32>, vector<128x10xf32>, vector<1x10xf32> -> vector<1x10xf32>
    %c0_76 = arith.constant 0 : index
    %c0_77 = arith.constant 0 : index
    %98 = vector.load %arg5[%c0_76, %c0_77] : memref<1x10xf32, #tpu.memory_space<vmem>>, vector<1x10xf32>
    %99 = arith.addf %97, %98 : vector<1x10xf32>
    %cst_78 = arith.constant 0.000000e+00 : f32
    %100 = vector.broadcast %cst_78 : f32 to vector<1x10xf32>
    %101 = arith.subf %100, %99 : vector<1x10xf32>
    %102 = math.exp %101 : vector<1x10xf32>
    %cst_79 = arith.constant 1.000000e+00 : f32
    %103 = vector.broadcast %cst_79 : f32 to vector<1x10xf32>
    %104 = arith.addf %103, %102 : vector<1x10xf32>
    %cst_80 = arith.constant 1.000000e+00 : f32
    %105 = vector.broadcast %cst_80 : f32 to vector<1x10xf32>
    %106 = arith.divf %105, %104 : vector<1x10xf32>
    %c0_81 = arith.constant 0 : index
    %c0_82 = arith.constant 0 : index
    %c0_83 = arith.constant 0 : index
    %107 = vector.load %arg6[%c0_81, %c0_82, %c0_83] : memref<1x1x10xf32, #tpu.memory_space<vmem>>, vector<1x1x10xf32>
    %108 = vector.shape_cast %107 : vector<1x1x10xf32> to vector<1x10xf32>
    %109 = vector.shape_cast %106 : vector<1x10xf32> to vector<1x1x10xf32>
    tpu.vector_store %arg6[%c0_81, %c0_82, %c0_83], %109 {strides = array<i32>} : memref<1x1x10xf32, #tpu.memory_space<vmem>>, vector<1x1x10xf32>,
    return
  }
  func.func @transform_0(%arg0: i32) -> (i32, i32, i32, i32) {
    %c0_i32 = arith.constant 0 : i32
    %c0_i32_0 = arith.constant 0 : i32
    %c0_i32_1 = arith.constant 0 : i32
    %c0_i32_2 = arith.constant 0 : i32
    return %arg0, %c0_i32, %c0_i32_0, %c0_i32_1 : i32, i32, i32, i32
  }
  func.func @transform_1(%arg0: i32) -> (i32, i32, i32) {
    %c0_i32 = arith.constant 0 : i32
    %c0_i32_0 = arith.constant 0 : i32
    %c0_i32_1 = arith.constant 0 : i32
    %c0_i32_2 = arith.constant 0 : i32
    return %c0_i32, %c0_i32_0, %c0_i32_1 : i32, i32, i32
  }
  func.func @transform_2(%arg0: i32) -> (i32, i32) {
    %c0_i32 = arith.constant 0 : i32
    %c0_i32_0 = arith.constant 0 : i32
    %c0_i32_1 = arith.constant 0 : i32
    return %c0_i32, %c0_i32_0 : i32, i32
  }
  func.func @transform_3(%arg0: i32) -> (i32, i32) {
    %c0_i32 = arith.constant 0 : i32
    %c0_i32_0 = arith.constant 0 : i32
    %c0_i32_1 = arith.constant 0 : i32
    return %c0_i32, %c0_i32_0 : i32, i32
  }
  func.func @transform_4(%arg0: i32) -> (i32, i32) {
    %c0_i32 = arith.constant 0 : i32
    %c0_i32_0 = arith.constant 0 : i32
    %c0_i32_1 = arith.constant 0 : i32
    return %c0_i32, %c0_i32_0 : i32, i32
  }
  func.func @transform_5(%arg0: i32) -> (i32, i32, i32) {
    %c0_i32 = arith.constant 0 : i32
    %c0_i32_0 = arith.constant 0 : i32
    %c0_i32_1 = arith.constant 0 : i32
    return %arg0, %c0_i32, %c0_i32_0 : i32, i32, i32
  }
}

</mosaic_0001>

<bundles_post_ra>
// kernel: cnn_forward.3
= control target key start
LH: loop header
LB: loop body
LE: loop exit
PB: predicated region body
PF: predicated region fallthrough
CT: control target
= control target key end

     0   :  { %s894_s12 = smov 0   ;;  %s1061_s0 = inlined_call_operand.vmem [shape: f32[2,256,9], index: 0, kind: input, shape index: {}]   ;;  %s1062_s1 = inlined_call_operand.vmem [shape: f32[9,128], index: 1, kind: input, shape index: {}]   ;;  %s1063_s2 = inlined_call_operand.vmem [shape: f32[1,128], index: 2, kind: input, shape index: {}]   ;;  %s1064_s3 = inlined_call_operand.vmem [shape: f32[2,16,16,128], index: 3, kind: output, shape index: {}]  }
   0x1 LB: > { %s721_s13 = sadd.s32 4294967295, %s872_s12   ;;  %p725_p0 = scmp.ge.s32.totalorder %s872_s12, 1  ;;  %s872_s12 = sphi %s894_s12, %s13_s12  }
   0x2   : > { %p137_p1 = scmp.lt.s32.totalorder %s872_s12, 3 }
   0x4   : > { %p138_p2 = pnand %p725_p0, %p137_p1 }
   0x5   : > { %p161_p3 = scmp.lt.s32.totalorder (!%p138_p2), %s721_s13, 1 }
   0x6   : > { %141 = sbr.rel (%p138_p2) target bundleno = 247 (0xf7), region = 32 }
   0xb   : > { %v204_v0 = vld [vmem:[%s1062_s1 + $0x8] sm:$0x1]  ;;  %vm309_vm0 = vcmask 1040384   ;;  %v203_v1 = vld [vmem:[%s1062_s1] sm:$0xff]  ;;  %s1066_s13 = smov (!%p161_p3, %s721_s13), 1  ;;  %vm212_vm1 = vcmask 72704  }
   0xc   : > { %802 = vmatprep.subr.msk.mxu0 %vm309_vm0, %v204_v0  ;;  %854 = vmatprep.subr.msk.mxu1 %vm309_vm0, %v204_v0  ;;  %s766_s18 = sshll.u32 %s1066_s13, 8  ;;  %v985_v34 = vld [vmem:[%s1063_s2] ss:$0 sm:$0xff] }
   0xd   : > { %803 = vmatpush3.msk.msra.mxu0 %vm309_vm0, %v204_v0  ;;  %856 = vmatpush3.msk.msra.mxu1 %vm309_vm0, %v204_v0  ;;  %s916_s21 = scalar_lea.vmem %s1061_s0, %s766_s18  ;;  %s994_s26 = scalar_lea.vmem %s1064_s3, %s766_s18 }
   0xe   : > { %804 = vmatprep.subr.mxu0 %v203_v1  ;;  %855 = vmatprep.subr.mxu1 %v203_v1  ;;  %v171_v2 = vld [vmem:[%s916_s21] sm:$0xff]  ;;  %v172_v4 = vld [vmem:[%s916_s21 + $0x8] sm:$0xff]  ;;  %v173_v6 = vld [vmem:[%s916_s21 + $0x10] sm:$0xff] }
   0xf   : > { %805 = vmatpush3.msra.mxu0 %v203_v1  ;;  %857 = vmatpush3.msra.mxu1 %v203_v1  ;;  %v187_v3 = vld [vmem:[%s916_s21 + $0x80] sm:$0xff]  ;;  %v188_v5 = vld [vmem:[%s916_s21 + $0x88] sm:$0xff]  ;;  %v189_v7 = vld [vmem:[%s916_s21 + $0x90] sm:$0xff] }
  0x10   : > { %806 = vmatprep.mubr.msk.f32.mxu0 %vm212_vm1, %v171_v2  ;;  %830 = vmatprep.mubr.msk.f32.mxu1 %vm212_vm1, %v187_v3  ;;  %v174_v8 = vld [vmem:[%s916_s21 + $0x18] sm:$0xff]  ;;  %v175_v10 = vld [vmem:[%s916_s21 + $0x20] sm:$0xff]  ;;  %v176_v12 = vld [vmem:[%s916_s21 + $0x28] sm:$0xff] }
  0x11   : > { %807 = vmatmul.mubr.msk.f32.vlgmr.msra.gmra.mxu0 %vm212_vm1, %v172_v4  ;;  %831 = vmatmul.mubr.msk.f32.vlgmr.msra.gmra.mxu1 %vm212_vm1, %v188_v5  ;;  %v190_v9 = vld [vmem:[%s916_s21 + $0x98] sm:$0xff]  ;;  %v191_v11 = vld [vmem:[%s916_s21 + $0xa0] sm:$0xff]  ;;  %v192_v13 = vld [vmem:[%s916_s21 + $0xa8] sm:$0xff] }
  0x12   : > { %809 = vmatprep.mubr.msk.f32.mxu0 %vm212_vm1, %v173_v6  ;;  %833 = vmatprep.mubr.msk.f32.mxu1 %vm212_vm1, %v189_v7  ;;  %v177_v14 = vld [vmem:[%s916_s21 + $0x30] sm:$0xff]  ;;  %v178_v16 = vld [vmem:[%s916_s21 + $0x38] sm:$0xff]  ;;  %v179_v18 = vld [vmem:[%s916_s21 + $0x40] sm:$0xff] }
  0x13   : > { %v193_v15 = vld [vmem:[%s916_s21 + $0xb0] sm:$0xff]  ;;  %v194_v17 = vld [vmem:[%s916_s21 + $0xb8] sm:$0xff]  ;;  %v195_v19 = vld [vmem:[%s916_s21 + $0xc0] sm:$0xff] }
  0x14   : > { %v180_v20 = vld [vmem:[%s916_s21 + $0x48] sm:$0xff]  ;;  %v181_v22 = vld [vmem:[%s916_s21 + $0x50] sm:$0xff]  ;;  %v182_v24 = vld [vmem:[%s916_s21 + $0x58] sm:$0xff] }
  0x15   : > { %810 = vmatmul.mubr.msk.f32.gmra.mxu0 %vm212_vm1, %v174_v8  ;;  %834 = vmatmul.mubr.msk.f32.gmra.mxu1 %vm212_vm1, %v190_v9  ;;  %v196_v21 = vld [vmem:[%s916_s21 + $0xc8] sm:$0xff]  ;;  %v197_v23 = vld [vmem:[%s916_s21 + $0xd0] sm:$0xff]  ;;  %v198_v25 = vld [vmem:[%s916_s21 + $0xd8] sm:$0xff] }
  0x16   : > { %812 = vmatprep.mubr.msk.f32.mxu0 %vm212_vm1, %v175_v10  ;;  %836 = vmatprep.mubr.msk.f32.mxu1 %vm212_vm1, %v191_v11  ;;  %v183_v26 = vld [vmem:[%s916_s21 + $0x60] sm:$0xff]  ;;  %v184_v28 = vld [vmem:[%s916_s21 + $0x68] sm:$0xff]  ;;  %v185_v30 = vld [vmem:[%s916_s21 + $0x70] sm:$0xff] }
  0x17   : > { %v199_v27 = vld [vmem:[%s916_s21 + $0xe0] sm:$0xff]  ;;  %v200_v29 = vld [vmem:[%s916_s21 + $0xe8] sm:$0xff]  ;;  %v201_v31 = vld [vmem:[%s916_s21 + $0xf0] sm:$0xff] }
  0x18   : > { %v186_v32 = vld [vmem:[%s916_s21 + $0x78] sm:$0xff] }
  0x19   : > { %813 = vmatmul.mubr.msk.f32.gmra.mxu0 %vm212_vm1, %v176_v12  ;;  %837 = vmatmul.mubr.msk.f32.gmra.mxu1 %vm212_vm1, %v192_v13  ;;  %v202_v33 = vld [vmem:[%s916_s21 + $0xf8] sm:$0xff] }
  0x1a   : > { %815 = vmatprep.mubr.msk.f32.mxu0 %vm212_vm1, %v177_v14  ;;  %839 = vmatprep.mubr.msk.f32.mxu1 %vm212_vm1, %v193_v15 }
  0x1d   : > { %816 = vmatmul.mubr.msk.f32.gmra.mxu0 %vm212_vm1, %v178_v16  ;;  %840 = vmatmul.mubr.msk.f32.gmra.mxu1 %vm212_vm1, %v194_v17 }
  0x1e   : > { %818 = vmatprep.mubr.msk.f32.mxu0 %vm212_vm1, %v179_v18  ;;  %842 = vmatprep.mubr.msk.f32.mxu1 %vm212_vm1, %v195_v19 }
  0x21   : > { %819 = vmatmul.mubr.msk.f32.gmra.mxu0 %vm212_vm1, %v180_v20  ;;  %843 = vmatmul.mubr.msk.f32.gmra.mxu1 %vm212_vm1, %v196_v21 }
  0x22   : > { %821 = vmatprep.mubr.msk.f32.mxu0 %vm212_vm1, %v181_v22  ;;  %845 = vmatprep.mubr.msk.f32.mxu1 %vm212_vm1, %v197_v23 }
  0x25   : > { %822 = vmatmul.mubr.msk.f32.gmra.mxu0 %vm212_vm1, %v182_v24  ;;  %846 = vmatmul.mubr.msk.f32.gmra.mxu1 %vm212_vm1, %v198_v25 }
  0x26   : > { %824 = vmatprep.mubr.msk.f32.mxu0 %vm212_vm1, %v183_v26  ;;  %848 = vmatprep.mubr.msk.f32.mxu1 %vm212_vm1, %v199_v27 }
  0x29   : > { %825 = vmatmul.mubr.msk.f32.gmra.mxu0 %vm212_vm1, %v184_v28  ;;  %849 = vmatmul.mubr.msk.f32.gmra.mxu1 %vm212_vm1, %v200_v29 }
  0x2a   : > { %827 = vmatprep.mubr.msk.f32.mxu0 %vm212_vm1, %v185_v30  ;;  %851 = vmatprep.mubr.msk.f32.mxu1 %vm212_vm1, %v201_v31 }
  0x2d   : > { %828 = vmatmul.mubr.msk.f32.gmra.mxu0 %vm212_vm1, %v186_v32  ;;  %852 = vmatmul.mubr.msk.f32.gmra.mxu1 %vm212_vm1, %v202_v33 }
  0xd1   : > { %v808_v35 = vpop.f32.mrf.mxu0  ;;  %v832_v36 = vpop.f32.mrf.mxu1 }
  0xd2   : > { %v385_v37 = vadd.f32 %v808_v35, %v985_v34  ;;  %v465_v38 = vadd.f32 %v832_v36, %v985_v34 }
  0xd3   : > { %v379_v39 = vpop.f32.mrf.mxu0  ;;  %v459_v40 = vpop.f32.mrf.mxu1 }
  0xd4   : > { %vm539_vm2 = vcmp.ge.f32.partialorder %v385_v37, 0.0  ;;  %v571_v41 = vmul.f32 0.01, %v385_v37  ;;  %vm555_vm3 = vcmp.ge.f32.partialorder %v465_v38, 0.0  ;;  %v587_v42 = vmul.f32 0.01, %v465_v38 }
  0xd5   : > { %v380_v43 = vadd.f32 %v985_v34, %v379_v39  ;;  %v460_v44 = vadd.f32 %v985_v34, %v459_v40  ;;  %v811_v45 = vpop.f32.mrf.mxu0  ;;  %v835_v46 = vpop.f32.mrf.mxu1 }
  0xd6   : > { %v603_v47 = vsel %vm539_vm2, %v385_v37, %v571_v41  ;;  %v619_v48 = vsel %vm555_vm3, %v465_v38, %v587_v42  ;;  %v395_v49 = vadd.f32 %v811_v45, %v985_v34  ;;  %v475_v50 = vadd.f32 %v835_v46, %v985_v34 }
  0xd7   : > { %635 = vst [vmem:[%s994_s26 + $0x8] sm:$0xff] %v603_v47  ;;  %651 = vst [vmem:[%s994_s26 + $0x88] sm:$0xff] %v619_v48  ;;  %vm538_vm4 = vcmp.ge.f32.partialorder %v380_v43, 0.0  ;;  %v570_v51 = vmul.f32 0.01, %v380_v43  ;;  %vm554_vm5 = vcmp.ge.f32.partialorder %v460_v44, 0.0  ;;  %v389_v53 = vpop.f32.mrf.mxu0  ;;  %v469_v54 = vpop.f32.mrf.mxu1 }
  0xd8   : > { %v586_v52 = vmul.f32 0.01, %v460_v44  ;;  %vm541_vm6 = vcmp.ge.f32.partialorder %v395_v49, 0.0  ;;  %v573_v55 = vmul.f32 0.01, %v395_v49  ;;  %vm557_vm7 = vcmp.ge.f32.partialorder %v475_v50, 0.0 }
  0xd9   : > { %v589_v56 = vmul.f32 0.01, %v475_v50  ;;  %v602_v57 = vsel %vm538_vm4, %v380_v43, %v570_v51  ;;  %v390_v59 = vadd.f32 %v985_v34, %v389_v53  ;;  %v470_v60 = vadd.f32 %v985_v34, %v469_v54  ;;  %v814_v61 = vpop.f32.mrf.mxu0  ;;  %v838_v62 = vpop.f32.mrf.mxu1 }
  0xda   : > { %v618_v58 = vsel %vm554_vm5, %v460_v44, %v586_v52  ;;  %634 = vst [vmem:[%s994_s26] sm:$0xff] %v602_v57  ;;  %v605_v63 = vsel %vm541_vm6, %v395_v49, %v573_v55  ;;  %v405_v1 = vadd.f32 %v814_v61, %v985_v34  ;;  %v485_v2 = vadd.f32 %v838_v62, %v985_v34 }
  0xdb   : > { %650 = vst [vmem:[%s994_s26 + $0x80] sm:$0xff] %v618_v58  ;;  %v621_v0 = vsel %vm557_vm7, %v475_v50, %v589_v56  ;;  %637 = vst [vmem:[%s994_s26 + $0x18] sm:$0xff] %v605_v63  ;;  %vm540_vm8 = vcmp.ge.f32.partialorder %v390_v59, 0.0  ;;  %v572_v3 = vmul.f32 0.01, %v390_v59  ;;  %vm556_vm9 = vcmp.ge.f32.partialorder %v470_v60, 0.0  ;;  %v399_v5 = vpop.f32.mrf.mxu0  ;;  %v479_v6 = vpop.f32.mrf.mxu1 }
  0xdc   : > { %653 = vst [vmem:[%s994_s26 + $0x98] sm:$0xff] %v621_v0  ;;  %v588_v4 = vmul.f32 0.01, %v470_v60  ;;  %vm543_vm10 = vcmp.ge.f32.partialorder %v405_v1, 0.0  ;;  %v575_v7 = vmul.f32 0.01, %v405_v1  ;;  %v400_v11 = vadd.f32 %v985_v34, %v399_v5 }
  0xdd   : > { %vm559_vm11 = vcmp.ge.f32.partialorder %v485_v2, 0.0  ;;  %v591_v8 = vmul.f32 0.01, %v485_v2  ;;  %v604_v9 = vsel %vm540_vm8, %v390_v59, %v572_v3  ;;  %v480_v12 = vadd.f32 %v985_v34, %v479_v6  ;;  %v817_v13 = vpop.f32.mrf.mxu0  ;;  %v841_v14 = vpop.f32.mrf.mxu1 }
  0xde   : > { %v620_v10 = vsel %vm556_vm9, %v470_v60, %v588_v4  ;;  %636 = vst [vmem:[%s994_s26 + $0x10] sm:$0xff] %v604_v9  ;;  %v607_v15 = vsel %vm543_vm10, %v405_v1, %v575_v7  ;;  %v415_v17 = vadd.f32 %v817_v13, %v985_v34  ;;  %v495_v18 = vadd.f32 %v841_v14, %v985_v34 }
  0xdf   : > { %652 = vst [vmem:[%s994_s26 + $0x90] sm:$0xff] %v620_v10  ;;  %v623_v16 = vsel %vm559_vm11, %v485_v2, %v591_v8  ;;  %639 = vst [vmem:[%s994_s26 + $0x28] sm:$0xff] %v607_v15  ;;  %vm542_vm12 = vcmp.ge.f32.partialorder %v400_v11, 0.0  ;;  %v574_v19 = vmul.f32 0.01, %v400_v11  ;;  %vm558_vm13 = vcmp.ge.f32.partialorder %v480_v12, 0.0  ;;  %v409_v21 = vpop.f32.mrf.mxu0  ;;  %v489_v22 = vpop.f32.mrf.mxu1 }
  0xe0   : > { %655 = vst [vmem:[%s994_s26 + $0xa8] sm:$0xff] %v623_v16  ;;  %v590_v20 = vmul.f32 0.01, %v480_v12  ;;  %vm545_vm14 = vcmp.ge.f32.partialorder %v415_v17, 0.0  ;;  %v577_v23 = vmul.f32 0.01, %v415_v17  ;;  %v410_v27 = vadd.f32 %v985_v34, %v409_v21 }
  0xe1   : > { %vm561_vm15 = vcmp.ge.f32.partialorder %v495_v18, 0.0  ;;  %v593_v24 = vmul.f32 0.01, %v495_v18  ;;  %v606_v25 = vsel %vm542_vm12, %v400_v11, %v574_v19  ;;  %v490_v28 = vadd.f32 %v985_v34, %v489_v22  ;;  %v820_v29 = vpop.f32.mrf.mxu0  ;;  %v844_v30 = vpop.f32.mrf.mxu1 }
  0xe2   : > { %v622_v26 = vsel %vm558_vm13, %v480_v12, %v590_v20  ;;  %638 = vst [vmem:[%s994_s26 + $0x20] sm:$0xff] %v606_v25  ;;  %v609_v31 = vsel %vm545_vm14, %v415_v17, %v577_v23  ;;  %v425_v33 = vadd.f32 %v820_v29, %v985_v34  ;;  %v505_v35 = vadd.f32 %v844_v30, %v985_v34 }
  0xe3   : > { %654 = vst [vmem:[%s994_s26 + $0xa0] sm:$0xff] %v622_v26  ;;  %v625_v32 = vsel %vm561_vm15, %v495_v18, %v593_v24  ;;  %641 = vst [vmem:[%s994_s26 + $0x38] sm:$0xff] %v609_v31  ;;  %vm544_vm0 = vcmp.ge.f32.partialorder %v410_v27, 0.0  ;;  %v576_v36 = vmul.f32 0.01, %v410_v27  ;;  %vm560_vm1 = vcmp.ge.f32.partialorder %v490_v28, 0.0  ;;  %v419_v38 = vpop.f32.mrf.mxu0  ;;  %v499_v39 = vpop.f32.mrf.mxu1 }
  0xe4   : > { %657 = vst [vmem:[%s994_s26 + $0xb8] sm:$0xff] %v625_v32  ;;  %v592_v37 = vmul.f32 0.01, %v490_v28  ;;  %vm547_vm2 = vcmp.ge.f32.partialorder %v425_v33, 0.0  ;;  %v579_v40 = vmul.f32 0.01, %v425_v33  ;;  %v420_v44 = vadd.f32 %v985_v34, %v419_v38 }
  0xe5   : > { %vm563_vm3 = vcmp.ge.f32.partialorder %v505_v35, 0.0  ;;  %v595_v41 = vmul.f32 0.01, %v505_v35  ;;  %v608_v42 = vsel %vm544_vm0, %v410_v27, %v576_v36  ;;  %v500_v45 = vadd.f32 %v985_v34, %v499_v39  ;;  %v823_v46 = vpop.f32.mrf.mxu0  ;;  %v847_v47 = vpop.f32.mrf.mxu1 }
  0xe6   : > { %v624_v43 = vsel %vm560_vm1, %v490_v28, %v592_v37  ;;  %640 = vst [vmem:[%s994_s26 + $0x30] sm:$0xff] %v608_v42  ;;  %v611_v48 = vsel %vm547_vm2, %v425_v33, %v579_v40  ;;  %v435_v50 = vadd.f32 %v823_v46, %v985_v34  ;;  %v515_v51 = vadd.f32 %v847_v47, %v985_v34 }
  0xe7   : > { %656 = vst [vmem:[%s994_s26 + $0xb0] sm:$0xff] %v624_v43  ;;  %v627_v49 = vsel %vm563_vm3, %v505_v35, %v595_v41  ;;  %643 = vst [vmem:[%s994_s26 + $0x48] sm:$0xff] %v611_v48  ;;  %vm546_vm4 = vcmp.ge.f32.partialorder %v420_v44, 0.0  ;;  %v578_v52 = vmul.f32 0.01, %v420_v44  ;;  %vm562_vm5 = vcmp.ge.f32.partialorder %v500_v45, 0.0  ;;  %v429_v54 = vpop.f32.mrf.mxu0  ;;  %v509_v55 = vpop.f32.mrf.mxu1 }
  0xe8   : > { %659 = vst [vmem:[%s994_s26 + $0xc8] sm:$0xff] %v627_v49  ;;  %v594_v53 = vmul.f32 0.01, %v500_v45  ;;  %vm549_vm6 = vcmp.ge.f32.partialorder %v435_v50, 0.0  ;;  %v581_v56 = vmul.f32 0.01, %v435_v50  ;;  %v430_v60 = vadd.f32 %v985_v34, %v429_v54 }
  0xe9   : > { %vm565_vm7 = vcmp.ge.f32.partialorder %v515_v51, 0.0  ;;  %v597_v57 = vmul.f32 0.01, %v515_v51  ;;  %v610_v58 = vsel %vm546_vm4, %v420_v44, %v578_v52  ;;  %v510_v61 = vadd.f32 %v985_v34, %v509_v55  ;;  %v826_v62 = vpop.f32.mrf.mxu0  ;;  %v850_v63 = vpop.f32.mrf.mxu1 }
  0xea   : > { %v626_v59 = vsel %vm562_vm5, %v500_v45, %v594_v53  ;;  %642 = vst [vmem:[%s994_s26 + $0x40] sm:$0xff] %v610_v58  ;;  %v613_v0 = vsel %vm549_vm6, %v435_v50, %v581_v56  ;;  %v445_v2 = vadd.f32 %v826_v62, %v985_v34  ;;  %v525_v3 = vadd.f32 %v850_v63, %v985_v34 }
  0xeb   : > { %658 = vst [vmem:[%s994_s26 + $0xc0] sm:$0xff] %v626_v59  ;;  %v629_v1 = vsel %vm565_vm7, %v515_v51, %v597_v57  ;;  %645 = vst [vmem:[%s994_s26 + $0x58] sm:$0xff] %v613_v0  ;;  %vm548_vm8 = vcmp.ge.f32.partialorder %v430_v60, 0.0  ;;  %v580_v4 = vmul.f32 0.01, %v430_v60  ;;  %vm564_vm9 = vcmp.ge.f32.partialorder %v510_v61, 0.0  ;;  %v439_v6 = vpop.f32.mrf.mxu0  ;;  %v519_v7 = vpop.f32.mrf.mxu1 }
  0xec   : > { %661 = vst [vmem:[%s994_s26 + $0xd8] sm:$0xff] %v629_v1  ;;  %v596_v5 = vmul.f32 0.01, %v510_v61  ;;  %vm551_vm10 = vcmp.ge.f32.partialorder %v445_v2, 0.0  ;;  %v583_v8 = vmul.f32 0.01, %v445_v2  ;;  %v440_v12 = vadd.f32 %v985_v34, %v439_v6 }
  0xed   : > { %vm567_vm11 = vcmp.ge.f32.partialorder %v525_v3, 0.0  ;;  %v599_v9 = vmul.f32 0.01, %v525_v3  ;;  %v612_v10 = vsel %vm548_vm8, %v430_v60, %v580_v4  ;;  %v520_v13 = vadd.f32 %v985_v34, %v519_v7  ;;  %v829_v14 = vpop.f32.mrf.mxu0  ;;  %v853_v15 = vpop.f32.mrf.mxu1 }
  0xee   : > { %v628_v11 = vsel %vm564_vm9, %v510_v61, %v596_v5  ;;  %644 = vst [vmem:[%s994_s26 + $0x50] sm:$0xff] %v612_v10  ;;  %v615_v16 = vsel %vm551_vm10, %v445_v2, %v583_v8  ;;  %v455_v18 = vadd.f32 %v829_v14, %v985_v34  ;;  %v535_v19 = vadd.f32 %v853_v15, %v985_v34 }
  0xef   : > { %660 = vst [vmem:[%s994_s26 + $0xd0] sm:$0xff] %v628_v11  ;;  %v631_v17 = vsel %vm567_vm11, %v525_v3, %v599_v9  ;;  %647 = vst [vmem:[%s994_s26 + $0x68] sm:$0xff] %v615_v16  ;;  %vm550_vm12 = vcmp.ge.f32.partialorder %v440_v12, 0.0  ;;  %v582_v20 = vmul.f32 0.01, %v440_v12  ;;  %vm566_vm13 = vcmp.ge.f32.partialorder %v520_v13, 0.0  ;;  %v449_v22 = vpop.f32.mrf.mxu0  ;;  %v529_v23 = vpop.f32.mrf.mxu1 }
  0xf0   : > { %663 = vst [vmem:[%s994_s26 + $0xe8] sm:$0xff] %v631_v17  ;;  %v598_v21 = vmul.f32 0.01, %v520_v13  ;;  %vm553_vm14 = vcmp.ge.f32.partialorder %v455_v18, 0.0  ;;  %v585_v24 = vmul.f32 0.01, %v455_v18  ;;  %v450_v28 = vadd.f32 %v985_v34, %v449_v22 }
  0xf1   : > { %vm569_vm15 = vcmp.ge.f32.partialorder %v535_v19, 0.0  ;;  %v601_v25 = vmul.f32 0.01, %v535_v19  ;;  %v614_v26 = vsel %vm550_vm12, %v440_v12, %v582_v20  ;;  %v530_v29 = vadd.f32 %v985_v34, %v529_v23 }
  0xf2   : > { %v630_v27 = vsel %vm566_vm13, %v520_v13, %v598_v21  ;;  %646 = vst [vmem:[%s994_s26 + $0x60] sm:$0xff] %v614_v26  ;;  %v617_v30 = vsel %vm553_vm14, %v455_v18, %v585_v24  ;;  %vm552_vm0 = vcmp.ge.f32.partialorder %v450_v28, 0.0  ;;  %v584_v32 = vmul.f32 0.01, %v450_v28 }
  0xf3   : > { %662 = vst [vmem:[%s994_s26 + $0xe0] sm:$0xff] %v630_v27  ;;  %v633_v31 = vsel %vm569_vm15, %v535_v19, %v601_v25  ;;  %649 = vst [vmem:[%s994_s26 + $0x78] sm:$0xff] %v617_v30  ;;  %vm568_vm1 = vcmp.ge.f32.partialorder %v530_v29, 0.0  ;;  %v600_v33 = vmul.f32 0.01, %v530_v29 }
  0xf4   : > { %665 = vst [vmem:[%s994_s26 + $0xf8] sm:$0xff] %v633_v31  ;;  %v616_v35 = vsel %vm552_vm0, %v450_v28, %v584_v32 }
  0xf5   : > { %v632_v36 = vsel %vm568_vm1, %v530_v29, %v600_v33  ;;  %648 = vst [vmem:[%s994_s26 + $0x70] sm:$0xff] %v616_v35 }
  0xf6   : > { %664 = vst [vmem:[%s994_s26 + $0xf0] sm:$0xff] %v632_v36 }
  0xf7 PF: > { %s13_s12 = sadd.s32 1, %s872_s12  }
  0xf8   : > { %p10_p4 = scmp.ge.s32.totalorder %s13_s12, 4  }
  0xfa   :  { %12 = sbr.rel (!%p10_p4) target bundleno = 1 (0x1), region = 62 }

// kernel: cnn_forward.4
= control target key start
LH: loop header
LB: loop body
LE: loop exit
PB: predicated region body
PF: predicated region fallthrough
CT: control target
= control target key end

     0   :  { %s4637_s12 = smov 0   ;;  %s6214_s0 = inlined_call_operand.vmem [shape: f32[2,18,18,128], index: 0, kind: input, shape index: {}]   ;;  %s6215_s1 = inlined_call_operand.vmem [shape: f32[9,128,128], index: 1, kind: input, shape index: {}]   ;;  %s6216_s2 = inlined_call_operand.vmem [shape: f32[1,128], index: 2, kind: input, shape index: {}]   ;;  %s6217_s3 = inlined_call_operand.vmem [shape: f32[2,16,16,128], index: 3, kind: output, shape index: {}]  }
   0x1 LB: > { %s3084_s13 = sadd.s32 4294967295, %s4615_s12   ;;  %p3088_p0 = scmp.ge.s32.totalorder %s4615_s12, 1  ;;  %s4615_s12 = sphi %s4637_s12, %s13_s12  }
   0x2   : > { %p137_p1 = scmp.lt.s32.totalorder %s4615_s12, 3 }
   0x4   : > { %p138_p2 = pnand %p3088_p0, %p137_p1 }
   0x6   : > { %141 = sbr.rel (%p138_p2) target bundleno = 549 (0x225), region = 32 }
   0xb   : > { %v3107_v0 = vld [vmem:[%s6215_s1 + $0xf8] sm:$0xff]  ;;  %v3106_v1 = vld [vmem:[%s6215_s1 + $0xf0] sm:$0xff]  ;;  %v3105_v2 = vld [vmem:[%s6215_s1 + $0xe8] sm:$0xff]  ;;  %p161_p3 = scmp.lt.s32.totalorder %s3084_s13, 1 }
   0xc   : > { %4568 = vmatprep.subr.mxu1 %v3107_v0  ;;  %3848 = vmatprep.subr.mxu0 %v3107_v0  ;;  %v3104_v3 = vld [vmem:[%s6215_s1 + $0xe0] sm:$0xff]  ;;  %v3103_v4 = vld [vmem:[%s6215_s1 + $0xd8] sm:$0xff]  ;;  %v3102_v5 = vld [vmem:[%s6215_s1 + $0xd0] sm:$0xff] }
   0xd   : > { %4584 = vmatpush3.msra.mxu1 %v3107_v0  ;;  %3849 = vmatpush3.msra.mxu0 %v3107_v0  ;;  %v3101_v6 = vld [vmem:[%s6215_s1 + $0xc8] sm:$0xff]  ;;  %v3100_v7 = vld [vmem:[%s6215_s1 + $0xc0] sm:$0xff]  ;;  %v3099_v8 = vld [vmem:[%s6215_s1 + $0xb8] sm:$0xff]  ;;  %s6389_s13 = smov (!%p161_p3, %s3084_s13), 1 }
   0xe   : > { %4569 = vmatprep.subr.mxu1 %v3106_v1  ;;  %3850 = vmatprep.subr.mxu0 %v3106_v1  ;;  %v3098_v9 = vld [vmem:[%s6215_s1 + $0xb0] sm:$0xff]  ;;  %v3097_v10 = vld [vmem:[%s6215_s1 + $0xa8] sm:$0xff]  ;;  %v3096_v11 = vld [vmem:[%s6215_s1 + $0xa0] sm:$0xff]  ;;  %s4600_s15 = smul.u32 432, %s6389_s13  ;;  %s3415_s17 = sshll.u32 %s6389_s13, 8 }
   0xf   : > { %4585 = vmatpush3.msra.mxu1 %v3106_v1  ;;  %3851 = vmatpush3.msra.mxu0 %v3106_v1  ;;  %v3095_v12 = vld [vmem:[%s6215_s1 + $0x98] sm:$0xff]  ;;  %v3094_v13 = vld [vmem:[%s6215_s1 + $0x90] sm:$0xff]  ;;  %v3093_v14 = vld [vmem:[%s6215_s1 + $0x88] sm:$0xff]  ;;  %s6070_s20 = scalar_lea.vmem %s6217_s3, %s3415_s17 }
  0x10   : > { %4570 = vmatprep.subr.mxu1 %v3105_v2  ;;  %3852 = vmatprep.subr.mxu0 %v3105_v2  ;;  %s4700_s22 = scalar_lea.vmem %s6214_s0, %s4600_s15  ;;  %v3092_v15 = vld [vmem:[%s6215_s1 + $0x80] sm:$0xff]  ;;  %v218_v19 = vld [vmem:[%s6215_s1 + $0x78] sm:$0xff]  ;;  %v217_v22 = vld [vmem:[%s6215_s1 + $0x70] sm:$0xff] }
  0x11   : > { %4586 = vmatpush3.msra.mxu1 %v3105_v2  ;;  %3853 = vmatpush3.msra.mxu0 %v3105_v2  ;;  %v4706_v16 = vld [vmem:[%s4700_s22 + $0xc1] sm:$0xff]  ;;  %v4710_v18 = vld [vmem:[%s4700_s22 + $0xc9] sm:$0xff]  ;;  %v3123_v21 = vld [vmem:[%s6215_s1 + $0x178] sm:$0xff] }
  0x12   : > { %4571 = vmatprep.subr.mxu1 %v3104_v3  ;;  %3854 = vmatprep.subr.mxu0 %v3104_v3  ;;  %v219_v17 = vld [vmem:[%s4700_s22 + $0x1] sm:$0xff]  ;;  %v220_v20 = vld [vmem:[%s4700_s22 + $0x9] sm:$0xff]  ;;  %v4725_v23 = vld [vmem:[%s4700_s22 + $0xd9] sm:$0xff] }
  0x13   : > { %4587 = vmatpush3.msra.mxu1 %v3104_v3  ;;  %3855 = vmatpush3.msra.mxu0 %v3104_v3  ;;  %v3122_v24 = vld [vmem:[%s6215_s1 + $0x170] sm:$0xff]  ;;  %v4731_v25 = vld [vmem:[%s4700_s22 + $0x19] sm:$0xff]  ;;  %v4734_v26 = vld [vmem:[%s4700_s22 + $0xe1] sm:$0xff] }
  0x14   : > { %4572 = vmatprep.subr.mxu1 %v3103_v4  ;;  %3856 = vmatprep.subr.mxu0 %v3103_v4  ;;  %v216_v27 = vld [vmem:[%s6215_s1 + $0x68] sm:$0xff]  ;;  %v215_v30 = vld [vmem:[%s6215_s1 + $0x60] sm:$0xff]  ;;  %v4752_v31 = vld [vmem:[%s4700_s22 + $0xf1] sm:$0xff] }
  0x15   : > { %4588 = vmatpush3.msra.mxu1 %v3103_v4  ;;  %3857 = vmatpush3.msra.mxu0 %v3103_v4  ;;  %v4741_v28 = vld [vmem:[%s4700_s22 + $0x21] sm:$0xff]  ;;  %v4759_v33 = vld [vmem:[%s4700_s22 + $0x31] sm:$0xff]  ;;  %v4762_v34 = vld [vmem:[%s4700_s22 + $0xf9] sm:$0xff] }
  0x16   : > { %4573 = vmatprep.subr.mxu1 %v3102_v5  ;;  %3858 = vmatprep.subr.mxu0 %v3102_v5  ;;  %v3121_v29 = vld [vmem:[%s6215_s1 + $0x168] sm:$0xff]  ;;  %v3120_v32 = vld [vmem:[%s6215_s1 + $0x160] sm:$0xff]  ;;  %v214_v35 = vld [vmem:[%s6215_s1 + $0x58] sm:$0xff] }
  0x17   : > { %4589 = vmatpush3.msra.mxu1 %v3102_v5  ;;  %3859 = vmatpush3.msra.mxu0 %v3102_v5  ;;  %v4769_v36 = vld [vmem:[%s4700_s22 + $0x39] sm:$0xff]  ;;  %v213_v38 = vld [vmem:[%s6215_s1 + $0x50] sm:$0xff]  ;;  %v212_v43 = vld [vmem:[%s6215_s1 + $0x48] sm:$0xff] }
  0x18   : > { %4574 = vmatprep.subr.mxu1 %v3101_v6  ;;  %3860 = vmatprep.subr.mxu0 %v3101_v6  ;;  %v3119_v37 = vld [vmem:[%s6215_s1 + $0x158] sm:$0xff]  ;;  %v4780_v39 = vld [vmem:[%s4700_s22 + $0x109] sm:$0xff]  ;;  %v211_v46 = vld [vmem:[%s6215_s1 + $0x40] sm:$0xff] }
  0x19   : > { %4590 = vmatpush3.msra.mxu1 %v3101_v6  ;;  %3861 = vmatpush3.msra.mxu0 %v3101_v6  ;;  %v3118_v40 = vld [vmem:[%s6215_s1 + $0x150] sm:$0xff]  ;;  %v3117_v45 = vld [vmem:[%s6215_s1 + $0x148] sm:$0xff]  ;;  %v3116_v48 = vld [vmem:[%s6215_s1 + $0x140] sm:$0xff] }
  0x1a   : > { %4575 = vmatprep.subr.mxu1 %v3100_v7  ;;  %3862 = vmatprep.subr.mxu0 %v3100_v7  ;;  %v4787_v41 = vld [vmem:[%s4700_s22 + $0x49] sm:$0xff]  ;;  %v4790_v42 = vld [vmem:[%s4700_s22 + $0x111] sm:$0xff]  ;;  %v4808_v47 = vld [vmem:[%s4700_s22 + $0x121] sm:$0xff] }
  0x1b   : > { %4591 = vmatpush3.msra.mxu1 %v3100_v7  ;;  %3863 = vmatpush3.msra.mxu0 %v3100_v7  ;;  %v4797_v44 = vld [vmem:[%s4700_s22 + $0x51] sm:$0xff]  ;;  %v4815_v49 = vld [vmem:[%s4700_s22 + $0x61] sm:$0xff]  ;;  %v4818_v50 = vld [vmem:[%s4700_s22 + $0x129] sm:$0xff] }
  0x1c   : > { %4576 = vmatprep.subr.mxu1 %v3099_v8  ;;  %3864 = vmatprep.subr.mxu0 %v3099_v8  ;;  %v210_v51 = vld [vmem:[%s6215_s1 + $0x38] sm:$0xff]  ;;  %v4825_v52 = vld [vmem:[%s4700_s22 + $0x69] sm:$0xff]  ;;  %v4846_v58 = vld [vmem:[%s4700_s22 + $0x141] sm:$0xff] }
  0x1d   : > { %4592 = vmatpush3.msra.mxu1 %v3099_v8  ;;  %3865 = vmatpush3.msra.mxu0 %v3099_v8  ;;  %v3115_v53 = vld [vmem:[%s6215_s1 + $0x138] sm:$0xff]  ;;  %v209_v54 = vld [vmem:[%s6215_s1 + $0x30] sm:$0xff]  ;;  %v208_v59 = vld [vmem:[%s6215_s1 + $0x28] sm:$0xff] }
  0x1e   : > { %4577 = vmatprep.subr.mxu1 %v3098_v9  ;;  %3866 = vmatprep.subr.mxu0 %v3098_v9  ;;  %v4836_v55 = vld [vmem:[%s4700_s22 + $0x139] sm:$0xff]  ;;  %v3114_v56 = vld [vmem:[%s6215_s1 + $0x130] sm:$0xff]  ;;  %v4853_v60 = vld [vmem:[%s4700_s22 + $0x81] sm:$0xff] }
  0x1f   : > { %4593 = vmatpush3.msra.mxu1 %v3098_v9  ;;  %3867 = vmatpush3.msra.mxu0 %v3098_v9  ;;  %v4843_v57 = vld [vmem:[%s4700_s22 + $0x79] sm:$0xff]  ;;  %v3113_v61 = vld [vmem:[%s6215_s1 + $0x128] sm:$0xff]  ;;  %v4864_v63 = vld [vmem:[%s4700_s22 + $0x151] sm:$0xff] }
  0x20   : > { %4578 = vmatprep.subr.mxu1 %v3097_v10  ;;  %3868 = vmatprep.subr.mxu0 %v3097_v10  ;;  %v207_v62 = vld [vmem:[%s6215_s1 + $0x20] sm:$0xff]  ;;  %v4871_v1 = vld [vmem:[%s4700_s22 + $0x91] sm:$0xff]  ;;  %v4892_v7 = vld [vmem:[%s4700_s22 + $0x169] sm:$0xff] }
  0x21   : > { %4594 = vmatpush3.msra.mxu1 %v3097_v10  ;;  %3869 = vmatpush3.msra.mxu0 %v3097_v10  ;;  %v3112_v0 = vld [vmem:[%s6215_s1 + $0x120] sm:$0xff]  ;;  %v206_v3 = vld [vmem:[%s6215_s1 + $0x18] sm:$0xff]  ;;  %v205_v6 = vld [vmem:[%s6215_s1 + $0x10] sm:$0xff]  ;;  %6249 = vst [vmem:[#allocation3_spill] sm:$0xff] %v4892_v7 }
  0x22   : > { %4579 = vmatprep.subr.mxu1 %v3096_v11  ;;  %3870 = vmatprep.subr.mxu0 %v3096_v11  ;;  %v4874_v2 = vld [vmem:[%s4700_s22 + $0x159] sm:$0xff]  ;;  %v3110_v8 = vld [vmem:[%s6215_s1 + $0x110] sm:$0xff] }
  0x23   : > { %4595 = vmatpush3.msra.mxu1 %v3096_v11  ;;  %3871 = vmatpush3.msra.mxu0 %v3096_v11  ;;  %6248 = vst [vmem:[#allocation2_spill] sm:$0xff] %v4874_v2  ;;  %v4881_v4 = vld [vmem:[%s4700_s22 + $0x99] sm:$0xff]  ;;  %v4899_v9 = vld [vmem:[%s4700_s22 + $0xa9] sm:$0xff]  ;;  %v4902_v10 = vld [vmem:[%s4700_s22 + $0x171] sm:$0xff] }
  0x24   : > { %4580 = vmatprep.subr.mxu1 %v3095_v12  ;;  %3872 = vmatprep.subr.mxu0 %v3095_v12  ;;  %v3111_v5 = vld [vmem:[%s6215_s1 + $0x118] sm:$0xff]  ;;  %6250 = vst [vmem:[#allocation4_spill] sm:$0xff] %v4902_v10  ;;  %v204_v11 = vld [vmem:[%s6215_s1 + $0x8] sm:$0xff] }
  0x25   : > { %4596 = vmatpush3.msra.mxu1 %v3095_v12  ;;  %3873 = vmatpush3.msra.mxu0 %v3095_v12  ;;  %v4909_v12 = vld [vmem:[%s4700_s22 + $0xb1] sm:$0xff] }
  0x26   : > { %4581 = vmatprep.subr.mxu1 %v3094_v13  ;;  %3874 = vmatprep.subr.mxu0 %v3094_v13 }
  0x27   : > { %4597 = vmatpush3.msra.mxu1 %v3094_v13  ;;  %3875 = vmatpush3.msra.mxu0 %v3094_v13  ;;  %v3109_v13 = vld [vmem:[%s6215_s1 + $0x108] sm:$0xff] }
  0x28   : > { %4582 = vmatprep.subr.mxu1 %v3093_v14  ;;  %3876 = vmatprep.subr.mxu0 %v3093_v14 }
  0x29   : > { %4598 = vmatpush3.msra.mxu1 %v3093_v14  ;;  %3877 = vmatpush3.msra.mxu0 %v3093_v14  ;;  %v203_v14 = vld [vmem:[%s6215_s1] sm:$0xff] }
  0x2a   : > { %4583 = vmatprep.subr.mxu1 %v3092_v15  ;;  %3878 = vmatprep.subr.mxu0 %v3092_v15 }
  0x2b   : > { %4599 = vmatpush3.msra.mxu1 %v3092_v15  ;;  %3904 = vmatprep.mubr.f32.mxu1 %v4706_v16 }
  0x2c   : > { %3879 = vmatpush3.msra.mxu0 %v3092_v15  ;;  %3880 = vmatprep.mubr.f32.mxu0 %v219_v17  ;;  %v171_v15 = vld [vmem:[%s4700_s22] sm:$0xff] }
  0x2d   : > { %3905 = vmatmul.mubr.f32.vlgmr.msra.gmra.mxu1 %v4710_v18  ;;  %3928 = vmatprep.subr.mxu1 %v218_v19  ;;  %v3108_v17 = vld [vmem:[%s6215_s1 + $0x100] sm:$0xff] }
  0x2e   : > { %3881 = vmatmul.mubr.f32.vlgmr.msra.gmra.mxu0 %v220_v20  ;;  %3929 = vmatpush3.msra.mxu1 %v218_v19  ;;  %v172_v19 = vld [vmem:[%s4700_s22 + $0x8] sm:$0xff] }
  0x2f   : > { %4008 = vmatprep.subr.mxu0 %v3123_v21  ;;  %3930 = vmatprep.subr.mxu1 %v217_v22  ;;  %v718_v20 = vld [vmem:[%s4700_s22 + $0x2] sm:$0xff] }
  0x30   : > { %4009 = vmatpush3.msra.mxu0 %v3123_v21  ;;  %3907 = vmatprep.mubr.f32.mxu1 %v4725_v23  ;;  %v3171_v21 = vld [vmem:[%s6215_s1 + $0x1f8] sm:$0xff] }
  0x31   : > { %3931 = vmatpush3.msra.mxu1 %v217_v22  ;;  %4010 = vmatprep.subr.mxu0 %v3122_v24  ;;  %v719_v22 = vld [vmem:[%s4700_s22 + $0xa] sm:$0xff] }
  0x32   : > { %3883 = vmatprep.mubr.f32.mxu0 %v4731_v25  ;;  %3908 = vmatmul.mubr.f32.gmra.mxu1 %v4734_v26 }
  0x33   : > { %3932 = vmatprep.subr.mxu1 %v216_v27  ;;  %4011 = vmatpush3.msra.mxu0 %v3122_v24  ;;  %v3219_v24 = vld [vmem:[%s6215_s1 + $0x278] sm:$0xff] }
  0x34   : > { %3884 = vmatmul.mubr.f32.gmra.mxu0 %v4741_v28  ;;  %3933 = vmatpush3.msra.mxu1 %v216_v27  ;;  %v4934_v27 = vld [vmem:[%s4700_s22 + $0x18] sm:$0xff] }
  0x35   : > { %4012 = vmatprep.subr.mxu0 %v3121_v29  ;;  %3934 = vmatprep.subr.mxu1 %v215_v30 }
  0x36   : > { %4013 = vmatpush3.msra.mxu0 %v3121_v29  ;;  %3910 = vmatprep.mubr.f32.mxu1 %v4752_v31  ;;  %v4937_v29 = vld [vmem:[%s4700_s22 + $0x20] sm:$0xff] }
  0x37   : > { %3935 = vmatpush3.msra.mxu1 %v215_v30  ;;  %4014 = vmatprep.subr.mxu0 %v3120_v32  ;;  %v4940_v30 = vld [vmem:[%s4700_s22 + $0x1a] sm:$0xff] }
  0x38   : > { %3886 = vmatprep.mubr.f32.mxu0 %v4759_v33  ;;  %3911 = vmatmul.mubr.f32.gmra.mxu1 %v4762_v34  ;;  %6251 = vst [vmem:[#allocation5_spill] sm:$0xff] %v4940_v30 }
  0x39   : > { %3936 = vmatprep.subr.mxu1 %v214_v35  ;;  %4015 = vmatpush3.msra.mxu0 %v3120_v32  ;;  %v3170_v32 = vld [vmem:[%s6215_s1 + $0x1f0] sm:$0xff] }
  0x3a   : > { %3887 = vmatmul.mubr.f32.gmra.mxu0 %v4769_v36  ;;  %3937 = vmatpush3.msra.mxu1 %v214_v35  ;;  %v4947_v35 = vld [vmem:[%s4700_s22 + $0x22] sm:$0xff] }
  0x3b   : > { %4016 = vmatprep.subr.mxu0 %v3119_v37  ;;  %3938 = vmatprep.subr.mxu1 %v213_v38  ;;  %6252 = vst [vmem:[#allocation6_spill] sm:$0xff] %v4947_v35 }
  0x3c   : > { %4017 = vmatpush3.msra.mxu0 %v3119_v37  ;;  %3913 = vmatprep.mubr.f32.mxu1 %v4780_v39  ;;  %v3218_v37 = vld [vmem:[%s6215_s1 + $0x270] sm:$0xff] }
  0x3d   : > { %3939 = vmatpush3.msra.mxu1 %v213_v38  ;;  %4018 = vmatprep.subr.mxu0 %v3118_v40  ;;  %v4954_v38 = vld [vmem:[%s4700_s22 + $0x30] sm:$0xff] }
  0x3e   : > { %3889 = vmatprep.mubr.f32.mxu0 %v4787_v41  ;;  %3914 = vmatmul.mubr.f32.gmra.mxu1 %v4790_v42 }
  0x3f   : > { %3940 = vmatprep.subr.mxu1 %v212_v43  ;;  %4019 = vmatpush3.msra.mxu0 %v3118_v40  ;;  %v4958_v40 = vld [vmem:[%s4700_s22 + $0x38] sm:$0xff] }
  0x40   : > { %3890 = vmatmul.mubr.f32.gmra.mxu0 %v4797_v44  ;;  %3941 = vmatpush3.msra.mxu1 %v212_v43  ;;  %v4962_v43 = vld [vmem:[%s4700_s22 + $0x32] sm:$0xff] }
  0x41   : > { %4020 = vmatprep.subr.mxu0 %v3117_v45  ;;  %3942 = vmatprep.subr.mxu1 %v211_v46  ;;  %6253 = vst [vmem:[#allocation7_spill] sm:$0xff] %v4962_v43 }
  0x42   : > { %4021 = vmatpush3.msra.mxu0 %v3117_v45  ;;  %3916 = vmatprep.mubr.f32.mxu1 %v4808_v47  ;;  %v3169_v45 = vld [vmem:[%s6215_s1 + $0x1e8] sm:$0xff] }
  0x43   : > { %3943 = vmatpush3.msra.mxu1 %v211_v46  ;;  %4022 = vmatprep.subr.mxu0 %v3116_v48  ;;  %v4969_v46 = vld [vmem:[%s4700_s22 + $0x3a] sm:$0xff] }
  0x44   : > { %3892 = vmatprep.mubr.f32.mxu0 %v4815_v49  ;;  %3917 = vmatmul.mubr.f32.gmra.mxu1 %v4818_v50  ;;  %6254 = vst [vmem:[#allocation8_spill] sm:$0xff] %v4969_v46 }
  0x45   : > { %3944 = vmatprep.subr.mxu1 %v210_v51  ;;  %4023 = vmatpush3.msra.mxu0 %v3116_v48  ;;  %v3217_v48 = vld [vmem:[%s6215_s1 + $0x268] sm:$0xff] }
  0x46   : > { %3893 = vmatmul.mubr.f32.gmra.mxu0 %v4825_v52  ;;  %3945 = vmatpush3.msra.mxu1 %v210_v51  ;;  %v4976_v51 = vld [vmem:[%s4700_s22 + $0x48] sm:$0xff] }
  0x47   : > { %4024 = vmatprep.subr.mxu0 %v3115_v53  ;;  %3946 = vmatprep.subr.mxu1 %v209_v54 }
  0x48   : > { %4025 = vmatpush3.msra.mxu0 %v3115_v53  ;;  %3919 = vmatprep.mubr.f32.mxu1 %v4836_v55  ;;  %v4980_v53 = vld [vmem:[%s4700_s22 + $0x50] sm:$0xff] }
  0x49   : > { %3947 = vmatpush3.msra.mxu1 %v209_v54  ;;  %4026 = vmatprep.subr.mxu0 %v3114_v56  ;;  %v4984_v54 = vld [vmem:[%s4700_s22 + $0x4a] sm:$0xff] }
  0x4a   : > { %3895 = vmatprep.mubr.f32.mxu0 %v4843_v57  ;;  %3920 = vmatmul.mubr.f32.gmra.mxu1 %v4846_v58  ;;  %6255 = vst [vmem:[#allocation9_spill] sm:$0xff] %v4984_v54 }
  0x4b   : > { %3948 = vmatprep.subr.mxu1 %v208_v59  ;;  %4027 = vmatpush3.msra.mxu0 %v3114_v56  ;;  %v3168_v56 = vld [vmem:[%s6215_s1 + $0x1e0] sm:$0xff] }
  0x4c   : > { %3896 = vmatmul.mubr.f32.gmra.mxu0 %v4853_v60  ;;  %3949 = vmatpush3.msra.mxu1 %v208_v59  ;;  %v4991_v59 = vld [vmem:[%s4700_s22 + $0x52] sm:$0xff] }
  0x4d   : > { %4028 = vmatprep.subr.mxu0 %v3113_v61  ;;  %3950 = vmatprep.subr.mxu1 %v207_v62  ;;  %6256 = vst [vmem:[#allocation10_spill] sm:$0xff] %v4991_v59 }
  0x4e   : > { %4029 = vmatpush3.msra.mxu0 %v3113_v61  ;;  %3922 = vmatprep.mubr.f32.mxu1 %v4864_v63  ;;  %v3216_v61 = vld [vmem:[%s6215_s1 + $0x260] sm:$0xff] }
  0x4f   : > { %3951 = vmatpush3.msra.mxu1 %v207_v62  ;;  %4030 = vmatprep.subr.mxu0 %v3112_v0  ;;  %v4998_v62 = vld [vmem:[%s4700_s22 + $0x60] sm:$0xff] }
  0x50   : > { %3898 = vmatprep.mubr.f32.mxu0 %v4871_v1  ;;  %3923 = vmatmul.mubr.f32.gmra.mxu1 %v4874_v2  ;;  %v5255_v2 = vld [vmem:[%s4700_s22 + $0x172] sm:$0xff] }
  0x51   : > { %3952 = vmatprep.subr.mxu1 %v206_v3  ;;  %4031 = vmatpush3.msra.mxu0 %v3112_v0  ;;  %v5002_v0 = vld [vmem:[%s4700_s22 + $0x68] sm:$0xff] }
  0x52   : > { %3899 = vmatmul.mubr.f32.gmra.mxu0 %v4881_v4  ;;  %3953 = vmatpush3.msra.mxu1 %v206_v3  ;;  %v5006_v3 = vld [vmem:[%s4700_s22 + $0x62] sm:$0xff] }
  0x53   : > { %4032 = vmatprep.subr.mxu0 %v3111_v5  ;;  %3954 = vmatprep.subr.mxu1 %v205_v6  ;;  %6257 = vst [vmem:[#allocation11_spill] sm:$0xff] %v5006_v3 }
  0x54   : > { %4033 = vmatpush3.msra.mxu0 %v3111_v5  ;;  %3925 = vmatprep.mubr.f32.mxu1 %v4892_v7  ;;  %v3167_v5 = vld [vmem:[%s6215_s1 + $0x1d8] sm:$0xff]  ;;  %v5248_v7 = vld [vmem:[%s4700_s22 + $0x16a] sm:$0xff] }
  0x55   : > { %3955 = vmatpush3.msra.mxu1 %v205_v6  ;;  %4034 = vmatprep.subr.mxu0 %v3110_v8  ;;  %v5013_v6 = vld [vmem:[%s4700_s22 + $0x6a] sm:$0xff] }
  0x56   : > { %3901 = vmatprep.mubr.f32.mxu0 %v4899_v9  ;;  %3926 = vmatmul.mubr.f32.gmra.mxu1 %v4902_v10  ;;  %6258 = vst [vmem:[#allocation12_spill] sm:$0xff] %v5013_v6  ;;  %v5233_v10 = vld [vmem:[%s4700_s22 + $0x15a] sm:$0xff] }
  0x57   : > { %3956 = vmatprep.subr.mxu1 %v204_v11  ;;  %4035 = vmatpush3.msra.mxu0 %v3110_v8  ;;  %v3215_v8 = vld [vmem:[%s6215_s1 + $0x258] sm:$0xff] }
  0x58   : > { %3902 = vmatmul.mubr.f32.gmra.mxu0 %v4909_v12  ;;  %3957 = vmatpush3.msra.mxu1 %v204_v11  ;;  %v5020_v11 = vld [vmem:[%s4700_s22 + $0x78] sm:$0xff] }
  0x59   : > { %4036 = vmatprep.subr.mxu0 %v3109_v13  ;;  %3958 = vmatprep.subr.mxu1 %v203_v14 }
  0x5a   : > { %4037 = vmatpush3.msra.mxu0 %v3109_v13  ;;  %3959 = vmatpush3.msra.mxu1 %v203_v14  ;;  %v5024_v13 = vld [vmem:[%s4700_s22 + $0x80] sm:$0xff] }
  0x5b   : > { %3960 = vmatprep.mubr.f32.mxu1 %v171_v15  ;;  %4038 = vmatprep.subr.mxu0 %v3108_v17  ;;  %v5028_v14 = vld [vmem:[%s4700_s22 + $0x7a] sm:$0xff]  ;;  %v3166_v15 = vld [vmem:[%s6215_s1 + $0x1d0] sm:$0xff] }
  0x5c   : > { %3961 = vmatmul.mubr.f32.vlgmr.msra.gmra.mxu1 %v172_v19  ;;  %4039 = vmatpush3.msra.mxu0 %v3108_v17  ;;  %6259 = vst [vmem:[#allocation13_spill] sm:$0xff] %v5028_v14  ;;  %v5035_v17 = vld [vmem:[%s4700_s22 + $0x82] sm:$0xff]  ;;  %v3214_v19 = vld [vmem:[%s6215_s1 + $0x250] sm:$0xff] }
  0x5d   : > { %4040 = vmatprep.mubr.f32.mxu0 %v718_v20  ;;  %4088 = vmatprep.subr.mxu1 %v3171_v21  ;;  %6260 = vst [vmem:[#allocation14_spill] sm:$0xff] %v5035_v17  ;;  %v5042_v20 = vld [vmem:[%s4700_s22 + $0x90] sm:$0xff] }
  0x5e   : > { %4041 = vmatmul.mubr.f32.vlgmr.msra.gmra.mxu0 %v719_v22  ;;  %4089 = vmatpush3.msra.mxu1 %v3171_v21  ;;  %v5046_v21 = vld [vmem:[%s4700_s22 + $0x98] sm:$0xff] }
  0x5f   : > { %4168 = vmatprep.subr.mxu0 %v3219_v24  ;;  %3963 = vmatprep.mubr.f32.mxu1 %v4934_v27  ;;  %v5050_v22 = vld [vmem:[%s4700_s22 + $0x92] sm:$0xff] }
  0x60   : > { %4169 = vmatpush3.msra.mxu0 %v3219_v24  ;;  %3964 = vmatmul.mubr.f32.gmra.mxu1 %v4937_v29  ;;  %6261 = vst [vmem:[#allocation15_spill] sm:$0xff] %v5050_v22  ;;  %v3165_v24 = vld [vmem:[%s6215_s1 + $0x1c8] sm:$0xff] }
  0x61   : > { %4043 = vmatprep.mubr.f32.mxu0 %v4940_v30  ;;  %4090 = vmatprep.subr.mxu1 %v3170_v32  ;;  %v3157_v30 = vld [vmem:[%s6215_s1 + $0x188] sm:$0xff] }
  0x62   : > { %4044 = vmatmul.mubr.f32.gmra.mxu0 %v4947_v35  ;;  %4091 = vmatpush3.msra.mxu1 %v3170_v32  ;;  %v5057_v32 = vld [vmem:[%s4700_s22 + $0x9a] sm:$0xff]  ;;  %v5211_v35 = vld [vmem:[%s4700_s22 + $0x142] sm:$0xff] }
  0x63   : > { %4170 = vmatprep.subr.mxu0 %v3218_v37  ;;  %3966 = vmatprep.mubr.f32.mxu1 %v4954_v38  ;;  %6262 = vst [vmem:[#allocation16_spill] sm:$0xff] %v5057_v32  ;;  %6276 = vst [vmem:[#allocation30_spill] sm:$0xff] %v5211_v35 }
  0x64   : > { %4171 = vmatpush3.msra.mxu0 %v3218_v37  ;;  %3967 = vmatmul.mubr.f32.gmra.mxu1 %v4958_v40  ;;  %v3213_v37 = vld [vmem:[%s6215_s1 + $0x248] sm:$0xff] }
  0x65   : > { %4046 = vmatprep.mubr.f32.mxu0 %v4962_v43  ;;  %4092 = vmatprep.subr.mxu1 %v3169_v45  ;;  %v3158_v43 = vld [vmem:[%s6215_s1 + $0x190] sm:$0xff] }
  0x66   : > { %4047 = vmatmul.mubr.f32.gmra.mxu0 %v4969_v46  ;;  %4093 = vmatpush3.msra.mxu1 %v3169_v45  ;;  %v5064_v45 = vld [vmem:[%s4700_s22 + $0xa8] sm:$0xff] }
  0x67   : > { %4172 = vmatprep.subr.mxu0 %v3217_v48  ;;  %3969 = vmatprep.mubr.f32.mxu1 %v4976_v51  ;;  %v5189_v46 = vld [vmem:[%s4700_s22 + $0x12a] sm:$0xff] }
  0x68   : > { %4173 = vmatpush3.msra.mxu0 %v3217_v48  ;;  %3970 = vmatmul.mubr.f32.gmra.mxu1 %v4980_v53  ;;  %v5068_v48 = vld [vmem:[%s4700_s22 + $0xb0] sm:$0xff]  ;;  %6274 = vst [vmem:[#allocation28_spill] sm:$0xff] %v5189_v46 }
  0x69   : > { %4049 = vmatprep.mubr.f32.mxu0 %v4984_v54  ;;  %4094 = vmatprep.subr.mxu1 %v3168_v56  ;;  %v3159_v54 = vld [vmem:[%s6215_s1 + $0x198] sm:$0xff] }
  0x6a   : > { %4050 = vmatmul.mubr.f32.gmra.mxu0 %v4991_v59  ;;  %4095 = vmatpush3.msra.mxu1 %v3168_v56  ;;  %v5072_v56 = vld [vmem:[%s4700_s22 + $0xaa] sm:$0xff]  ;;  %v5167_v59 = vld [vmem:[%s4700_s22 + $0x112] sm:$0xff] }
  0x6b   : > { %4174 = vmatprep.subr.mxu0 %v3216_v61  ;;  %3972 = vmatprep.mubr.f32.mxu1 %v4998_v62  ;;  %6263 = vst [vmem:[#allocation17_spill] sm:$0xff] %v5072_v56  ;;  %6272 = vst [vmem:[#allocation26_spill] sm:$0xff] %v5167_v59 }
  0x6c   : > { %4175 = vmatpush3.msra.mxu0 %v3216_v61  ;;  %3973 = vmatmul.mubr.f32.gmra.mxu1 %v5002_v0  ;;  %v3164_v61 = vld [vmem:[%s6215_s1 + $0x1c0] sm:$0xff] }
  0x6d   : > { %4052 = vmatprep.mubr.f32.mxu0 %v5006_v3  ;;  %4096 = vmatprep.subr.mxu1 %v3167_v5  ;;  %v3160_v3 = vld [vmem:[%s6215_s1 + $0x1a0] sm:$0xff] }
  0x6e   : > { %4053 = vmatmul.mubr.f32.gmra.mxu0 %v5013_v6  ;;  %4097 = vmatpush3.msra.mxu1 %v3167_v5  ;;  %v5079_v5 = vld [vmem:[%s4700_s22 + $0xb2] sm:$0xff]  ;;  %v5145_v6 = vld [vmem:[%s4700_s22 + $0xfa] sm:$0xff] }
  0x6f   : > { %4176 = vmatprep.subr.mxu0 %v3215_v8  ;;  %3975 = vmatprep.mubr.f32.mxu1 %v5020_v11  ;;  %6264 = vst [vmem:[#allocation18_spill] sm:$0xff] %v5079_v5  ;;  %6270 = vst [vmem:[#allocation24_spill] sm:$0xff] %v5145_v6 }
  0x70   : > { %4177 = vmatpush3.msra.mxu0 %v3215_v8  ;;  %3976 = vmatmul.mubr.f32.gmra.mxu1 %v5024_v13  ;;  %v3212_v8 = vld [vmem:[%s6215_s1 + $0x240] sm:$0xff] }
  0x71   : > { %4055 = vmatprep.mubr.f32.mxu0 %v5028_v14  ;;  %4098 = vmatprep.subr.mxu1 %v3166_v15  ;;  %v3161_v14 = vld [vmem:[%s6215_s1 + $0x1a8] sm:$0xff] }
  0x72   : > { %4056 = vmatmul.mubr.f32.gmra.mxu0 %v5035_v17  ;;  %4099 = vmatpush3.msra.mxu1 %v3166_v15  ;;  %v5086_v15 = vld [vmem:[%s4700_s22 + $0xc0] sm:$0xff] }
  0x73   : > { %4178 = vmatprep.subr.mxu0 %v3214_v19  ;;  %3978 = vmatprep.mubr.f32.mxu1 %v5042_v20  ;;  %v5123_v17 = vld [vmem:[%s4700_s22 + $0xe2] sm:$0xff] }
  0x74   : > { %4179 = vmatpush3.msra.mxu0 %v3214_v19  ;;  %3979 = vmatmul.mubr.f32.gmra.mxu1 %v5046_v21  ;;  %v5090_v19 = vld [vmem:[%s4700_s22 + $0xc8] sm:$0xff]  ;;  %6268 = vst [vmem:[#allocation22_spill] sm:$0xff] %v5123_v17 }
  0x75   : > { %4058 = vmatprep.mubr.f32.mxu0 %v5050_v22  ;;  %4100 = vmatprep.subr.mxu1 %v3165_v24  ;;  %v3162_v22 = vld [vmem:[%s6215_s1 + $0x1b0] sm:$0xff] }
  0x76   : > { %4059 = vmatmul.mubr.f32.gmra.mxu0 %v5057_v32  ;;  %4101 = vmatpush3.msra.mxu1 %v3165_v24  ;;  %v5094_v24 = vld [vmem:[%s4700_s22 + $0xc2] sm:$0xff]  ;;  %v5101_v32 = vld [vmem:[%s4700_s22 + $0xca] sm:$0xff] }
  0x77   : > { %4180 = vmatprep.subr.mxu0 %v3213_v37  ;;  %3981 = vmatprep.mubr.f32.mxu1 %v5064_v45  ;;  %6265 = vst [vmem:[#allocation19_spill] sm:$0xff] %v5094_v24  ;;  %6266 = vst [vmem:[#allocation20_spill] sm:$0xff] %v5101_v32 }
  0x78   : > { %4181 = vmatpush3.msra.mxu0 %v3213_v37  ;;  %3982 = vmatmul.mubr.f32.gmra.mxu1 %v5068_v48  ;;  %v3163_v37 = vld [vmem:[%s6215_s1 + $0x1b8] sm:$0xff] }
  0x79   : > { %4061 = vmatprep.mubr.f32.mxu0 %v5072_v56  ;;  %4102 = vmatprep.subr.mxu1 %v3164_v61  ;;  %v5112_v56 = vld [vmem:[%s4700_s22 + $0xe0] sm:$0xff] }
  0x7a   : > { %4062 = vmatmul.mubr.f32.gmra.mxu0 %v5079_v5  ;;  %4103 = vmatpush3.msra.mxu1 %v3164_v61  ;;  %v3211_v61 = vld [vmem:[%s6215_s1 + $0x238] sm:$0xff] }
  0x7b   : > { %4182 = vmatprep.subr.mxu0 %v3212_v8  ;;  %3984 = vmatprep.mubr.f32.mxu1 %v5086_v15  ;;  %v5108_v5 = vld [vmem:[%s4700_s22 + $0xd8] sm:$0xff] }
  0x7c   : > { %4183 = vmatpush3.msra.mxu0 %v3212_v8  ;;  %3985 = vmatmul.mubr.f32.gmra.mxu1 %v5090_v19  ;;  %v5116_v8 = vld [vmem:[%s4700_s22 + $0xda] sm:$0xff] }
  0x7d   : > { %4064 = vmatprep.mubr.f32.mxu0 %v5094_v24  ;;  %4104 = vmatprep.subr.mxu1 %v3163_v37  ;;  %6267 = vst [vmem:[#allocation21_spill] sm:$0xff] %v5116_v8  ;;  %v5134_v24 = vld [vmem:[%s4700_s22 + $0xf8] sm:$0xff] }
  0x7e   : > { %4065 = vmatmul.mubr.f32.gmra.mxu0 %v5101_v32  ;;  %4105 = vmatpush3.msra.mxu1 %v3163_v37  ;;  %v3210_v37 = vld [vmem:[%s6215_s1 + $0x230] sm:$0xff] }
  0x7f   : > { %4184 = vmatprep.subr.mxu0 %v3211_v61  ;;  %3987 = vmatprep.mubr.f32.mxu1 %v5108_v5  ;;  %v5130_v32 = vld [vmem:[%s4700_s22 + $0xf0] sm:$0xff] }
  0x80   : > { %4185 = vmatpush3.msra.mxu0 %v3211_v61  ;;  %3988 = vmatmul.mubr.f32.gmra.mxu1 %v5112_v56  ;;  %v5138_v61 = vld [vmem:[%s4700_s22 + $0xf2] sm:$0xff] }
  0x81   : > { %4067 = vmatprep.mubr.f32.mxu0 %v5116_v8  ;;  %4106 = vmatprep.subr.mxu1 %v3162_v22  ;;  %6269 = vst [vmem:[#allocation23_spill] sm:$0xff] %v5138_v61  ;;  %v5156_v8 = vld [vmem:[%s4700_s22 + $0x110] sm:$0xff] }
  0x82   : > { %4068 = vmatmul.mubr.f32.gmra.mxu0 %v5123_v17  ;;  %4107 = vmatpush3.msra.mxu1 %v3162_v22  ;;  %v3209_v22 = vld [vmem:[%s6215_s1 + $0x228] sm:$0xff] }
  0x83   : > { %4186 = vmatprep.subr.mxu0 %v3210_v37  ;;  %3990 = vmatprep.mubr.f32.mxu1 %v5130_v32  ;;  %v5152_v17 = vld [vmem:[%s4700_s22 + $0x108] sm:$0xff] }
  0x84   : > { %4187 = vmatpush3.msra.mxu0 %v3210_v37  ;;  %3991 = vmatmul.mubr.f32.gmra.mxu1 %v5134_v24  ;;  %v5160_v37 = vld [vmem:[%s4700_s22 + $0x10a] sm:$0xff] }
  0x85   : > { %4070 = vmatprep.mubr.f32.mxu0 %v5138_v61  ;;  %4108 = vmatprep.subr.mxu1 %v3161_v14  ;;  %6271 = vst [vmem:[#allocation25_spill] sm:$0xff] %v5160_v37  ;;  %v5178_v61 = vld [vmem:[%s4700_s22 + $0x128] sm:$0xff] }
  0x86   : > { %4071 = vmatmul.mubr.f32.gmra.mxu0 %v5145_v6  ;;  %4109 = vmatpush3.msra.mxu1 %v3161_v14  ;;  %v3208_v14 = vld [vmem:[%s6215_s1 + $0x220] sm:$0xff] }
  0x87   : > { %4188 = vmatprep.subr.mxu0 %v3209_v22  ;;  %3993 = vmatprep.mubr.f32.mxu1 %v5152_v17  ;;  %v5174_v6 = vld [vmem:[%s4700_s22 + $0x120] sm:$0xff] }
  0x88   : > { %4189 = vmatpush3.msra.mxu0 %v3209_v22  ;;  %3994 = vmatmul.mubr.f32.gmra.mxu1 %v5156_v8  ;;  %v5182_v22 = vld [vmem:[%s4700_s22 + $0x122] sm:$0xff] }
  0x89   : > { %4073 = vmatprep.mubr.f32.mxu0 %v5160_v37  ;;  %4110 = vmatprep.subr.mxu1 %v3160_v3  ;;  %6273 = vst [vmem:[#allocation27_spill] sm:$0xff] %v5182_v22  ;;  %v5200_v37 = vld [vmem:[%s4700_s22 + $0x140] sm:$0xff] }
  0x8a   : > { %4074 = vmatmul.mubr.f32.gmra.mxu0 %v5167_v59  ;;  %4111 = vmatpush3.msra.mxu1 %v3160_v3  ;;  %v3207_v3 = vld [vmem:[%s6215_s1 + $0x218] sm:$0xff] }
  0x8b   : > { %4190 = vmatprep.subr.mxu0 %v3208_v14  ;;  %3996 = vmatprep.mubr.f32.mxu1 %v5174_v6  ;;  %v5196_v59 = vld [vmem:[%s4700_s22 + $0x138] sm:$0xff] }
  0x8c   : > { %4191 = vmatpush3.msra.mxu0 %v3208_v14  ;;  %3997 = vmatmul.mubr.f32.gmra.mxu1 %v5178_v61  ;;  %v5204_v14 = vld [vmem:[%s4700_s22 + $0x13a] sm:$0xff] }
  0x8d   : > { %4076 = vmatprep.mubr.f32.mxu0 %v5182_v22  ;;  %4112 = vmatprep.subr.mxu1 %v3159_v54  ;;  %6275 = vst [vmem:[#allocation29_spill] sm:$0xff] %v5204_v14  ;;  %v5222_v22 = vld [vmem:[%s4700_s22 + $0x158] sm:$0xff] }
  0x8e   : > { %4077 = vmatmul.mubr.f32.gmra.mxu0 %v5189_v46  ;;  %4113 = vmatpush3.msra.mxu1 %v3159_v54  ;;  %v3206_v54 = vld [vmem:[%s6215_s1 + $0x210] sm:$0xff] }
  0x8f   : > { %4192 = vmatprep.subr.mxu0 %v3207_v3  ;;  %3999 = vmatprep.mubr.f32.mxu1 %v5196_v59  ;;  %v5218_v46 = vld [vmem:[%s4700_s22 + $0x150] sm:$0xff] }
  0x90   : > { %4193 = vmatpush3.msra.mxu0 %v3207_v3  ;;  %4000 = vmatmul.mubr.f32.gmra.mxu1 %v5200_v37  ;;  %v5226_v3 = vld [vmem:[%s4700_s22 + $0x152] sm:$0xff] }
  0x91   : > { %4079 = vmatprep.mubr.f32.mxu0 %v5204_v14  ;;  %4114 = vmatprep.subr.mxu1 %v3158_v43  ;;  %6277 = vst [vmem:[#allocation31_spill] sm:$0xff] %v5226_v3  ;;  %v5244_v14 = vld [vmem:[%s4700_s22 + $0x170] sm:$0xff] }
  0x92   : > { %4080 = vmatmul.mubr.f32.gmra.mxu0 %v5211_v35  ;;  %4115 = vmatpush3.msra.mxu1 %v3158_v43  ;;  %v3205_v35 = vld [vmem:[%s6215_s1 + $0x208] sm:$0xff] }
  0x93   : > { %4194 = vmatprep.subr.mxu0 %v3206_v54  ;;  %4002 = vmatprep.mubr.f32.mxu1 %v5218_v46  ;;  %v5240_v43 = vld [vmem:[%s4700_s22 + $0x168] sm:$0xff] }
  0x94   : > { %4195 = vmatpush3.msra.mxu0 %v3206_v54  ;;  %4003 = vmatmul.mubr.f32.gmra.mxu1 %v5222_v22  ;;  %v3156_v54 = vld [vmem:[%s6215_s1 + $0x180] sm:$0xff] }
  0x95   : > { %4082 = vmatprep.mubr.f32.mxu0 %v5226_v3  ;;  %4116 = vmatprep.subr.mxu1 %v3157_v30  ;;  %v3204_v3 = vld [vmem:[%s6215_s1 + $0x200] sm:$0xff] }
  0x96   : > { %4083 = vmatmul.mubr.f32.gmra.mxu0 %v5233_v10  ;;  %4117 = vmatpush3.msra.mxu1 %v3157_v30  ;;  %v3267_v30 = vld [vmem:[%s6215_s1 + $0x2f8] sm:$0xff] }
  0x97   : > { %4196 = vmatprep.subr.mxu0 %v3205_v35  ;;  %4005 = vmatprep.mubr.f32.mxu1 %v5240_v43 }
  0x98   : > { %4197 = vmatpush3.msra.mxu0 %v3205_v35  ;;  %4006 = vmatmul.mubr.f32.gmra.mxu1 %v5244_v14  ;;  %v3315_v35 = vld [vmem:[%s6215_s1 + $0x378] sm:$0xff] }
  0x99   : > { %4085 = vmatprep.mubr.f32.mxu0 %v5248_v7  ;;  %4118 = vmatprep.subr.mxu1 %v3156_v54 }
  0x9a   : > { %4086 = vmatmul.mubr.f32.gmra.mxu0 %v5255_v2  ;;  %4119 = vmatpush3.msra.mxu1 %v3156_v54  ;;  %v3266_v54 = vld [vmem:[%s6215_s1 + $0x2f0] sm:$0xff] }
  0x9b   : > { %4198 = vmatprep.subr.mxu0 %v3204_v3  ;;  %4120 = vmatprep.mubr.f32.mxu1 %v4934_v27  ;;  %v3314_v27 = vld [vmem:[%s6215_s1 + $0x370] sm:$0xff] }
  0x9c   : > { %4199 = vmatpush3.msra.mxu0 %v3204_v3  ;;  %4121 = vmatmul.mubr.f32.vlgmr.msra.gmra.mxu1 %v4937_v29  ;;  %v5412_v29 = vld [vmem:[%s4700_s22 + $0x180] sm:$0xff]  ;;  %v6279_v3 = vld [vmem:[#allocation3_spill] sm:$0xff] }
  0x9d   : > { %4200 = vmatprep.mubr.f32.mxu0 %v4731_v25  ;;  %4248 = vmatprep.subr.mxu1 %v3267_v30  ;;  %v3265_v25 = vld [vmem:[%s6215_s1 + $0x2e8] sm:$0xff] }
  0x9e   : > { %4201 = vmatmul.mubr.f32.vlgmr.msra.gmra.mxu0 %v4741_v28  ;;  %4249 = vmatpush3.msra.mxu1 %v3267_v30  ;;  %v3313_v28 = vld [vmem:[%s6215_s1 + $0x368] sm:$0xff] }
  0x9f   : > { %4328 = vmatprep.subr.mxu0 %v3315_v35  ;;  %4123 = vmatprep.mubr.f32.mxu1 %v4954_v38  ;;  %v5416_v30 = vld [vmem:[%s4700_s22 + $0x188] sm:$0xff] }
  0xa0   : > { %4329 = vmatpush3.msra.mxu0 %v3315_v35  ;;  %4124 = vmatmul.mubr.f32.gmra.mxu1 %v4958_v40  ;;  %v6280_v35 = vld [vmem:[#allocation4_spill] sm:$0xff] }
  0xa1   : > { %4203 = vmatprep.mubr.f32.mxu0 %v4759_v33  ;;  %4250 = vmatprep.subr.mxu1 %v3266_v54  ;;  %v3264_v33 = vld [vmem:[%s6215_s1 + $0x2e0] sm:$0xff] }
  0xa2   : > { %4204 = vmatmul.mubr.f32.gmra.mxu0 %v4769_v36  ;;  %4251 = vmatpush3.msra.mxu1 %v3266_v54  ;;  %v3312_v36 = vld [vmem:[%s6215_s1 + $0x360] sm:$0xff] }
  0xa3   : > { %4330 = vmatprep.subr.mxu0 %v3314_v27  ;;  %4126 = vmatprep.mubr.f32.mxu1 %v4976_v51  ;;  %v5420_v54 = vld [vmem:[%s4700_s22 + $0x181] sm:$0xff] }
  0xa4   : > { %4331 = vmatpush3.msra.mxu0 %v3314_v27  ;;  %4127 = vmatmul.mubr.f32.gmra.mxu1 %v4980_v53  ;;  %v3252_v27 = vld [vmem:[%s6215_s1 + $0x280] sm:$0xff] }
  0xa5   : > { %4206 = vmatprep.mubr.f32.mxu0 %v4787_v41  ;;  %4252 = vmatprep.subr.mxu1 %v3265_v25  ;;  %v3263_v41 = vld [vmem:[%s6215_s1 + $0x2d8] sm:$0xff] }
  0xa6   : > { %4207 = vmatmul.mubr.f32.gmra.mxu0 %v4797_v44  ;;  %4253 = vmatpush3.msra.mxu1 %v3265_v25  ;;  %v3311_v44 = vld [vmem:[%s6215_s1 + $0x358] sm:$0xff]  ;;  %v5427_v25 = vld [vmem:[%s4700_s22 + $0x189] sm:$0xff] }
  0xa7   : > { %4332 = vmatprep.subr.mxu0 %v3313_v28  ;;  %4129 = vmatprep.mubr.f32.mxu1 %v4998_v62 }
  0xa8   : > { %4333 = vmatpush3.msra.mxu0 %v3313_v28  ;;  %4130 = vmatmul.mubr.f32.gmra.mxu1 %v5002_v0  ;;  %v3300_v28 = vld [vmem:[%s6215_s1 + $0x300] sm:$0xff] }
  0xa9   : > { %4209 = vmatprep.mubr.f32.mxu0 %v4815_v49  ;;  %4254 = vmatprep.subr.mxu1 %v3264_v33  ;;  %v3262_v49 = vld [vmem:[%s6215_s1 + $0x2d0] sm:$0xff] }
  0xaa   : > { %4210 = vmatmul.mubr.f32.gmra.mxu0 %v4825_v52  ;;  %4255 = vmatpush3.msra.mxu1 %v3264_v33  ;;  %v3310_v52 = vld [vmem:[%s6215_s1 + $0x350] sm:$0xff]  ;;  %v3363_v33 = vld [vmem:[%s6215_s1 + $0x3f8] sm:$0xff] }
  0xab   : > { %4334 = vmatprep.subr.mxu0 %v3312_v36  ;;  %4132 = vmatprep.mubr.f32.mxu1 %v5020_v11 }
  0xac   : > { %4335 = vmatpush3.msra.mxu0 %v3312_v36  ;;  %4133 = vmatmul.mubr.f32.gmra.mxu1 %v5024_v13  ;;  %v6281_v36 = vld [vmem:[#allocation5_spill] sm:$0xff] }
  0xad   : > { %4212 = vmatprep.mubr.f32.mxu0 %v4843_v57  ;;  %4256 = vmatprep.subr.mxu1 %v3263_v41  ;;  %v3261_v57 = vld [vmem:[%s6215_s1 + $0x2c8] sm:$0xff] }
  0xae   : > { %4213 = vmatmul.mubr.f32.gmra.mxu0 %v4853_v60  ;;  %4257 = vmatpush3.msra.mxu1 %v3263_v41  ;;  %v3309_v60 = vld [vmem:[%s6215_s1 + $0x348] sm:$0xff]  ;;  %v6282_v41 = vld [vmem:[#allocation6_spill] sm:$0xff] }
  0xaf   : > { %4336 = vmatprep.subr.mxu0 %v3311_v44  ;;  %4135 = vmatprep.mubr.f32.mxu1 %v5042_v20 }
  0xb0   : > { %4337 = vmatpush3.msra.mxu0 %v3311_v44  ;;  %4136 = vmatmul.mubr.f32.gmra.mxu1 %v5046_v21  ;;  %v3411_v44 = vld [vmem:[%s6215_s1 + $0x478] sm:$0xff] }
  0xb1   : > { %4215 = vmatprep.mubr.f32.mxu0 %v4871_v1  ;;  %4258 = vmatprep.subr.mxu1 %v3262_v49  ;;  %v3260_v1 = vld [vmem:[%s6215_s1 + $0x2c0] sm:$0xff] }
  0xb2   : > { %4216 = vmatmul.mubr.f32.gmra.mxu0 %v4881_v4  ;;  %4259 = vmatpush3.msra.mxu1 %v3262_v49  ;;  %v3308_v4 = vld [vmem:[%s6215_s1 + $0x340] sm:$0xff]  ;;  %v3362_v49 = vld [vmem:[%s6215_s1 + $0x3f0] sm:$0xff] }
  0xb3   : > { %4338 = vmatprep.subr.mxu0 %v3310_v52  ;;  %4138 = vmatprep.mubr.f32.mxu1 %v5064_v45 }
  0xb4   : > { %4339 = vmatpush3.msra.mxu0 %v3310_v52  ;;  %4139 = vmatmul.mubr.f32.gmra.mxu1 %v5068_v48  ;;  %v6283_v52 = vld [vmem:[#allocation7_spill] sm:$0xff] }
  0xb5   : > { %4218 = vmatprep.mubr.f32.mxu0 %v4899_v9  ;;  %4260 = vmatprep.subr.mxu1 %v3261_v57  ;;  %v3259_v9 = vld [vmem:[%s6215_s1 + $0x2b8] sm:$0xff] }
  0xb6   : > { %4219 = vmatmul.mubr.f32.gmra.mxu0 %v4909_v12  ;;  %4261 = vmatpush3.msra.mxu1 %v3261_v57  ;;  %v3307_v12 = vld [vmem:[%s6215_s1 + $0x338] sm:$0xff]  ;;  %v6284_v57 = vld [vmem:[#allocation8_spill] sm:$0xff] }
  0xb7   : > { %4340 = vmatprep.subr.mxu0 %v3309_v60  ;;  %4141 = vmatprep.mubr.f32.mxu1 %v5086_v15 }
  0xb8   : > { %4341 = vmatpush3.msra.mxu0 %v3309_v60  ;;  %4142 = vmatmul.mubr.f32.gmra.mxu1 %v5090_v19  ;;  %v3410_v60 = vld [vmem:[%s6215_s1 + $0x470] sm:$0xff] }
  0xb9   : > { %4221 = vmatprep.mubr.f32.mxu0 %v4706_v16  ;;  %4262 = vmatprep.subr.mxu1 %v3260_v1  ;;  %v3258_v16 = vld [vmem:[%s6215_s1 + $0x2b0] sm:$0xff] }
  0xba   : > { %4222 = vmatmul.mubr.f32.gmra.mxu0 %v4710_v18  ;;  %4263 = vmatpush3.msra.mxu1 %v3260_v1  ;;  %v3306_v18 = vld [vmem:[%s6215_s1 + $0x330] sm:$0xff]  ;;  %v6286_v1 = vld [vmem:[#allocation10_spill] sm:$0xff] }
  0xbb   : > { %4342 = vmatprep.subr.mxu0 %v3308_v4  ;;  %4144 = vmatprep.mubr.f32.mxu1 %v5108_v5 }
  0xbc   : > { %4343 = vmatpush3.msra.mxu0 %v3308_v4  ;;  %4145 = vmatmul.mubr.f32.gmra.mxu1 %v5112_v56  ;;  %v3409_v4 = vld [vmem:[%s6215_s1 + $0x468] sm:$0xff] }
  0xbd   : > { %4224 = vmatprep.mubr.f32.mxu0 %v4725_v23  ;;  %4264 = vmatprep.subr.mxu1 %v3259_v9  ;;  %v3257_v23 = vld [vmem:[%s6215_s1 + $0x2a8] sm:$0xff] }
  0xbe   : > { %4225 = vmatmul.mubr.f32.gmra.mxu0 %v4734_v26  ;;  %4265 = vmatpush3.msra.mxu1 %v3259_v9  ;;  %v3305_v26 = vld [vmem:[%s6215_s1 + $0x328] sm:$0xff]  ;;  %v6288_v9 = vld [vmem:[#allocation12_spill] sm:$0xff] }
  0xbf   : > { %4344 = vmatprep.subr.mxu0 %v3307_v12  ;;  %4147 = vmatprep.mubr.f32.mxu1 %v5130_v32 }
  0xc0   : > { %4345 = vmatpush3.msra.mxu0 %v3307_v12  ;;  %4148 = vmatmul.mubr.f32.gmra.mxu1 %v5134_v24  ;;  %v3408_v12 = vld [vmem:[%s6215_s1 + $0x460] sm:$0xff] }
  0xc1   : > { %4227 = vmatprep.mubr.f32.mxu0 %v4752_v31  ;;  %4266 = vmatprep.subr.mxu1 %v3258_v16  ;;  %v3256_v31 = vld [vmem:[%s6215_s1 + $0x2a0] sm:$0xff] }
  0xc2   : > { %4228 = vmatmul.mubr.f32.gmra.mxu0 %v4762_v34  ;;  %4267 = vmatpush3.msra.mxu1 %v3258_v16  ;;  %v3304_v34 = vld [vmem:[%s6215_s1 + $0x320] sm:$0xff] }
  0xc3   : > { %4346 = vmatprep.subr.mxu0 %v3306_v18  ;;  %4150 = vmatprep.mubr.f32.mxu1 %v5152_v17  ;;  %v6290_v16 = vld [vmem:[#allocation14_spill] sm:$0xff] }
  0xc4   : > { %4347 = vmatpush3.msra.mxu0 %v3306_v18  ;;  %4151 = vmatmul.mubr.f32.gmra.mxu1 %v5156_v8  ;;  %v3407_v18 = vld [vmem:[%s6215_s1 + $0x458] sm:$0xff] }
  0xc5   : > { %4230 = vmatprep.mubr.f32.mxu0 %v4780_v39  ;;  %4268 = vmatprep.subr.mxu1 %v3257_v23  ;;  %v3255_v39 = vld [vmem:[%s6215_s1 + $0x298] sm:$0xff] }
  0xc6   : > { %4231 = vmatmul.mubr.f32.gmra.mxu0 %v4790_v42  ;;  %4269 = vmatpush3.msra.mxu1 %v3257_v23  ;;  %v3303_v42 = vld [vmem:[%s6215_s1 + $0x318] sm:$0xff] }
  0xc7   : > { %4348 = vmatprep.subr.mxu0 %v3305_v26  ;;  %4153 = vmatprep.mubr.f32.mxu1 %v5174_v6 }
  0xc8   : > { %4349 = vmatpush3.msra.mxu0 %v3305_v26  ;;  %4154 = vmatmul.mubr.f32.gmra.mxu1 %v5178_v61  ;;  %v6291_v26 = vld [vmem:[#allocation15_spill] sm:$0xff] }
  0xc9   : > { %4233 = vmatprep.mubr.f32.mxu0 %v4808_v47  ;;  %4270 = vmatprep.subr.mxu1 %v3256_v31  ;;  %v3254_v47 = vld [vmem:[%s6215_s1 + $0x290] sm:$0xff] }
  0xca   : > { %4234 = vmatmul.mubr.f32.gmra.mxu0 %v4818_v50  ;;  %4271 = vmatpush3.msra.mxu1 %v3256_v31  ;;  %v3302_v50 = vld [vmem:[%s6215_s1 + $0x310] sm:$0xff] }
  0xcb   : > { %4350 = vmatprep.subr.mxu0 %v3304_v34  ;;  %4156 = vmatprep.mubr.f32.mxu1 %v5196_v59 }
  0xcc   : > { %4351 = vmatpush3.msra.mxu0 %v3304_v34  ;;  %4157 = vmatmul.mubr.f32.gmra.mxu1 %v5200_v37  ;;  %v6292_v34 = vld [vmem:[#allocation16_spill] sm:$0xff] }
  0xcd   : > { %4236 = vmatprep.mubr.f32.mxu0 %v4836_v55  ;;  %4272 = vmatprep.subr.mxu1 %v3255_v39  ;;  %v6278_v55 = vld [vmem:[#allocation2_spill] sm:$0xff] }
  0xce   : > { %4237 = vmatmul.mubr.f32.gmra.mxu0 %v4846_v58  ;;  %4273 = vmatpush3.msra.mxu1 %v3255_v39  ;;  %v3253_v58 = vld [vmem:[%s6215_s1 + $0x288] sm:$0xff] }
  0xcf   : > { %4352 = vmatprep.subr.mxu0 %v3303_v42  ;;  %4159 = vmatprep.mubr.f32.mxu1 %v5218_v46  ;;  %v3357_v39 = vld [vmem:[%s6215_s1 + $0x3c8] sm:$0xff] }
  0xd0   : > { %4353 = vmatpush3.msra.mxu0 %v3303_v42  ;;  %4160 = vmatmul.mubr.f32.gmra.mxu1 %v5222_v22 }
  0xd1   : > { %4239 = vmatprep.mubr.f32.mxu0 %v4864_v63  ;;  %4274 = vmatprep.subr.mxu1 %v3254_v47  ;;  %v3301_v63 = vld [vmem:[%s6215_s1 + $0x308] sm:$0xff] }
  0xd2   : > { %4240 = vmatmul.mubr.f32.gmra.mxu0 %v6278_v55  ;;  %4275 = vmatpush3.msra.mxu1 %v3254_v47  ;;  %v6293_v47 = vld [vmem:[#allocation17_spill] sm:$0xff] }
  0xd3   : > { %4354 = vmatprep.subr.mxu0 %v3302_v50  ;;  %4162 = vmatprep.mubr.f32.mxu1 %v5240_v43 }
  0xd4   : > { %4355 = vmatpush3.msra.mxu0 %v3302_v50  ;;  %4163 = vmatmul.mubr.f32.gmra.mxu1 %v5244_v14  ;;  %v6294_v50 = vld [vmem:[#allocation18_spill] sm:$0xff] }
  0xd5   : > { %4242 = vmatprep.mubr.f32.mxu0 %v6279_v3  ;;  %4276 = vmatprep.subr.mxu1 %v3253_v58  ;;  %v6295_v3 = vld [vmem:[#allocation19_spill] sm:$0xff] }
  0xd6   : > { %4243 = vmatmul.mubr.f32.gmra.mxu0 %v6280_v35  ;;  %4277 = vmatpush3.msra.mxu1 %v3253_v58  ;;  %v3356_v58 = vld [vmem:[%s6215_s1 + $0x3c0] sm:$0xff]  ;;  %v6296_v35 = vld [vmem:[#allocation20_spill] sm:$0xff] }
  0xd7   : > { %4356 = vmatprep.subr.mxu0 %v3301_v63  ;;  %4165 = vmatprep.mubr.f32.mxu1 %v5412_v29 }
  0xd8   : > { %4357 = vmatpush3.msra.mxu0 %v3301_v63  ;;  %4166 = vmatmul.mubr.f32.gmra.mxu1 %v5416_v30 }
  0xd9   : > { %4245 = vmatprep.mubr.f32.mxu0 %v5420_v54  ;;  %4278 = vmatprep.subr.mxu1 %v3252_v27 }
  0xda   : > { %4246 = vmatmul.mubr.f32.gmra.mxu0 %v5427_v25  ;;  %4279 = vmatpush3.msra.mxu1 %v3252_v27 }
  0xdb   : > { %4358 = vmatprep.subr.mxu0 %v3300_v28  ;;  %4280 = vmatprep.mubr.f32.mxu1 %v6281_v36  ;;  %v6297_v36 = vld [vmem:[#allocation21_spill] sm:$0xff] }
  0xdc   : > { %4359 = vmatpush3.msra.mxu0 %v3300_v28  ;;  %4281 = vmatmul.mubr.f32.vlgmr.msra.gmra.mxu1 %v6282_v41  ;;  %v6298_v41 = vld [vmem:[#allocation22_spill] sm:$0xff] }
  0xdd   : > { %4360 = vmatprep.mubr.f32.mxu0 %v4954_v38  ;;  %4408 = vmatprep.subr.mxu1 %v3363_v33  ;;  %v3361_v38 = vld [vmem:[%s6215_s1 + $0x3e8] sm:$0xff] }
  0xde   : > { %4361 = vmatmul.mubr.f32.vlgmr.msra.gmra.mxu0 %v4958_v40  ;;  %4409 = vmatpush3.msra.mxu1 %v3363_v33  ;;  %v6285_v40 = vld [vmem:[#allocation9_spill] sm:$0xff] }
  0xdf   : > { %4488 = vmatprep.subr.mxu0 %v3411_v44  ;;  %4283 = vmatprep.mubr.f32.mxu1 %v6283_v52  ;;  %v6299_v52 = vld [vmem:[#allocation23_spill] sm:$0xff] }
  0xe0   : > { %4489 = vmatpush3.msra.mxu0 %v3411_v44  ;;  %4284 = vmatmul.mubr.f32.gmra.mxu1 %v6284_v57  ;;  %v3354_v44 = vld [vmem:[%s6215_s1 + $0x3b0] sm:$0xff] }
  0xe1   : > { %4363 = vmatprep.mubr.f32.mxu0 %v4976_v51  ;;  %4410 = vmatprep.subr.mxu1 %v3362_v49  ;;  %v3360_v51 = vld [vmem:[%s6215_s1 + $0x3e0] sm:$0xff]  ;;  %v6300_v57 = vld [vmem:[#allocation24_spill] sm:$0xff] }
  0xe2   : > { %4364 = vmatmul.mubr.f32.gmra.mxu0 %v4980_v53  ;;  %4411 = vmatpush3.msra.mxu1 %v3362_v49  ;;  %v6287_v53 = vld [vmem:[#allocation11_spill] sm:$0xff] }
  0xe3   : > { %4490 = vmatprep.subr.mxu0 %v3410_v60  ;;  %4286 = vmatprep.mubr.f32.mxu1 %v6285_v40 }
  0xe4   : > { %4491 = vmatpush3.msra.mxu0 %v3410_v60  ;;  %4287 = vmatmul.mubr.f32.gmra.mxu1 %v6286_v1  ;;  %v6301_v1 = vld [vmem:[#allocation25_spill] sm:$0xff] }
  0xe5   : > { %4366 = vmatprep.mubr.f32.mxu0 %v4998_v62  ;;  %4412 = vmatprep.subr.mxu1 %v3361_v38  ;;  %v3359_v62 = vld [vmem:[%s6215_s1 + $0x3d8] sm:$0xff] }
  0xe6   : > { %4367 = vmatmul.mubr.f32.gmra.mxu0 %v5002_v0  ;;  %4413 = vmatpush3.msra.mxu1 %v3361_v38  ;;  %v6289_v0 = vld [vmem:[#allocation13_spill] sm:$0xff]  ;;  %v3353_v38 = vld [vmem:[%s6215_s1 + $0x3a8] sm:$0xff] }
  0xe7   : > { %4492 = vmatprep.subr.mxu0 %v3409_v4  ;;  %4289 = vmatprep.mubr.f32.mxu1 %v6287_v53 }
  0xe8   : > { %4493 = vmatpush3.msra.mxu0 %v3409_v4  ;;  %4290 = vmatmul.mubr.f32.gmra.mxu1 %v6288_v9  ;;  %v6302_v4 = vld [vmem:[#allocation26_spill] sm:$0xff] }
  0xe9   : > { %4369 = vmatprep.mubr.f32.mxu0 %v5020_v11  ;;  %4414 = vmatprep.subr.mxu1 %v3360_v51 }
  0xea   : > { %4370 = vmatmul.mubr.f32.gmra.mxu0 %v5024_v13  ;;  %4415 = vmatpush3.msra.mxu1 %v3360_v51  ;;  %v3358_v13 = vld [vmem:[%s6215_s1 + $0x3d0] sm:$0xff] }
  0xeb   : > { %4494 = vmatprep.subr.mxu0 %v3408_v12  ;;  %4292 = vmatprep.mubr.f32.mxu1 %v6289_v0  ;;  %v3351_v0 = vld [vmem:[%s6215_s1 + $0x398] sm:$0xff] }
  0xec   : > { %4495 = vmatpush3.msra.mxu0 %v3408_v12  ;;  %4293 = vmatmul.mubr.f32.gmra.mxu1 %v6290_v16  ;;  %v6303_v12 = vld [vmem:[#allocation27_spill] sm:$0xff] }
  0xed   : > { %4372 = vmatprep.mubr.f32.mxu0 %v5042_v20  ;;  %4416 = vmatprep.subr.mxu1 %v3359_v62  ;;  %v5484_v11 = vpop.f32.mrf.mxu1  ;;  %v3406_v20 = vld [vmem:[%s6215_s1 + $0x450] sm:$0xff] }
  0xee   : > { %4373 = vmatmul.mubr.f32.gmra.mxu0 %v5046_v21  ;;  %4417 = vmatpush3.msra.mxu1 %v3359_v62  ;;  %v5490_v23 = vpop.f32.mrf.mxu0  ;;  %v6304_v62 = vld [vmem:[#allocation28_spill] sm:$0xff] }
  0xef   : > { %4496 = vmatprep.subr.mxu0 %v3407_v18  ;;  %4295 = vmatprep.mubr.f32.mxu1 %v6291_v26  ;;  %v5493_v31 = vpop.f32.mrf.mxu1 }
  0xf0   : > { %4497 = vmatpush3.msra.mxu0 %v3407_v18  ;;  %4296 = vmatmul.mubr.f32.gmra.mxu1 %v6292_v34  ;;  %v5499_v21 = vpop.f32.mrf.mxu0  ;;  %v6305_v18 = vld [vmem:[#allocation29_spill] sm:$0xff]  ;;  %v3350_v34 = vld [vmem:[%s6215_s1 + $0x390] sm:$0xff] }
  0xf1   : > { %4375 = vmatprep.mubr.f32.mxu0 %v5064_v45  ;;  %4418 = vmatprep.subr.mxu1 %v3358_v13  ;;  %v3405_v45 = vld [vmem:[%s6215_s1 + $0x448] sm:$0xff] }
  0xf2   : > { %4376 = vmatmul.mubr.f32.gmra.mxu0 %v5068_v48  ;;  %4419 = vmatpush3.msra.mxu1 %v3358_v13  ;;  %v5506_v42 = vpop.f32.mrf.mxu1  ;;  %v6306_v13 = vld [vmem:[#allocation30_spill] sm:$0xff] }
  0xf3   : > { %4498 = vmatprep.subr.mxu0 %v3406_v20  ;;  %4298 = vmatprep.mubr.f32.mxu1 %v6293_v47 }
  0xf4   : > { %4499 = vmatpush3.msra.mxu0 %v3406_v20  ;;  %4299 = vmatmul.mubr.f32.gmra.mxu1 %v6294_v50  ;;  %v5513_v55 = vpop.f32.mrf.mxu0  ;;  %v5515_v48 = vpop.f32.mrf.mxu1 }
  0xf5   : > { %4378 = vmatprep.mubr.f32.mxu0 %v5086_v15  ;;  %4420 = vmatprep.subr.mxu1 %v3357_v39  ;;  %v3404_v15 = vld [vmem:[%s6215_s1 + $0x440] sm:$0xff] }
  0xf6   : > { %4379 = vmatmul.mubr.f32.gmra.mxu0 %v5090_v19  ;;  %4421 = vmatpush3.msra.mxu1 %v3357_v39  ;;  %v5522_v63 = vpop.f32.mrf.mxu0  ;;  %v3355_v19 = vld [vmem:[%s6215_s1 + $0x3b8] sm:$0xff]  ;;  %v6307_v39 = vld [vmem:[#allocation31_spill] sm:$0xff] }
  0xf7   : > { %4500 = vmatprep.subr.mxu0 %v3405_v45  ;;  %4301 = vmatprep.mubr.f32.mxu1 %v6295_v3  ;;  %v3348_v3 = vld [vmem:[%s6215_s1 + $0x380] sm:$0xff] }
  0xf8   : > { %4501 = vmatpush3.msra.mxu0 %v3405_v45  ;;  %4302 = vmatmul.mubr.f32.gmra.mxu1 %v6296_v35  ;;  %v5529_v27 = vpop.f32.mrf.mxu1  ;;  %v5640_v45 = vld [vmem:[%s4700_s22 + $0x182] sm:$0xff] }
  0xf9   : > { %4381 = vmatprep.mubr.f32.mxu0 %v5108_v5  ;;  %4422 = vmatprep.subr.mxu1 %v3356_v58  ;;  %v3403_v5 = vld [vmem:[%s6215_s1 + $0x438] sm:$0xff] }
  0xfa   : > { %4382 = vmatmul.mubr.f32.gmra.mxu0 %v5112_v56  ;;  %4423 = vmatpush3.msra.mxu1 %v3356_v58  ;;  %v5536_v28 = vpop.f32.mrf.mxu0  ;;  %v5538_v33 = vpop.f32.mrf.mxu1  ;;  %v5644_v58 = vld [vmem:[%s4700_s22 + $0x18a] sm:$0xff] }
  0xfb   : > { %4502 = vmatprep.subr.mxu0 %v3404_v15  ;;  %4304 = vmatprep.mubr.f32.mxu1 %v6297_v36  ;;  %v3317_v36 = vld [vmem:[%s4700_s22 + $0x39] sm:$0xff] }
  0xfc   : > { %4503 = vmatpush3.msra.mxu0 %v3404_v15  ;;  %4305 = vmatmul.mubr.f32.gmra.mxu1 %v6298_v41  ;;  %v5545_v56 = vpop.f32.mrf.mxu0  ;;  %v3396_v15 = vld [vmem:[%s6215_s1 + $0x400] sm:$0xff] }
  0xfd   : > { %4384 = vmatprep.mubr.f32.mxu0 %v5130_v32  ;;  %4424 = vmatprep.subr.mxu1 %v3355_v19  ;;  %v3402_v32 = vld [vmem:[%s6215_s1 + $0x430] sm:$0xff] }
  0xfe   : > { %4385 = vmatmul.mubr.f32.gmra.mxu0 %v5134_v24  ;;  %4425 = vmatpush3.msra.mxu1 %v3355_v19  ;;  %v5552_v49 = vpop.f32.mrf.mxu1  ;;  %v3316_v19 = vld [vmem:[%s4700_s22 + $0x31] sm:$0xff] }
  0xff   : > { %4504 = vmatprep.subr.mxu0 %v3403_v5  ;;  %4307 = vmatprep.mubr.f32.mxu1 %v6299_v52  ;;  %v3365_v52 = vld [vmem:[%s4700_s22 + $0x3a] sm:$0xff] }
 0x100   : > { %4505 = vmatpush3.msra.mxu0 %v3403_v5  ;;  %4308 = vmatmul.mubr.f32.gmra.mxu1 %v6300_v57  ;;  %v5559_v60 = vpop.f32.mrf.mxu0  ;;  %v5561_v24 = vpop.f32.mrf.mxu1  ;;  %v3364_v5 = vld [vmem:[%s4700_s22 + $0x32] sm:$0xff] }
 0x101   : > { %4387 = vmatprep.mubr.f32.mxu0 %v5152_v17  ;;  %4426 = vmatprep.subr.mxu1 %v3354_v44  ;;  %v3401_v17 = vld [vmem:[%s6215_s1 + $0x428] sm:$0xff] }
 0x102   : > { %4388 = vmatmul.mubr.f32.gmra.mxu0 %v5156_v8  ;;  %4427 = vmatpush3.msra.mxu1 %v3354_v44  ;;  %v5568_v40 = vpop.f32.mrf.mxu0  ;;  %v3352_v8 = vld [vmem:[%s6215_s1 + $0x3a0] sm:$0xff]  ;;  %v3318_v44 = vld [vmem:[%s4700_s22 + $0x49] sm:$0xff] }
 0x103   : > { %4506 = vmatprep.subr.mxu0 %v3402_v32  ;;  %4310 = vmatprep.mubr.f32.mxu1 %v6301_v1  ;;  %v3319_v1 = vld [vmem:[%s4700_s22 + $0x51] sm:$0xff] }
 0x104   : > { %4507 = vmatpush3.msra.mxu0 %v3402_v32  ;;  %4311 = vmatmul.mubr.f32.gmra.mxu1 %v6302_v4  ;;  %v5575_v51 = vpop.f32.mrf.mxu1  ;;  %v3366_v32 = vld [vmem:[%s4700_s22 + $0x4a] sm:$0xff] }
 0x105   : > { %4390 = vmatprep.mubr.f32.mxu0 %v5174_v6  ;;  %4428 = vmatprep.subr.mxu1 %v3353_v38  ;;  %v3400_v6 = vld [vmem:[%s6215_s1 + $0x420] sm:$0xff] }
 0x106   : > { %4391 = vmatmul.mubr.f32.gmra.mxu0 %v5178_v61  ;;  %4429 = vmatpush3.msra.mxu1 %v3353_v38  ;;  %v5582_v53 = vpop.f32.mrf.mxu0  ;;  %v5584_v9 = vpop.f32.mrf.mxu1 }
 0x107   : > { %4508 = vmatprep.subr.mxu0 %v3401_v17  ;;  %4313 = vmatprep.mubr.f32.mxu1 %v6303_v12 }
 0x108   : > { %4509 = vmatpush3.msra.mxu0 %v3401_v17  ;;  %4314 = vmatmul.mubr.f32.gmra.mxu1 %v6304_v62  ;;  %v5591_v61 = vpop.f32.mrf.mxu0 }
 0x109   : > { %4393 = vmatprep.mubr.f32.mxu0 %v5196_v59  ;;  %4430 = vmatprep.subr.mxu1 %v3352_v8  ;;  %v3399_v59 = vld [vmem:[%s6215_s1 + $0x418] sm:$0xff] }
 0x10a   : > { %4394 = vmatmul.mubr.f32.gmra.mxu0 %v5200_v37  ;;  %4431 = vmatpush3.msra.mxu1 %v3352_v8  ;;  %v5598_v16 = vpop.f32.mrf.mxu1  ;;  %v3320_v8 = vld [vmem:[%s4700_s22 + $0x61] sm:$0xff] }
 0x10b   : > { %4510 = vmatprep.subr.mxu0 %v3400_v6  ;;  %4316 = vmatprep.mubr.f32.mxu1 %v6305_v18 }
 0x10c   : > { %4511 = vmatpush3.msra.mxu0 %v3400_v6  ;;  %4317 = vmatmul.mubr.f32.gmra.mxu1 %v6306_v13  ;;  %v5605_v26 = vpop.f32.mrf.mxu0  ;;  %v5607_v37 = vpop.f32.mrf.mxu1  ;;  %v3367_v6 = vld [vmem:[%s4700_s22 + $0x52] sm:$0xff] }
 0x10d   : > { %4396 = vmatprep.mubr.f32.mxu0 %v5218_v46  ;;  %4432 = vmatprep.subr.mxu1 %v3351_v0  ;;  %v3398_v46 = vld [vmem:[%s6215_s1 + $0x410] sm:$0xff] }
 0x10e   : > { %4397 = vmatmul.mubr.f32.gmra.mxu0 %v5222_v22  ;;  %4433 = vmatpush3.msra.mxu1 %v3351_v0  ;;  %v5614_v20 = vpop.f32.mrf.mxu0  ;;  %v3349_v22 = vld [vmem:[%s6215_s1 + $0x388] sm:$0xff] }
 0x10f   : > { %4512 = vmatprep.subr.mxu0 %v3399_v59  ;;  %4319 = vmatprep.mubr.f32.mxu1 %v6307_v39 }
 0x110   : > { %4513 = vmatpush3.msra.mxu0 %v3399_v59  ;;  %4320 = vmatmul.mubr.f32.gmra.mxu1 %v5233_v10  ;;  %v5621_v47 = vpop.f32.mrf.mxu1 }
 0x111   : > { %4399 = vmatprep.mubr.f32.mxu0 %v5240_v43  ;;  %4434 = vmatprep.subr.mxu1 %v3350_v34 }
 0x112   : > { %4400 = vmatmul.mubr.f32.gmra.mxu0 %v5244_v14  ;;  %4435 = vmatpush3.msra.mxu1 %v3350_v34  ;;  %v5628_v10 = vpop.f32.mrf.mxu0  ;;  %v5630_v50 = vpop.f32.mrf.mxu1  ;;  %v3397_v14 = vld [vmem:[%s6215_s1 + $0x408] sm:$0xff] }
 0x113   : > { %4514 = vmatprep.subr.mxu0 %v3398_v46  ;;  %4322 = vmatprep.mubr.f32.mxu1 %v5248_v7  ;;  %v3321_v34 = vld [vmem:[%s4700_s22 + $0x69] sm:$0xff] }
 0x114   : > { %4515 = vmatpush3.msra.mxu0 %v3398_v46  ;;  %4323 = vmatmul.mubr.f32.gmra.mxu1 %v5255_v2  ;;  %v5637_v43 = vpop.f32.mrf.mxu0  ;;  %v3298_v2 = vld [vmem:[%s4700_s22 + $0x198] sm:$0xff] }
 0x115   : > { %4402 = vmatprep.mubr.f32.mxu0 %v5412_v29  ;;  %4436 = vmatprep.subr.mxu1 %v3349_v22  ;;  %v3299_v29 = vld [vmem:[%s4700_s22 + $0x1a0] sm:$0xff] }
 0x116   : > { %4403 = vmatmul.mubr.f32.gmra.mxu0 %v5416_v30  ;;  %4437 = vmatpush3.msra.mxu1 %v3349_v22  ;;  %v5647_v7 = vpop.f32.mrf.mxu1  ;;  %v3322_v22 = vld [vmem:[%s4700_s22 + $0x79] sm:$0xff] }
 0x117   : > { %4516 = vmatprep.subr.mxu0 %v3397_v14  ;;  %4325 = vmatprep.mubr.f32.mxu1 %v5640_v45 }
 0x118   : > { %4517 = vmatpush3.msra.mxu0 %v3397_v14  ;;  %4326 = vmatmul.mubr.f32.gmra.mxu1 %v5644_v58  ;;  %v5656_v30 = vpop.f32.mrf.mxu0  ;;  %v5658_v35 = vpop.f32.mrf.mxu1 }
 0x119   : > { %4405 = vmatprep.mubr.f32.mxu0 %v3298_v2  ;;  %4438 = vmatprep.subr.mxu1 %v3348_v3  ;;  %v3369_v2 = vld [vmem:[%s4700_s22 + $0x6a] sm:$0xff] }
 0x11a   : > { %4406 = vmatmul.mubr.f32.gmra.mxu0 %v3299_v29  ;;  %4439 = vmatpush3.msra.mxu1 %v3348_v3  ;;  %v5665_v41 = vpop.f32.mrf.mxu0 }
 0x11b   : > { %4518 = vmatprep.subr.mxu0 %v3396_v15  ;;  %4440 = vmatprep.mubr.f32.mxu1 %v3316_v19 }
 0x11c   : > { %4519 = vmatpush3.msra.mxu0 %v3396_v15  ;;  %v3962_v57 = vpop.f32.mrf.mxu1  ;;  %4441 = vmatmul.mubr.f32.vlgmr.msra.gmra.mxu1 %v3317_v36  ;;  %v3370_v15 = vld [vmem:[%s4700_s22 + $0x7a] sm:$0xff] }
 0x11d   : > { %v565_v38 = vadd.f32 %v3962_v57, %v5490_v23  ;;  %4520 = vmatprep.mubr.f32.mxu0 %v3364_v5  ;;  %4443 = vmatprep.mubr.f32.mxu1 %v3318_v44  ;;  %v3368_v23 = vld [vmem:[%s4700_s22 + $0x62] sm:$0xff] }
 0x11e   : > { %v4042_v4 = vpop.f32.mrf.mxu0  ;;  %4521 = vmatmul.mubr.f32.vlgmr.msra.gmra.mxu0 %v3365_v52  ;;  %v559_v17 = vpop.f32.mrf.mxu1  ;;  %v3323_v36 = vld [vmem:[%s4700_s22 + $0x81] sm:$0xff]  ;;  %v3324_v52 = vld [vmem:[%s4700_s22 + $0x91] sm:$0xff] }
 0x11f   : > { %v5674_v12 = vadd.f32 %v4042_v4, %v565_v38  ;;  %v560_v62 = vadd.f32 %v559_v17, %v5499_v21  ;;  %4523 = vmatprep.mubr.f32.mxu0 %v3366_v32  ;;  %v3371_v32 = vld [vmem:[%s4700_s22 + $0x82] sm:$0xff]  ;;  %v3372_v4 = vld [vmem:[%s4700_s22 + $0x92] sm:$0xff] }
 0x120   : > { %v833_v0 = vpop.f32.mrf.mxu0  ;;  %v3965_v18 = vpop.f32.mrf.mxu1  ;;  %4444 = vmatmul.mubr.f32.gmra.mxu1 %v3319_v1 }
 0x121   : > { %v5679_v13 = vadd.f32 %v833_v0, %v560_v62  ;;  %v575_v59 = vadd.f32 %v3965_v18, %v5513_v55  ;;  %4446 = vmatprep.mubr.f32.mxu1 %v3320_v8  ;;  %v3325_v8 = vld [vmem:[%s4700_s22 + $0x99] sm:$0xff]  ;;  %v3326_v0 = vld [vmem:[%s4700_s22 + $0xa9] sm:$0xff] }
 0x122   : > { %v4045_v39 = vpop.f32.mrf.mxu0  ;;  %4524 = vmatmul.mubr.f32.gmra.mxu0 %v3367_v6  ;;  %v569_v46 = vpop.f32.mrf.mxu1 }
 0x123   : > { %v5684_v21 = vadd.f32 %v4045_v39, %v575_v59  ;;  %v570_v14 = vadd.f32 %v569_v46, %v5522_v63  ;;  %4526 = vmatprep.mubr.f32.mxu0 %v3368_v23  ;;  %v3373_v23 = vld [vmem:[%s4700_s22 + $0x9a] sm:$0xff]  ;;  %v3374_v39 = vld [vmem:[%s4700_s22 + $0xaa] sm:$0xff] }
 0x124   : > { %v843_v3 = vpop.f32.mrf.mxu0  ;;  %v3968_v29 = vpop.f32.mrf.mxu1  ;;  %4447 = vmatmul.mubr.f32.gmra.mxu1 %v3321_v34 }
 0x125   : > { %v5689_v55 = vadd.f32 %v843_v3, %v570_v14  ;;  %v585_v19 = vadd.f32 %v3968_v29, %v5536_v28  ;;  %4449 = vmatprep.mubr.f32.mxu1 %v3322_v22  ;;  %v3327_v22 = vld [vmem:[%s4700_s22 + $0xb1] sm:$0xff]  ;;  %v3328_v3 = vld [vmem:[%s4700_s22 + $0xc1] sm:$0xff] }
 0x126   : > { %v4048_v5 = vpop.f32.mrf.mxu0  ;;  %4527 = vmatmul.mubr.f32.gmra.mxu0 %v3369_v2  ;;  %v579_v44 = vpop.f32.mrf.mxu1 }
 0x127   : > { %v5694_v63 = vadd.f32 %v4048_v5, %v585_v19  ;;  %v580_v57 = vadd.f32 %v579_v44, %v5545_v56  ;;  %4529 = vmatprep.mubr.f32.mxu0 %v3370_v15  ;;  %v3375_v15 = vld [vmem:[%s4700_s22 + $0xb2] sm:$0xff]  ;;  %v3376_v5 = vld [vmem:[%s4700_s22 + $0xc2] sm:$0xff] }
 0x128   : > { %v853_v38 = vpop.f32.mrf.mxu0  ;;  %v3971_v1 = vpop.f32.mrf.mxu1  ;;  %4450 = vmatmul.mubr.f32.gmra.mxu1 %v3323_v36 }
 0x129   : > { %v5699_v28 = vadd.f32 %v853_v38, %v580_v57  ;;  %v595_v17 = vadd.f32 %v3971_v1, %v5559_v60  ;;  %4452 = vmatprep.mubr.f32.mxu1 %v3324_v52  ;;  %v3329_v52 = vld [vmem:[%s4700_s22 + $0xc9] sm:$0xff]  ;;  %v3330_v38 = vld [vmem:[%s4700_s22 + $0xd9] sm:$0xff] }
 0x12a   : > { %v4051_v62 = vpop.f32.mrf.mxu0  ;;  %4530 = vmatmul.mubr.f32.gmra.mxu0 %v3371_v32  ;;  %v589_v6 = vpop.f32.mrf.mxu1 }
 0x12b   : > { %v5704_v56 = vadd.f32 %v4051_v62, %v595_v17  ;;  %v590_v18 = vadd.f32 %v589_v6, %v5568_v40  ;;  %4532 = vmatprep.mubr.f32.mxu0 %v3372_v4  ;;  %v3377_v4 = vld [vmem:[%s4700_s22 + $0xca] sm:$0xff]  ;;  %v3378_v62 = vld [vmem:[%s4700_s22 + $0xda] sm:$0xff] }
 0x12c   : > { %v863_v59 = vpop.f32.mrf.mxu0  ;;  %v3974_v34 = vpop.f32.mrf.mxu1  ;;  %4453 = vmatmul.mubr.f32.gmra.mxu1 %v3325_v8 }
 0x12d   : > { %v5709_v60 = vadd.f32 %v863_v59, %v590_v18  ;;  %v605_v46 = vadd.f32 %v3974_v34, %v5582_v53  ;;  %4455 = vmatprep.mubr.f32.mxu1 %v3326_v0  ;;  %v3331_v0 = vld [vmem:[%s4700_s22 + $0xe1] sm:$0xff]  ;;  %v3332_v59 = vld [vmem:[%s4700_s22 + $0xf1] sm:$0xff] }
 0x12e   : > { %v4054_v14 = vpop.f32.mrf.mxu0  ;;  %4533 = vmatmul.mubr.f32.gmra.mxu0 %v3373_v23  ;;  %v599_v2 = vpop.f32.mrf.mxu1 }
 0x12f   : > { %v5714_v40 = vadd.f32 %v4054_v14, %v605_v46  ;;  %v600_v29 = vadd.f32 %v599_v2, %v5591_v61  ;;  %4535 = vmatprep.mubr.f32.mxu0 %v3374_v39  ;;  %v3379_v39 = vld [vmem:[%s4700_s22 + $0xe2] sm:$0xff]  ;;  %v3380_v14 = vld [vmem:[%s4700_s22 + $0xf2] sm:$0xff] }
 0x130   : > { %v873_v19 = vpop.f32.mrf.mxu0  ;;  %v3977_v36 = vpop.f32.mrf.mxu1  ;;  %4456 = vmatmul.mubr.f32.gmra.mxu1 %v3327_v22 }
 0x131   : > { %v5719_v53 = vadd.f32 %v873_v19, %v600_v29  ;;  %v615_v44 = vadd.f32 %v3977_v36, %v5605_v26  ;;  %4458 = vmatprep.mubr.f32.mxu1 %v3328_v3  ;;  %v3333_v3 = vld [vmem:[%s4700_s22 + $0xf9] sm:$0xff]  ;;  %v3334_v19 = vld [vmem:[%s4700_s22 + $0x109] sm:$0xff] }
 0x132   : > { %v4057_v57 = vpop.f32.mrf.mxu0  ;;  %4536 = vmatmul.mubr.f32.gmra.mxu0 %v3375_v15  ;;  %v609_v32 = vpop.f32.mrf.mxu1 }
 0x133   : > { %v5724_v61 = vadd.f32 %v4057_v57, %v615_v44  ;;  %v610_v1 = vadd.f32 %v609_v32, %v5614_v20  ;;  %4538 = vmatprep.mubr.f32.mxu0 %v3376_v5  ;;  %v3381_v5 = vld [vmem:[%s4700_s22 + $0xfa] sm:$0xff]  ;;  %v3382_v57 = vld [vmem:[%s4700_s22 + $0x10a] sm:$0xff] }
 0x134   : > { %v883_v17 = vpop.f32.mrf.mxu0  ;;  %v3980_v8 = vpop.f32.mrf.mxu1  ;;  %4459 = vmatmul.mubr.f32.gmra.mxu1 %v3329_v52 }
 0x135   : > { %v5729_v26 = vadd.f32 %v883_v17, %v610_v1  ;;  %v625_v6 = vadd.f32 %v3980_v8, %v5628_v10  ;;  %4461 = vmatprep.mubr.f32.mxu1 %v3330_v38  ;;  %v3335_v38 = vld [vmem:[%s4700_s22 + $0x111] sm:$0xff]  ;;  %v3336_v17 = vld [vmem:[%s4700_s22 + $0x121] sm:$0xff] }
 0x136   : > { %v4060_v18 = vpop.f32.mrf.mxu0  ;;  %4539 = vmatmul.mubr.f32.gmra.mxu0 %v3377_v4  ;;  %v619_v23 = vpop.f32.mrf.mxu1 }
 0x137   : > { %v5734_v20 = vadd.f32 %v4060_v18, %v625_v6  ;;  %v620_v34 = vadd.f32 %v619_v23, %v5637_v43  ;;  %4541 = vmatprep.mubr.f32.mxu0 %v3378_v62  ;;  %v3383_v62 = vld [vmem:[%s4700_s22 + $0x112] sm:$0xff]  ;;  %v3384_v18 = vld [vmem:[%s4700_s22 + $0x122] sm:$0xff] }
 0x138   : > { %v893_v46 = vpop.f32.mrf.mxu0  ;;  %v3983_v22 = vpop.f32.mrf.mxu1  ;;  %4462 = vmatmul.mubr.f32.gmra.mxu1 %v3331_v0 }
 0x139   : > { %v5739_v10 = vadd.f32 %v893_v46, %v620_v34  ;;  %v635_v2 = vadd.f32 %v3983_v22, %v5656_v30  ;;  %4464 = vmatprep.mubr.f32.mxu1 %v3332_v59  ;;  %v3337_v59 = vld [vmem:[%s4700_s22 + $0x129] sm:$0xff]  ;;  %v3338_v46 = vld [vmem:[%s4700_s22 + $0x139] sm:$0xff] }
 0x13a   : > { %v4063_v29 = vpop.f32.mrf.mxu0  ;;  %4542 = vmatmul.mubr.f32.gmra.mxu0 %v3379_v39  ;;  %v629_v15 = vpop.f32.mrf.mxu1 }
 0x13b   : > { %v5744_v43 = vadd.f32 %v4063_v29, %v635_v2  ;;  %v630_v36 = vadd.f32 %v629_v15, %v5665_v41  ;;  %4544 = vmatprep.mubr.f32.mxu0 %v3380_v14  ;;  %v3385_v14 = vld [vmem:[%s4700_s22 + $0x12a] sm:$0xff]  ;;  %v3386_v29 = vld [vmem:[%s4700_s22 + $0x13a] sm:$0xff] }
 0x13c   : > { %v903_v44 = vpop.f32.mrf.mxu0  ;;  %v3986_v52 = vpop.f32.mrf.mxu1  ;;  %4465 = vmatmul.mubr.f32.gmra.mxu1 %v3333_v3 }
 0x13d   : > { %v5749_v30 = vadd.f32 %v903_v44, %v630_v36  ;;  %v645_v32 = vadd.f32 %v3986_v52, %v5484_v11  ;;  %4467 = vmatprep.mubr.f32.mxu1 %v3334_v19  ;;  %v3339_v19 = vld [vmem:[%s4700_s22 + $0x141] sm:$0xff]  ;;  %v3340_v44 = vld [vmem:[%s4700_s22 + $0x151] sm:$0xff] }
 0x13e   : > { %v4066_v1 = vpop.f32.mrf.mxu0  ;;  %4545 = vmatmul.mubr.f32.gmra.mxu0 %v3381_v5  ;;  %v639_v4 = vpop.f32.mrf.mxu1 }
 0x13f   : > { %v5754_v41 = vadd.f32 %v4066_v1, %v645_v32  ;;  %v640_v8 = vadd.f32 %v639_v4, %v5493_v31  ;;  %4547 = vmatprep.mubr.f32.mxu0 %v3382_v57  ;;  %v3387_v57 = vld [vmem:[%s4700_s22 + $0x142] sm:$0xff]  ;;  %v3388_v1 = vld [vmem:[%s4700_s22 + $0x152] sm:$0xff] }
 0x140   : > { %v913_v6 = vpop.f32.mrf.mxu0  ;;  %v3989_v0 = vpop.f32.mrf.mxu1  ;;  %4468 = vmatmul.mubr.f32.gmra.mxu1 %v3335_v38 }
 0x141   : > { %v5759_v11 = vadd.f32 %v913_v6, %v640_v8  ;;  %v655_v23 = vadd.f32 %v3989_v0, %v5506_v42  ;;  %4470 = vmatprep.mubr.f32.mxu1 %v3336_v17  ;;  %v3341_v17 = vld [vmem:[%s4700_s22 + $0x159] sm:$0xff]  ;;  %v3342_v6 = vld [vmem:[%s4700_s22 + $0x169] sm:$0xff] }
 0x142   : > { %v4069_v34 = vpop.f32.mrf.mxu0  ;;  %4548 = vmatmul.mubr.f32.gmra.mxu0 %v3383_v62  ;;  %v649_v39 = vpop.f32.mrf.mxu1 }
 0x143   : > { %v5764_v31 = vadd.f32 %v4069_v34, %v655_v23  ;;  %v650_v22 = vadd.f32 %v649_v39, %v5515_v48  ;;  %4550 = vmatprep.mubr.f32.mxu0 %v3384_v18  ;;  %v3389_v18 = vld [vmem:[%s4700_s22 + $0x15a] sm:$0xff]  ;;  %v3390_v34 = vld [vmem:[%s4700_s22 + $0x16a] sm:$0xff] }
 0x144   : > { %v923_v2 = vpop.f32.mrf.mxu0  ;;  %v3992_v3 = vpop.f32.mrf.mxu1  ;;  %4471 = vmatmul.mubr.f32.gmra.mxu1 %v3337_v59 }
 0x145   : > { %v5769_v42 = vadd.f32 %v923_v2, %v650_v22  ;;  %v665_v15 = vadd.f32 %v3992_v3, %v5529_v27  ;;  %4473 = vmatprep.mubr.f32.mxu1 %v3338_v46  ;;  %v3343_v46 = vld [vmem:[%s4700_s22 + $0x171] sm:$0xff] }
 0x146   : > { %v4072_v36 = vpop.f32.mrf.mxu0  ;;  %4551 = vmatmul.mubr.f32.gmra.mxu0 %v3385_v14  ;;  %v659_v5 = vpop.f32.mrf.mxu1  ;;  %v3391_v3 = vld [vmem:[%s4700_s22 + $0x172] sm:$0xff] }
 0x147   : > { %v5774_v48 = vadd.f32 %v4072_v36, %v665_v15  ;;  %v660_v52 = vadd.f32 %v659_v5, %v5538_v33  ;;  %4553 = vmatprep.mubr.f32.mxu0 %v3386_v29 }
 0x148   : > { %v933_v32 = vpop.f32.mrf.mxu0  ;;  %v3995_v38 = vpop.f32.mrf.mxu1  ;;  %4474 = vmatmul.mubr.f32.gmra.mxu1 %v3339_v19 }
 0x149   : > { %v5779_v27 = vadd.f32 %v933_v32, %v660_v52  ;;  %v675_v4 = vadd.f32 %v3995_v38, %v5552_v49  ;;  %4476 = vmatprep.mubr.f32.mxu1 %v3340_v44  ;;  %v3346_v44 = vld [vmem:[%s4700_s22 + $0x199] sm:$0xff] }
 0x14a   : > { %v4075_v8 = vpop.f32.mrf.mxu0  ;;  %4554 = vmatmul.mubr.f32.gmra.mxu0 %v3387_v57  ;;  %v669_v62 = vpop.f32.mrf.mxu1  ;;  %v3394_v38 = vld [vmem:[%s4700_s22 + $0x19a] sm:$0xff] }
 0x14b   : > { %v5784_v33 = vadd.f32 %v4075_v8, %v675_v4  ;;  %v670_v0 = vadd.f32 %v669_v62, %v5561_v24  ;;  %4556 = vmatprep.mubr.f32.mxu0 %v3388_v1  ;;  %v3347_v1 = vld [vmem:[%s4700_s22 + $0x1a1] sm:$0xff] }
 0x14c   : > { %v943_v23 = vpop.f32.mrf.mxu0  ;;  %v3998_v59 = vpop.f32.mrf.mxu1  ;;  %4477 = vmatmul.mubr.f32.gmra.mxu1 %v3341_v17 }
 0x14d   : > { %v5789_v39 = vadd.f32 %v943_v23, %v670_v0  ;;  %v685_v49 = vadd.f32 %v3998_v59, %v5575_v51  ;;  %4479 = vmatprep.mubr.f32.mxu1 %v3342_v6 }
 0x14e   : > { %v4078_v22 = vpop.f32.mrf.mxu0  ;;  %4557 = vmatmul.mubr.f32.gmra.mxu0 %v3389_v18  ;;  %v679_v14 = vpop.f32.mrf.mxu1 }
 0x14f   : > { %v5793_v2 = vadd.f32 %v4078_v22, %v685_v49  ;;  %v680_v24 = vadd.f32 %v679_v14, %v5584_v9  ;;  %4559 = vmatprep.mubr.f32.mxu0 %v3390_v34 }
 0x150   : > { %v953_v29 = vpop.f32.mrf.mxu0  ;;  %v4001_v15 = vpop.f32.mrf.mxu1  ;;  %4480 = vmatmul.mubr.f32.gmra.mxu1 %v3343_v46 }
 0x151   : > { %v5797_v19 = vadd.f32 %v953_v29, %v680_v24  ;;  %v695_v51 = vadd.f32 %v4001_v15, %v5598_v16  ;;  %4482 = vmatprep.mubr.f32.mxu1 %v5420_v54 }
 0x152   : > { %v4081_v36 = vpop.f32.mrf.mxu0  ;;  %4560 = vmatmul.mubr.f32.gmra.mxu0 %v3391_v3  ;;  %v689_v5 = vpop.f32.mrf.mxu1 }
 0x153   : > { %v5802_v52 = vadd.f32 %v4081_v36, %v695_v51  ;;  %v690_v9 = vadd.f32 %v689_v5, %v5607_v37  ;;  %4562 = vmatprep.mubr.f32.mxu0 %v5640_v45  ;;  %v3395_v45 = vld [vmem:[%s4700_s22 + $0x1a2] sm:$0xff] }
 0x154   : > { %v963_v57 = vpop.f32.mrf.mxu0  ;;  %v4004_v32 = vpop.f32.mrf.mxu1  ;;  %4483 = vmatmul.mubr.f32.gmra.mxu1 %v5427_v25 }
 0x155   : > { %v5808_v16 = vadd.f32 %v963_v57, %v690_v9  ;;  %v705_v54 = vadd.f32 %v4004_v32, %v5621_v47  ;;  %4485 = vmatprep.mubr.f32.mxu1 %v3346_v44 }
 0x156   : > { %v4084_v4 = vpop.f32.mrf.mxu0  ;;  %4563 = vmatmul.mubr.f32.gmra.mxu0 %v5644_v58  ;;  %v699_v17 = vpop.f32.mrf.mxu1 }
 0x157   : > { %v5813_v8 = vadd.f32 %v4084_v4, %v705_v54  ;;  %v700_v37 = vadd.f32 %v699_v17, %v5630_v50  ;;  %4565 = vmatprep.mubr.f32.mxu0 %v3394_v38 }
 0x158   : > { %v973_v62 = vpop.f32.mrf.mxu0  ;;  %v4007_v6 = vpop.f32.mrf.mxu1  ;;  %4486 = vmatmul.mubr.f32.gmra.mxu1 %v3347_v1 }
 0x159   : > { %v5817_v25 = vadd.f32 %v973_v62, %v700_v37  ;;  %v715_v0 = vadd.f32 %v4007_v6, %v5647_v7 }
 0x15a   : > { %v4087_v47 = vpop.f32.mrf.mxu0  ;;  %4566 = vmatmul.mubr.f32.gmra.mxu0 %v3395_v45  ;;  %v709_v18 = vpop.f32.mrf.mxu1 }
 0x15b   : > { %v5820_v23 = vadd.f32 %v4087_v47, %v715_v0  ;;  %v710_v58 = vadd.f32 %v709_v18, %v5658_v35 }
 0x15c   : > { %v983_v59 = vpop.f32.mrf.mxu0  ;;  %v4122_v34 = vpop.f32.mrf.mxu1 }
 0x15d   : > { %v5823_v49 = vadd.f32 %v983_v59, %v710_v58  ;;  %v1300_v50 = vadd.f32 %v4122_v34, %v5674_v12 }
 0x15e   : > { %v4202_v46 = vpop.f32.mrf.mxu0  ;;  %v1140_v22 = vpop.f32.mrf.mxu1 }
 0x15f   : > { %v5826_v14 = vadd.f32 %v4202_v46, %v1300_v50  ;;  %v1299_v24 = vadd.f32 %v1140_v22, %v5679_v13 }
 0x160   : > { %v1446_v7 = vpop.f32.mrf.mxu0  ;;  %v4125_v3 = vpop.f32.mrf.mxu1 }
 0x161   : > { %v5829_v29 = vadd.f32 %v1446_v7, %v1299_v24  ;;  %v1302_v15 = vadd.f32 %v4125_v3, %v5684_v21 }
 0x162   : > { %v4205_v51 = vpop.f32.mrf.mxu0  ;;  %v1150_v35 = vpop.f32.mrf.mxu1 }
 0x163   : > { %v5832_v36 = vadd.f32 %v4205_v51, %v1302_v15  ;;  %v1301_v5 = vadd.f32 %v1150_v35, %v5689_v55 }
 0x164   : > { %v1456_v44 = vpop.f32.mrf.mxu0  ;;  %v4128_v12 = vpop.f32.mrf.mxu1 }
 0x165   : > { %v5835_v9 = vadd.f32 %v1456_v44, %v1301_v5  ;;  %v1304_v57 = vadd.f32 %v4128_v12, %v5694_v63 }
 0x166   : > { %v4208_v32 = vpop.f32.mrf.mxu0  ;;  %v1160_v13 = vpop.f32.mrf.mxu1 }
 0x167   : > { %v5838_v38 = vadd.f32 %v4208_v32, %v1304_v57  ;;  %v1303_v54 = vadd.f32 %v1160_v13, %v5699_v28 }
 0x168   : > { %v1466_v1 = vpop.f32.mrf.mxu0  ;;  %v4131_v21 = vpop.f32.mrf.mxu1 }
 0x169   : > { %v5841_v4 = vadd.f32 %v1466_v1, %v1303_v54  ;;  %v1306_v17 = vadd.f32 %v4131_v21, %v5704_v56 }
 0x16a   : > { %v4211_v37 = vpop.f32.mrf.mxu0  ;;  %v1170_v55 = vpop.f32.mrf.mxu1 }
 0x16b   : > { %v5844_v45 = vadd.f32 %v4211_v37, %v1306_v17  ;;  %v1305_v62 = vadd.f32 %v1170_v55, %v5709_v60 }
 0x16c   : > { %v1476_v6 = vpop.f32.mrf.mxu0  ;;  %v4134_v63 = vpop.f32.mrf.mxu1 }
 0x16d   : > { %v5847_v0 = vadd.f32 %v1476_v6, %v1305_v62  ;;  %v1308_v47 = vadd.f32 %v4134_v63, %v5714_v40 }
 0x16e   : > { %v4214_v18 = vpop.f32.mrf.mxu0  ;;  %v1180_v28 = vpop.f32.mrf.mxu1 }
 0x16f   : > { %v5850_v58 = vadd.f32 %v4214_v18, %v1308_v47  ;;  %v1307_v59 = vadd.f32 %v1180_v28, %v5719_v53 }
 0x170   : > { %v1486_v34 = vpop.f32.mrf.mxu0  ;;  %v4137_v56 = vpop.f32.mrf.mxu1 }
 0x171   : > { %v5853_v50 = vadd.f32 %v1486_v34, %v1307_v59  ;;  %v1310_v46 = vadd.f32 %v4137_v56, %v5724_v61 }
 0x172   : > { %v4217_v22 = vpop.f32.mrf.mxu0  ;;  %v1190_v60 = vpop.f32.mrf.mxu1 }
 0x173   : > { %v5856_v24 = vadd.f32 %v4217_v22, %v1310_v46  ;;  %v1309_v7 = vadd.f32 %v1190_v60, %v5729_v26 }
 0x174   : > { %v1496_v3 = vpop.f32.mrf.mxu0  ;;  %v4140_v40 = vpop.f32.mrf.mxu1 }
 0x175   : > { %v5859_v15 = vadd.f32 %v1496_v3, %v1309_v7  ;;  %v1312_v51 = vadd.f32 %v4140_v40, %v5734_v20 }
 0x176   : > { %v4220_v35 = vpop.f32.mrf.mxu0  ;;  %v1200_v53 = vpop.f32.mrf.mxu1 }
 0x177   : > { %v5862_v5 = vadd.f32 %v4220_v35, %v1312_v51  ;;  %v1311_v44 = vadd.f32 %v1200_v53, %v5739_v10 }
 0x178   : > { %v1506_v12 = vpop.f32.mrf.mxu0  ;;  %v4143_v61 = vpop.f32.mrf.mxu1 }
 0x179   : > { %v5865_v57 = vadd.f32 %v1506_v12, %v1311_v44  ;;  %v1314_v32 = vadd.f32 %v4143_v61, %v5744_v43 }
 0x17a   : > { %v4223_v13 = vpop.f32.mrf.mxu0  ;;  %v1210_v26 = vpop.f32.mrf.mxu1 }
 0x17b   : > { %v5868_v54 = vadd.f32 %v4223_v13, %v1314_v32  ;;  %v1313_v1 = vadd.f32 %v1210_v26, %v5749_v30 }
 0x17c   : > { %v1516_v21 = vpop.f32.mrf.mxu0  ;;  %v4146_v20 = vpop.f32.mrf.mxu1 }
 0x17d   : > { %v5871_v17 = vadd.f32 %v1516_v21, %v1313_v1  ;;  %v1316_v37 = vadd.f32 %v4146_v20, %v5754_v41 }
 0x17e   : > { %v4226_v55 = vpop.f32.mrf.mxu0  ;;  %v1220_v10 = vpop.f32.mrf.mxu1 }
 0x17f   : > { %v5874_v62 = vadd.f32 %v4226_v55, %v1316_v37  ;;  %v1315_v6 = vadd.f32 %v1220_v10, %v5759_v11 }
 0x180   : > { %v1526_v63 = vpop.f32.mrf.mxu0  ;;  %v4149_v43 = vpop.f32.mrf.mxu1 }
 0x181   : > { %v5877_v47 = vadd.f32 %v1526_v63, %v1315_v6  ;;  %v1318_v18 = vadd.f32 %v4149_v43, %v5764_v31 }
 0x182   : > { %v4229_v28 = vpop.f32.mrf.mxu0  ;;  %v1230_v30 = vpop.f32.mrf.mxu1 }
 0x183   : > { %v5880_v59 = vadd.f32 %v4229_v28, %v1318_v18  ;;  %v1317_v34 = vadd.f32 %v1230_v30, %v5769_v42 }
 0x184   : > { %v1536_v56 = vpop.f32.mrf.mxu0  ;;  %v4152_v41 = vpop.f32.mrf.mxu1 }
 0x185   : > { %6308 = vst [vmem:[#allocation2_spill] sm:$0xff] %v5880_v59  ;;  %v5883_v46 = vadd.f32 %v1536_v56, %v1317_v34  ;;  %v1320_v22 = vadd.f32 %v4152_v41, %v5774_v48 }
 0x186   : > { %v4232_v60 = vpop.f32.mrf.mxu0  ;;  %v1240_v11 = vpop.f32.mrf.mxu1 }
 0x187   : > { %6309 = vst [vmem:[#allocation3_spill] sm:$0xff] %v5883_v46  ;;  %v5886_v7 = vadd.f32 %v4232_v60, %v1320_v22  ;;  %v1319_v3 = vadd.f32 %v1240_v11, %v5779_v27 }
 0x188   : > { %v1546_v40 = vpop.f32.mrf.mxu0  ;;  %v4155_v31 = vpop.f32.mrf.mxu1 }
 0x189   : > { %6310 = vst [vmem:[#allocation4_spill] sm:$0xff] %v5886_v7  ;;  %v5889_v51 = vadd.f32 %v1546_v40, %v1319_v3  ;;  %v1322_v35 = vadd.f32 %v4155_v31, %v5784_v33 }
 0x18a   : > { %v4235_v53 = vpop.f32.mrf.mxu0  ;;  %v1250_v42 = vpop.f32.mrf.mxu1 }
 0x18b   : > { %6311 = vst [vmem:[#allocation5_spill] sm:$0xff] %v5889_v51  ;;  %v5892_v44 = vadd.f32 %v4235_v53, %v1322_v35  ;;  %v1321_v12 = vadd.f32 %v1250_v42, %v5789_v39 }
 0x18c   : > { %v1556_v61 = vpop.f32.mrf.mxu0  ;;  %v4158_v48 = vpop.f32.mrf.mxu1 }
 0x18d   : > { %6312 = vst [vmem:[#allocation6_spill] sm:$0xff] %v5892_v44  ;;  %v5895_v32 = vadd.f32 %v1556_v61, %v1321_v12  ;;  %v1324_v13 = vadd.f32 %v4158_v48, %v5793_v2 }
 0x18e   : > { %v4238_v26 = vpop.f32.mrf.mxu0  ;;  %v1260_v27 = vpop.f32.mrf.mxu1 }
 0x18f   : > { %6313 = vst [vmem:[#allocation7_spill] sm:$0xff] %v5895_v32  ;;  %v5898_v1 = vadd.f32 %v4238_v26, %v1324_v13  ;;  %v1323_v21 = vadd.f32 %v1260_v27, %v5797_v19 }
 0x190   : > { %v1566_v20 = vpop.f32.mrf.mxu0  ;;  %v4161_v33 = vpop.f32.mrf.mxu1 }
 0x191   : > { %6314 = vst [vmem:[#allocation8_spill] sm:$0xff] %v5898_v1  ;;  %v5901_v37 = vadd.f32 %v1566_v20, %v1323_v21  ;;  %v1326_v55 = vadd.f32 %v4161_v33, %v5802_v52 }
 0x192   : > { %v4241_v10 = vpop.f32.mrf.mxu0  ;;  %v1270_v39 = vpop.f32.mrf.mxu1 }
 0x193   : > { %6315 = vst [vmem:[#allocation9_spill] sm:$0xff] %v5901_v37  ;;  %v5904_v6 = vadd.f32 %v4241_v10, %v1326_v55  ;;  %v1325_v63 = vadd.f32 %v1270_v39, %v5808_v16 }
 0x194   : > { %v1576_v43 = vpop.f32.mrf.mxu0  ;;  %v4164_v2 = vpop.f32.mrf.mxu1 }
 0x195   : > { %6316 = vst [vmem:[#allocation10_spill] sm:$0xff] %v5904_v6  ;;  %v5907_v18 = vadd.f32 %v1576_v43, %v1325_v63  ;;  %v1328_v28 = vadd.f32 %v4164_v2, %v5813_v8 }
 0x196   : > { %v4244_v30 = vpop.f32.mrf.mxu0  ;;  %v1280_v19 = vpop.f32.mrf.mxu1 }
 0x197   : > { %6317 = vst [vmem:[#allocation11_spill] sm:$0xff] %v5907_v18  ;;  %v5910_v34 = vadd.f32 %v4244_v30, %v1328_v28  ;;  %v1327_v56 = vadd.f32 %v1280_v19, %v5817_v25 }
 0x198   : > { %v1586_v41 = vpop.f32.mrf.mxu0  ;;  %v4167_v52 = vpop.f32.mrf.mxu1 }
 0x199   : > { %6318 = vst [vmem:[#allocation12_spill] sm:$0xff] %v5910_v34  ;;  %v5913_v22 = vadd.f32 %v1586_v41, %v1327_v56  ;;  %v1330_v60 = vadd.f32 %v4167_v52, %v5820_v23 }
 0x19a   : > { %v4247_v11 = vpop.f32.mrf.mxu0  ;;  %v1290_v16 = vpop.f32.mrf.mxu1 }
 0x19b   : > { %6319 = vst [vmem:[#allocation13_spill] sm:$0xff] %v5913_v22  ;;  %v5916_v3 = vadd.f32 %v4247_v11, %v1330_v60  ;;  %v1329_v40 = vadd.f32 %v1290_v16, %v5823_v49 }
 0x19c   : > { %v1596_v31 = vpop.f32.mrf.mxu0  ;;  %v4282_v8 = vpop.f32.mrf.mxu1 }
 0x19d   : > { %6320 = vst [vmem:[#allocation14_spill] sm:$0xff] %v5916_v3  ;;  %v5919_v35 = vadd.f32 %v1596_v31, %v1329_v40 }
 0x19e   : > { %v5921_v53 = vpop.f32.mrf.mxu0  ;;  %v1752_v42 = vpop.f32.mrf.mxu1 }
 0x19f   : > { %6321 = vst [vmem:[#allocation15_spill] sm:$0xff] %v5919_v35 }
 0x1a0   : > { %v5923_v25 = vpop.f32.mrf.mxu0  ;;  %v4285_v12 = vpop.f32.mrf.mxu1 }
 0x1a2   : > { %v5925_v61 = vpop.f32.mrf.mxu0  ;;  %v5927_v48 = vpop.f32.mrf.mxu1 }
 0x1a4   : > { %v5929_v23 = vpop.f32.mrf.mxu0  ;;  %v5931_v13 = vpop.f32.mrf.mxu1 }
 0x1a6   : > { %v5933_v26 = vpop.f32.mrf.mxu0  ;;  %v5935_v49 = vpop.f32.mrf.mxu1 }
 0x1a8   : > { %v5937_v27 = vpop.f32.mrf.mxu0  ;;  %v5939_v21 = vpop.f32.mrf.mxu1 }
 0x1aa   : > { %v5941_v20 = vpop.f32.mrf.mxu0  ;;  %v5943_v33 = vpop.f32.mrf.mxu1 }
 0x1ac   : > { %v5945_v55 = vpop.f32.mrf.mxu0  ;;  %v5947_v10 = vpop.f32.mrf.mxu1 }
 0x1ae   : > { %v5949_v39 = vpop.f32.mrf.mxu0  ;;  %v5951_v63 = vpop.f32.mrf.mxu1 }
 0x1b0   : > { %v5953_v43 = vpop.f32.mrf.mxu0  ;;  %v5955_v2 = vpop.f32.mrf.mxu1 }
 0x1b2   : > { %v5957_v28 = vpop.f32.mrf.mxu0  ;;  %v5959_v30 = vpop.f32.mrf.mxu1 }
 0x1b4   : > { %v5961_v19 = vpop.f32.mrf.mxu0  ;;  %v5963_v56 = vpop.f32.mrf.mxu1 }
 0x1b6   : > { %v5965_v41 = vpop.f32.mrf.mxu0  ;;  %v5967_v52 = vpop.f32.mrf.mxu1 }
 0x1b8   : > { %v5969_v60 = vpop.f32.mrf.mxu0  ;;  %v5971_v11 = vpop.f32.mrf.mxu1 }
 0x1ba   : > { %v5973_v16 = vpop.f32.mrf.mxu0  ;;  %v5975_v40 = vpop.f32.mrf.mxu1 }
 0x1bc   : > { %v5977_v31 = vpop.f32.mrf.mxu0  ;;  %v5979_v35 = vpop.f32.mrf.mxu1 }
 0x1be   : > { %v5981_v3 = vpop.f32.mrf.mxu0  ;;  %v5983_v22 = vpop.f32.mrf.mxu1 }
 0x1c0   : > { %v5985_v34 = vpop.f32.mrf.mxu0  ;;  %v5987_v18 = vpop.f32.mrf.mxu1 }
 0x1c1   : > { %6322 = vst [vmem:[#allocation16_spill] sm:$0xff] %v5985_v34  ;;  %6323 = vst [vmem:[#allocation17_spill] sm:$0xff] %v5987_v18 }
 0x1c2   : > { %v5989_v6 = vpop.f32.mrf.mxu0  ;;  %v5991_v37 = vpop.f32.mrf.mxu1 }
 0x1c3   : > { %6324 = vst [vmem:[#allocation18_spill] sm:$0xff] %v5989_v6  ;;  %6325 = vst [vmem:[#allocation19_spill] sm:$0xff] %v5991_v37 }
 0x1c4   : > { %v5993_v1 = vpop.f32.mrf.mxu0  ;;  %v5995_v32 = vpop.f32.mrf.mxu1 }
 0x1c5   : > { %6326 = vst [vmem:[#allocation20_spill] sm:$0xff] %v5993_v1  ;;  %6327 = vst [vmem:[#allocation21_spill] sm:$0xff] %v5995_v32 }
 0x1c6   : > { %v5997_v44 = vpop.f32.mrf.mxu0  ;;  %v5999_v51 = vpop.f32.mrf.mxu1 }
 0x1c7   : > { %6328 = vst [vmem:[#allocation22_spill] sm:$0xff] %v5997_v44  ;;  %6329 = vst [vmem:[#allocation23_spill] sm:$0xff] %v5999_v51 }
 0x1c8   : > { %v6001_v7 = vpop.f32.mrf.mxu0  ;;  %v6003_v46 = vpop.f32.mrf.mxu1 }
 0x1c9   : > { %6330 = vst [vmem:[#allocation24_spill] sm:$0xff] %v6001_v7  ;;  %6331 = vst [vmem:[#allocation25_spill] sm:$0xff] %v6003_v46 }
 0x1ca   : > { %v6005_v59 = vpop.f32.mrf.mxu0  ;;  %v6007_v34 = vpop.f32.mrf.mxu1 }
 0x1cb   : > { %6332 = vst [vmem:[#allocation26_spill] sm:$0xff] %v6005_v59  ;;  %6333 = vst [vmem:[#allocation27_spill] sm:$0xff] %v6007_v34 }
 0x1cc   : > { %v6009_v18 = vpop.f32.mrf.mxu0  ;;  %v6011_v6 = vpop.f32.mrf.mxu1 }
 0x1cd   : > { %6334 = vst [vmem:[#allocation28_spill] sm:$0xff] %v6009_v18  ;;  %6335 = vst [vmem:[#allocation29_spill] sm:$0xff] %v6011_v6 }
 0x1ce   : > { %v6013_v37 = vpop.f32.mrf.mxu0  ;;  %v6015_v1 = vpop.f32.mrf.mxu1 }
 0x1cf   : > { %6336 = vst [vmem:[#allocation30_spill] sm:$0xff] %v6013_v37  ;;  %6337 = vst [vmem:[#allocation31_spill] sm:$0xff] %v6015_v1  ;;  %v1912_v37 = vadd.f32 %v4282_v8, %v5826_v14 }
 0x1d0   : > { %v6017_v32 = vpop.f32.mrf.mxu0  ;;  %v6019_v44 = vpop.f32.mrf.mxu1 }
 0x1d1   : > { %6338 = vst [vmem:[#allocation32_spill] sm:$0xff] %v6017_v32  ;;  %6339 = vst [vmem:[#allocation33_spill] sm:$0xff] %v6019_v44  ;;  %v1911_v32 = vadd.f32 %v1752_v42, %v5829_v29  ;;  %v1916_v29 = vadd.f32 %v5931_v13, %v5838_v38  ;;  %v1915_v42 = vadd.f32 %v5935_v49, %v5841_v4 }
 0x1d2   : > { %v6021_v51 = vpop.f32.mrf.mxu0  ;;  %v6023_v7 = vpop.f32.mrf.mxu1 }
 0x1d3   : > { %6340 = vst [vmem:[#allocation34_spill] sm:$0xff] %v6021_v51  ;;  %v2218_v14 = vadd.f32 %v5923_v25, %v1911_v32  ;;  %v2223_v13 = vadd.f32 %v5933_v26, %v1916_v29  ;;  %v2222_v49 = vadd.f32 %v5937_v27, %v1915_v42 }
 0x1d4   : > { %v6025_v46 = vpop.f32.mrf.mxu0  ;;  %v6027_v59 = vpop.f32.mrf.mxu1 }
 0x1d5   : > { %6341 = vst [vmem:[#allocation35_spill] sm:$0xff] %v6025_v46  ;;  %6342 = vst [vmem:[#allocation36_spill] sm:$0xff] %v6027_v59  ;;  %v2219_v46 = vadd.f32 %v5921_v53, %v1912_v37  ;;  %v1914_v59 = vadd.f32 %v4285_v12, %v5832_v36  ;;  %v6057_v36 = vld [vmem:[%s6216_s2] ss:$0 sm:$0xff] }
 0x1d6   : > { %v6029_v34 = vpop.f32.mrf.mxu0  ;;  %v6031_v18 = vpop.f32.mrf.mxu1 }
 0x1d7   : > { %6343 = vst [vmem:[#allocation37_spill] sm:$0xff] %v6029_v34  ;;  %6344 = vst [vmem:[#allocation38_spill] sm:$0xff] %v6031_v18  ;;  %v2221_v53 = vadd.f32 %v5925_v61, %v1914_v59 }
 0x1d8   : > { %v6034_v6 = vpop.f32.mrf.mxu0  ;;  %v6036_v1 = vpop.f32.mrf.mxu1 }
 0x1d9   : > { %6345 = vst [vmem:[#allocation39_spill] sm:$0xff] %v6034_v6  ;;  %v1913_v6 = vadd.f32 %v5927_v48, %v5835_v9  ;;  %v1918_v9 = vadd.f32 %v5939_v21, %v5844_v45 }
 0x1da   : > { %v6039_v44 = vpop.f32.mrf.mxu0  ;;  %v6041_v51 = vpop.f32.mrf.mxu1 }
 0x1db   : > { %6346 = vst [vmem:[#allocation40_spill] sm:$0xff] %v6039_v44  ;;  %v2220_v48 = vadd.f32 %v5929_v23, %v1913_v6  ;;  %v2225_v21 = vadd.f32 %v5941_v20, %v1918_v9  ;;  %v1917_v6 = vadd.f32 %v5943_v33, %v5847_v0  ;;  %v1920_v23 = vadd.f32 %v5947_v10, %v5850_v58 }
 0x1dc   : > { %v6045_v34 = vpop.f32.mrf.mxu0  ;;  %v4442_v18 = vpop.f32.mrf.mxu1  ;;  %v1922_v20 = vadd.f32 %v5955_v2, %v5856_v24  ;;  %v1921_v9 = vadd.f32 %v5959_v30, %v5859_v15 }
 0x1dd   : > { %6347 = vst [vmem:[#allocation41_spill] sm:$0xff] %v6045_v34  ;;  %v2525_v8 = vadd.f32 %v4442_v18, %v2219_v46 }
 0x1de   : > { %v4522_v44 = vpop.f32.mrf.mxu0  ;;  %v2365_v37 = vpop.f32.mrf.mxu1 }
 0x1df   : > { %v2831_v32 = vadd.f32 %v4522_v44, %v2525_v8  ;;  %v2524_v46 = vadd.f32 %v2365_v37, %v2218_v14 }
 0x1e0   : > { %v2671_v18 = vpop.f32.mrf.mxu0  ;;  %v4445_v38 = vpop.f32.mrf.mxu1 }
 0x1e1   : > { %v2870_v25 = vadd.f32 %v6057_v36, %v2831_v32  ;;  %v2830_v4 = vadd.f32 %v2671_v18, %v2524_v46  ;;  %v2527_v12 = vadd.f32 %v4445_v38, %v2221_v53  ;;  %v2224_v46 = vadd.f32 %v5945_v55, %v1917_v6 }
 0x1e2   : > { %v4525_v34 = vpop.f32.mrf.mxu0  ;;  %v2375_v59 = vpop.f32.mrf.mxu1  ;;  %v2227_v18 = vadd.f32 %v5949_v39, %v1920_v23  ;;  %v2228_v39 = vadd.f32 %v5961_v19, %v1921_v9 }
 0x1e3   : > { %vm2902_vm0 = vcmp.ge.f32.partialorder %v2870_v25, 0.0  ;;  %v2934_v45 = vmul.f32 0.01, %v2870_v25  ;;  %v2869_v44 = vadd.f32 %v6057_v36, %v2830_v4  ;;  %v2833_v61 = vadd.f32 %v4525_v34, %v2527_v12 }
 0x1e4   : > { %v2526_v26 = vadd.f32 %v2375_v59, %v2220_v48  ;;  %v2681_v27 = vpop.f32.mrf.mxu0  ;;  %v4448_v14 = vpop.f32.mrf.mxu1  ;;  %v1919_v34 = vadd.f32 %v5951_v63, %v5853_v50 }
 0x1e5   : > { %v2966_v8 = vsel %vm2902_vm0, %v2870_v25, %v2934_v45  ;;  %vm2901_vm1 = vcmp.ge.f32.partialorder %v2869_v44, 0.0  ;;  %v2933_v29 = vmul.f32 0.01, %v2869_v44  ;;  %v2872_v42 = vadd.f32 %v6057_v36, %v2833_v61 }
 0x1e6   : > { %2998 = vst [vmem:[%s6070_s20 + $0x8] sm:$0xff] %v2966_v8  ;;  %v2832_v0 = vadd.f32 %v2681_v27, %v2526_v26  ;;  %v2529_v33 = vadd.f32 %v4448_v14, %v2223_v13  ;;  %v4528_v37 = vpop.f32.mrf.mxu0  ;;  %v2385_v58 = vpop.f32.mrf.mxu1  ;;  %v2226_v12 = vadd.f32 %v5953_v43, %v1919_v34  ;;  %v2229_v13 = vadd.f32 %v5957_v28, %v1922_v20 }
 0x1e7   : > { %v2965_v10 = vsel %vm2901_vm1, %v2869_v44, %v2933_v29  ;;  %vm2904_vm2 = vcmp.ge.f32.partialorder %v2872_v42, 0.0  ;;  %v2936_v53 = vmul.f32 0.01, %v2872_v42  ;;  %v2528_v32 = vadd.f32 %v2385_v58, %v2222_v49 }
 0x1e8   : > { %2997 = vst [vmem:[%s6070_s20] sm:$0xff] %v2965_v10  ;;  %v2871_v50 = vadd.f32 %v6057_v36, %v2832_v0  ;;  %v2835_v63 = vadd.f32 %v4528_v37, %v2529_v33  ;;  %v2691_v24 = vpop.f32.mrf.mxu0  ;;  %v4451_v2 = vpop.f32.mrf.mxu1  ;;  %v1924_v28 = vadd.f32 %v5963_v56, %v5862_v5  ;;  %v1923_v27 = vadd.f32 %v5967_v52, %v5865_v57 }
 0x1e9   : > { %v2968_v38 = vsel %vm2904_vm2, %v2872_v42, %v2936_v53  ;;  %v2834_v25 = vadd.f32 %v2691_v24, %v2528_v32  ;;  %v2531_v4 = vadd.f32 %v4451_v2, %v2225_v21  ;;  %v1926_v0 = vadd.f32 %v5971_v11, %v5868_v54 }
 0x1ea   : > { %3000 = vst [vmem:[%s6070_s20 + $0x18] sm:$0xff] %v2968_v38  ;;  %vm2903_vm3 = vcmp.ge.f32.partialorder %v2871_v50, 0.0  ;;  %v2935_v55 = vmul.f32 0.01, %v2871_v50  ;;  %v2874_v48 = vadd.f32 %v6057_v36, %v2835_v63  ;;  %v4531_v15 = vpop.f32.mrf.mxu0  ;;  %v2395_v30 = vpop.f32.mrf.mxu1  ;;  %v1925_v5 = vadd.f32 %v5975_v40, %v5871_v17 }
 0x1eb   : > { %v2873_v49 = vadd.f32 %v6057_v36, %v2834_v25  ;;  %v2837_v59 = vadd.f32 %v4531_v15, %v2531_v4  ;;  %v2530_v45 = vadd.f32 %v2395_v30, %v2224_v46  ;;  %v2231_v53 = vadd.f32 %v5965_v41, %v1924_v28 }
 0x1ec   : > { %v2967_v44 = vsel %vm2903_vm3, %v2871_v50, %v2935_v55  ;;  %vm2906_vm4 = vcmp.ge.f32.partialorder %v2874_v48, 0.0  ;;  %v2938_v43 = vmul.f32 0.01, %v2874_v48  ;;  %v2701_v61 = vpop.f32.mrf.mxu0  ;;  %v4454_v21 = vpop.f32.mrf.mxu1  ;;  %v1928_v32 = vadd.f32 %v5979_v35, %v5874_v62 }
 0x1ed   : > { %2999 = vst [vmem:[%s6070_s20 + $0x10] sm:$0xff] %v2967_v44  ;;  %vm2905_vm5 = vcmp.ge.f32.partialorder %v2873_v49, 0.0  ;;  %v2937_v6 = vmul.f32 0.01, %v2873_v49  ;;  %v2876_v23 = vadd.f32 %v6057_v36, %v2837_v59  ;;  %v2836_v26 = vadd.f32 %v2701_v61, %v2530_v45  ;;  %v6349_v59 = vld [vmem:[#allocation17_spill] sm:$0xff] }
 0x1ee   : > { %v2970_v19 = vsel %vm2906_vm4, %v2874_v48, %v2938_v43  ;;  %v2533_v14 = vadd.f32 %v4454_v21, %v2227_v18  ;;  %v4534_v8 = vpop.f32.mrf.mxu0  ;;  %v2405_v29 = vpop.f32.mrf.mxu1  ;;  %v2230_v46 = vadd.f32 %v5969_v60, %v1923_v27  ;;  %v2233_v24 = vadd.f32 %v5973_v16, %v1926_v0  ;;  %v6352_v27 = vld [vmem:[#allocation4_spill] sm:$0xff] }
 0x1ef   : > { %3002 = vst [vmem:[%s6070_s20 + $0x28] sm:$0xff] %v2970_v19  ;;  %v2969_v42 = vsel %vm2905_vm5, %v2873_v49, %v2937_v6  ;;  %vm2908_vm6 = vcmp.ge.f32.partialorder %v2876_v23, 0.0  ;;  %v2940_v34 = vmul.f32 0.01, %v2876_v23  ;;  %v2875_v20 = vadd.f32 %v6057_v36, %v2836_v26  ;;  %v6348_v49 = vld [vmem:[#allocation2_spill] sm:$0xff]  ;;  %v6351_v26 = vld [vmem:[#allocation19_spill] sm:$0xff] }
 0x1f0   : > { %3001 = vst [vmem:[%s6070_s20 + $0x20] sm:$0xff] %v2969_v42  ;;  %v2839_v56 = vadd.f32 %v4534_v8, %v2533_v14  ;;  %v2532_v57 = vadd.f32 %v2405_v29, %v2226_v12  ;;  %v2711_v52 = vpop.f32.mrf.mxu0  ;;  %v4457_v33 = vpop.f32.mrf.mxu1  ;;  %v2232_v18 = vadd.f32 %v5977_v31, %v1925_v5  ;;  %v2235_v60 = vadd.f32 %v5981_v3, %v1928_v32  ;;  %v6353_v19 = vld [vmem:[#allocation21_spill] sm:$0xff]  ;;  %v6354_v0 = vld [vmem:[#allocation16_spill] sm:$0xff] }
 0x1f1   : > { %v2972_v37 = vsel %vm2908_vm6, %v2876_v23, %v2940_v34  ;;  %vm2907_vm7 = vcmp.ge.f32.partialorder %v2875_v20, 0.0  ;;  %v2939_v58 = vmul.f32 0.01, %v2875_v20  ;;  %v2535_v10 = vadd.f32 %v4457_v33, %v2229_v13  ;;  %v6350_v23 = vld [vmem:[#allocation3_spill] sm:$0xff] }
 0x1f2   : > { %3004 = vst [vmem:[%s6070_s20 + $0x38] sm:$0xff] %v2972_v37  ;;  %v2878_v54 = vadd.f32 %v6057_v36, %v2839_v56  ;;  %v2838_v11 = vadd.f32 %v2711_v52, %v2532_v57  ;;  %v4537_v17 = vpop.f32.mrf.mxu0  ;;  %v2415_v40 = vpop.f32.mrf.mxu1  ;;  %v1927_v31 = vadd.f32 %v5983_v22, %v5877_v47  ;;  %v1930_v45 = vadd.f32 %v6349_v59, %v6348_v49  ;;  %v6355_v37 = vld [vmem:[#allocation18_spill] sm:$0xff] }
 0x1f3   : > { %v2971_v9 = vsel %vm2907_vm7, %v2875_v20, %v2939_v58  ;;  %v2841_v50 = vadd.f32 %v4537_v17, %v2535_v10  ;;  %v2534_v63 = vadd.f32 %v2415_v40, %v2228_v39  ;;  %v1929_v28 = vadd.f32 %v6351_v26, %v6350_v23  ;;  %v6365_v23 = vld [vmem:[#allocation8_spill] sm:$0xff]  ;;  %v6366_v26 = vld [vmem:[#allocation29_spill] sm:$0xff] }
 0x1f4   : > { %3003 = vst [vmem:[%s6070_s20 + $0x30] sm:$0xff] %v2971_v9  ;;  %vm2910_vm8 = vcmp.ge.f32.partialorder %v2878_v54, 0.0  ;;  %v2942_v41 = vmul.f32 0.01, %v2878_v54  ;;  %v2877_v2 = vadd.f32 %v6057_v36, %v2838_v11  ;;  %v2721_v62 = vpop.f32.mrf.mxu0  ;;  %v4460_v35 = vpop.f32.mrf.mxu1  ;;  %v1932_v47 = vadd.f32 %v6353_v19, %v6352_v27 }
 0x1f5   : > { %v2880_v38 = vadd.f32 %v6057_v36, %v2841_v50  ;;  %v2840_v25 = vadd.f32 %v2721_v62, %v2534_v63  ;;  %v2537_v4 = vadd.f32 %v4460_v35, %v2231_v53  ;;  %v2234_v5 = vadd.f32 %v6354_v0, %v1927_v31  ;;  %v6357_v50 = vld [vmem:[#allocation22_spill] sm:$0xff]  ;;  %v6358_v62 = vld [vmem:[#allocation5_spill] sm:$0xff]  ;;  %v6359_v35 = vld [vmem:[#allocation23_spill] sm:$0xff] }
 0x1f6   : > { %v2974_v12 = vsel %vm2910_vm8, %v2878_v54, %v2942_v41  ;;  %vm2909_vm9 = vcmp.ge.f32.partialorder %v2877_v2, 0.0  ;;  %v2941_v16 = vmul.f32 0.01, %v2877_v2  ;;  %v4540_v55 = vpop.f32.mrf.mxu0  ;;  %v2425_v48 = vpop.f32.mrf.mxu1  ;;  %v2237_v58 = vadd.f32 %v6355_v37, %v1930_v45  ;;  %v6356_v54 = vld [vmem:[#allocation20_spill] sm:$0xff]  ;;  %v6363_v31 = vld [vmem:[#allocation27_spill] sm:$0xff] }
 0x1f7   : > { %3006 = vst [vmem:[%s6070_s20 + $0x48] sm:$0xff] %v2974_v12  ;;  %vm2912_vm10 = vcmp.ge.f32.partialorder %v2880_v38, 0.0  ;;  %v2944_v15 = vmul.f32 0.01, %v2880_v38  ;;  %v2879_v30 = vadd.f32 %v6057_v36, %v2840_v25  ;;  %v2843_v13 = vadd.f32 %v4540_v55, %v2537_v4 }
 0x1f8   : > { %v2973_v3 = vsel %vm2909_vm9, %v2877_v2, %v2941_v16  ;;  %v2536_v39 = vadd.f32 %v2425_v48, %v2230_v46  ;;  %v2731_v44 = vpop.f32.mrf.mxu0  ;;  %v4463_v43 = vpop.f32.mrf.mxu1  ;;  %v2236_v11 = vadd.f32 %v6356_v54, %v1929_v28  ;;  %v2239_v63 = vadd.f32 %v6357_v50, %v1932_v47  ;;  %v6360_v48 = vld [vmem:[#allocation6_spill] sm:$0xff] }
 0x1f9   : > { %3005 = vst [vmem:[%s6070_s20 + $0x40] sm:$0xff] %v2973_v3  ;;  %v2976_v61 = vsel %vm2912_vm10, %v2880_v38, %v2944_v15  ;;  %vm2911_vm11 = vcmp.ge.f32.partialorder %v2879_v30, 0.0  ;;  %v2943_v21 = vmul.f32 0.01, %v2879_v30  ;;  %v2882_v6 = vadd.f32 %v6057_v36, %v2843_v13  ;;  %v6361_v15 = vld [vmem:[#allocation25_spill] sm:$0xff]  ;;  %v6362_v13 = vld [vmem:[#allocation7_spill] sm:$0xff] }
 0x1fa   : > { %3008 = vst [vmem:[%s6070_s20 + $0x58] sm:$0xff] %v2976_v61  ;;  %v2842_v22 = vadd.f32 %v2731_v44, %v2536_v39  ;;  %v2539_v14 = vadd.f32 %v4463_v43, %v2233_v24  ;;  %v4543_v8 = vpop.f32.mrf.mxu0  ;;  %v2435_v29 = vpop.f32.mrf.mxu1  ;;  %v1933_v49 = vadd.f32 %v6363_v31, %v6362_v13  ;;  %v1936_v28 = vadd.f32 %v6366_v26, %v6365_v23 }
 0x1fb   : > { %v2975_v42 = vsel %vm2911_vm11, %v2879_v30, %v2943_v21  ;;  %vm2914_vm12 = vcmp.ge.f32.partialorder %v2882_v6, 0.0  ;;  %v2946_v34 = vmul.f32 0.01, %v2882_v6  ;;  %v2538_v20 = vadd.f32 %v2435_v29, %v2232_v18  ;;  %v6364_v21 = vld [vmem:[#allocation24_spill] sm:$0xff] }
 0x1fc   : > { %3007 = vst [vmem:[%s6070_s20 + $0x50] sm:$0xff] %v2975_v42  ;;  %v2881_v56 = vadd.f32 %v6057_v36, %v2842_v22  ;;  %v2845_v57 = vadd.f32 %v4543_v8, %v2539_v14  ;;  %v2741_v52 = vpop.f32.mrf.mxu0  ;;  %v4466_v33 = vpop.f32.mrf.mxu1  ;;  %v1931_v18 = vadd.f32 %v6359_v35, %v6358_v62  ;;  %v1934_v30 = vadd.f32 %v6361_v15, %v6360_v48  ;;  %v6367_v42 = vld [vmem:[#allocation26_spill] sm:$0xff]  ;;  %v6375_v48 = vld [vmem:[#allocation11_spill] sm:$0xff] }
 0x1fd   : > { %v2978_v10 = vsel %vm2914_vm12, %v2882_v6, %v2946_v34  ;;  %v2844_v53 = vadd.f32 %v2741_v52, %v2538_v20  ;;  %v2541_v32 = vadd.f32 %v4466_v33, %v2235_v60  ;;  %v1937_v15 = vadd.f32 %v6023_v7, %v6375_v48 }
 0x1fe   : > { %3010 = vst [vmem:[%s6070_s20 + $0x68] sm:$0xff] %v2978_v10  ;;  %vm2913_vm13 = vcmp.ge.f32.partialorder %v2881_v56, 0.0  ;;  %v2945_v17 = vmul.f32 0.01, %v2881_v56  ;;  %v2884_v40 = vadd.f32 %v6057_v36, %v2845_v57  ;;  %v4546_v46 = vpop.f32.mrf.mxu0  ;;  %v2445_v9 = vpop.f32.mrf.mxu1  ;;  %v2238_v6 = vadd.f32 %v6364_v21, %v1931_v18  ;;  %v6368_v57 = vld [vmem:[#allocation28_spill] sm:$0xff]  ;;  %v6369_v10 = vld [vmem:[#allocation9_spill] sm:$0xff] }
 0x1ff   : > { %v2883_v24 = vadd.f32 %v6057_v36, %v2844_v53  ;;  %v2847_v41 = vadd.f32 %v4546_v46, %v2541_v32  ;;  %v2540_v2 = vadd.f32 %v2445_v9, %v2234_v5  ;;  %v2241_v34 = vadd.f32 %v6367_v42, %v1934_v30  ;;  %v6370_v53 = vld [vmem:[#allocation31_spill] sm:$0xff]  ;;  %v6371_v46 = vld [vmem:[#allocation30_spill] sm:$0xff] }
 0x200   : > { %v2977_v38 = vsel %vm2913_vm13, %v2881_v56, %v2945_v17  ;;  %vm2916_vm14 = vcmp.ge.f32.partialorder %v2884_v40, 0.0  ;;  %v2948_v25 = vmul.f32 0.01, %v2884_v40  ;;  %v2751_v4 = vpop.f32.mrf.mxu0  ;;  %v4469_v60 = vpop.f32.mrf.mxu1  ;;  %v2240_v52 = vadd.f32 %v6368_v57, %v1933_v49 }
 0x201   : > { %3009 = vst [vmem:[%s6070_s20 + $0x60] sm:$0xff] %v2977_v38  ;;  %vm2915_vm15 = vcmp.ge.f32.partialorder %v2883_v24, 0.0  ;;  %v2947_v12 = vmul.f32 0.01, %v2883_v24  ;;  %v2886_v16 = vadd.f32 %v6057_v36, %v2847_v41  ;;  %v2846_v55 = vadd.f32 %v2751_v4, %v2540_v2  ;;  %v6372_v41 = vld [vmem:[#allocation10_spill] sm:$0xff]  ;;  %v6373_v2 = vld [vmem:[#allocation33_spill] sm:$0xff] }
 0x202   : > { %v2980_v59 = vsel %vm2916_vm14, %v2884_v40, %v2948_v25  ;;  %v2543_v45 = vadd.f32 %v4469_v60, %v2237_v58  ;;  %v4549_v3 = vpop.f32.mrf.mxu0  ;;  %v2455_v39 = vpop.f32.mrf.mxu1  ;;  %v1935_v32 = vadd.f32 %v6370_v53, %v6369_v10  ;;  %v2243_v9 = vadd.f32 %v6371_v46, %v1936_v28  ;;  %v6384_v46 = vld [vmem:[#allocation15_spill] sm:$0xff] }
 0x203   : > { %3012 = vst [vmem:[%s6070_s20 + $0x78] sm:$0xff] %v2980_v59  ;;  %v2979_v44 = vsel %vm2915_vm15, %v2883_v24, %v2947_v12  ;;  %vm2918_vm0 = vcmp.ge.f32.partialorder %v2886_v16, 0.0  ;;  %v2950_v43 = vmul.f32 0.01, %v2886_v16  ;;  %v2885_v61 = vadd.f32 %v6057_v36, %v2846_v55 }
 0x204   : > { %3011 = vst [vmem:[%s6070_s20 + $0x70] sm:$0xff] %v2979_v44  ;;  %v2849_v27 = vadd.f32 %v4549_v3, %v2543_v45  ;;  %v2542_v19 = vadd.f32 %v2455_v39, %v2236_v11  ;;  %v2761_v47 = vpop.f32.mrf.mxu0  ;;  %v4472_v22 = vpop.f32.mrf.mxu1  ;;  %v1938_v62 = vadd.f32 %v6373_v2, %v6372_v41  ;;  %v6376_v39 = vld [vmem:[#allocation34_spill] sm:$0xff] }
 0x205   : > { %v2982_v14 = vsel %vm2918_vm0, %v2886_v16, %v2950_v43  ;;  %vm2917_vm1 = vcmp.ge.f32.partialorder %v2885_v61, 0.0  ;;  %v2949_v8 = vmul.f32 0.01, %v2885_v61  ;;  %v2545_v29 = vadd.f32 %v4472_v22, %v2239_v63  ;;  %v6374_v16 = vld [vmem:[#allocation32_spill] sm:$0xff] }
 0x206   : > { %3014 = vst [vmem:[%s6070_s20 + $0x88] sm:$0xff] %v2982_v14  ;;  %v2888_v20 = vadd.f32 %v6057_v36, %v2849_v27  ;;  %v2848_v0 = vadd.f32 %v2761_v47, %v2542_v19  ;;  %v4552_v5 = vpop.f32.mrf.mxu0  ;;  %v2465_v56 = vpop.f32.mrf.mxu1  ;;  %v2242_v55 = vadd.f32 %v6374_v16, %v1935_v32  ;;  %v2245_v44 = vadd.f32 %v6376_v39, %v1938_v62  ;;  %v6377_v43 = vld [vmem:[#allocation12_spill] sm:$0xff]  ;;  %v6379_v47 = vld [vmem:[#allocation35_spill] sm:$0xff]  ;;  %v6383_v32 = vld [vmem:[#allocation37_spill] sm:$0xff] }
 0x207   : > { %v2981_v33 = vsel %vm2917_vm1, %v2885_v61, %v2949_v8  ;;  %v2851_v37 = vadd.f32 %v4552_v5, %v2545_v29  ;;  %v2544_v58 = vadd.f32 %v2465_v56, %v2238_v6  ;;  %v6378_v61 = vld [vmem:[#allocation36_spill] sm:$0xff]  ;;  %v2244_v22 = vadd.f32 %v6379_v47, %v1937_v15  ;;  %v6387_v15 = vld [vmem:[#allocation41_spill] sm:$0xff] }
 0x208   : > { %3013 = vst [vmem:[%s6070_s20 + $0x80] sm:$0xff] %v2981_v33  ;;  %vm2920_vm2 = vcmp.ge.f32.partialorder %v2888_v20, 0.0  ;;  %v2952_v54 = vmul.f32 0.01, %v2888_v20  ;;  %v2887_v11 = vadd.f32 %v6057_v36, %v2848_v0  ;;  %v2771_v17 = vpop.f32.mrf.mxu0  ;;  %v4475_v40 = vpop.f32.mrf.mxu1  ;;  %v1940_v21 = vadd.f32 %v6378_v61, %v6377_v43 }
 0x209   : > { %v2890_v50 = vadd.f32 %v6057_v36, %v2851_v37  ;;  %v2850_v63 = vadd.f32 %v2771_v17, %v2544_v58  ;;  %v2547_v24 = vadd.f32 %v4475_v40, %v2241_v34  ;;  %v6380_v34 = vld [vmem:[#allocation13_spill] sm:$0xff] }
 0x20a   : > { %v2984_v35 = vsel %vm2920_vm2, %v2888_v20, %v2952_v54  ;;  %vm2919_vm3 = vcmp.ge.f32.partialorder %v2887_v11, 0.0  ;;  %v2951_v18 = vmul.f32 0.01, %v2887_v11  ;;  %v4555_v38 = vpop.f32.mrf.mxu0  ;;  %v2475_v25 = vpop.f32.mrf.mxu1  ;;  %v6381_v20 = vld [vmem:[#allocation38_spill] sm:$0xff]  ;;  %v2247_v54 = vadd.f32 %v6383_v32, %v1940_v21 }
 0x20b   : > { %3016 = vst [vmem:[%s6070_s20 + $0x98] sm:$0xff] %v2984_v35  ;;  %vm2922_vm4 = vcmp.ge.f32.partialorder %v2890_v50, 0.0  ;;  %v2954_v4 = vmul.f32 0.01, %v2890_v50  ;;  %v2889_v60 = vadd.f32 %v6057_v36, %v2850_v63  ;;  %v2853_v12 = vadd.f32 %v4555_v38, %v2547_v24  ;;  %v6385_v35 = vld [vmem:[#allocation39_spill] sm:$0xff]  ;;  %v6386_v38 = vld [vmem:[#allocation40_spill] sm:$0xff] }
 0x20c   : > { %v2983_v30 = vsel %vm2919_vm3, %v2887_v11, %v2951_v18  ;;  %v2546_v13 = vadd.f32 %v2475_v25, %v2240_v52  ;;  %v2781_v31 = vpop.f32.mrf.mxu0  ;;  %v4478_v49 = vpop.f32.mrf.mxu1  ;;  %v1939_v0 = vadd.f32 %v6381_v20, %v6380_v34  ;;  %v6382_v52 = vld [vmem:[#allocation14_spill] sm:$0xff] }
 0x20d   : > { %3015 = vst [vmem:[%s6070_s20 + $0x90] sm:$0xff] %v2983_v30  ;;  %v2986_v59 = vsel %vm2922_vm4, %v2890_v50, %v2954_v4  ;;  %vm2921_vm5 = vcmp.ge.f32.partialorder %v2889_v60, 0.0  ;;  %v2953_v45 = vmul.f32 0.01, %v2889_v60  ;;  %v2892_v3 = vadd.f32 %v6057_v36, %v2853_v12 }
 0x20e   : > { %3018 = vst [vmem:[%s6070_s20 + $0xa8] sm:$0xff] %v2986_v59  ;;  %v2852_v6 = vadd.f32 %v2781_v31, %v2546_v13  ;;  %v2549_v23 = vadd.f32 %v4478_v49, %v2243_v9  ;;  %v4558_v7 = vpop.f32.mrf.mxu0  ;;  %v2485_v26 = vpop.f32.mrf.mxu1  ;;  %v1942_v33 = vadd.f32 %v6036_v1, %v6382_v52  ;;  %v1941_v9 = vadd.f32 %v6041_v51, %v6384_v46 }
 0x20f   : > { %v2985_v28 = vsel %vm2921_vm5, %v2889_v60, %v2953_v45  ;;  %vm2924_vm6 = vcmp.ge.f32.partialorder %v2892_v3, 0.0  ;;  %v2956_v27 = vmul.f32 0.01, %v2892_v3  ;;  %v2548_v19 = vadd.f32 %v2485_v26, %v2242_v55 }
 0x210   : > { %3017 = vst [vmem:[%s6070_s20 + $0xa0] sm:$0xff] %v2985_v28  ;;  %v2891_v14 = vadd.f32 %v6057_v36, %v2852_v6  ;;  %v2855_v8 = vadd.f32 %v4558_v7, %v2549_v23  ;;  %v2791_v29 = vpop.f32.mrf.mxu0  ;;  %v4481_v42 = vpop.f32.mrf.mxu1  ;;  %v2246_v18 = vadd.f32 %v6385_v35, %v1939_v0  ;;  %v2249_v25 = vadd.f32 %v6386_v38, %v1942_v33 }
 0x211   : > { %v2988_v5 = vsel %vm2924_vm6, %v2892_v3, %v2956_v27  ;;  %v2854_v56 = vadd.f32 %v2791_v29, %v2548_v19  ;;  %v2551_v57 = vadd.f32 %v4481_v42, %v2245_v44  ;;  %v2248_v30 = vadd.f32 %v6387_v15, %v1941_v9 }
 0x212   : > { %3020 = vst [vmem:[%s6070_s20 + $0xb8] sm:$0xff] %v2988_v5  ;;  %vm2923_vm7 = vcmp.ge.f32.partialorder %v2891_v14, 0.0  ;;  %v2955_v37 = vmul.f32 0.01, %v2891_v14  ;;  %v2894_v58 = vadd.f32 %v6057_v36, %v2855_v8  ;;  %v4561_v10 = vpop.f32.mrf.mxu0  ;;  %v2495_v53 = vpop.f32.mrf.mxu1 }
 0x213   : > { %v2893_v11 = vadd.f32 %v6057_v36, %v2854_v56  ;;  %v2857_v17 = vadd.f32 %v4561_v10, %v2551_v57  ;;  %v2550_v40 = vadd.f32 %v2495_v53, %v2244_v22 }
 0x214   : > { %v2987_v50 = vsel %vm2923_vm7, %v2891_v14, %v2955_v37  ;;  %vm2926_vm8 = vcmp.ge.f32.partialorder %v2894_v58, 0.0  ;;  %v2958_v1 = vmul.f32 0.01, %v2894_v58  ;;  %v2801_v63 = vpop.f32.mrf.mxu0  ;;  %v4484_v24 = vpop.f32.mrf.mxu1 }
 0x215   : > { %3019 = vst [vmem:[%s6070_s20 + $0xb0] sm:$0xff] %v2987_v50  ;;  %vm2925_vm9 = vcmp.ge.f32.partialorder %v2893_v11, 0.0  ;;  %v2957_v41 = vmul.f32 0.01, %v2893_v11  ;;  %v2896_v2 = vadd.f32 %v6057_v36, %v2857_v17  ;;  %v2856_v62 = vadd.f32 %v2801_v63, %v2550_v40 }
 0x216   : > { %v2990_v4 = vsel %vm2926_vm8, %v2894_v58, %v2958_v1  ;;  %v2553_v60 = vadd.f32 %v4484_v24, %v2247_v54  ;;  %v4564_v51 = vpop.f32.mrf.mxu0  ;;  %v2505_v12 = vpop.f32.mrf.mxu1 }
 0x217   : > { %3022 = vst [vmem:[%s6070_s20 + $0xc8] sm:$0xff] %v2990_v4  ;;  %v2989_v16 = vsel %vm2925_vm9, %v2893_v11, %v2957_v41  ;;  %vm2928_vm10 = vcmp.ge.f32.partialorder %v2896_v2, 0.0  ;;  %v2960_v55 = vmul.f32 0.01, %v2896_v2  ;;  %v2895_v48 = vadd.f32 %v6057_v36, %v2856_v62 }
 0x218   : > { %3021 = vst [vmem:[%s6070_s20 + $0xc0] sm:$0xff] %v2989_v16  ;;  %v2859_v13 = vadd.f32 %v4564_v51, %v2553_v60  ;;  %v2552_v31 = vadd.f32 %v2505_v12, %v2246_v18  ;;  %v2811_v49 = vpop.f32.mrf.mxu0  ;;  %v4487_v59 = vpop.f32.mrf.mxu1 }
 0x219   : > { %v2992_v45 = vsel %vm2928_vm10, %v2896_v2, %v2960_v55  ;;  %vm2927_vm11 = vcmp.ge.f32.partialorder %v2895_v48, 0.0  ;;  %v2959_v3 = vmul.f32 0.01, %v2895_v48  ;;  %v2555_v39 = vadd.f32 %v4487_v59, %v2249_v25 }
 0x21a   : > { %3024 = vst [vmem:[%s6070_s20 + $0xd8] sm:$0xff] %v2992_v45  ;;  %v2898_v44 = vadd.f32 %v6057_v36, %v2859_v13  ;;  %v2858_v43 = vadd.f32 %v2811_v49, %v2552_v31  ;;  %v4567_v61 = vpop.f32.mrf.mxu0  ;;  %v2515_v21 = vpop.f32.mrf.mxu1 }
 0x21b   : > { %v2991_v6 = vsel %vm2927_vm11, %v2895_v48, %v2959_v3  ;;  %v2861_v23 = vadd.f32 %v4567_v61, %v2555_v39  ;;  %v2554_v7 = vadd.f32 %v2515_v21, %v2248_v30 }
 0x21c   : > { %3023 = vst [vmem:[%s6070_s20 + $0xd0] sm:$0xff] %v2991_v6  ;;  %vm2930_vm12 = vcmp.ge.f32.partialorder %v2898_v44, 0.0  ;;  %v2962_v26 = vmul.f32 0.01, %v2898_v44  ;;  %v2897_v28 = vadd.f32 %v6057_v36, %v2858_v43  ;;  %v2821_v27 = vpop.f32.mrf.mxu0 }
 0x21d   : > { %v2900_v19 = vadd.f32 %v6057_v36, %v2861_v23  ;;  %v2860_v47 = vadd.f32 %v2821_v27, %v2554_v7 }
 0x21e   : > { %v2994_v22 = vsel %vm2930_vm12, %v2898_v44, %v2962_v26  ;;  %vm2929_vm13 = vcmp.ge.f32.partialorder %v2897_v28, 0.0  ;;  %v2961_v14 = vmul.f32 0.01, %v2897_v28 }
 0x21f   : > { %3026 = vst [vmem:[%s6070_s20 + $0xe8] sm:$0xff] %v2994_v22  ;;  %vm2932_vm14 = vcmp.ge.f32.partialorder %v2900_v19, 0.0  ;;  %v2964_v8 = vmul.f32 0.01, %v2900_v19  ;;  %v2899_v29 = vadd.f32 %v6057_v36, %v2860_v47 }
 0x220   : > { %v2993_v42 = vsel %vm2929_vm13, %v2897_v28, %v2961_v14 }
 0x221   : > { %3025 = vst [vmem:[%s6070_s20 + $0xe0] sm:$0xff] %v2993_v42  ;;  %v2996_v34 = vsel %vm2932_vm14, %v2900_v19, %v2964_v8  ;;  %vm2931_vm15 = vcmp.ge.f32.partialorder %v2899_v29, 0.0  ;;  %v2963_v20 = vmul.f32 0.01, %v2899_v29 }
 0x222   : > { %3028 = vst [vmem:[%s6070_s20 + $0xf8] sm:$0xff] %v2996_v34 }
 0x223   : > { %v2995_v0 = vsel %vm2931_vm15, %v2899_v29, %v2963_v20 }
 0x224   : > { %3027 = vst [vmem:[%s6070_s20 + $0xf0] sm:$0xff] %v2995_v0 }
 0x225 PF: > { %s13_s12 = sadd.s32 1, %s4615_s12  }
 0x226   : > { %p10_p4 = scmp.ge.s32.totalorder %s13_s12, 4  }
 0x228   :  { %12 = sbr.rel (!%p10_p4) target bundleno = 1 (0x1), region = 72 }

// kernel: cnn_forward.5
= control target key start
LH: loop header
LB: loop body
LE: loop exit
PB: predicated region body
PF: predicated region fallthrough
CT: control target
= control target key end

     0   :  { %10 = vsyncpa [#allocation3], 0  ;;  %s6751_s0 = inlined_call_operand.vmem [shape: f32[2,18,18,128], index: 0, kind: input, shape index: {}]   ;;  %s6752_s1 = inlined_call_operand.vmem [shape: f32[9,128,128], index: 1, kind: input, shape index: {}]   ;;  %s6753_s2 = inlined_call_operand.vmem [shape: f32[1,128], index: 2, kind: input, shape index: {}]   ;;  %s6754_s3 = inlined_call_operand.vmem [shape: f32[128,10], index: 3, kind: input, shape index: {}]   ;;  %s6755_s4 = inlined_call_operand.vmem [shape: f32[1,10], index: 4, kind: input, shape index: {}]   ;;  %s6756_s5 = inlined_call_operand.hbm [shape: f32[2,1,10], index: 5, kind: output, shape index: {}]  }
   0x1   :  { %12 = vsyncpa [#allocation3 + $0x1], 0  ;;  %s5085_s18 = smov 0   ;;  %s5087_s19 = smov 0  }
   0x2   :  { %s5089_s20 = smov 0   ;;  %s5091_s21 = smov 0  }
   0x3 LB: > { %s5106_s22 = sadd.s32 4294967295, %s5050_s21   ;;  %s3379_s23 = sadd.s32 4294967294, %s5050_s21   ;;  %s5050_s21 = sphi %s5091_s21, %s6856_s21   ;;  %s5046_s20 = sphi %s5089_s20, %s6855_s20   ;;  %s5042_s19 = sphi %s5087_s19, %s6854_s19   ;;  %s5038_s18 = sphi %s5085_s18, %s6853_s18  }
   0x4   : > { %s5110_s24 = sadd.s32 1, %s5050_s21   ;;  %s135_s25 = sadd.s32 1, %s5046_s20 }
   0x5   : > { %s132_s26 = ssub.s32 %s5050_s21, %s5110_s24  ;;  %p145_p0 = scmp.ne.s32.totalorder %s5046_s20, %s5042_s19 }
   0x6   : > { %p133_p1 = scmp.eq.s32.totalorder %s132_s26, 0  ;;  %p146_p2 = scmp.eq.s32.totalorder %s5106_s22, 1 }
   0x7   : > { %p151_p3 = scmp.ne.s32.totalorder %s5042_s19, %s5038_s18  ;;  %p152_p4 = scmp.eq.s32.totalorder %s3379_s23, 1 }
   0x8   : > { %s5121_s27 = scalar_select %p133_p1, %s5046_s20, %s135_s25  }
   0x9   : > { %p5123_p5 = por %p146_p2, %p145_p0  ;;  %p5127_p6 = por %p152_p4, %p151_p3 }
   0xa   : > { %p3382_p7 = scmp.ge.s32.totalorder %s5050_s21, 1  ;;  %p190_p8 = scmp.lt.s32.totalorder %s5050_s21, 3 }
   0xc   : > { %p191_p9 = pnand %p3382_p7, %p190_p8 }
   0xe   : > { %194 = sbr.rel (%p191_p9) target bundleno = 831 (0x33f), region = 40 }
  0x13   : > { %v3399_v0 = vld [vmem:[%s6752_s1 + $0xf8] sm:$0xff]  ;;  %v3398_v1 = vld [vmem:[%s6752_s1 + $0xf0] sm:$0xff]  ;;  %v3397_v2 = vld [vmem:[%s6752_s1 + $0xe8] sm:$0xff]  ;;  %p217_p10 = scmp.lt.s32.totalorder %s5106_s22, 1  ;;  %vm5053_vm0 = vmmov 0   ;;  %vm3080_vm2 = vcmask 1046528  }
  0x14   : > { %4912 = vmatprep.subr.mxu1 %v3399_v0  ;;  %4157 = vmatprep.subr.mxu0 %v3399_v0  ;;  %v3396_v3 = vld [vmem:[%s6752_s1 + $0xe0] sm:$0xff]  ;;  %v3395_v4 = vld [vmem:[%s6752_s1 + $0xd8] sm:$0xff]  ;;  %v3394_v5 = vld [vmem:[%s6752_s1 + $0xd0] sm:$0xff]  ;;  %s215_s14 = sand.u32 1, %s5042_s19   ;;  %s3705_s15 = sshll.u32 %s5106_s22, 4 }
  0x15   : > { %4928 = vmatpush3.msra.mxu1 %v3399_v0  ;;  %4158 = vmatpush3.msra.mxu0 %v3399_v0  ;;  %v3393_v6 = vld [vmem:[%s6752_s1 + $0xc8] sm:$0xff]  ;;  %v3392_v7 = vld [vmem:[%s6752_s1 + $0xc0] sm:$0xff]  ;;  %v3391_v8 = vld [vmem:[%s6752_s1 + $0xb8] sm:$0xff]  ;;  %s218_s11 = scalar_select %p217_p10, %s5106_s22, 1 }
  0x16   : > { %4913 = vmatprep.subr.mxu1 %v3398_v1  ;;  %4159 = vmatprep.subr.mxu0 %v3398_v1  ;;  %v3390_v9 = vld [vmem:[%s6752_s1 + $0xb0] sm:$0xff]  ;;  %v3389_v10 = vld [vmem:[%s6752_s1 + $0xa8] sm:$0xff]  ;;  %v3388_v11 = vld [vmem:[%s6752_s1 + $0xa0] sm:$0xff]  ;;  %s6716_s26 = scalar_lea.hbm %s6756_s5, %s3705_s15  ;;  %s3312_s30 = scalar_lea.sflag [#allocation3], %s215_s14 }
  0x17   : > { %4929 = vmatpush3.msra.mxu1 %v3398_v1  ;;  %4160 = vmatpush3.msra.mxu0 %v3398_v1  ;;  %v3387_v12 = vld [vmem:[%s6752_s1 + $0x98] sm:$0xff]  ;;  %s4944_s16 = smul.u32 432, %s218_s11  ;;  %v3386_v13 = vld [vmem:[%s6752_s1 + $0x90] sm:$0xff]  ;;  %v3385_v14 = vld [vmem:[%s6752_s1 + $0x88] sm:$0xff]  ;;  %s5054_s8 = smov [#allocation2]  }
  0x18   : > { %4914 = vmatprep.subr.mxu1 %v3397_v2  ;;  %4161 = vmatprep.subr.mxu0 %v3397_v2  ;;  %v3384_v15 = vld [vmem:[%s6752_s1 + $0x80] sm:$0xff]  ;;  %v269_v19 = vld [vmem:[%s6752_s1 + $0x78] sm:$0xff]  ;;  %v268_v22 = vld [vmem:[%s6752_s1 + $0x70] sm:$0xff]  ;;  %s4994_s9 = sshll.u32 %s5054_s8, 4  ;;  %s4995_s9 = int_to_ptr.vmem [resolvable:$false] %s4994_s9 }
  0x19   : > { %4930 = vmatpush3.msra.mxu1 %v3397_v2  ;;  %4162 = vmatpush3.msra.mxu0 %v3397_v2  ;;  %s5183_s7 = scalar_lea.vmem %s6751_s0, %s4944_s16  ;;  %v3415_v21 = vld [vmem:[%s6752_s1 + $0x178] sm:$0xff]  ;;  %v3414_v24 = vld [vmem:[%s6752_s1 + $0x170] sm:$0xff]  ;;  %v267_v27 = vld [vmem:[%s6752_s1 + $0x68] sm:$0xff]  ;;  %s216_s16 = scalar_lea.vmem [#allocation2], %s215_s14 }
  0x1a   : > { %4915 = vmatprep.subr.mxu1 %v3396_v3  ;;  %4163 = vmatprep.subr.mxu0 %v3396_v3  ;;  %v5189_v16 = vld [vmem:[%s5183_s7 + $0xc1] sm:$0xff]  ;;  %v5193_v18 = vld [vmem:[%s5183_s7 + $0xc9] sm:$0xff]  ;;  %v5208_v23 = vld [vmem:[%s5183_s7 + $0xd9] sm:$0xff]  ;;  %s3324_s17 = sshll.u32 %s216_s16, 4  ;;  %s4996_s22 = scalar_lea.vmem %s4995_s9, 32  ;;  %s3325_s17 = int_to_ptr.vmem [resolvable:$true] %s3324_s17 }
  0x1b   : > { %4931 = vmatpush3.msra.mxu1 %v3396_v3  ;;  %4164 = vmatpush3.msra.mxu0 %v3396_v3  ;;  %v270_v17 = vld [vmem:[%s5183_s7 + $0x1] sm:$0xff]  ;;  %v271_v20 = vld [vmem:[%s5183_s7 + $0x9] sm:$0xff]  ;;  %v5214_v25 = vld [vmem:[%s5183_s7 + $0x19] sm:$0xff]  ;;  %s4990_s6 = scalar_lea.vmem %s3325_s17, 16  ;;  %p4997_p0 = scmp.lt.s32.totalorder %s3325_s17, %s4995_s9 }
  0x1c   : > { %4916 = vmatprep.subr.mxu1 %v3395_v4  ;;  %4165 = vmatprep.subr.mxu0 %v3395_v4  ;;  %v5217_v26 = vld [vmem:[%s5183_s7 + $0xe1] sm:$0xff]  ;;  %v5235_v31 = vld [vmem:[%s5183_s7 + $0xf1] sm:$0xff]  ;;  %v5245_v34 = vld [vmem:[%s5183_s7 + $0xf9] sm:$0xff]  ;;  %p4991_p11 = scmp.ne.s32.totalorder %s3325_s17, %s4990_s6  ;;  %p4998_p1 = scmp.lt.s32.totalorder %s4996_s22, %s4990_s6 }
  0x1d   : > { %4932 = vmatpush3.msra.mxu1 %v3395_v4  ;;  %4166 = vmatpush3.msra.mxu0 %v3395_v4  ;;  %v5224_v28 = vld [vmem:[%s5183_s7 + $0x21] sm:$0xff]  ;;  %v5242_v33 = vld [vmem:[%s5183_s7 + $0x31] sm:$0xff]  ;;  %v5252_v36 = vld [vmem:[%s5183_s7 + $0x39] sm:$0xff] }
  0x1e   : > { %4917 = vmatprep.subr.mxu1 %v3394_v5  ;;  %4167 = vmatprep.subr.mxu0 %v3394_v5  ;;  %v3413_v29 = vld [vmem:[%s6752_s1 + $0x168] sm:$0xff]  ;;  %v266_v30 = vld [vmem:[%s6752_s1 + $0x60] sm:$0xff]  ;;  %v265_v35 = vld [vmem:[%s6752_s1 + $0x58] sm:$0xff]  ;;  %p4992_p12 = pnand %p4991_p11, %p5123_p5  ;;  %p4999_p2 = por %p4998_p1, %p4997_p0 }
  0x1f   : > { %4933 = vmatpush3.msra.mxu1 %v3394_v5  ;;  %4168 = vmatpush3.msra.mxu0 %v3394_v5  ;;  %v3412_v32 = vld [vmem:[%s6752_s1 + $0x160] sm:$0xff]  ;;  %v3411_v37 = vld [vmem:[%s6752_s1 + $0x158] sm:$0xff]  ;;  %v264_v38 = vld [vmem:[%s6752_s1 + $0x50] sm:$0xff] }
  0x20   : > { %4918 = vmatprep.subr.mxu1 %v3393_v6  ;;  %4169 = vmatprep.subr.mxu0 %v3393_v6  ;;  %v5263_v39 = vld [vmem:[%s5183_s7 + $0x109] sm:$0xff]  ;;  %v5273_v42 = vld [vmem:[%s5183_s7 + $0x111] sm:$0xff]  ;;  %v262_v46 = vld [vmem:[%s6752_s1 + $0x40] sm:$0xff]  ;;  %p4993_p13 = pneg %p4992_p12 }
  0x21   : > { %4934 = vmatpush3.msra.mxu1 %v3393_v6  ;;  %4170 = vmatpush3.msra.mxu0 %v3393_v6  ;;  %v3410_v40 = vld [vmem:[%s6752_s1 + $0x150] sm:$0xff]  ;;  %v263_v43 = vld [vmem:[%s6752_s1 + $0x48] sm:$0xff]  ;;  %v3408_v48 = vld [vmem:[%s6752_s1 + $0x140] sm:$0xff] }
  0x22   : > { %4919 = vmatprep.subr.mxu1 %v3392_v7  ;;  %4171 = vmatprep.subr.mxu0 %v3392_v7  ;;  %v5270_v41 = vld [vmem:[%s5183_s7 + $0x49] sm:$0xff]  ;;  %v5280_v44 = vld [vmem:[%s5183_s7 + $0x51] sm:$0xff]  ;;  %v5291_v47 = vld [vmem:[%s5183_s7 + $0x121] sm:$0xff]  ;;  %p5000_p3 = pnand %p4999_p2, %p4993_p13 }
  0x23   : > { %4935 = vmatpush3.msra.mxu1 %v3392_v7  ;;  %4172 = vmatpush3.msra.mxu0 %v3392_v7  ;;  %v3409_v45 = vld [vmem:[%s6752_s1 + $0x148] sm:$0xff]  ;;  %v261_v51 = vld [vmem:[%s6752_s1 + $0x38] sm:$0xff]  ;;  %v260_v54 = vld [vmem:[%s6752_s1 + $0x30] sm:$0xff] }
  0x24   : > { %4920 = vmatprep.subr.mxu1 %v3391_v8  ;;  %4173 = vmatprep.subr.mxu0 %v3391_v8  ;;  %v5298_v49 = vld [vmem:[%s5183_s7 + $0x61] sm:$0xff]  ;;  %v5301_v50 = vld [vmem:[%s5183_s7 + $0x129] sm:$0xff]  ;;  %v3407_v53 = vld [vmem:[%s6752_s1 + $0x138] sm:$0xff] }
  0x25   : > { %4936 = vmatpush3.msra.mxu1 %v3391_v8  ;;  %4174 = vmatpush3.msra.mxu0 %v3391_v8  ;;  %v5308_v52 = vld [vmem:[%s5183_s7 + $0x69] sm:$0xff]  ;;  %v5319_v55 = vld [vmem:[%s5183_s7 + $0x139] sm:$0xff]  ;;  %v5329_v58 = vld [vmem:[%s5183_s7 + $0x141] sm:$0xff] }
  0x26   : > { %4921 = vmatprep.subr.mxu1 %v3390_v9  ;;  %4175 = vmatprep.subr.mxu0 %v3390_v9  ;;  %v3406_v56 = vld [vmem:[%s6752_s1 + $0x130] sm:$0xff]  ;;  %v5326_v57 = vld [vmem:[%s5183_s7 + $0x79] sm:$0xff]  ;;  %v259_v59 = vld [vmem:[%s6752_s1 + $0x28] sm:$0xff] }
  0x27   : > { %4937 = vmatpush3.msra.mxu1 %v3390_v9  ;;  %4176 = vmatpush3.msra.mxu0 %v3390_v9  ;;  %v5336_v60 = vld [vmem:[%s5183_s7 + $0x81] sm:$0xff]  ;;  %v5347_v63 = vld [vmem:[%s5183_s7 + $0x151] sm:$0xff]  ;;  %v5357_v2 = vld [vmem:[%s5183_s7 + $0x159] sm:$0xff] }
  0x28   : > { %4922 = vmatprep.subr.mxu1 %v3389_v10  ;;  %4177 = vmatprep.subr.mxu0 %v3389_v10  ;;  %v3405_v61 = vld [vmem:[%s6752_s1 + $0x128] sm:$0xff]  ;;  %v258_v62 = vld [vmem:[%s6752_s1 + $0x20] sm:$0xff]  ;;  %v5354_v1 = vld [vmem:[%s5183_s7 + $0x91] sm:$0xff]  ;;  %6789 = vst [vmem:[#allocation5_spill] sm:$0xff] %v5357_v2 }
  0x29   : > { %4938 = vmatpush3.msra.mxu1 %v3389_v10  ;;  %4178 = vmatpush3.msra.mxu0 %v3389_v10  ;;  %v3404_v0 = vld [vmem:[%s6752_s1 + $0x120] sm:$0xff]  ;;  %v257_v3 = vld [vmem:[%s6752_s1 + $0x18] sm:$0xff]  ;;  %v256_v6 = vld [vmem:[%s6752_s1 + $0x10] sm:$0xff] }
  0x2a   : > { %4923 = vmatprep.subr.mxu1 %v3388_v11  ;;  %4179 = vmatprep.subr.mxu0 %v3388_v11  ;;  %v5364_v4 = vld [vmem:[%s5183_s7 + $0x99] sm:$0xff]  ;;  %v5375_v7 = vld [vmem:[%s5183_s7 + $0x169] sm:$0xff]  ;;  %v5385_v10 = vld [vmem:[%s5183_s7 + $0x171] sm:$0xff] }
  0x2b   : > { %4939 = vmatpush3.msra.mxu1 %v3388_v11  ;;  %4180 = vmatpush3.msra.mxu0 %v3388_v11  ;;  %v3403_v5 = vld [vmem:[%s6752_s1 + $0x118] sm:$0xff]  ;;  %6790 = vst [vmem:[#allocation6_spill] sm:$0xff] %v5375_v7  ;;  %v3402_v8 = vld [vmem:[%s6752_s1 + $0x110] sm:$0xff]  ;;  %6791 = vst [vmem:[#allocation7_spill] sm:$0xff] %v5385_v10 }
  0x2c   : > { %4924 = vmatprep.subr.mxu1 %v3387_v12  ;;  %4181 = vmatprep.subr.mxu0 %v3387_v12  ;;  %v5382_v9 = vld [vmem:[%s5183_s7 + $0xa9] sm:$0xff] }
  0x2d   : > { %4940 = vmatpush3.msra.mxu1 %v3387_v12  ;;  %4182 = vmatpush3.msra.mxu0 %v3387_v12  ;;  %v255_v11 = vld [vmem:[%s6752_s1 + $0x8] sm:$0xff]  ;;  %v5392_v12 = vld [vmem:[%s5183_s7 + $0xb1] sm:$0xff] }
  0x2e   : > { %4925 = vmatprep.subr.mxu1 %v3386_v13  ;;  %4183 = vmatprep.subr.mxu0 %v3386_v13 }
  0x2f   : > { %4941 = vmatpush3.msra.mxu1 %v3386_v13  ;;  %4184 = vmatpush3.msra.mxu0 %v3386_v13  ;;  %v3401_v13 = vld [vmem:[%s6752_s1 + $0x108] sm:$0xff] }
  0x30   : > { %4926 = vmatprep.subr.mxu1 %v3385_v14  ;;  %4185 = vmatprep.subr.mxu0 %v3385_v14 }
  0x31   : > { %4942 = vmatpush3.msra.mxu1 %v3385_v14  ;;  %4186 = vmatpush3.msra.mxu0 %v3385_v14  ;;  %v254_v14 = vld [vmem:[%s6752_s1] sm:$0xff] }
  0x32   : > { %4927 = vmatprep.subr.mxu1 %v3384_v15  ;;  %4187 = vmatprep.subr.mxu0 %v3384_v15 }
  0x33   : > { %4943 = vmatpush3.msra.mxu1 %v3384_v15  ;;  %4213 = vmatprep.mubr.f32.mxu1 %v5189_v16 }
  0x34   : > { %4188 = vmatpush3.msra.mxu0 %v3384_v15  ;;  %4189 = vmatprep.mubr.f32.mxu0 %v270_v17  ;;  %v222_v15 = vld [vmem:[%s5183_s7] sm:$0xff] }
  0x35   : > { %4214 = vmatmul.mubr.f32.vlgmr.msra.gmra.mxu1 %v5193_v18  ;;  %4237 = vmatprep.subr.mxu1 %v269_v19  ;;  %v3400_v17 = vld [vmem:[%s6752_s1 + $0x100] sm:$0xff] }
  0x36   : > { %4190 = vmatmul.mubr.f32.vlgmr.msra.gmra.mxu0 %v271_v20  ;;  %4238 = vmatpush3.msra.mxu1 %v269_v19  ;;  %v223_v19 = vld [vmem:[%s5183_s7 + $0x8] sm:$0xff] }
  0x37   : > { %4317 = vmatprep.subr.mxu0 %v3415_v21  ;;  %4239 = vmatprep.subr.mxu1 %v268_v22  ;;  %v769_v20 = vld [vmem:[%s5183_s7 + $0x2] sm:$0xff] }
  0x38   : > { %4318 = vmatpush3.msra.mxu0 %v3415_v21  ;;  %4216 = vmatprep.mubr.f32.mxu1 %v5208_v23  ;;  %v3463_v21 = vld [vmem:[%s6752_s1 + $0x1f8] sm:$0xff] }
  0x39   : > { %4240 = vmatpush3.msra.mxu1 %v268_v22  ;;  %4319 = vmatprep.subr.mxu0 %v3414_v24  ;;  %v770_v22 = vld [vmem:[%s5183_s7 + $0xa] sm:$0xff] }
  0x3a   : > { %4192 = vmatprep.mubr.f32.mxu0 %v5214_v25  ;;  %4217 = vmatmul.mubr.f32.gmra.mxu1 %v5217_v26 }
  0x3b   : > { %4241 = vmatprep.subr.mxu1 %v267_v27  ;;  %4320 = vmatpush3.msra.mxu0 %v3414_v24  ;;  %v3511_v24 = vld [vmem:[%s6752_s1 + $0x278] sm:$0xff] }
  0x3c   : > { %4193 = vmatmul.mubr.f32.gmra.mxu0 %v5224_v28  ;;  %4242 = vmatpush3.msra.mxu1 %v267_v27  ;;  %v5417_v27 = vld [vmem:[%s5183_s7 + $0x18] sm:$0xff] }
  0x3d   : > { %4321 = vmatprep.subr.mxu0 %v3413_v29  ;;  %4243 = vmatprep.subr.mxu1 %v266_v30 }
  0x3e   : > { %4322 = vmatpush3.msra.mxu0 %v3413_v29  ;;  %4219 = vmatprep.mubr.f32.mxu1 %v5235_v31  ;;  %v5420_v29 = vld [vmem:[%s5183_s7 + $0x20] sm:$0xff] }
  0x3f   : > { %4244 = vmatpush3.msra.mxu1 %v266_v30  ;;  %4323 = vmatprep.subr.mxu0 %v3412_v32  ;;  %v5423_v30 = vld [vmem:[%s5183_s7 + $0x1a] sm:$0xff] }
  0x40   : > { %4195 = vmatprep.mubr.f32.mxu0 %v5242_v33  ;;  %4220 = vmatmul.mubr.f32.gmra.mxu1 %v5245_v34  ;;  %6792 = vst [vmem:[#allocation8_spill] sm:$0xff] %v5423_v30 }
  0x41   : > { %4245 = vmatprep.subr.mxu1 %v265_v35  ;;  %4324 = vmatpush3.msra.mxu0 %v3412_v32  ;;  %v3462_v32 = vld [vmem:[%s6752_s1 + $0x1f0] sm:$0xff] }
  0x42   : > { %4196 = vmatmul.mubr.f32.gmra.mxu0 %v5252_v36  ;;  %4246 = vmatpush3.msra.mxu1 %v265_v35  ;;  %v5430_v35 = vld [vmem:[%s5183_s7 + $0x22] sm:$0xff] }
  0x43   : > { %4325 = vmatprep.subr.mxu0 %v3411_v37  ;;  %4247 = vmatprep.subr.mxu1 %v264_v38  ;;  %6793 = vst [vmem:[#allocation9_spill] sm:$0xff] %v5430_v35 }
  0x44   : > { %4326 = vmatpush3.msra.mxu0 %v3411_v37  ;;  %4222 = vmatprep.mubr.f32.mxu1 %v5263_v39  ;;  %v3510_v37 = vld [vmem:[%s6752_s1 + $0x270] sm:$0xff] }
  0x45   : > { %4248 = vmatpush3.msra.mxu1 %v264_v38  ;;  %4327 = vmatprep.subr.mxu0 %v3410_v40  ;;  %v5437_v38 = vld [vmem:[%s5183_s7 + $0x30] sm:$0xff] }
  0x46   : > { %4198 = vmatprep.mubr.f32.mxu0 %v5270_v41  ;;  %4223 = vmatmul.mubr.f32.gmra.mxu1 %v5273_v42 }
  0x47   : > { %4249 = vmatprep.subr.mxu1 %v263_v43  ;;  %4328 = vmatpush3.msra.mxu0 %v3410_v40  ;;  %v5441_v40 = vld [vmem:[%s5183_s7 + $0x38] sm:$0xff] }
  0x48   : > { %4199 = vmatmul.mubr.f32.gmra.mxu0 %v5280_v44  ;;  %4250 = vmatpush3.msra.mxu1 %v263_v43  ;;  %v5445_v43 = vld [vmem:[%s5183_s7 + $0x32] sm:$0xff] }
  0x49   : > { %4329 = vmatprep.subr.mxu0 %v3409_v45  ;;  %4251 = vmatprep.subr.mxu1 %v262_v46  ;;  %6794 = vst [vmem:[#allocation10_spill] sm:$0xff] %v5445_v43 }
  0x4a   : > { %4330 = vmatpush3.msra.mxu0 %v3409_v45  ;;  %4225 = vmatprep.mubr.f32.mxu1 %v5291_v47  ;;  %v3461_v45 = vld [vmem:[%s6752_s1 + $0x1e8] sm:$0xff] }
  0x4b   : > { %4252 = vmatpush3.msra.mxu1 %v262_v46  ;;  %4331 = vmatprep.subr.mxu0 %v3408_v48  ;;  %v5452_v46 = vld [vmem:[%s5183_s7 + $0x3a] sm:$0xff] }
  0x4c   : > { %4201 = vmatprep.mubr.f32.mxu0 %v5298_v49  ;;  %4226 = vmatmul.mubr.f32.gmra.mxu1 %v5301_v50  ;;  %6795 = vst [vmem:[#allocation11_spill] sm:$0xff] %v5452_v46 }
  0x4d   : > { %4253 = vmatprep.subr.mxu1 %v261_v51  ;;  %4332 = vmatpush3.msra.mxu0 %v3408_v48  ;;  %v3509_v48 = vld [vmem:[%s6752_s1 + $0x268] sm:$0xff] }
  0x4e   : > { %4202 = vmatmul.mubr.f32.gmra.mxu0 %v5308_v52  ;;  %4254 = vmatpush3.msra.mxu1 %v261_v51  ;;  %v5459_v51 = vld [vmem:[%s5183_s7 + $0x48] sm:$0xff] }
  0x4f   : > { %4333 = vmatprep.subr.mxu0 %v3407_v53  ;;  %4255 = vmatprep.subr.mxu1 %v260_v54 }
  0x50   : > { %4334 = vmatpush3.msra.mxu0 %v3407_v53  ;;  %4228 = vmatprep.mubr.f32.mxu1 %v5319_v55  ;;  %v5463_v53 = vld [vmem:[%s5183_s7 + $0x50] sm:$0xff] }
  0x51   : > { %4256 = vmatpush3.msra.mxu1 %v260_v54  ;;  %4335 = vmatprep.subr.mxu0 %v3406_v56  ;;  %v5467_v54 = vld [vmem:[%s5183_s7 + $0x4a] sm:$0xff] }
  0x52   : > { %4204 = vmatprep.mubr.f32.mxu0 %v5326_v57  ;;  %4229 = vmatmul.mubr.f32.gmra.mxu1 %v5329_v58  ;;  %6796 = vst [vmem:[#allocation12_spill] sm:$0xff] %v5467_v54 }
  0x53   : > { %4257 = vmatprep.subr.mxu1 %v259_v59  ;;  %4336 = vmatpush3.msra.mxu0 %v3406_v56  ;;  %v3460_v56 = vld [vmem:[%s6752_s1 + $0x1e0] sm:$0xff] }
  0x54   : > { %4205 = vmatmul.mubr.f32.gmra.mxu0 %v5336_v60  ;;  %4258 = vmatpush3.msra.mxu1 %v259_v59  ;;  %v5474_v59 = vld [vmem:[%s5183_s7 + $0x52] sm:$0xff] }
  0x55   : > { %4337 = vmatprep.subr.mxu0 %v3405_v61  ;;  %4259 = vmatprep.subr.mxu1 %v258_v62  ;;  %6797 = vst [vmem:[#allocation13_spill] sm:$0xff] %v5474_v59 }
  0x56   : > { %4338 = vmatpush3.msra.mxu0 %v3405_v61  ;;  %4231 = vmatprep.mubr.f32.mxu1 %v5347_v63  ;;  %v3508_v61 = vld [vmem:[%s6752_s1 + $0x260] sm:$0xff] }
  0x57   : > { %4260 = vmatpush3.msra.mxu1 %v258_v62  ;;  %4339 = vmatprep.subr.mxu0 %v3404_v0  ;;  %v5481_v62 = vld [vmem:[%s5183_s7 + $0x60] sm:$0xff] }
  0x58   : > { %4207 = vmatprep.mubr.f32.mxu0 %v5354_v1  ;;  %4232 = vmatmul.mubr.f32.gmra.mxu1 %v5357_v2  ;;  %v5738_v2 = vld [vmem:[%s5183_s7 + $0x172] sm:$0xff] }
  0x59   : > { %4261 = vmatprep.subr.mxu1 %v257_v3  ;;  %4340 = vmatpush3.msra.mxu0 %v3404_v0  ;;  %v5485_v0 = vld [vmem:[%s5183_s7 + $0x68] sm:$0xff] }
  0x5a   : > { %4208 = vmatmul.mubr.f32.gmra.mxu0 %v5364_v4  ;;  %4262 = vmatpush3.msra.mxu1 %v257_v3  ;;  %v5489_v3 = vld [vmem:[%s5183_s7 + $0x62] sm:$0xff] }
  0x5b   : > { %4341 = vmatprep.subr.mxu0 %v3403_v5  ;;  %4263 = vmatprep.subr.mxu1 %v256_v6  ;;  %6798 = vst [vmem:[#allocation14_spill] sm:$0xff] %v5489_v3 }
  0x5c   : > { %4342 = vmatpush3.msra.mxu0 %v3403_v5  ;;  %4234 = vmatprep.mubr.f32.mxu1 %v5375_v7  ;;  %v3459_v5 = vld [vmem:[%s6752_s1 + $0x1d8] sm:$0xff]  ;;  %v5731_v7 = vld [vmem:[%s5183_s7 + $0x16a] sm:$0xff] }
  0x5d   : > { %4264 = vmatpush3.msra.mxu1 %v256_v6  ;;  %4343 = vmatprep.subr.mxu0 %v3402_v8  ;;  %v5496_v6 = vld [vmem:[%s5183_s7 + $0x6a] sm:$0xff] }
  0x5e   : > { %4210 = vmatprep.mubr.f32.mxu0 %v5382_v9  ;;  %4235 = vmatmul.mubr.f32.gmra.mxu1 %v5385_v10  ;;  %6799 = vst [vmem:[#allocation15_spill] sm:$0xff] %v5496_v6  ;;  %v5716_v10 = vld [vmem:[%s5183_s7 + $0x15a] sm:$0xff] }
  0x5f   : > { %4265 = vmatprep.subr.mxu1 %v255_v11  ;;  %4344 = vmatpush3.msra.mxu0 %v3402_v8  ;;  %v3507_v8 = vld [vmem:[%s6752_s1 + $0x258] sm:$0xff] }
  0x60   : > { %4211 = vmatmul.mubr.f32.gmra.mxu0 %v5392_v12  ;;  %4266 = vmatpush3.msra.mxu1 %v255_v11  ;;  %v5503_v11 = vld [vmem:[%s5183_s7 + $0x78] sm:$0xff] }
  0x61   : > { %4345 = vmatprep.subr.mxu0 %v3401_v13  ;;  %4267 = vmatprep.subr.mxu1 %v254_v14 }
  0x62   : > { %4346 = vmatpush3.msra.mxu0 %v3401_v13  ;;  %4268 = vmatpush3.msra.mxu1 %v254_v14  ;;  %v5507_v13 = vld [vmem:[%s5183_s7 + $0x80] sm:$0xff] }
  0x63   : > { %4269 = vmatprep.mubr.f32.mxu1 %v222_v15  ;;  %4347 = vmatprep.subr.mxu0 %v3400_v17  ;;  %v5511_v14 = vld [vmem:[%s5183_s7 + $0x7a] sm:$0xff]  ;;  %v3458_v15 = vld [vmem:[%s6752_s1 + $0x1d0] sm:$0xff] }
  0x64   : > { %4270 = vmatmul.mubr.f32.vlgmr.msra.gmra.mxu1 %v223_v19  ;;  %4348 = vmatpush3.msra.mxu0 %v3400_v17  ;;  %6800 = vst [vmem:[#allocation16_spill] sm:$0xff] %v5511_v14  ;;  %v5518_v17 = vld [vmem:[%s5183_s7 + $0x82] sm:$0xff]  ;;  %v3506_v19 = vld [vmem:[%s6752_s1 + $0x250] sm:$0xff] }
  0x65   : > { %4349 = vmatprep.mubr.f32.mxu0 %v769_v20  ;;  %4397 = vmatprep.subr.mxu1 %v3463_v21  ;;  %6801 = vst [vmem:[#allocation17_spill] sm:$0xff] %v5518_v17  ;;  %v5525_v20 = vld [vmem:[%s5183_s7 + $0x90] sm:$0xff] }
  0x66   : > { %4350 = vmatmul.mubr.f32.vlgmr.msra.gmra.mxu0 %v770_v22  ;;  %4398 = vmatpush3.msra.mxu1 %v3463_v21  ;;  %v5529_v21 = vld [vmem:[%s5183_s7 + $0x98] sm:$0xff] }
  0x67   : > { %4477 = vmatprep.subr.mxu0 %v3511_v24  ;;  %4272 = vmatprep.mubr.f32.mxu1 %v5417_v27  ;;  %v5533_v22 = vld [vmem:[%s5183_s7 + $0x92] sm:$0xff] }
  0x68   : > { %4478 = vmatpush3.msra.mxu0 %v3511_v24  ;;  %4273 = vmatmul.mubr.f32.gmra.mxu1 %v5420_v29  ;;  %6802 = vst [vmem:[#allocation18_spill] sm:$0xff] %v5533_v22  ;;  %v3457_v24 = vld [vmem:[%s6752_s1 + $0x1c8] sm:$0xff] }
  0x69   : > { %4352 = vmatprep.mubr.f32.mxu0 %v5423_v30  ;;  %4399 = vmatprep.subr.mxu1 %v3462_v32  ;;  %v3449_v30 = vld [vmem:[%s6752_s1 + $0x188] sm:$0xff] }
  0x6a   : > { %4353 = vmatmul.mubr.f32.gmra.mxu0 %v5430_v35  ;;  %4400 = vmatpush3.msra.mxu1 %v3462_v32  ;;  %v5540_v32 = vld [vmem:[%s5183_s7 + $0x9a] sm:$0xff]  ;;  %v5694_v35 = vld [vmem:[%s5183_s7 + $0x142] sm:$0xff] }
  0x6b   : > { %4479 = vmatprep.subr.mxu0 %v3510_v37  ;;  %4275 = vmatprep.mubr.f32.mxu1 %v5437_v38  ;;  %6803 = vst [vmem:[#allocation19_spill] sm:$0xff] %v5540_v32  ;;  %6817 = vst [vmem:[#allocation33_spill] sm:$0xff] %v5694_v35 }
  0x6c   : > { %4480 = vmatpush3.msra.mxu0 %v3510_v37  ;;  %4276 = vmatmul.mubr.f32.gmra.mxu1 %v5441_v40  ;;  %v3505_v37 = vld [vmem:[%s6752_s1 + $0x248] sm:$0xff] }
  0x6d   : > { %4355 = vmatprep.mubr.f32.mxu0 %v5445_v43  ;;  %4401 = vmatprep.subr.mxu1 %v3461_v45  ;;  %v3450_v43 = vld [vmem:[%s6752_s1 + $0x190] sm:$0xff] }
  0x6e   : > { %4356 = vmatmul.mubr.f32.gmra.mxu0 %v5452_v46  ;;  %4402 = vmatpush3.msra.mxu1 %v3461_v45  ;;  %v5547_v45 = vld [vmem:[%s5183_s7 + $0xa8] sm:$0xff] }
  0x6f   : > { %4481 = vmatprep.subr.mxu0 %v3509_v48  ;;  %4278 = vmatprep.mubr.f32.mxu1 %v5459_v51  ;;  %v5672_v46 = vld [vmem:[%s5183_s7 + $0x12a] sm:$0xff] }
  0x70   : > { %4482 = vmatpush3.msra.mxu0 %v3509_v48  ;;  %4279 = vmatmul.mubr.f32.gmra.mxu1 %v5463_v53  ;;  %v5551_v48 = vld [vmem:[%s5183_s7 + $0xb0] sm:$0xff]  ;;  %6815 = vst [vmem:[#allocation31_spill] sm:$0xff] %v5672_v46 }
  0x71   : > { %4358 = vmatprep.mubr.f32.mxu0 %v5467_v54  ;;  %4403 = vmatprep.subr.mxu1 %v3460_v56  ;;  %v3451_v54 = vld [vmem:[%s6752_s1 + $0x198] sm:$0xff] }
  0x72   : > { %4359 = vmatmul.mubr.f32.gmra.mxu0 %v5474_v59  ;;  %4404 = vmatpush3.msra.mxu1 %v3460_v56  ;;  %v5555_v56 = vld [vmem:[%s5183_s7 + $0xaa] sm:$0xff]  ;;  %v5650_v59 = vld [vmem:[%s5183_s7 + $0x112] sm:$0xff] }
  0x73   : > { %4483 = vmatprep.subr.mxu0 %v3508_v61  ;;  %4281 = vmatprep.mubr.f32.mxu1 %v5481_v62  ;;  %6804 = vst [vmem:[#allocation20_spill] sm:$0xff] %v5555_v56  ;;  %6813 = vst [vmem:[#allocation29_spill] sm:$0xff] %v5650_v59 }
  0x74   : > { %4484 = vmatpush3.msra.mxu0 %v3508_v61  ;;  %4282 = vmatmul.mubr.f32.gmra.mxu1 %v5485_v0  ;;  %v3456_v61 = vld [vmem:[%s6752_s1 + $0x1c0] sm:$0xff] }
  0x75   : > { %4361 = vmatprep.mubr.f32.mxu0 %v5489_v3  ;;  %4405 = vmatprep.subr.mxu1 %v3459_v5  ;;  %v3452_v3 = vld [vmem:[%s6752_s1 + $0x1a0] sm:$0xff] }
  0x76   : > { %4362 = vmatmul.mubr.f32.gmra.mxu0 %v5496_v6  ;;  %4406 = vmatpush3.msra.mxu1 %v3459_v5  ;;  %v5562_v5 = vld [vmem:[%s5183_s7 + $0xb2] sm:$0xff]  ;;  %v5628_v6 = vld [vmem:[%s5183_s7 + $0xfa] sm:$0xff] }
  0x77   : > { %4485 = vmatprep.subr.mxu0 %v3507_v8  ;;  %4284 = vmatprep.mubr.f32.mxu1 %v5503_v11  ;;  %6805 = vst [vmem:[#allocation21_spill] sm:$0xff] %v5562_v5  ;;  %6811 = vst [vmem:[#allocation27_spill] sm:$0xff] %v5628_v6 }
  0x78   : > { %4486 = vmatpush3.msra.mxu0 %v3507_v8  ;;  %4285 = vmatmul.mubr.f32.gmra.mxu1 %v5507_v13  ;;  %v3504_v8 = vld [vmem:[%s6752_s1 + $0x240] sm:$0xff] }
  0x79   : > { %4364 = vmatprep.mubr.f32.mxu0 %v5511_v14  ;;  %4407 = vmatprep.subr.mxu1 %v3458_v15  ;;  %v3453_v14 = vld [vmem:[%s6752_s1 + $0x1a8] sm:$0xff] }
  0x7a   : > { %4365 = vmatmul.mubr.f32.gmra.mxu0 %v5518_v17  ;;  %4408 = vmatpush3.msra.mxu1 %v3458_v15  ;;  %v5569_v15 = vld [vmem:[%s5183_s7 + $0xc0] sm:$0xff] }
  0x7b   : > { %4487 = vmatprep.subr.mxu0 %v3506_v19  ;;  %4287 = vmatprep.mubr.f32.mxu1 %v5525_v20  ;;  %v5606_v17 = vld [vmem:[%s5183_s7 + $0xe2] sm:$0xff] }
  0x7c   : > { %4488 = vmatpush3.msra.mxu0 %v3506_v19  ;;  %4288 = vmatmul.mubr.f32.gmra.mxu1 %v5529_v21  ;;  %v5573_v19 = vld [vmem:[%s5183_s7 + $0xc8] sm:$0xff]  ;;  %6809 = vst [vmem:[#allocation25_spill] sm:$0xff] %v5606_v17 }
  0x7d   : > { %4367 = vmatprep.mubr.f32.mxu0 %v5533_v22  ;;  %4409 = vmatprep.subr.mxu1 %v3457_v24  ;;  %v3454_v22 = vld [vmem:[%s6752_s1 + $0x1b0] sm:$0xff] }
  0x7e   : > { %4368 = vmatmul.mubr.f32.gmra.mxu0 %v5540_v32  ;;  %4410 = vmatpush3.msra.mxu1 %v3457_v24  ;;  %v5577_v24 = vld [vmem:[%s5183_s7 + $0xc2] sm:$0xff]  ;;  %v5584_v32 = vld [vmem:[%s5183_s7 + $0xca] sm:$0xff] }
  0x7f   : > { %4489 = vmatprep.subr.mxu0 %v3505_v37  ;;  %4290 = vmatprep.mubr.f32.mxu1 %v5547_v45  ;;  %6806 = vst [vmem:[#allocation22_spill] sm:$0xff] %v5577_v24  ;;  %6807 = vst [vmem:[#allocation23_spill] sm:$0xff] %v5584_v32 }
  0x80   : > { %4490 = vmatpush3.msra.mxu0 %v3505_v37  ;;  %4291 = vmatmul.mubr.f32.gmra.mxu1 %v5551_v48  ;;  %v3455_v37 = vld [vmem:[%s6752_s1 + $0x1b8] sm:$0xff] }
  0x81   : > { %4370 = vmatprep.mubr.f32.mxu0 %v5555_v56  ;;  %4411 = vmatprep.subr.mxu1 %v3456_v61  ;;  %v5595_v56 = vld [vmem:[%s5183_s7 + $0xe0] sm:$0xff] }
  0x82   : > { %4371 = vmatmul.mubr.f32.gmra.mxu0 %v5562_v5  ;;  %4412 = vmatpush3.msra.mxu1 %v3456_v61  ;;  %v3503_v61 = vld [vmem:[%s6752_s1 + $0x238] sm:$0xff] }
  0x83   : > { %4491 = vmatprep.subr.mxu0 %v3504_v8  ;;  %4293 = vmatprep.mubr.f32.mxu1 %v5569_v15  ;;  %v5591_v5 = vld [vmem:[%s5183_s7 + $0xd8] sm:$0xff] }
  0x84   : > { %4492 = vmatpush3.msra.mxu0 %v3504_v8  ;;  %4294 = vmatmul.mubr.f32.gmra.mxu1 %v5573_v19  ;;  %v5599_v8 = vld [vmem:[%s5183_s7 + $0xda] sm:$0xff] }
  0x85   : > { %4373 = vmatprep.mubr.f32.mxu0 %v5577_v24  ;;  %4413 = vmatprep.subr.mxu1 %v3455_v37  ;;  %6808 = vst [vmem:[#allocation24_spill] sm:$0xff] %v5599_v8  ;;  %v5617_v24 = vld [vmem:[%s5183_s7 + $0xf8] sm:$0xff] }
  0x86   : > { %4374 = vmatmul.mubr.f32.gmra.mxu0 %v5584_v32  ;;  %4414 = vmatpush3.msra.mxu1 %v3455_v37  ;;  %v3502_v37 = vld [vmem:[%s6752_s1 + $0x230] sm:$0xff] }
  0x87   : > { %4493 = vmatprep.subr.mxu0 %v3503_v61  ;;  %4296 = vmatprep.mubr.f32.mxu1 %v5591_v5  ;;  %v5613_v32 = vld [vmem:[%s5183_s7 + $0xf0] sm:$0xff] }
  0x88   : > { %4494 = vmatpush3.msra.mxu0 %v3503_v61  ;;  %4297 = vmatmul.mubr.f32.gmra.mxu1 %v5595_v56  ;;  %v5621_v61 = vld [vmem:[%s5183_s7 + $0xf2] sm:$0xff] }
  0x89   : > { %4376 = vmatprep.mubr.f32.mxu0 %v5599_v8  ;;  %4415 = vmatprep.subr.mxu1 %v3454_v22  ;;  %6810 = vst [vmem:[#allocation26_spill] sm:$0xff] %v5621_v61  ;;  %v5639_v8 = vld [vmem:[%s5183_s7 + $0x110] sm:$0xff] }
  0x8a   : > { %4377 = vmatmul.mubr.f32.gmra.mxu0 %v5606_v17  ;;  %4416 = vmatpush3.msra.mxu1 %v3454_v22  ;;  %v3501_v22 = vld [vmem:[%s6752_s1 + $0x228] sm:$0xff] }
  0x8b   : > { %4495 = vmatprep.subr.mxu0 %v3502_v37  ;;  %4299 = vmatprep.mubr.f32.mxu1 %v5613_v32  ;;  %v5635_v17 = vld [vmem:[%s5183_s7 + $0x108] sm:$0xff] }
  0x8c   : > { %4496 = vmatpush3.msra.mxu0 %v3502_v37  ;;  %4300 = vmatmul.mubr.f32.gmra.mxu1 %v5617_v24  ;;  %v5643_v37 = vld [vmem:[%s5183_s7 + $0x10a] sm:$0xff] }
  0x8d   : > { %4379 = vmatprep.mubr.f32.mxu0 %v5621_v61  ;;  %4417 = vmatprep.subr.mxu1 %v3453_v14  ;;  %6812 = vst [vmem:[#allocation28_spill] sm:$0xff] %v5643_v37  ;;  %v5661_v61 = vld [vmem:[%s5183_s7 + $0x128] sm:$0xff] }
  0x8e   : > { %4380 = vmatmul.mubr.f32.gmra.mxu0 %v5628_v6  ;;  %4418 = vmatpush3.msra.mxu1 %v3453_v14  ;;  %v3500_v14 = vld [vmem:[%s6752_s1 + $0x220] sm:$0xff] }
  0x8f   : > { %4497 = vmatprep.subr.mxu0 %v3501_v22  ;;  %4302 = vmatprep.mubr.f32.mxu1 %v5635_v17  ;;  %v5657_v6 = vld [vmem:[%s5183_s7 + $0x120] sm:$0xff] }
  0x90   : > { %4498 = vmatpush3.msra.mxu0 %v3501_v22  ;;  %4303 = vmatmul.mubr.f32.gmra.mxu1 %v5639_v8  ;;  %v5665_v22 = vld [vmem:[%s5183_s7 + $0x122] sm:$0xff] }
  0x91   : > { %4382 = vmatprep.mubr.f32.mxu0 %v5643_v37  ;;  %4419 = vmatprep.subr.mxu1 %v3452_v3  ;;  %6814 = vst [vmem:[#allocation30_spill] sm:$0xff] %v5665_v22  ;;  %v5683_v37 = vld [vmem:[%s5183_s7 + $0x140] sm:$0xff] }
  0x92   : > { %4383 = vmatmul.mubr.f32.gmra.mxu0 %v5650_v59  ;;  %4420 = vmatpush3.msra.mxu1 %v3452_v3  ;;  %v3499_v3 = vld [vmem:[%s6752_s1 + $0x218] sm:$0xff] }
  0x93   : > { %4499 = vmatprep.subr.mxu0 %v3500_v14  ;;  %4305 = vmatprep.mubr.f32.mxu1 %v5657_v6  ;;  %v5679_v59 = vld [vmem:[%s5183_s7 + $0x138] sm:$0xff] }
  0x94   : > { %4500 = vmatpush3.msra.mxu0 %v3500_v14  ;;  %4306 = vmatmul.mubr.f32.gmra.mxu1 %v5661_v61  ;;  %v5687_v14 = vld [vmem:[%s5183_s7 + $0x13a] sm:$0xff] }
  0x95   : > { %4385 = vmatprep.mubr.f32.mxu0 %v5665_v22  ;;  %4421 = vmatprep.subr.mxu1 %v3451_v54  ;;  %6816 = vst [vmem:[#allocation32_spill] sm:$0xff] %v5687_v14  ;;  %v5705_v22 = vld [vmem:[%s5183_s7 + $0x158] sm:$0xff] }
  0x96   : > { %4386 = vmatmul.mubr.f32.gmra.mxu0 %v5672_v46  ;;  %4422 = vmatpush3.msra.mxu1 %v3451_v54  ;;  %v3498_v54 = vld [vmem:[%s6752_s1 + $0x210] sm:$0xff] }
  0x97   : > { %4501 = vmatprep.subr.mxu0 %v3499_v3  ;;  %4308 = vmatprep.mubr.f32.mxu1 %v5679_v59  ;;  %v5701_v46 = vld [vmem:[%s5183_s7 + $0x150] sm:$0xff] }
  0x98   : > { %4502 = vmatpush3.msra.mxu0 %v3499_v3  ;;  %4309 = vmatmul.mubr.f32.gmra.mxu1 %v5683_v37  ;;  %v5709_v3 = vld [vmem:[%s5183_s7 + $0x152] sm:$0xff] }
  0x99   : > { %4388 = vmatprep.mubr.f32.mxu0 %v5687_v14  ;;  %4423 = vmatprep.subr.mxu1 %v3450_v43  ;;  %6818 = vst [vmem:[#allocation34_spill] sm:$0xff] %v5709_v3  ;;  %v5727_v14 = vld [vmem:[%s5183_s7 + $0x170] sm:$0xff] }
  0x9a   : > { %4389 = vmatmul.mubr.f32.gmra.mxu0 %v5694_v35  ;;  %4424 = vmatpush3.msra.mxu1 %v3450_v43  ;;  %v3497_v35 = vld [vmem:[%s6752_s1 + $0x208] sm:$0xff] }
  0x9b   : > { %4503 = vmatprep.subr.mxu0 %v3498_v54  ;;  %4311 = vmatprep.mubr.f32.mxu1 %v5701_v46  ;;  %v5723_v43 = vld [vmem:[%s5183_s7 + $0x168] sm:$0xff] }
  0x9c   : > { %4504 = vmatpush3.msra.mxu0 %v3498_v54  ;;  %4312 = vmatmul.mubr.f32.gmra.mxu1 %v5705_v22  ;;  %v3448_v54 = vld [vmem:[%s6752_s1 + $0x180] sm:$0xff] }
  0x9d   : > { %4391 = vmatprep.mubr.f32.mxu0 %v5709_v3  ;;  %4425 = vmatprep.subr.mxu1 %v3449_v30  ;;  %v3496_v3 = vld [vmem:[%s6752_s1 + $0x200] sm:$0xff] }
  0x9e   : > { %4392 = vmatmul.mubr.f32.gmra.mxu0 %v5716_v10  ;;  %4426 = vmatpush3.msra.mxu1 %v3449_v30  ;;  %v3559_v30 = vld [vmem:[%s6752_s1 + $0x2f8] sm:$0xff] }
  0x9f   : > { %4505 = vmatprep.subr.mxu0 %v3497_v35  ;;  %4314 = vmatprep.mubr.f32.mxu1 %v5723_v43 }
  0xa0   : > { %4506 = vmatpush3.msra.mxu0 %v3497_v35  ;;  %4315 = vmatmul.mubr.f32.gmra.mxu1 %v5727_v14  ;;  %v3607_v35 = vld [vmem:[%s6752_s1 + $0x378] sm:$0xff] }
  0xa1   : > { %4394 = vmatprep.mubr.f32.mxu0 %v5731_v7  ;;  %4427 = vmatprep.subr.mxu1 %v3448_v54 }
  0xa2   : > { %4395 = vmatmul.mubr.f32.gmra.mxu0 %v5738_v2  ;;  %4428 = vmatpush3.msra.mxu1 %v3448_v54  ;;  %v3558_v54 = vld [vmem:[%s6752_s1 + $0x2f0] sm:$0xff] }
  0xa3   : > { %4507 = vmatprep.subr.mxu0 %v3496_v3  ;;  %4429 = vmatprep.mubr.f32.mxu1 %v5417_v27  ;;  %v3606_v27 = vld [vmem:[%s6752_s1 + $0x370] sm:$0xff] }
  0xa4   : > { %4508 = vmatpush3.msra.mxu0 %v3496_v3  ;;  %4430 = vmatmul.mubr.f32.vlgmr.msra.gmra.mxu1 %v5420_v29  ;;  %v5895_v29 = vld [vmem:[%s5183_s7 + $0x180] sm:$0xff]  ;;  %v6820_v3 = vld [vmem:[#allocation6_spill] sm:$0xff] }
  0xa5   : > { %4509 = vmatprep.mubr.f32.mxu0 %v5214_v25  ;;  %4557 = vmatprep.subr.mxu1 %v3559_v30  ;;  %v3557_v25 = vld [vmem:[%s6752_s1 + $0x2e8] sm:$0xff] }
  0xa6   : > { %4510 = vmatmul.mubr.f32.vlgmr.msra.gmra.mxu0 %v5224_v28  ;;  %4558 = vmatpush3.msra.mxu1 %v3559_v30  ;;  %v3605_v28 = vld [vmem:[%s6752_s1 + $0x368] sm:$0xff] }
  0xa7   : > { %4637 = vmatprep.subr.mxu0 %v3607_v35  ;;  %4432 = vmatprep.mubr.f32.mxu1 %v5437_v38  ;;  %v5899_v30 = vld [vmem:[%s5183_s7 + $0x188] sm:$0xff] }
  0xa8   : > { %4638 = vmatpush3.msra.mxu0 %v3607_v35  ;;  %4433 = vmatmul.mubr.f32.gmra.mxu1 %v5441_v40  ;;  %v6821_v35 = vld [vmem:[#allocation7_spill] sm:$0xff] }
  0xa9   : > { %4512 = vmatprep.mubr.f32.mxu0 %v5242_v33  ;;  %4559 = vmatprep.subr.mxu1 %v3558_v54  ;;  %v3556_v33 = vld [vmem:[%s6752_s1 + $0x2e0] sm:$0xff] }
  0xaa   : > { %4513 = vmatmul.mubr.f32.gmra.mxu0 %v5252_v36  ;;  %4560 = vmatpush3.msra.mxu1 %v3558_v54  ;;  %v3604_v36 = vld [vmem:[%s6752_s1 + $0x360] sm:$0xff] }
  0xab   : > { %4639 = vmatprep.subr.mxu0 %v3606_v27  ;;  %4435 = vmatprep.mubr.f32.mxu1 %v5459_v51  ;;  %v5903_v54 = vld [vmem:[%s5183_s7 + $0x181] sm:$0xff] }
  0xac   : > { %4640 = vmatpush3.msra.mxu0 %v3606_v27  ;;  %4436 = vmatmul.mubr.f32.gmra.mxu1 %v5463_v53  ;;  %v3544_v27 = vld [vmem:[%s6752_s1 + $0x280] sm:$0xff] }
  0xad   : > { %4515 = vmatprep.mubr.f32.mxu0 %v5270_v41  ;;  %4561 = vmatprep.subr.mxu1 %v3557_v25  ;;  %v3555_v41 = vld [vmem:[%s6752_s1 + $0x2d8] sm:$0xff] }
  0xae   : > { %4516 = vmatmul.mubr.f32.gmra.mxu0 %v5280_v44  ;;  %4562 = vmatpush3.msra.mxu1 %v3557_v25  ;;  %v3603_v44 = vld [vmem:[%s6752_s1 + $0x358] sm:$0xff]  ;;  %v5910_v25 = vld [vmem:[%s5183_s7 + $0x189] sm:$0xff] }
  0xaf   : > { %4641 = vmatprep.subr.mxu0 %v3605_v28  ;;  %4438 = vmatprep.mubr.f32.mxu1 %v5481_v62 }
  0xb0   : > { %4642 = vmatpush3.msra.mxu0 %v3605_v28  ;;  %4439 = vmatmul.mubr.f32.gmra.mxu1 %v5485_v0  ;;  %v3592_v28 = vld [vmem:[%s6752_s1 + $0x300] sm:$0xff] }
  0xb1   : > { %4518 = vmatprep.mubr.f32.mxu0 %v5298_v49  ;;  %4563 = vmatprep.subr.mxu1 %v3556_v33  ;;  %v3554_v49 = vld [vmem:[%s6752_s1 + $0x2d0] sm:$0xff] }
  0xb2   : > { %4519 = vmatmul.mubr.f32.gmra.mxu0 %v5308_v52  ;;  %4564 = vmatpush3.msra.mxu1 %v3556_v33  ;;  %v3602_v52 = vld [vmem:[%s6752_s1 + $0x350] sm:$0xff]  ;;  %v3655_v33 = vld [vmem:[%s6752_s1 + $0x3f8] sm:$0xff] }
  0xb3   : > { %4643 = vmatprep.subr.mxu0 %v3604_v36  ;;  %4441 = vmatprep.mubr.f32.mxu1 %v5503_v11 }
  0xb4   : > { %4644 = vmatpush3.msra.mxu0 %v3604_v36  ;;  %4442 = vmatmul.mubr.f32.gmra.mxu1 %v5507_v13  ;;  %v6822_v36 = vld [vmem:[#allocation8_spill] sm:$0xff] }
  0xb5   : > { %4521 = vmatprep.mubr.f32.mxu0 %v5326_v57  ;;  %4565 = vmatprep.subr.mxu1 %v3555_v41  ;;  %v3553_v57 = vld [vmem:[%s6752_s1 + $0x2c8] sm:$0xff] }
  0xb6   : > { %4522 = vmatmul.mubr.f32.gmra.mxu0 %v5336_v60  ;;  %4566 = vmatpush3.msra.mxu1 %v3555_v41  ;;  %v3601_v60 = vld [vmem:[%s6752_s1 + $0x348] sm:$0xff] }
  0xb7   : > { %4645 = vmatprep.subr.mxu0 %v3603_v44  ;;  %4444 = vmatprep.mubr.f32.mxu1 %v5525_v20  ;;  %v6823_v41 = vld [vmem:[#allocation9_spill] sm:$0xff] }
  0xb8   : > { %4646 = vmatpush3.msra.mxu0 %v3603_v44  ;;  %4445 = vmatmul.mubr.f32.gmra.mxu1 %v5529_v21  ;;  %v3703_v44 = vld [vmem:[%s6752_s1 + $0x478] sm:$0xff] }
  0xb9   : > { %4524 = vmatprep.mubr.f32.mxu0 %v5354_v1  ;;  %4567 = vmatprep.subr.mxu1 %v3554_v49  ;;  %v3552_v1 = vld [vmem:[%s6752_s1 + $0x2c0] sm:$0xff] }
  0xba   : > { %4525 = vmatmul.mubr.f32.gmra.mxu0 %v5364_v4  ;;  %4568 = vmatpush3.msra.mxu1 %v3554_v49  ;;  %v3600_v4 = vld [vmem:[%s6752_s1 + $0x340] sm:$0xff]  ;;  %v3654_v49 = vld [vmem:[%s6752_s1 + $0x3f0] sm:$0xff] }
  0xbb   : > { %4647 = vmatprep.subr.mxu0 %v3602_v52  ;;  %4447 = vmatprep.mubr.f32.mxu1 %v5547_v45 }
  0xbc   : > { %4648 = vmatpush3.msra.mxu0 %v3602_v52  ;;  %4448 = vmatmul.mubr.f32.gmra.mxu1 %v5551_v48  ;;  %v6824_v52 = vld [vmem:[#allocation10_spill] sm:$0xff] }
  0xbd   : > { %4527 = vmatprep.mubr.f32.mxu0 %v5382_v9  ;;  %4569 = vmatprep.subr.mxu1 %v3553_v57  ;;  %v3551_v9 = vld [vmem:[%s6752_s1 + $0x2b8] sm:$0xff] }
  0xbe   : > { %4528 = vmatmul.mubr.f32.gmra.mxu0 %v5392_v12  ;;  %4570 = vmatpush3.msra.mxu1 %v3553_v57  ;;  %v3599_v12 = vld [vmem:[%s6752_s1 + $0x338] sm:$0xff] }
  0xbf   : > { %4649 = vmatprep.subr.mxu0 %v3601_v60  ;;  %4450 = vmatprep.mubr.f32.mxu1 %v5569_v15  ;;  %v6825_v57 = vld [vmem:[#allocation11_spill] sm:$0xff] }
  0xc0   : > { %4650 = vmatpush3.msra.mxu0 %v3601_v60  ;;  %4451 = vmatmul.mubr.f32.gmra.mxu1 %v5573_v19  ;;  %v3702_v60 = vld [vmem:[%s6752_s1 + $0x470] sm:$0xff] }
  0xc1   : > { %4530 = vmatprep.mubr.f32.mxu0 %v5189_v16  ;;  %4571 = vmatprep.subr.mxu1 %v3552_v1  ;;  %v3550_v16 = vld [vmem:[%s6752_s1 + $0x2b0] sm:$0xff] }
  0xc2   : > { %4531 = vmatmul.mubr.f32.gmra.mxu0 %v5193_v18  ;;  %4572 = vmatpush3.msra.mxu1 %v3552_v1  ;;  %v3598_v18 = vld [vmem:[%s6752_s1 + $0x330] sm:$0xff]  ;;  %v6827_v1 = vld [vmem:[#allocation13_spill] sm:$0xff] }
  0xc3   : > { %4651 = vmatprep.subr.mxu0 %v3600_v4  ;;  %4453 = vmatprep.mubr.f32.mxu1 %v5591_v5 }
  0xc4   : > { %4652 = vmatpush3.msra.mxu0 %v3600_v4  ;;  %4454 = vmatmul.mubr.f32.gmra.mxu1 %v5595_v56  ;;  %v3701_v4 = vld [vmem:[%s6752_s1 + $0x468] sm:$0xff] }
  0xc5   : > { %4533 = vmatprep.mubr.f32.mxu0 %v5208_v23  ;;  %4573 = vmatprep.subr.mxu1 %v3551_v9  ;;  %v3549_v23 = vld [vmem:[%s6752_s1 + $0x2a8] sm:$0xff] }
  0xc6   : > { %4534 = vmatmul.mubr.f32.gmra.mxu0 %v5217_v26  ;;  %4574 = vmatpush3.msra.mxu1 %v3551_v9  ;;  %v3597_v26 = vld [vmem:[%s6752_s1 + $0x328] sm:$0xff]  ;;  %v6829_v9 = vld [vmem:[#allocation15_spill] sm:$0xff] }
  0xc7   : > { %4653 = vmatprep.subr.mxu0 %v3599_v12  ;;  %4456 = vmatprep.mubr.f32.mxu1 %v5613_v32 }
  0xc8   : > { %4654 = vmatpush3.msra.mxu0 %v3599_v12  ;;  %4457 = vmatmul.mubr.f32.gmra.mxu1 %v5617_v24  ;;  %v3700_v12 = vld [vmem:[%s6752_s1 + $0x460] sm:$0xff] }
  0xc9   : > { %4536 = vmatprep.mubr.f32.mxu0 %v5235_v31  ;;  %4575 = vmatprep.subr.mxu1 %v3550_v16  ;;  %v3548_v31 = vld [vmem:[%s6752_s1 + $0x2a0] sm:$0xff] }
  0xca   : > { %4537 = vmatmul.mubr.f32.gmra.mxu0 %v5245_v34  ;;  %4576 = vmatpush3.msra.mxu1 %v3550_v16  ;;  %v3596_v34 = vld [vmem:[%s6752_s1 + $0x320] sm:$0xff] }
  0xcb   : > { %4655 = vmatprep.subr.mxu0 %v3598_v18  ;;  %4459 = vmatprep.mubr.f32.mxu1 %v5635_v17  ;;  %v6831_v16 = vld [vmem:[#allocation17_spill] sm:$0xff] }
  0xcc   : > { %4656 = vmatpush3.msra.mxu0 %v3598_v18  ;;  %4460 = vmatmul.mubr.f32.gmra.mxu1 %v5639_v8  ;;  %v3699_v18 = vld [vmem:[%s6752_s1 + $0x458] sm:$0xff] }
  0xcd   : > { %4539 = vmatprep.mubr.f32.mxu0 %v5263_v39  ;;  %4577 = vmatprep.subr.mxu1 %v3549_v23  ;;  %v3547_v39 = vld [vmem:[%s6752_s1 + $0x298] sm:$0xff] }
  0xce   : > { %4540 = vmatmul.mubr.f32.gmra.mxu0 %v5273_v42  ;;  %4578 = vmatpush3.msra.mxu1 %v3549_v23  ;;  %v3595_v42 = vld [vmem:[%s6752_s1 + $0x318] sm:$0xff] }
  0xcf   : > { %4657 = vmatprep.subr.mxu0 %v3597_v26  ;;  %4462 = vmatprep.mubr.f32.mxu1 %v5657_v6 }
  0xd0   : > { %4658 = vmatpush3.msra.mxu0 %v3597_v26  ;;  %4463 = vmatmul.mubr.f32.gmra.mxu1 %v5661_v61  ;;  %v6832_v26 = vld [vmem:[#allocation18_spill] sm:$0xff] }
  0xd1   : > { %4542 = vmatprep.mubr.f32.mxu0 %v5291_v47  ;;  %4579 = vmatprep.subr.mxu1 %v3548_v31  ;;  %v3546_v47 = vld [vmem:[%s6752_s1 + $0x290] sm:$0xff] }
  0xd2   : > { %4543 = vmatmul.mubr.f32.gmra.mxu0 %v5301_v50  ;;  %4580 = vmatpush3.msra.mxu1 %v3548_v31  ;;  %v3594_v50 = vld [vmem:[%s6752_s1 + $0x310] sm:$0xff] }
  0xd3   : > { %4659 = vmatprep.subr.mxu0 %v3596_v34  ;;  %4465 = vmatprep.mubr.f32.mxu1 %v5679_v59 }
  0xd4   : > { %4660 = vmatpush3.msra.mxu0 %v3596_v34  ;;  %4466 = vmatmul.mubr.f32.gmra.mxu1 %v5683_v37  ;;  %v6833_v34 = vld [vmem:[#allocation19_spill] sm:$0xff] }
  0xd5   : > { %4545 = vmatprep.mubr.f32.mxu0 %v5319_v55  ;;  %4581 = vmatprep.subr.mxu1 %v3547_v39  ;;  %v6819_v55 = vld [vmem:[#allocation5_spill] sm:$0xff] }
  0xd6   : > { %4546 = vmatmul.mubr.f32.gmra.mxu0 %v5329_v58  ;;  %4582 = vmatpush3.msra.mxu1 %v3547_v39  ;;  %v3545_v58 = vld [vmem:[%s6752_s1 + $0x288] sm:$0xff] }
  0xd7   : > { %4661 = vmatprep.subr.mxu0 %v3595_v42  ;;  %4468 = vmatprep.mubr.f32.mxu1 %v5701_v46  ;;  %v3649_v39 = vld [vmem:[%s6752_s1 + $0x3c8] sm:$0xff] }
  0xd8   : > { %4662 = vmatpush3.msra.mxu0 %v3595_v42  ;;  %4469 = vmatmul.mubr.f32.gmra.mxu1 %v5705_v22 }
  0xd9   : > { %4548 = vmatprep.mubr.f32.mxu0 %v5347_v63  ;;  %4583 = vmatprep.subr.mxu1 %v3546_v47  ;;  %v3593_v63 = vld [vmem:[%s6752_s1 + $0x308] sm:$0xff] }
  0xda   : > { %4549 = vmatmul.mubr.f32.gmra.mxu0 %v6819_v55  ;;  %4584 = vmatpush3.msra.mxu1 %v3546_v47  ;;  %v6834_v47 = vld [vmem:[#allocation20_spill] sm:$0xff] }
  0xdb   : > { %4663 = vmatprep.subr.mxu0 %v3594_v50  ;;  %4471 = vmatprep.mubr.f32.mxu1 %v5723_v43 }
  0xdc   : > { %4664 = vmatpush3.msra.mxu0 %v3594_v50  ;;  %4472 = vmatmul.mubr.f32.gmra.mxu1 %v5727_v14  ;;  %v6835_v50 = vld [vmem:[#allocation21_spill] sm:$0xff] }
  0xdd   : > { %4551 = vmatprep.mubr.f32.mxu0 %v6820_v3  ;;  %4585 = vmatprep.subr.mxu1 %v3545_v58  ;;  %v6836_v3 = vld [vmem:[#allocation22_spill] sm:$0xff] }
  0xde   : > { %4552 = vmatmul.mubr.f32.gmra.mxu0 %v6821_v35  ;;  %4586 = vmatpush3.msra.mxu1 %v3545_v58  ;;  %v3648_v58 = vld [vmem:[%s6752_s1 + $0x3c0] sm:$0xff]  ;;  %v6837_v35 = vld [vmem:[#allocation23_spill] sm:$0xff] }
  0xdf   : > { %4665 = vmatprep.subr.mxu0 %v3593_v63  ;;  %4474 = vmatprep.mubr.f32.mxu1 %v5895_v29 }
  0xe0   : > { %4666 = vmatpush3.msra.mxu0 %v3593_v63  ;;  %4475 = vmatmul.mubr.f32.gmra.mxu1 %v5899_v30 }
  0xe1   : > { %4554 = vmatprep.mubr.f32.mxu0 %v5903_v54  ;;  %4587 = vmatprep.subr.mxu1 %v3544_v27 }
  0xe2   : > { %4555 = vmatmul.mubr.f32.gmra.mxu0 %v5910_v25  ;;  %4588 = vmatpush3.msra.mxu1 %v3544_v27 }
  0xe3   : > { %4667 = vmatprep.subr.mxu0 %v3592_v28  ;;  %4589 = vmatprep.mubr.f32.mxu1 %v6822_v36  ;;  %v6838_v36 = vld [vmem:[#allocation24_spill] sm:$0xff] }
  0xe4   : > { %4668 = vmatpush3.msra.mxu0 %v3592_v28  ;;  %4590 = vmatmul.mubr.f32.vlgmr.msra.gmra.mxu1 %v6823_v41  ;;  %v6839_v41 = vld [vmem:[#allocation25_spill] sm:$0xff] }
  0xe5   : > { %4669 = vmatprep.mubr.f32.mxu0 %v5437_v38  ;;  %4717 = vmatprep.subr.mxu1 %v3655_v33  ;;  %v3653_v38 = vld [vmem:[%s6752_s1 + $0x3e8] sm:$0xff] }
  0xe6   : > { %4670 = vmatmul.mubr.f32.vlgmr.msra.gmra.mxu0 %v5441_v40  ;;  %4718 = vmatpush3.msra.mxu1 %v3655_v33  ;;  %v6826_v40 = vld [vmem:[#allocation12_spill] sm:$0xff] }
  0xe7   : > { %4797 = vmatprep.subr.mxu0 %v3703_v44  ;;  %4592 = vmatprep.mubr.f32.mxu1 %v6824_v52  ;;  %v6840_v52 = vld [vmem:[#allocation26_spill] sm:$0xff] }
  0xe8   : > { %4798 = vmatpush3.msra.mxu0 %v3703_v44  ;;  %4593 = vmatmul.mubr.f32.gmra.mxu1 %v6825_v57  ;;  %v3646_v44 = vld [vmem:[%s6752_s1 + $0x3b0] sm:$0xff] }
  0xe9   : > { %4672 = vmatprep.mubr.f32.mxu0 %v5459_v51  ;;  %4719 = vmatprep.subr.mxu1 %v3654_v49  ;;  %v3652_v51 = vld [vmem:[%s6752_s1 + $0x3e0] sm:$0xff]  ;;  %v6841_v57 = vld [vmem:[#allocation27_spill] sm:$0xff] }
  0xea   : > { %4673 = vmatmul.mubr.f32.gmra.mxu0 %v5463_v53  ;;  %4720 = vmatpush3.msra.mxu1 %v3654_v49  ;;  %v6828_v53 = vld [vmem:[#allocation14_spill] sm:$0xff] }
  0xeb   : > { %4799 = vmatprep.subr.mxu0 %v3702_v60  ;;  %4595 = vmatprep.mubr.f32.mxu1 %v6826_v40 }
  0xec   : > { %4800 = vmatpush3.msra.mxu0 %v3702_v60  ;;  %4596 = vmatmul.mubr.f32.gmra.mxu1 %v6827_v1  ;;  %v6842_v1 = vld [vmem:[#allocation28_spill] sm:$0xff] }
  0xed   : > { %4675 = vmatprep.mubr.f32.mxu0 %v5481_v62  ;;  %4721 = vmatprep.subr.mxu1 %v3653_v38  ;;  %v3651_v62 = vld [vmem:[%s6752_s1 + $0x3d8] sm:$0xff] }
  0xee   : > { %4676 = vmatmul.mubr.f32.gmra.mxu0 %v5485_v0  ;;  %4722 = vmatpush3.msra.mxu1 %v3653_v38  ;;  %v6830_v0 = vld [vmem:[#allocation16_spill] sm:$0xff]  ;;  %v3645_v38 = vld [vmem:[%s6752_s1 + $0x3a8] sm:$0xff] }
  0xef   : > { %4801 = vmatprep.subr.mxu0 %v3701_v4  ;;  %4598 = vmatprep.mubr.f32.mxu1 %v6828_v53 }
  0xf0   : > { %4802 = vmatpush3.msra.mxu0 %v3701_v4  ;;  %4599 = vmatmul.mubr.f32.gmra.mxu1 %v6829_v9  ;;  %v6843_v4 = vld [vmem:[#allocation29_spill] sm:$0xff] }
  0xf1   : > { %4678 = vmatprep.mubr.f32.mxu0 %v5503_v11  ;;  %4723 = vmatprep.subr.mxu1 %v3652_v51 }
  0xf2   : > { %4679 = vmatmul.mubr.f32.gmra.mxu0 %v5507_v13  ;;  %4724 = vmatpush3.msra.mxu1 %v3652_v51  ;;  %v3650_v13 = vld [vmem:[%s6752_s1 + $0x3d0] sm:$0xff] }
  0xf3   : > { %4803 = vmatprep.subr.mxu0 %v3700_v12  ;;  %4601 = vmatprep.mubr.f32.mxu1 %v6830_v0  ;;  %v3643_v0 = vld [vmem:[%s6752_s1 + $0x398] sm:$0xff] }
  0xf4   : > { %4804 = vmatpush3.msra.mxu0 %v3700_v12  ;;  %4602 = vmatmul.mubr.f32.gmra.mxu1 %v6831_v16  ;;  %v6844_v12 = vld [vmem:[#allocation30_spill] sm:$0xff] }
  0xf5   : > { %4681 = vmatprep.mubr.f32.mxu0 %v5525_v20  ;;  %4725 = vmatprep.subr.mxu1 %v3651_v62  ;;  %v5967_v11 = vpop.f32.mrf.mxu1  ;;  %v3698_v20 = vld [vmem:[%s6752_s1 + $0x450] sm:$0xff] }
  0xf6   : > { %4682 = vmatmul.mubr.f32.gmra.mxu0 %v5529_v21  ;;  %4726 = vmatpush3.msra.mxu1 %v3651_v62  ;;  %v5973_v23 = vpop.f32.mrf.mxu0  ;;  %v6845_v62 = vld [vmem:[#allocation31_spill] sm:$0xff] }
  0xf7   : > { %4805 = vmatprep.subr.mxu0 %v3699_v18  ;;  %4604 = vmatprep.mubr.f32.mxu1 %v6832_v26  ;;  %v5976_v31 = vpop.f32.mrf.mxu1 }
  0xf8   : > { %4806 = vmatpush3.msra.mxu0 %v3699_v18  ;;  %4605 = vmatmul.mubr.f32.gmra.mxu1 %v6833_v34  ;;  %v5982_v21 = vpop.f32.mrf.mxu0  ;;  %v6846_v18 = vld [vmem:[#allocation32_spill] sm:$0xff]  ;;  %v3642_v34 = vld [vmem:[%s6752_s1 + $0x390] sm:$0xff] }
  0xf9   : > { %4684 = vmatprep.mubr.f32.mxu0 %v5547_v45  ;;  %4727 = vmatprep.subr.mxu1 %v3650_v13  ;;  %v3697_v45 = vld [vmem:[%s6752_s1 + $0x448] sm:$0xff] }
  0xfa   : > { %4685 = vmatmul.mubr.f32.gmra.mxu0 %v5551_v48  ;;  %4728 = vmatpush3.msra.mxu1 %v3650_v13  ;;  %v5989_v42 = vpop.f32.mrf.mxu1  ;;  %v6847_v13 = vld [vmem:[#allocation33_spill] sm:$0xff] }
  0xfb   : > { %4807 = vmatprep.subr.mxu0 %v3698_v20  ;;  %4607 = vmatprep.mubr.f32.mxu1 %v6834_v47 }
  0xfc   : > { %4808 = vmatpush3.msra.mxu0 %v3698_v20  ;;  %4608 = vmatmul.mubr.f32.gmra.mxu1 %v6835_v50  ;;  %v5996_v55 = vpop.f32.mrf.mxu0  ;;  %v5998_v48 = vpop.f32.mrf.mxu1 }
  0xfd   : > { %4687 = vmatprep.mubr.f32.mxu0 %v5569_v15  ;;  %4729 = vmatprep.subr.mxu1 %v3649_v39  ;;  %v3696_v15 = vld [vmem:[%s6752_s1 + $0x440] sm:$0xff] }
  0xfe   : > { %4688 = vmatmul.mubr.f32.gmra.mxu0 %v5573_v19  ;;  %4730 = vmatpush3.msra.mxu1 %v3649_v39  ;;  %v6005_v63 = vpop.f32.mrf.mxu0  ;;  %v3647_v19 = vld [vmem:[%s6752_s1 + $0x3b8] sm:$0xff]  ;;  %v6848_v39 = vld [vmem:[#allocation34_spill] sm:$0xff] }
  0xff   : > { %4809 = vmatprep.subr.mxu0 %v3697_v45  ;;  %4610 = vmatprep.mubr.f32.mxu1 %v6836_v3  ;;  %v3640_v3 = vld [vmem:[%s6752_s1 + $0x380] sm:$0xff] }
 0x100   : > { %4810 = vmatpush3.msra.mxu0 %v3697_v45  ;;  %4611 = vmatmul.mubr.f32.gmra.mxu1 %v6837_v35  ;;  %v6012_v27 = vpop.f32.mrf.mxu1  ;;  %v6123_v45 = vld [vmem:[%s5183_s7 + $0x182] sm:$0xff] }
 0x101   : > { %4690 = vmatprep.mubr.f32.mxu0 %v5591_v5  ;;  %4731 = vmatprep.subr.mxu1 %v3648_v58  ;;  %v3695_v5 = vld [vmem:[%s6752_s1 + $0x438] sm:$0xff] }
 0x102   : > { %4691 = vmatmul.mubr.f32.gmra.mxu0 %v5595_v56  ;;  %4732 = vmatpush3.msra.mxu1 %v3648_v58  ;;  %v6019_v28 = vpop.f32.mrf.mxu0  ;;  %v6021_v33 = vpop.f32.mrf.mxu1  ;;  %v6127_v58 = vld [vmem:[%s5183_s7 + $0x18a] sm:$0xff] }
 0x103   : > { %4811 = vmatprep.subr.mxu0 %v3696_v15  ;;  %4613 = vmatprep.mubr.f32.mxu1 %v6838_v36  ;;  %v3609_v36 = vld [vmem:[%s5183_s7 + $0x39] sm:$0xff] }
 0x104   : > { %4812 = vmatpush3.msra.mxu0 %v3696_v15  ;;  %4614 = vmatmul.mubr.f32.gmra.mxu1 %v6839_v41  ;;  %v6028_v56 = vpop.f32.mrf.mxu0  ;;  %v3688_v15 = vld [vmem:[%s6752_s1 + $0x400] sm:$0xff] }
 0x105   : > { %4693 = vmatprep.mubr.f32.mxu0 %v5613_v32  ;;  %4733 = vmatprep.subr.mxu1 %v3647_v19  ;;  %v3694_v32 = vld [vmem:[%s6752_s1 + $0x430] sm:$0xff] }
 0x106   : > { %4694 = vmatmul.mubr.f32.gmra.mxu0 %v5617_v24  ;;  %4734 = vmatpush3.msra.mxu1 %v3647_v19  ;;  %v6035_v49 = vpop.f32.mrf.mxu1  ;;  %v3608_v19 = vld [vmem:[%s5183_s7 + $0x31] sm:$0xff] }
 0x107   : > { %4813 = vmatprep.subr.mxu0 %v3695_v5  ;;  %4616 = vmatprep.mubr.f32.mxu1 %v6840_v52  ;;  %v3657_v52 = vld [vmem:[%s5183_s7 + $0x3a] sm:$0xff] }
 0x108   : > { %4814 = vmatpush3.msra.mxu0 %v3695_v5  ;;  %4617 = vmatmul.mubr.f32.gmra.mxu1 %v6841_v57  ;;  %v6042_v60 = vpop.f32.mrf.mxu0  ;;  %v6044_v24 = vpop.f32.mrf.mxu1  ;;  %v3656_v5 = vld [vmem:[%s5183_s7 + $0x32] sm:$0xff] }
 0x109   : > { %4696 = vmatprep.mubr.f32.mxu0 %v5635_v17  ;;  %4735 = vmatprep.subr.mxu1 %v3646_v44  ;;  %v3693_v17 = vld [vmem:[%s6752_s1 + $0x428] sm:$0xff] }
 0x10a   : > { %4697 = vmatmul.mubr.f32.gmra.mxu0 %v5639_v8  ;;  %4736 = vmatpush3.msra.mxu1 %v3646_v44  ;;  %v6051_v40 = vpop.f32.mrf.mxu0  ;;  %v3644_v8 = vld [vmem:[%s6752_s1 + $0x3a0] sm:$0xff]  ;;  %v3610_v44 = vld [vmem:[%s5183_s7 + $0x49] sm:$0xff] }
 0x10b   : > { %4815 = vmatprep.subr.mxu0 %v3694_v32  ;;  %4619 = vmatprep.mubr.f32.mxu1 %v6842_v1  ;;  %v3611_v1 = vld [vmem:[%s5183_s7 + $0x51] sm:$0xff] }
 0x10c   : > { %4816 = vmatpush3.msra.mxu0 %v3694_v32  ;;  %4620 = vmatmul.mubr.f32.gmra.mxu1 %v6843_v4  ;;  %v6058_v51 = vpop.f32.mrf.mxu1  ;;  %v3658_v32 = vld [vmem:[%s5183_s7 + $0x4a] sm:$0xff] }
 0x10d   : > { %4699 = vmatprep.mubr.f32.mxu0 %v5657_v6  ;;  %4737 = vmatprep.subr.mxu1 %v3645_v38  ;;  %v3692_v6 = vld [vmem:[%s6752_s1 + $0x420] sm:$0xff] }
 0x10e   : > { %4700 = vmatmul.mubr.f32.gmra.mxu0 %v5661_v61  ;;  %4738 = vmatpush3.msra.mxu1 %v3645_v38  ;;  %v6065_v53 = vpop.f32.mrf.mxu0  ;;  %v6067_v9 = vpop.f32.mrf.mxu1 }
 0x10f   : > { %4817 = vmatprep.subr.mxu0 %v3693_v17  ;;  %4622 = vmatprep.mubr.f32.mxu1 %v6844_v12 }
 0x110   : > { %4818 = vmatpush3.msra.mxu0 %v3693_v17  ;;  %4623 = vmatmul.mubr.f32.gmra.mxu1 %v6845_v62  ;;  %v6074_v61 = vpop.f32.mrf.mxu0 }
 0x111   : > { %4702 = vmatprep.mubr.f32.mxu0 %v5679_v59  ;;  %4739 = vmatprep.subr.mxu1 %v3644_v8  ;;  %v3691_v59 = vld [vmem:[%s6752_s1 + $0x418] sm:$0xff] }
 0x112   : > { %4703 = vmatmul.mubr.f32.gmra.mxu0 %v5683_v37  ;;  %4740 = vmatpush3.msra.mxu1 %v3644_v8  ;;  %v6081_v16 = vpop.f32.mrf.mxu1  ;;  %v3612_v8 = vld [vmem:[%s5183_s7 + $0x61] sm:$0xff] }
 0x113   : > { %4819 = vmatprep.subr.mxu0 %v3692_v6  ;;  %4625 = vmatprep.mubr.f32.mxu1 %v6846_v18 }
 0x114   : > { %4820 = vmatpush3.msra.mxu0 %v3692_v6  ;;  %4626 = vmatmul.mubr.f32.gmra.mxu1 %v6847_v13  ;;  %v6088_v26 = vpop.f32.mrf.mxu0  ;;  %v6090_v37 = vpop.f32.mrf.mxu1  ;;  %v3659_v6 = vld [vmem:[%s5183_s7 + $0x52] sm:$0xff] }
 0x115   : > { %4705 = vmatprep.mubr.f32.mxu0 %v5701_v46  ;;  %4741 = vmatprep.subr.mxu1 %v3643_v0  ;;  %v3690_v46 = vld [vmem:[%s6752_s1 + $0x410] sm:$0xff] }
 0x116   : > { %4706 = vmatmul.mubr.f32.gmra.mxu0 %v5705_v22  ;;  %4742 = vmatpush3.msra.mxu1 %v3643_v0  ;;  %v6097_v20 = vpop.f32.mrf.mxu0  ;;  %v3641_v22 = vld [vmem:[%s6752_s1 + $0x388] sm:$0xff] }
 0x117   : > { %4821 = vmatprep.subr.mxu0 %v3691_v59  ;;  %4628 = vmatprep.mubr.f32.mxu1 %v6848_v39 }
 0x118   : > { %4822 = vmatpush3.msra.mxu0 %v3691_v59  ;;  %4629 = vmatmul.mubr.f32.gmra.mxu1 %v5716_v10  ;;  %v6104_v47 = vpop.f32.mrf.mxu1 }
 0x119   : > { %4708 = vmatprep.mubr.f32.mxu0 %v5723_v43  ;;  %4743 = vmatprep.subr.mxu1 %v3642_v34 }
 0x11a   : > { %4709 = vmatmul.mubr.f32.gmra.mxu0 %v5727_v14  ;;  %4744 = vmatpush3.msra.mxu1 %v3642_v34  ;;  %v6111_v10 = vpop.f32.mrf.mxu0  ;;  %v6113_v50 = vpop.f32.mrf.mxu1  ;;  %v3689_v14 = vld [vmem:[%s6752_s1 + $0x408] sm:$0xff] }
 0x11b   : > { %4823 = vmatprep.subr.mxu0 %v3690_v46  ;;  %4631 = vmatprep.mubr.f32.mxu1 %v5731_v7  ;;  %v3613_v34 = vld [vmem:[%s5183_s7 + $0x69] sm:$0xff] }
 0x11c   : > { %4824 = vmatpush3.msra.mxu0 %v3690_v46  ;;  %4632 = vmatmul.mubr.f32.gmra.mxu1 %v5738_v2  ;;  %v6120_v43 = vpop.f32.mrf.mxu0  ;;  %v3590_v2 = vld [vmem:[%s5183_s7 + $0x198] sm:$0xff] }
 0x11d   : > { %4711 = vmatprep.mubr.f32.mxu0 %v5895_v29  ;;  %4745 = vmatprep.subr.mxu1 %v3641_v22  ;;  %v3591_v29 = vld [vmem:[%s5183_s7 + $0x1a0] sm:$0xff] }
 0x11e   : > { %4712 = vmatmul.mubr.f32.gmra.mxu0 %v5899_v30  ;;  %4746 = vmatpush3.msra.mxu1 %v3641_v22  ;;  %v6130_v7 = vpop.f32.mrf.mxu1  ;;  %v3614_v22 = vld [vmem:[%s5183_s7 + $0x79] sm:$0xff] }
 0x11f   : > { %4825 = vmatprep.subr.mxu0 %v3689_v14  ;;  %4634 = vmatprep.mubr.f32.mxu1 %v6123_v45 }
 0x120   : > { %4826 = vmatpush3.msra.mxu0 %v3689_v14  ;;  %4635 = vmatmul.mubr.f32.gmra.mxu1 %v6127_v58  ;;  %v6139_v30 = vpop.f32.mrf.mxu0  ;;  %v6141_v35 = vpop.f32.mrf.mxu1 }
 0x121   : > { %4714 = vmatprep.mubr.f32.mxu0 %v3590_v2  ;;  %4747 = vmatprep.subr.mxu1 %v3640_v3  ;;  %v3661_v2 = vld [vmem:[%s5183_s7 + $0x6a] sm:$0xff] }
 0x122   : > { %4715 = vmatmul.mubr.f32.gmra.mxu0 %v3591_v29  ;;  %4748 = vmatpush3.msra.mxu1 %v3640_v3  ;;  %v6148_v41 = vpop.f32.mrf.mxu0 }
 0x123   : > { %4827 = vmatprep.subr.mxu0 %v3688_v15  ;;  %4749 = vmatprep.mubr.f32.mxu1 %v3608_v19 }
 0x124   : > { %4828 = vmatpush3.msra.mxu0 %v3688_v15  ;;  %v4271_v57 = vpop.f32.mrf.mxu1  ;;  %4750 = vmatmul.mubr.f32.vlgmr.msra.gmra.mxu1 %v3609_v36  ;;  %v3662_v15 = vld [vmem:[%s5183_s7 + $0x7a] sm:$0xff] }
 0x125   : > { %v616_v38 = vadd.f32 %v4271_v57, %v5973_v23  ;;  %4829 = vmatprep.mubr.f32.mxu0 %v3656_v5  ;;  %4752 = vmatprep.mubr.f32.mxu1 %v3610_v44  ;;  %v3660_v23 = vld [vmem:[%s5183_s7 + $0x62] sm:$0xff] }
 0x126   : > { %v4351_v4 = vpop.f32.mrf.mxu0  ;;  %4830 = vmatmul.mubr.f32.vlgmr.msra.gmra.mxu0 %v3657_v52  ;;  %v610_v17 = vpop.f32.mrf.mxu1  ;;  %v3615_v36 = vld [vmem:[%s5183_s7 + $0x81] sm:$0xff]  ;;  %v3616_v52 = vld [vmem:[%s5183_s7 + $0x91] sm:$0xff] }
 0x127   : > { %v6157_v12 = vadd.f32 %v4351_v4, %v616_v38  ;;  %v611_v62 = vadd.f32 %v610_v17, %v5982_v21  ;;  %4832 = vmatprep.mubr.f32.mxu0 %v3658_v32  ;;  %v3663_v32 = vld [vmem:[%s5183_s7 + $0x82] sm:$0xff]  ;;  %v3664_v4 = vld [vmem:[%s5183_s7 + $0x92] sm:$0xff] }
 0x128   : > { %v884_v0 = vpop.f32.mrf.mxu0  ;;  %v4274_v18 = vpop.f32.mrf.mxu1  ;;  %4753 = vmatmul.mubr.f32.gmra.mxu1 %v3611_v1 }
 0x129   : > { %v6162_v13 = vadd.f32 %v884_v0, %v611_v62  ;;  %v626_v59 = vadd.f32 %v4274_v18, %v5996_v55  ;;  %4755 = vmatprep.mubr.f32.mxu1 %v3612_v8  ;;  %v3617_v8 = vld [vmem:[%s5183_s7 + $0x99] sm:$0xff]  ;;  %v3618_v0 = vld [vmem:[%s5183_s7 + $0xa9] sm:$0xff] }
 0x12a   : > { %v4354_v39 = vpop.f32.mrf.mxu0  ;;  %4833 = vmatmul.mubr.f32.gmra.mxu0 %v3659_v6  ;;  %v620_v46 = vpop.f32.mrf.mxu1 }
 0x12b   : > { %v6167_v21 = vadd.f32 %v4354_v39, %v626_v59  ;;  %v621_v14 = vadd.f32 %v620_v46, %v6005_v63  ;;  %4835 = vmatprep.mubr.f32.mxu0 %v3660_v23  ;;  %v3665_v23 = vld [vmem:[%s5183_s7 + $0x9a] sm:$0xff]  ;;  %v3666_v39 = vld [vmem:[%s5183_s7 + $0xaa] sm:$0xff] }
 0x12c   : > { %v894_v3 = vpop.f32.mrf.mxu0  ;;  %v4277_v29 = vpop.f32.mrf.mxu1  ;;  %4756 = vmatmul.mubr.f32.gmra.mxu1 %v3613_v34 }
 0x12d   : > { %v6172_v55 = vadd.f32 %v894_v3, %v621_v14  ;;  %v636_v19 = vadd.f32 %v4277_v29, %v6019_v28  ;;  %4758 = vmatprep.mubr.f32.mxu1 %v3614_v22  ;;  %v3619_v22 = vld [vmem:[%s5183_s7 + $0xb1] sm:$0xff]  ;;  %v3620_v3 = vld [vmem:[%s5183_s7 + $0xc1] sm:$0xff] }
 0x12e   : > { %v4357_v5 = vpop.f32.mrf.mxu0  ;;  %4836 = vmatmul.mubr.f32.gmra.mxu0 %v3661_v2  ;;  %v630_v44 = vpop.f32.mrf.mxu1 }
 0x12f   : > { %v6177_v63 = vadd.f32 %v4357_v5, %v636_v19  ;;  %v631_v57 = vadd.f32 %v630_v44, %v6028_v56  ;;  %4838 = vmatprep.mubr.f32.mxu0 %v3662_v15  ;;  %v3667_v15 = vld [vmem:[%s5183_s7 + $0xb2] sm:$0xff]  ;;  %v3668_v5 = vld [vmem:[%s5183_s7 + $0xc2] sm:$0xff] }
 0x130   : > { %v904_v38 = vpop.f32.mrf.mxu0  ;;  %v4280_v1 = vpop.f32.mrf.mxu1  ;;  %4759 = vmatmul.mubr.f32.gmra.mxu1 %v3615_v36 }
 0x131   : > { %v6182_v28 = vadd.f32 %v904_v38, %v631_v57  ;;  %v646_v17 = vadd.f32 %v4280_v1, %v6042_v60  ;;  %4761 = vmatprep.mubr.f32.mxu1 %v3616_v52  ;;  %v3621_v52 = vld [vmem:[%s5183_s7 + $0xc9] sm:$0xff]  ;;  %v3622_v38 = vld [vmem:[%s5183_s7 + $0xd9] sm:$0xff] }
 0x132   : > { %v4360_v62 = vpop.f32.mrf.mxu0  ;;  %4839 = vmatmul.mubr.f32.gmra.mxu0 %v3663_v32  ;;  %v640_v6 = vpop.f32.mrf.mxu1 }
 0x133   : > { %v6187_v56 = vadd.f32 %v4360_v62, %v646_v17  ;;  %v641_v18 = vadd.f32 %v640_v6, %v6051_v40  ;;  %4841 = vmatprep.mubr.f32.mxu0 %v3664_v4  ;;  %v3669_v4 = vld [vmem:[%s5183_s7 + $0xca] sm:$0xff]  ;;  %v3670_v62 = vld [vmem:[%s5183_s7 + $0xda] sm:$0xff] }
 0x134   : > { %v914_v59 = vpop.f32.mrf.mxu0  ;;  %v4283_v34 = vpop.f32.mrf.mxu1  ;;  %4762 = vmatmul.mubr.f32.gmra.mxu1 %v3617_v8 }
 0x135   : > { %v6192_v60 = vadd.f32 %v914_v59, %v641_v18  ;;  %v656_v46 = vadd.f32 %v4283_v34, %v6065_v53  ;;  %4764 = vmatprep.mubr.f32.mxu1 %v3618_v0  ;;  %v3623_v0 = vld [vmem:[%s5183_s7 + $0xe1] sm:$0xff]  ;;  %v3624_v59 = vld [vmem:[%s5183_s7 + $0xf1] sm:$0xff] }
 0x136   : > { %v4363_v14 = vpop.f32.mrf.mxu0  ;;  %4842 = vmatmul.mubr.f32.gmra.mxu0 %v3665_v23  ;;  %v650_v2 = vpop.f32.mrf.mxu1 }
 0x137   : > { %v6197_v40 = vadd.f32 %v4363_v14, %v656_v46  ;;  %v651_v29 = vadd.f32 %v650_v2, %v6074_v61  ;;  %4844 = vmatprep.mubr.f32.mxu0 %v3666_v39  ;;  %v3671_v39 = vld [vmem:[%s5183_s7 + $0xe2] sm:$0xff]  ;;  %v3672_v14 = vld [vmem:[%s5183_s7 + $0xf2] sm:$0xff] }
 0x138   : > { %v924_v19 = vpop.f32.mrf.mxu0  ;;  %v4286_v36 = vpop.f32.mrf.mxu1  ;;  %4765 = vmatmul.mubr.f32.gmra.mxu1 %v3619_v22 }
 0x139   : > { %v6202_v53 = vadd.f32 %v924_v19, %v651_v29  ;;  %v666_v44 = vadd.f32 %v4286_v36, %v6088_v26  ;;  %4767 = vmatprep.mubr.f32.mxu1 %v3620_v3  ;;  %v3625_v3 = vld [vmem:[%s5183_s7 + $0xf9] sm:$0xff]  ;;  %v3626_v19 = vld [vmem:[%s5183_s7 + $0x109] sm:$0xff] }
 0x13a   : > { %v4366_v57 = vpop.f32.mrf.mxu0  ;;  %4845 = vmatmul.mubr.f32.gmra.mxu0 %v3667_v15  ;;  %v660_v32 = vpop.f32.mrf.mxu1 }
 0x13b   : > { %v6207_v61 = vadd.f32 %v4366_v57, %v666_v44  ;;  %v661_v1 = vadd.f32 %v660_v32, %v6097_v20  ;;  %4847 = vmatprep.mubr.f32.mxu0 %v3668_v5  ;;  %v3673_v5 = vld [vmem:[%s5183_s7 + $0xfa] sm:$0xff] }
 0x13c   : > { %v934_v17 = vpop.f32.mrf.mxu0  ;;  %v4289_v8 = vpop.f32.mrf.mxu1  ;;  %4768 = vmatmul.mubr.f32.gmra.mxu1 %v3621_v52 }
 0x13d   : > { %v6212_v26 = vadd.f32 %v934_v17, %v661_v1  ;;  %v676_v6 = vadd.f32 %v4289_v8, %v6111_v10  ;;  %4770 = vmatprep.mubr.f32.mxu1 %v3622_v38  ;;  %v3627_v38 = vld [vmem:[%s5183_s7 + $0x111] sm:$0xff] }
 0x13e   : > { %v4369_v18 = vpop.f32.mrf.mxu0  ;;  %4848 = vmatmul.mubr.f32.gmra.mxu0 %v3669_v4  ;;  %v670_v23 = vpop.f32.mrf.mxu1  ;;  %v3675_v8 = vld [vmem:[%s5183_s7 + $0x112] sm:$0xff] }
 0x13f   : > { %v6217_v20 = vadd.f32 %v4369_v18, %v676_v6  ;;  %v671_v34 = vadd.f32 %v670_v23, %v6120_v43  ;;  %4850 = vmatprep.mubr.f32.mxu0 %v3670_v62  ;;  %v3629_v18 = vld [vmem:[%s5183_s7 + $0x129] sm:$0xff] }
 0x140   : > { %v944_v46 = vpop.f32.mrf.mxu0  ;;  %v4292_v22 = vpop.f32.mrf.mxu1  ;;  %4771 = vmatmul.mubr.f32.gmra.mxu1 %v3623_v0 }
 0x141   : > { %v6222_v10 = vadd.f32 %v944_v46, %v671_v34  ;;  %v686_v2 = vadd.f32 %v4292_v22, %v6139_v30  ;;  %4773 = vmatprep.mubr.f32.mxu1 %v3624_v59  ;;  %v3674_v30 = vld [vmem:[%s5183_s7 + $0x10a] sm:$0xff]  ;;  %v3630_v34 = vld [vmem:[%s5183_s7 + $0x139] sm:$0xff] }
 0x142   : > { %v4372_v29 = vpop.f32.mrf.mxu0  ;;  %4851 = vmatmul.mubr.f32.gmra.mxu0 %v3671_v39  ;;  %v680_v15 = vpop.f32.mrf.mxu1  ;;  %v3677_v22 = vld [vmem:[%s5183_s7 + $0x12a] sm:$0xff] }
 0x143   : > { %v6227_v43 = vadd.f32 %v4372_v29, %v686_v2  ;;  %v681_v36 = vadd.f32 %v680_v15, %v6148_v41  ;;  %4853 = vmatprep.mubr.f32.mxu0 %v3672_v14  ;;  %v3628_v41 = vld [vmem:[%s5183_s7 + $0x121] sm:$0xff] }
 0x144   : > { %v954_v44 = vpop.f32.mrf.mxu0  ;;  %v4295_v52 = vpop.f32.mrf.mxu1  ;;  %4774 = vmatmul.mubr.f32.gmra.mxu1 %v3625_v3  ;;  %v3678_v3 = vld [vmem:[%s5183_s7 + $0x13a] sm:$0xff] }
 0x145   : > { %v6232_v57 = vadd.f32 %v954_v44, %v681_v36  ;;  %v696_v32 = vadd.f32 %v4295_v52, %v5967_v11  ;;  %4776 = vmatprep.mubr.f32.mxu1 %v3626_v19  ;;  %v3676_v11 = vld [vmem:[%s5183_s7 + $0x122] sm:$0xff] }
 0x146   : > { %v4375_v1 = vpop.f32.mrf.mxu0  ;;  %4854 = vmatmul.mubr.f32.gmra.mxu0 %v3673_v5  ;;  %v6236_v4 = vpop.f32.mrf.mxu1  ;;  %v3631_v15 = vld [vmem:[%s5183_s7 + $0x141] sm:$0xff]  ;;  %v3632_v5 = vld [vmem:[%s5183_s7 + $0x151] sm:$0xff] }
 0x147   : > { %v6239_v17 = vadd.f32 %v4375_v1, %v696_v32  ;;  %4856 = vmatprep.mubr.f32.mxu0 %v3674_v30  ;;  %v3679_v52 = vld [vmem:[%s5183_s7 + $0x142] sm:$0xff] }
 0x148   : > { %v6242_v62 = vpop.f32.mrf.mxu0  ;;  %v4298_v6 = vpop.f32.mrf.mxu1  ;;  %4777 = vmatmul.mubr.f32.gmra.mxu1 %v3627_v38  ;;  %v3680_v38 = vld [vmem:[%s5183_s7 + $0x152] sm:$0xff] }
 0x149   : > { %v706_v0 = vadd.f32 %v4298_v6, %v5989_v42  ;;  %4779 = vmatprep.mubr.f32.mxu1 %v3628_v41  ;;  %v3633_v41 = vld [vmem:[%s5183_s7 + $0x159] sm:$0xff] }
 0x14a   : > { %v4378_v23 = vpop.f32.mrf.mxu0  ;;  %4857 = vmatmul.mubr.f32.gmra.mxu0 %v3675_v8  ;;  %v700_v59 = vpop.f32.mrf.mxu1 }
 0x14b   : > { %v6248_v39 = vadd.f32 %v4378_v23, %v706_v0  ;;  %v701_v46 = vadd.f32 %v700_v59, %v5998_v48  ;;  %4859 = vmatprep.mubr.f32.mxu0 %v3676_v11  ;;  %v3634_v11 = vld [vmem:[%s5183_s7 + $0x169] sm:$0xff] }
 0x14c   : > { %v974_v14 = vpop.f32.mrf.mxu0  ;;  %v4301_v2 = vpop.f32.mrf.mxu1  ;;  %4780 = vmatmul.mubr.f32.gmra.mxu1 %v3629_v18  ;;  %v3681_v18 = vld [vmem:[%s5183_s7 + $0x15a] sm:$0xff] }
 0x14d   : > { %v6253_v42 = vadd.f32 %v974_v14, %v701_v46  ;;  %v716_v29 = vadd.f32 %v4301_v2, %v6012_v27  ;;  %4782 = vmatprep.mubr.f32.mxu1 %v3630_v34  ;;  %v3682_v34 = vld [vmem:[%s5183_s7 + $0x16a] sm:$0xff] }
 0x14e   : > { %v4381_v19 = vpop.f32.mrf.mxu0  ;;  %4860 = vmatmul.mubr.f32.gmra.mxu0 %v3677_v22  ;;  %v710_v36 = vpop.f32.mrf.mxu1  ;;  %v3635_v22 = vld [vmem:[%s5183_s7 + $0x171] sm:$0xff] }
 0x14f   : > { %v6258_v48 = vadd.f32 %v4381_v19, %v716_v29  ;;  %v711_v44 = vadd.f32 %v710_v36, %v6021_v33  ;;  %4862 = vmatprep.mubr.f32.mxu0 %v3678_v3  ;;  %v3683_v29 = vld [vmem:[%s5183_s7 + $0x172] sm:$0xff] }
 0x150   : > { %v984_v30 = vpop.f32.mrf.mxu0  ;;  %v4304_v32 = vpop.f32.mrf.mxu1  ;;  %4783 = vmatmul.mubr.f32.gmra.mxu1 %v3631_v15 }
 0x151   : > { %v6263_v27 = vadd.f32 %v984_v30, %v711_v44  ;;  %v726_v1 = vadd.f32 %v4304_v32, %v6035_v49  ;;  %4785 = vmatprep.mubr.f32.mxu1 %v3632_v5 }
 0x152   : > { %v4384_v8 = vpop.f32.mrf.mxu0  ;;  %4863 = vmatmul.mubr.f32.gmra.mxu0 %v3679_v52  ;;  %v720_v6 = vpop.f32.mrf.mxu1  ;;  %v3638_v52 = vld [vmem:[%s5183_s7 + $0x199] sm:$0xff] }
 0x153   : > { %v6268_v33 = vadd.f32 %v4384_v8, %v726_v1  ;;  %v721_v0 = vadd.f32 %v720_v6, %v6044_v24  ;;  %4865 = vmatprep.mubr.f32.mxu0 %v3680_v38  ;;  %v3686_v1 = vld [vmem:[%s5183_s7 + $0x19a] sm:$0xff] }
 0x154   : > { %v994_v23 = vpop.f32.mrf.mxu0  ;;  %v4307_v59 = vpop.f32.mrf.mxu1  ;;  %4786 = vmatmul.mubr.f32.gmra.mxu1 %v3633_v41  ;;  %v3639_v41 = vld [vmem:[%s5183_s7 + $0x1a1] sm:$0xff] }
 0x155   : > { %v6273_v46 = vadd.f32 %v994_v23, %v721_v0  ;;  %v736_v49 = vadd.f32 %v4307_v59, %v6058_v51  ;;  %4788 = vmatprep.mubr.f32.mxu1 %v3634_v11 }
 0x156   : > { %v4387_v14 = vpop.f32.mrf.mxu0  ;;  %4866 = vmatmul.mubr.f32.gmra.mxu0 %v3681_v18  ;;  %v730_v2 = vpop.f32.mrf.mxu1 }
 0x157   : > { %v6277_v3 = vadd.f32 %v4387_v14, %v736_v49  ;;  %v731_v24 = vadd.f32 %v730_v2, %v6067_v9  ;;  %4868 = vmatprep.mubr.f32.mxu0 %v3682_v34 }
 0x158   : > { %v1004_v15 = vpop.f32.mrf.mxu0  ;;  %v4310_v19 = vpop.f32.mrf.mxu1  ;;  %4789 = vmatmul.mubr.f32.gmra.mxu1 %v3635_v22 }
 0x159   : > { %v6281_v36 = vadd.f32 %v1004_v15, %v731_v24  ;;  %v746_v51 = vadd.f32 %v4310_v19, %v6081_v16  ;;  %4791 = vmatprep.mubr.f32.mxu1 %v5903_v54 }
 0x15a   : > { %v4390_v5 = vpop.f32.mrf.mxu0  ;;  %4869 = vmatmul.mubr.f32.gmra.mxu0 %v3683_v29  ;;  %v740_v44 = vpop.f32.mrf.mxu1 }
 0x15b   : > { %v6286_v30 = vadd.f32 %v4390_v5, %v746_v51  ;;  %v741_v9 = vadd.f32 %v740_v44, %v6090_v37  ;;  %4871 = vmatprep.mubr.f32.mxu0 %v6123_v45  ;;  %v3687_v45 = vld [vmem:[%s5183_s7 + $0x1a2] sm:$0xff] }
 0x15c   : > { %v1014_v32 = vpop.f32.mrf.mxu0  ;;  %v4313_v38 = vpop.f32.mrf.mxu1  ;;  %4792 = vmatmul.mubr.f32.gmra.mxu1 %v5910_v25 }
 0x15d   : > { %v6292_v16 = vadd.f32 %v1014_v32, %v741_v9  ;;  %v756_v54 = vadd.f32 %v4313_v38, %v6104_v47  ;;  %4794 = vmatprep.mubr.f32.mxu1 %v3638_v52 }
 0x15e   : > { %v4393_v8 = vpop.f32.mrf.mxu0  ;;  %4872 = vmatmul.mubr.f32.gmra.mxu0 %v6127_v58  ;;  %v750_v6 = vpop.f32.mrf.mxu1 }
 0x15f   : > { %v6297_v11 = vadd.f32 %v4393_v8, %v756_v54  ;;  %v751_v37 = vadd.f32 %v750_v6, %v6113_v50  ;;  %4874 = vmatprep.mubr.f32.mxu0 %v3686_v1 }
 0x160   : > { %v1024_v0 = vpop.f32.mrf.mxu0  ;;  %v4316_v18 = vpop.f32.mrf.mxu1  ;;  %4795 = vmatmul.mubr.f32.gmra.mxu1 %v3639_v41 }
 0x161   : > { %v6301_v25 = vadd.f32 %v1024_v0, %v751_v37  ;;  %v766_v23 = vadd.f32 %v4316_v18, %v6130_v7 }
 0x162   : > { %v4396_v47 = vpop.f32.mrf.mxu0  ;;  %4875 = vmatmul.mubr.f32.gmra.mxu0 %v3687_v45  ;;  %v760_v59 = vpop.f32.mrf.mxu1 }
 0x163   : > { %v6304_v34 = vadd.f32 %v4396_v47, %v766_v23  ;;  %v761_v58 = vadd.f32 %v760_v59, %v6141_v35 }
 0x164   : > { %v1034_v49 = vpop.f32.mrf.mxu0  ;;  %v4431_v22 = vpop.f32.mrf.mxu1 }
 0x165   : > { %v6307_v14 = vadd.f32 %v1034_v49, %v761_v58  ;;  %v1351_v50 = vadd.f32 %v4431_v22, %v6157_v12 }
 0x166   : > { %v4511_v2 = vpop.f32.mrf.mxu0  ;;  %v1191_v24 = vpop.f32.mrf.mxu1 }
 0x167   : > { %v6310_v29 = vadd.f32 %v4511_v2, %v1351_v50  ;;  %v1350_v15 = vadd.f32 %v1191_v24, %v6162_v13 }
 0x168   : > { %v1497_v7 = vpop.f32.mrf.mxu0  ;;  %v4434_v19 = vpop.f32.mrf.mxu1 }
 0x169   : > { %v6313_v51 = vadd.f32 %v1497_v7, %v1350_v15  ;;  %v1353_v5 = vadd.f32 %v4434_v19, %v6167_v21 }
 0x16a   : > { %v4514_v44 = vpop.f32.mrf.mxu0  ;;  %v1201_v35 = vpop.f32.mrf.mxu1 }
 0x16b   : > { %v6316_v52 = vadd.f32 %v4514_v44, %v1353_v5  ;;  %v1352_v9 = vadd.f32 %v1201_v35, %v6172_v55 }
 0x16c   : > { %v1507_v32 = vpop.f32.mrf.mxu0  ;;  %v4437_v12 = vpop.f32.mrf.mxu1 }
 0x16d   : > { %v6319_v38 = vadd.f32 %v1507_v32, %v1352_v9  ;;  %v1355_v1 = vadd.f32 %v4437_v12, %v6177_v63 }
 0x16e   : > { %v4517_v54 = vpop.f32.mrf.mxu0  ;;  %v1211_v13 = vpop.f32.mrf.mxu1 }
 0x16f   : > { %v6322_v41 = vadd.f32 %v4517_v54, %v1355_v1  ;;  %v1354_v8 = vadd.f32 %v1211_v13, %v6182_v28  ;;  %v691_v13 = vadd.f32 %v6236_v4, %v5976_v31 }
 0x170   : > { %v1517_v6 = vpop.f32.mrf.mxu0  ;;  %v4440_v21 = vpop.f32.mrf.mxu1 }
 0x171   : > { %v6325_v37 = vadd.f32 %v1517_v6, %v1354_v8  ;;  %v1357_v45 = vadd.f32 %v4440_v21, %v6187_v56 }
 0x172   : > { %v4520_v0 = vpop.f32.mrf.mxu0  ;;  %v1221_v55 = vpop.f32.mrf.mxu1 }
 0x173   : > { %v6328_v18 = vadd.f32 %v4520_v0, %v1357_v45  ;;  %v1356_v23 = vadd.f32 %v1221_v55, %v6192_v60 }
 0x174   : > { %v1527_v47 = vpop.f32.mrf.mxu0  ;;  %v4443_v63 = vpop.f32.mrf.mxu1 }
 0x175   : > { %v6331_v59 = vadd.f32 %v1527_v47, %v1356_v23  ;;  %v1359_v58 = vadd.f32 %v4443_v63, %v6197_v40  ;;  %v1059_v23 = vadd.f32 %v6242_v62, %v691_v13 }
 0x176   : > { %v4523_v49 = vpop.f32.mrf.mxu0  ;;  %v1231_v28 = vpop.f32.mrf.mxu1 }
 0x177   : > { %v6334_v22 = vadd.f32 %v4523_v49, %v1359_v58  ;;  %v1358_v50 = vadd.f32 %v1231_v28, %v6202_v53 }
 0x178   : > { %v1537_v2 = vpop.f32.mrf.mxu0  ;;  %v4446_v56 = vpop.f32.mrf.mxu1 }
 0x179   : > { %v6337_v24 = vadd.f32 %v1537_v2, %v1358_v50  ;;  %v1361_v15 = vadd.f32 %v4446_v56, %v6207_v61 }
 0x17a   : > { %v4526_v7 = vpop.f32.mrf.mxu0  ;;  %v1241_v60 = vpop.f32.mrf.mxu1 }
 0x17b   : > { %v6340_v19 = vadd.f32 %v4526_v7, %v1361_v15  ;;  %v1360_v5 = vadd.f32 %v1241_v60, %v6212_v26 }
 0x17c   : > { %v1547_v44 = vpop.f32.mrf.mxu0  ;;  %v4449_v40 = vpop.f32.mrf.mxu1 }
 0x17d   : > { %v6343_v35 = vadd.f32 %v1547_v44, %v1360_v5  ;;  %v1363_v9 = vadd.f32 %v4449_v40, %v6217_v20 }
 0x17e   : > { %v4529_v32 = vpop.f32.mrf.mxu0  ;;  %v1251_v53 = vpop.f32.mrf.mxu1 }
 0x17f   : > { %v6346_v12 = vadd.f32 %v4529_v32, %v1363_v9  ;;  %v1362_v1 = vadd.f32 %v1251_v53, %v6222_v10 }
 0x180   : > { %v1557_v54 = vpop.f32.mrf.mxu0  ;;  %v4452_v61 = vpop.f32.mrf.mxu1 }
 0x181   : > { %v6351_v8 = vadd.f32 %v1557_v54, %v1362_v1  ;;  %v1365_v26 = vadd.f32 %v4452_v61, %v6227_v43 }
 0x182   : > { %v4532_v6 = vpop.f32.mrf.mxu0  ;;  %v1261_v21 = vpop.f32.mrf.mxu1 }
 0x183   : > { %v6354_v45 = vadd.f32 %v4532_v6, %v1365_v26  ;;  %v1364_v20 = vadd.f32 %v1261_v21, %v6232_v57 }
 0x184   : > { %v1567_v0 = vpop.f32.mrf.mxu0  ;;  %v4455_v55 = vpop.f32.mrf.mxu1 }
 0x185   : > { %v6358_v10 = vadd.f32 %v1567_v0, %v1364_v20  ;;  %v1367_v47 = vadd.f32 %v4455_v55, %v6239_v17 }
 0x186   : > { %v4535_v63 = vpop.f32.mrf.mxu0  ;;  %v1271_v31 = vpop.f32.mrf.mxu1 }
 0x187   : > { %v6361_v4 = vadd.f32 %v4535_v63, %v1367_v47  ;;  %v1366_v58 = vadd.f32 %v1271_v31, %v1059_v23  ;;  %v5052_v63 = vmov 0.0  }
 0x188   : > { %v1577_v43 = vpop.f32.mrf.mxu0  ;;  %v4458_v49 = vpop.f32.mrf.mxu1  ;;  %4877 = vmatprep.subr.mxu1 %v5052_v63  ;;  %4909 = vmatprep.mubr.msk.f32.mxu1 %vm5053_vm0, %v5052_v63 }
 0x189   : > { %v6363_v28 = vadd.f32 %v1577_v43, %v1366_v58  ;;  %v1369_v50 = vadd.f32 %v4458_v49, %v6248_v39 }
 0x18a   : > { %v4538_v57 = vpop.f32.mrf.mxu0  ;;  %v1281_v2 = vpop.f32.mrf.mxu1 }
 0x18b   : > { %v6366_v56 = vadd.f32 %v4538_v57, %v1369_v50  ;;  %v1368_v62 = vadd.f32 %v1281_v2, %v6253_v42 }
 0x18c   : > { %v1587_v15 = vpop.f32.mrf.mxu0  ;;  %v4461_v7 = vpop.f32.mrf.mxu1 }
 0x18d   : > { %v6369_v17 = vadd.f32 %v1587_v15, %v1368_v62  ;;  %v1371_v60 = vadd.f32 %v4461_v7, %v6258_v48 }
 0x18e   : > { %v4541_v5 = vpop.f32.mrf.mxu0  ;;  %v1291_v44 = vpop.f32.mrf.mxu1 }
 0x18f   : > { %v6372_v40 = vadd.f32 %v4541_v5, %v1371_v60  ;;  %v1370_v9 = vadd.f32 %v1291_v44, %v6263_v27 }
 0x190   : > { %v1597_v32 = vpop.f32.mrf.mxu0  ;;  %v4464_v39 = vpop.f32.mrf.mxu1 }
 0x191   : > { %v6375_v53 = vadd.f32 %v1597_v32, %v1370_v9  ;;  %v1373_v1 = vadd.f32 %v4464_v39, %v6268_v33  ;;  %v3231_v33 = vld [vmem:[%s6754_s3 + $0x78] sm:$0xff] }
 0x192   : > { %v4544_v54 = vpop.f32.mrf.mxu0  ;;  %v1301_v42 = vpop.f32.mrf.mxu1  ;;  %4878 = vmatpush3.msra.mxu1 %v3231_v33  ;;  %v3227_v33 = vld [vmem:[%s6754_s3 + $0x58] sm:$0xff] }
 0x193   : > { %v6378_v61 = vadd.f32 %v4544_v54, %v1373_v1  ;;  %v1372_v13 = vadd.f32 %v1301_v42, %v6273_v46  ;;  %4879 = vmatprep.subr.mxu1 %v5052_v63 }
 0x194   : > { %v1607_v26 = vpop.f32.mrf.mxu0  ;;  %v4467_v48 = vpop.f32.mrf.mxu1 }
 0x195   : > { %v6381_v6 = vadd.f32 %v1607_v26, %v1372_v13  ;;  %v1375_v21 = vadd.f32 %v4467_v48, %v6277_v3 }
 0x196   : > { %v4547_v20 = vpop.f32.mrf.mxu0  ;;  %v1311_v27 = vpop.f32.mrf.mxu1 }
 0x197   : > { %v6384_v0 = vadd.f32 %v4547_v20, %v1375_v21  ;;  %v1374_v55 = vadd.f32 %v1311_v27, %v6281_v36 }
 0x198   : > { %v1617_v23 = vpop.f32.mrf.mxu0  ;;  %v4470_v47 = vpop.f32.mrf.mxu1 }
 0x199   : > { %v6391_v46 = vadd.f32 %v1617_v23, %v1374_v55  ;;  %v1377_v31 = vadd.f32 %v4470_v47, %v6286_v30 }
 0x19a   : > { %v4550_v3 = vpop.f32.mrf.mxu0  ;;  %v1321_v58 = vpop.f32.mrf.mxu1 }
 0x19b   : > { %v6395_v43 = vadd.f32 %v4550_v3, %v1377_v31  ;;  %v1376_v36 = vadd.f32 %v1321_v58, %v6292_v16  ;;  %v3230_v16 = vld [vmem:[%s6754_s3 + $0x70] sm:$0xff] }
 0x19c   : > { %v1627_v49 = vpop.f32.mrf.mxu0  ;;  %v4473_v50 = vpop.f32.mrf.mxu1  ;;  %4880 = vmatpush3.msra.mxu1 %v3230_v16 }
 0x19d   : > { %v6398_v57 = vadd.f32 %v1627_v49, %v1376_v36  ;;  %v1379_v2 = vadd.f32 %v4473_v50, %v6297_v11  ;;  %v3229_v11 = vld [vmem:[%s6754_s3 + $0x68] sm:$0xff]  ;;  %4881 = vmatprep.subr.mxu1 %v5052_v63 }
 0x19e   : > { %v4553_v62 = vpop.f32.mrf.mxu0  ;;  %v1331_v15 = vpop.f32.mrf.mxu1  ;;  %4882 = vmatpush3.msra.mxu1 %v3229_v11  ;;  %v3226_v11 = vld [vmem:[%s6754_s3 + $0x50] sm:$0xff] }
 0x19f   : > { %v6401_v7 = vadd.f32 %v4553_v62, %v1379_v2  ;;  %v1378_v30 = vadd.f32 %v1331_v15, %v6301_v25  ;;  %4883 = vmatprep.subr.mxu1 %v5052_v63 }
 0x1a0   : > { %v1637_v60 = vpop.f32.mrf.mxu0  ;;  %v4476_v5 = vpop.f32.mrf.mxu1 }
 0x1a1   : > { %v6404_v44 = vadd.f32 %v1637_v60, %v1378_v30  ;;  %v1381_v9 = vadd.f32 %v4476_v5, %v6304_v34 }
 0x1a2   : > { %v4556_v32 = vpop.f32.mrf.mxu0  ;;  %v1341_v39 = vpop.f32.mrf.mxu1 }
 0x1a3   : > { %v6413_v1 = vadd.f32 %v4556_v32, %v1381_v9  ;;  %v1380_v25 = vadd.f32 %v1341_v39, %v6307_v14  ;;  %v3228_v14 = vld [vmem:[%s6754_s3 + $0x60] sm:$0xff] }
 0x1a4   : > { %v1647_v54 = vpop.f32.mrf.mxu0  ;;  %v4591_v42 = vpop.f32.mrf.mxu1  ;;  %4884 = vmatpush3.msra.mxu1 %v3228_v14 }
 0x1a5   : > { %v6417_v34 = vadd.f32 %v1647_v54, %v1380_v25  ;;  %v1963_v13 = vadd.f32 %v4591_v42, %v6310_v29  ;;  %4885 = vmatprep.subr.mxu1 %v5052_v63 }
 0x1a6   : > { %v4671_v26 = vpop.f32.mrf.mxu0  ;;  %v1803_v48 = vpop.f32.mrf.mxu1  ;;  %4886 = vmatpush3.msra.mxu1 %v3227_v33 }
 0x1a7   : > { %v6421_v21 = vadd.f32 %v4671_v26, %v1963_v13  ;;  %v1962_v20 = vadd.f32 %v1803_v48, %v6313_v51  ;;  %4887 = vmatprep.subr.mxu1 %v5052_v63 }
 0x1a8   : > { %v2110_v27 = vpop.f32.mrf.mxu0  ;;  %v4594_v55 = vpop.f32.mrf.mxu1  ;;  %4888 = vmatpush3.msra.mxu1 %v3226_v11  ;;  %v3221_v11 = vld [vmem:[%s6754_s3 + $0x28] sm:$0xff] }
 0x1a9   : > { %v6430_v23 = vadd.f32 %v2110_v27, %v1962_v20  ;;  %v1965_v29 = vadd.f32 %v4594_v55, %v6316_v52  ;;  %4889 = vmatprep.subr.mxu1 %v5052_v63 }
 0x1aa   : > { %v4674_v47 = vpop.f32.mrf.mxu0  ;;  %v1813_v31 = vpop.f32.mrf.mxu1 }
 0x1ab   : > { %v6434_v51 = vadd.f32 %v4674_v47, %v1965_v29  ;;  %v1964_v3 = vadd.f32 %v1813_v31, %v6319_v38 }
 0x1ac   : > { %v2120_v58 = vpop.f32.mrf.mxu0  ;;  %v4597_v36 = vpop.f32.mrf.mxu1 }
 0x1ad   : > { %v6438_v49 = vadd.f32 %v2120_v58, %v1964_v3  ;;  %v1967_v50 = vadd.f32 %v4597_v36, %v6322_v41  ;;  %v3225_v41 = vld [vmem:[%s6754_s3 + $0x48] sm:$0xff] }
 0x1ae   : > { %v4677_v2 = vpop.f32.mrf.mxu0  ;;  %v1823_v52 = vpop.f32.mrf.mxu1  ;;  %4890 = vmatpush3.msra.mxu1 %v3225_v41 }
 0x1af   : > { %v6441_v62 = vadd.f32 %v4677_v2, %v1967_v50  ;;  %v1966_v15 = vadd.f32 %v1823_v52, %v6325_v37  ;;  %4891 = vmatprep.subr.mxu1 %v5052_v63 }
 0x1b0   : > { %v2130_v30 = vpop.f32.mrf.mxu0  ;;  %v4600_v60 = vpop.f32.mrf.mxu1 }
 0x1b1   : > { %v6444_v5 = vadd.f32 %v2130_v30, %v1966_v15  ;;  %v1969_v38 = vadd.f32 %v4600_v60, %v6328_v18  ;;  %v3222_v60 = vld [vmem:[%s6754_s3 + $0x30] sm:$0xff] }
 0x1b2   : > { %v4680_v9 = vpop.f32.mrf.mxu0  ;;  %v1833_v16 = vpop.f32.mrf.mxu1 }
 0x1b3   : > { %v6453_v32 = vadd.f32 %v4680_v9, %v1969_v38  ;;  %v1968_v37 = vadd.f32 %v1833_v16, %v6331_v59 }
 0x1b4   : > { %v2140_v39 = vpop.f32.mrf.mxu0  ;;  %v4603_v25 = vpop.f32.mrf.mxu1 }
 0x1b5   : > { %v6457_v18 = vadd.f32 %v2140_v39, %v1968_v37  ;;  %v1971_v54 = vadd.f32 %v4603_v25, %v6334_v22  ;;  %v3220_v25 = vld [vmem:[%s6754_s3 + $0x20] sm:$0xff] }
 0x1b6   : > { %v4683_v42 = vpop.f32.mrf.mxu0  ;;  %v1843_v13 = vpop.f32.mrf.mxu1 }
 0x1b7   : > { %v6461_v26 = vadd.f32 %v4683_v42, %v1971_v54  ;;  %v1970_v48 = vadd.f32 %v1843_v13, %v6337_v24  ;;  %v3224_v24 = vld [vmem:[%s6754_s3 + $0x40] sm:$0xff] }
 0x1b8   : > { %v2150_v20 = vpop.f32.mrf.mxu0  ;;  %v4606_v59 = vpop.f32.mrf.mxu1  ;;  %4892 = vmatpush3.msra.mxu1 %v3224_v24 }
 0x1b9   : > { %v6464_v27 = vadd.f32 %v2150_v20, %v1970_v48  ;;  %v1973_v55 = vadd.f32 %v4606_v59, %v6340_v19  ;;  %4893 = vmatprep.subr.mxu1 %v5052_v63  ;;  %v3219_v48 = vld [vmem:[%s6754_s3 + $0x18] sm:$0xff] }
 0x1ba   : > { %v4686_v14 = vpop.f32.mrf.mxu0  ;;  %v1853_v33 = vpop.f32.mrf.mxu1 }
 0x1bb   : > { %v6467_v29 = vadd.f32 %v4686_v14, %v1973_v55  ;;  %v1972_v22 = vadd.f32 %v1853_v33, %v6343_v35  ;;  %v3223_v35 = vld [vmem:[%s6754_s3 + $0x38] sm:$0xff]  ;;  %v3217_v14 = vld [vmem:[%s6754_s3 + $0x8] sm:$0xff] }
 0x1bc   : > { %v2160_v47 = vpop.f32.mrf.mxu0  ;;  %v4609_v31 = vpop.f32.mrf.mxu1  ;;  %4894 = vmatpush3.msra.mxu1 %v3223_v35 }
 0x1bd   : > { %v6470_v3 = vadd.f32 %v2160_v47, %v1972_v22  ;;  %v1975_v58 = vadd.f32 %v4609_v31, %v6346_v12  ;;  %4895 = vmatprep.subr.mxu1 %v5052_v63 }
 0x1be   : > { %v4689_v36 = vpop.f32.mrf.mxu0  ;;  %v1863_v50 = vpop.f32.mrf.mxu1  ;;  %4896 = vmatpush3.msra.mxu1 %v3222_v60 }
 0x1bf   : > { %v6476_v19 = vadd.f32 %v4689_v36, %v1975_v58  ;;  %v1974_v2 = vadd.f32 %v1863_v50, %v6351_v8  ;;  %4897 = vmatprep.subr.mxu1 %v5052_v63  ;;  %v3216_v58 = vld [vmem:[%s6754_s3] sm:$0xff] }
 0x1c0   : > { %v2170_v52 = vpop.f32.mrf.mxu0  ;;  %v4612_v15 = vpop.f32.mrf.mxu1  ;;  %4898 = vmatpush3.msra.mxu1 %v3221_v11 }
 0x1c1   : > { %v6483_v12 = vadd.f32 %v2170_v52, %v1974_v2  ;;  %v1977_v30 = vadd.f32 %v4612_v15, %v6354_v45  ;;  %4899 = vmatprep.subr.mxu1 %v5052_v63 }
 0x1c2   : > { %v4692_v8 = vpop.f32.mrf.mxu0  ;;  %v1873_v38 = vpop.f32.mrf.mxu1  ;;  %4900 = vmatpush3.msra.mxu1 %v3220_v25 }
 0x1c3   : > { %v6490_v9 = vadd.f32 %v4692_v8, %v1977_v30  ;;  %v1976_v16 = vadd.f32 %v1873_v38, %v6358_v10  ;;  %4901 = vmatprep.subr.mxu1 %v5052_v63 }
 0x1c4   : > { %v2180_v45 = vpop.f32.mrf.mxu0  ;;  %v4615_v41 = vpop.f32.mrf.mxu1  ;;  %4902 = vmatpush3.msra.mxu1 %v3219_v48 }
 0x1c5   : > { %v6497_v37 = vadd.f32 %v2180_v45, %v1976_v16  ;;  %v1979_v39 = vadd.f32 %v4615_v41, %v6361_v4  ;;  %v3218_v4 = vld [vmem:[%s6754_s3 + $0x10] sm:$0xff]  ;;  %4903 = vmatprep.subr.mxu1 %v5052_v63 }
 0x1c6   : > { %v4695_v10 = vpop.f32.mrf.mxu0  ;;  %v1883_v54 = vpop.f32.mrf.mxu1  ;;  %4904 = vmatpush3.msra.mxu1 %v3218_v4 }
 0x1c7   : > { %v6504_v42 = vadd.f32 %v4695_v10, %v1979_v39  ;;  %v1978_v13 = vadd.f32 %v1883_v54, %v6363_v28  ;;  %4905 = vmatprep.subr.mxu1 %v5052_v63 }
 0x1c8   : > { %v2190_v20 = vpop.f32.mrf.mxu0  ;;  %v4618_v59 = vpop.f32.mrf.mxu1  ;;  %4906 = vmatpush3.msra.mxu1 %v3217_v14 }
 0x1c9   : > { %v6515_v55 = vadd.f32 %v2190_v20, %v1978_v13  ;;  %v1981_v28 = vadd.f32 %v4618_v59, %v6366_v56  ;;  %4907 = vmatprep.subr.mxu1 %v5052_v63 }
 0x1ca   : > { %v4698_v33 = vpop.f32.mrf.mxu0  ;;  %v1893_v22 = vpop.f32.mrf.mxu1  ;;  %4908 = vmatpush3.msra.mxu1 %v3216_v58 }
 0x1cb   : > { %v6522_v47 = vadd.f32 %v4698_v33, %v1981_v28  ;;  %v1980_v31 = vadd.f32 %v1893_v22, %v6369_v17 }
 0x1cc   : > { %v2200_v56 = vpop.f32.mrf.mxu0  ;;  %v4621_v24 = vpop.f32.mrf.mxu1 }
 0x1cd   : > { %v6529_v36 = vadd.f32 %v2200_v56, %v1980_v31  ;;  %v1983_v50 = vadd.f32 %v4621_v24, %v6372_v40 }
 0x1ce   : > { %v4701_v2 = vpop.f32.mrf.mxu0  ;;  %v1903_v35 = vpop.f32.mrf.mxu1 }
 0x1cf   : > { %v6533_v52 = vadd.f32 %v4701_v2, %v1983_v50  ;;  %v1982_v17 = vadd.f32 %v1903_v35, %v6375_v53  ;;  %v3137_v50 = vlaneseq }
 0x1d0   : > { %v2210_v15 = vpop.f32.mrf.mxu0  ;;  %v4624_v30 = vpop.f32.mrf.mxu1 }
 0x1d1   : > { %v6536_v60 = vadd.f32 %v2210_v15, %v1982_v17  ;;  %v1985_v8 = vadd.f32 %v4624_v30, %v6378_v61 }
 0x1d2   : > { %v4704_v38 = vpop.f32.mrf.mxu0  ;;  %v1913_v16 = vpop.f32.mrf.mxu1 }
 0x1d3   : > { %v6539_v11 = vadd.f32 %v4704_v38, %v1985_v8  ;;  %v1984_v40 = vadd.f32 %v1913_v16, %v6381_v6 }
 0x1d4   : > { %v2220_v63 = vpop.f32.mrf.mxu0  ;;  %v4627_v45 = vpop.f32.mrf.mxu1 }
 0x1d5   : > { %v6542_v41 = vadd.f32 %v2220_v63, %v1984_v40  ;;  %v1987_v39 = vadd.f32 %v4627_v45, %v6384_v0 }
 0x1d6   : > { %v4707_v25 = vpop.f32.mrf.mxu0  ;;  %v1923_v53 = vpop.f32.mrf.mxu1 }
 0x1d7   : > { %v6545_v10 = vadd.f32 %v4707_v25, %v1987_v39  ;;  %v1986_v54 = vadd.f32 %v1923_v53, %v6391_v46 }
 0x1d8   : > { %v2230_v13 = vpop.f32.mrf.mxu0  ;;  %v4630_v61 = vpop.f32.mrf.mxu1 }
 0x1d9   : > { %v6548_v48 = vadd.f32 %v2230_v13, %v1986_v54  ;;  %v1989_v4 = vadd.f32 %v4630_v61, %v6395_v43 }
 0x1da   : > { %v4710_v20 = vpop.f32.mrf.mxu0  ;;  %v1933_v6 = vpop.f32.mrf.mxu1 }
 0x1db   : > { %v6551_v59 = vadd.f32 %v4710_v20, %v1989_v4  ;;  %v1988_v28 = vadd.f32 %v1933_v6, %v6398_v57 }
 0x1dc   : > { %v2240_v14 = vpop.f32.mrf.mxu0  ;;  %v4633_v0 = vpop.f32.mrf.mxu1 }
 0x1dd   : > { %v6554_v33 = vadd.f32 %v2240_v14, %v1988_v28  ;;  %v1991_v22 = vadd.f32 %v4633_v0, %v6401_v7  ;;  %v3138_v7 = vshrl.u32 %v3137_v50, 7 }
 0x1de   : > { %v4713_v31 = vpop.f32.mrf.mxu0  ;;  %v1943_v46 = vpop.f32.mrf.mxu1 }
 0x1df   : > { %v6557_v58 = vadd.f32 %v4713_v31, %v1991_v22  ;;  %v1990_v56 = vadd.f32 %v1943_v46, %v6404_v44  ;;  %v6574_v44 = vld [vmem:[%s6753_s2] ss:$0 sm:$0xff]  ;;  %v3139_v39 = vadd.s32 8, %v3138_v7  ;;  %v3144_v22 = vand.u32 1, %v3138_v7 }
 0x1e0   : > { %v2250_v24 = vpop.f32.mrf.mxu0  ;;  %v6560_v43 = vpop.f32.mrf.mxu1 }
 0x1e1   : > { %v6562_v2 = vadd.f32 %v2250_v24, %v1990_v56  ;;  %v3151_v20 = vand.u32 1, %v3139_v39  ;;  %vm6590_vm6 = vcmp.eq.s32.totalorder %v3144_v22, 0 }
 0x1e2   : > { %v6564_v35 = vpop.f32.mrf.mxu0  ;;  %v6566_v57 = vpop.f32.mrf.mxu1 }
 0x1e3   : > { %vm6584_vm5 = vcmp.eq.s32.totalorder %v3151_v20, 0 }
 0x1e4   : > { %v6568_v17 = vpop.f32.mrf.mxu0  ;;  %v4751_v15 = vpop.f32.mrf.mxu1 }
 0x1e5   : > { %v2576_v30 = vadd.f32 %v4751_v15, %v6421_v21 }
 0x1e6   : > { %v4831_v8 = vpop.f32.mrf.mxu0  ;;  %v2416_v38 = vpop.f32.mrf.mxu1 }
 0x1e7   : > { %v2882_v16 = vadd.f32 %v4831_v8, %v2576_v30  ;;  %v2575_v40 = vadd.f32 %v2416_v38, %v6430_v23 }
 0x1e8   : > { %v2722_v63 = vpop.f32.mrf.mxu0  ;;  %v4754_v45 = vpop.f32.mrf.mxu1 }
 0x1e9   : > { %v2921_v25 = vadd.f32 %v6574_v44, %v2882_v16  ;;  %v2881_v53 = vadd.f32 %v2722_v63, %v2575_v40  ;;  %v2578_v54 = vadd.f32 %v4754_v45, %v6434_v51 }
 0x1ea   : > { %v4834_v13 = vpop.f32.mrf.mxu0  ;;  %v2426_v21 = vpop.f32.mrf.mxu1 }
 0x1eb   : > { %v2920_v61 = vadd.f32 %v6574_v44, %v2881_v53  ;;  %v2884_v4 = vadd.f32 %v4834_v13, %v2578_v54  ;;  %v2577_v6 = vadd.f32 %v2426_v21, %v6438_v49  ;;  %v2985_v0 = vmul.f32 0.01, %v2921_v25  ;;  %v3232_v49 = vld [vmem:[%s6755_s4] sm:$0x1] }
 0x1ec   : > { %v2732_v28 = vpop.f32.mrf.mxu0  ;;  %v4757_v14 = vpop.f32.mrf.mxu1  ;;  %vm2953_vm1 = vcmp.ge.f32.partialorder %v2921_v25, 0.0 }
 0x1ed   : > { %v2923_v23 = vadd.f32 %v6574_v44, %v2884_v4  ;;  %v2883_v31 = vadd.f32 %v2732_v28, %v2577_v6  ;;  %v2580_v46 = vadd.f32 %v4757_v14, %v6441_v62  ;;  %v2984_v24 = vmul.f32 0.01, %v2920_v61 }
 0x1ee   : > { %v4837_v51 = vpop.f32.mrf.mxu0  ;;  %v2436_v56 = vpop.f32.mrf.mxu1  ;;  %vm2952_vm4 = vcmp.ge.f32.partialorder %v2920_v61, 0.0  ;;  %v3017_v16 = vsel %vm2953_vm1, %v2921_v25, %v2985_v0 }
 0x1ef   : > { %vm2955_vm3 = vcmp.ge.f32.partialorder %v2923_v23, 0.0  ;;  %v2987_v50 = vmul.f32 0.01, %v2923_v23  ;;  %v2579_v15 = vadd.f32 %v2436_v56, %v6444_v5  ;;  %v2922_v30 = vadd.f32 %v6574_v44, %v2883_v31 }
 0x1f0   : > { %v2886_v7 = vadd.f32 %v4837_v51, %v2580_v46  ;;  %v2742_v8 = vpop.f32.mrf.mxu0  ;;  %v4760_v38 = vpop.f32.mrf.mxu1  ;;  %v3016_v21 = vsel %vm2952_vm4, %v2920_v61, %v2984_v24  ;;  %v6602_v46 = vadd.f32 %v6560_v43, %v6413_v1 }
 0x1f1   : > { %v3019_v62 = vsel %vm2955_vm3, %v2923_v23, %v2987_v50  ;;  %v2885_v63 = vadd.f32 %v2742_v8, %v2579_v15  ;;  %v2582_v5 = vadd.f32 %v4760_v38, %v6453_v32  ;;  %vm2954_vm7 = vcmp.ge.f32.partialorder %v2922_v30, 0.0 }
 0x1f2   : > { %v3049_v45 = vmax.f32 %v3017_v16, %v3019_v62  ;;  %v2986_v39 = vmul.f32 0.01, %v2922_v30  ;;  %v2925_v53 = vadd.f32 %v6574_v44, %v2886_v7  ;;  %v4840_v54 = vpop.f32.mrf.mxu0  ;;  %v2446_v13 = vpop.f32.mrf.mxu1 }
 0x1f3   : > { %v2924_v4 = vadd.f32 %v6574_v44, %v2885_v63  ;;  %v2888_v25 = vadd.f32 %v4840_v54, %v2582_v5  ;;  %v2581_v20 = vadd.f32 %v2446_v13, %v6457_v18 }
 0x1f4   : > { %v3082_v6 = vrot.slane %v3049_v45, 1  ;;  %v3018_v28 = vsel %vm2954_vm7, %v2922_v30, %v2986_v39  ;;  %vm2957_vm8 = vcmp.ge.f32.partialorder %v2925_v53, 0.0  ;;  %v2989_v14 = vmul.f32 0.01, %v2925_v53  ;;  %v2752_v0 = vpop.f32.mrf.mxu0  ;;  %v4763_v32 = vpop.f32.mrf.mxu1 }
 0x1f5   : > { %v3048_v23 = vmax.f32 %v3016_v21, %v3018_v28  ;;  %vm2956_vm9 = vcmp.ge.f32.partialorder %v2924_v4, 0.0  ;;  %v2988_v22 = vmul.f32 0.01, %v2924_v4  ;;  %v2927_v31 = vadd.f32 %v6574_v44, %v2888_v25 }
 0x1f6   : > { %v3122_v61 = vmax.f32 %v3049_v45, %v3082_v6  ;;  %v2887_v51 = vadd.f32 %v2752_v0, %v2581_v20  ;;  %v2584_v56 = vadd.f32 %v4763_v32, %v6461_v26  ;;  %v4843_v18 = vpop.f32.mrf.mxu0  ;;  %v2456_v24 = vpop.f32.mrf.mxu1  ;;  %v3021_v15 = vsel %vm2957_vm8, %v2925_v53, %v2989_v14 }
 0x1f7   : > { %v3081_v50 = vrot.slane %v3048_v23, 1  ;;  %vm2959_vm10 = vcmp.ge.f32.partialorder %v2927_v31, 0.0  ;;  %v2991_v30 = vmul.f32 0.01, %v2927_v31  ;;  %v3020_v7 = vsel %vm2956_vm9, %v2924_v4, %v2988_v22 }
 0x1f8   : > { %v2926_v8 = vadd.f32 %v6574_v44, %v2887_v51  ;;  %v2890_v38 = vadd.f32 %v4843_v18, %v2584_v56  ;;  %v2583_v16 = vadd.f32 %v2456_v24, %v6464_v27  ;;  %v2762_v62 = vpop.f32.mrf.mxu0  ;;  %v4766_v63 = vpop.f32.mrf.mxu1  ;;  %v3171_v1 = vsel %vm6584_vm5, %v3122_v61, 0.0 }
 0x1f9   : > { %v3083_v43 = vsel %vm3080_vm2, %v3081_v50, %v3082_v6  ;;  %v3023_v26 = vsel %vm2959_vm10, %v2927_v31, %v2991_v30  ;;  %v2586_v5 = vadd.f32 %v4766_v63, %v6467_v29  ;;  %v3186_v20 = vsel %vm3080_vm2, %v3171_v1, 0.0 }
 0x1fa   : > { %v3121_v45 = vmax.f32 %v3048_v23, %v3083_v43  ;;  %v3051_v39 = vmax.f32 %v3021_v15, %v3023_v26  ;;  %vm2958_vm11 = vcmp.ge.f32.partialorder %v2926_v8, 0.0  ;;  %v2990_v53 = vmul.f32 0.01, %v2926_v8  ;;  %v4846_v54 = vpop.f32.mrf.mxu0  ;;  %v2466_v13 = vpop.f32.mrf.mxu1 }
 0x1fb   : > { %v2929_v21 = vadd.f32 %v6574_v44, %v2890_v38  ;;  %v2889_v4 = vadd.f32 %v2762_v62, %v2583_v16  ;;  %v2892_v27 = vadd.f32 %v4846_v54, %v2586_v5  ;;  %v2585_v25 = vadd.f32 %v2466_v13, %v6470_v3 }
 0x1fc   : > { %v3170_v6 = vsel %vm6590_vm6, %v3121_v45, 0.0  ;;  %v3085_v28 = vrot.slane %v3051_v39, 1  ;;  %v3022_v14 = vsel %vm2958_vm11, %v2926_v8, %v2990_v53  ;;  %v2772_v29 = vpop.f32.mrf.mxu0  ;;  %v4769_v0 = vpop.f32.mrf.mxu1 }
 0x1fd   : > { %v3187_v32 = vadd.f32 %v3186_v20, %v3170_v6  ;;  %v3050_v23 = vmax.f32 %v3020_v7, %v3022_v14  ;;  %vm2961_vm12 = vcmp.ge.f32.partialorder %v2929_v21, 0.0  ;;  %v2993_v22 = vmul.f32 0.01, %v2929_v21 }
 0x1fe   : > { %v3124_v31 = vmax.f32 %v3051_v39, %v3085_v28  ;;  %v2928_v61 = vadd.f32 %v6574_v44, %v2889_v4  ;;  %v2931_v51 = vadd.f32 %v6574_v44, %v2892_v27  ;;  %v2891_v56 = vadd.f32 %v2772_v29, %v2585_v25  ;;  %v4849_v3 = vpop.f32.mrf.mxu0  ;;  %v2476_v18 = vpop.f32.mrf.mxu1 }
 0x1ff   : > { %v3084_v24 = vrot.slane %v3050_v23, 1  ;;  %v3025_v50 = vsel %vm2961_vm12, %v2929_v21, %v2993_v22  ;;  %v2588_v15 = vadd.f32 %v4769_v0, %v6476_v19  ;;  %v2587_v30 = vadd.f32 %v2476_v18, %v6483_v12 }
 0x200   : > { %v3173_v8 = vsel %vm6584_vm5, %v3124_v31, 0.0  ;;  %vm2960_vm13 = vcmp.ge.f32.partialorder %v2928_v61, 0.0  ;;  %v2992_v7 = vmul.f32 0.01, %v2928_v61  ;;  %vm2963_vm14 = vcmp.ge.f32.partialorder %v2931_v51, 0.0  ;;  %v2782_v38 = vpop.f32.mrf.mxu0  ;;  %v4772_v16 = vpop.f32.mrf.mxu1 }
 0x201   : > { %v3189_v62 = vsel %vm3080_vm2, %v3173_v8, 0.0  ;;  %v3086_v63 = vsel %vm3080_vm2, %v3084_v24, %v3085_v28  ;;  %v2995_v1 = vmul.f32 0.01, %v2931_v51  ;;  %v2930_v43 = vadd.f32 %v6574_v44, %v2891_v56 }
 0x202   : > { %v3123_v26 = vmax.f32 %v3050_v23, %v3086_v63  ;;  %v3024_v5 = vsel %vm2960_vm13, %v2928_v61, %v2992_v7  ;;  %v2894_v19 = vadd.f32 %v4849_v3, %v2588_v15  ;;  %v2893_v45 = vadd.f32 %v2782_v38, %v2587_v30  ;;  %v4852_v12 = vpop.f32.mrf.mxu0  ;;  %v2486_v39 = vpop.f32.mrf.mxu1 }
 0x203   : > { %v3027_v53 = vsel %vm2963_vm14, %v2931_v51, %v2995_v1  ;;  %vm2962_vm15 = vcmp.ge.f32.partialorder %v2930_v43, 0.0  ;;  %v2994_v54 = vmul.f32 0.01, %v2930_v43  ;;  %v2590_v13 = vadd.f32 %v4772_v16, %v6490_v9 }
 0x204   : > { %v3172_v21 = vsel %vm6590_vm6, %v3123_v26, 0.0  ;;  %v3053_v4 = vmax.f32 %v3025_v50, %v3027_v53  ;;  %v2933_v27 = vadd.f32 %v6574_v44, %v2894_v19  ;;  %v2932_v25 = vadd.f32 %v6574_v44, %v2893_v45  ;;  %v2792_v20 = vpop.f32.mrf.mxu0  ;;  %v4775_v6 = vpop.f32.mrf.mxu1 }
 0x205   : > { %v3188_v28 = vadd.f32 %v3187_v32, %v3172_v21  ;;  %v3026_v14 = vsel %vm2962_vm15, %v2930_v43, %v2994_v54  ;;  %v2896_v29 = vadd.f32 %v4852_v12, %v2590_v13  ;;  %v2589_v0 = vadd.f32 %v2486_v39, %v6497_v37 }
 0x206   : > { %v3088_v23 = vrot.slane %v3053_v4, 1  ;;  %v3052_v22 = vmax.f32 %v3024_v5, %v3026_v14  ;;  %vm2965_vm0 = vcmp.ge.f32.partialorder %v2933_v27, 0.0  ;;  %v2997_v31 = vmul.f32 0.01, %v2933_v27  ;;  %v4855_v9 = vpop.f32.mrf.mxu0  ;;  %v2496_v61 = vpop.f32.mrf.mxu1 }
 0x207   : > { %v3190_v51 = vadd.f32 %v3189_v62, %v3188_v28  ;;  %vm2964_vm1 = vcmp.ge.f32.partialorder %v2932_v25, 0.0  ;;  %v2996_v56 = vmul.f32 0.01, %v2932_v25  ;;  %v2935_v3 = vadd.f32 %v6574_v44, %v2896_v29 }
 0x208   : > { %v3126_v18 = vmax.f32 %v3053_v4, %v3088_v23  ;;  %v3087_v24 = vrot.slane %v3052_v22, 1  ;;  %v3029_v50 = vsel %vm2965_vm0, %v2933_v27, %v2997_v31  ;;  %v2895_v15 = vadd.f32 %v2792_v20, %v2589_v0  ;;  %v2802_v32 = vpop.f32.mrf.mxu0  ;;  %v4778_v30 = vpop.f32.mrf.mxu1 }
 0x209   : > { %v3028_v8 = vsel %vm2964_vm1, %v2932_v25, %v2996_v56  ;;  %vm2967_vm3 = vcmp.ge.f32.partialorder %v2935_v3, 0.0  ;;  %v2999_v37 = vmul.f32 0.01, %v2935_v3  ;;  %v2592_v7 = vadd.f32 %v4775_v6, %v6504_v42 }
 0x20a   : > { %v3175_v38 = vsel %vm6584_vm5, %v3126_v18, 0.0  ;;  %v3089_v16 = vsel %vm3080_vm2, %v3087_v24, %v3088_v23  ;;  %v2934_v62 = vadd.f32 %v6574_v44, %v2895_v15  ;;  %v2591_v63 = vadd.f32 %v2496_v61, %v6515_v55  ;;  %v4858_v1 = vpop.f32.mrf.mxu0  ;;  %v2506_v43 = vpop.f32.mrf.mxu1 }
 0x20b   : > { %v3192_v26 = vsel %vm3080_vm2, %v3175_v38, 0.0  ;;  %v3125_v5 = vmax.f32 %v3052_v22, %v3089_v16  ;;  %v3031_v19 = vsel %vm2967_vm3, %v2935_v3, %v2999_v37  ;;  %v2898_v45 = vadd.f32 %v4855_v9, %v2592_v7 }
 0x20c   : > { %v3055_v12 = vmax.f32 %v3029_v50, %v3031_v19  ;;  %vm2966_vm4 = vcmp.ge.f32.partialorder %v2934_v62, 0.0  ;;  %v2998_v39 = vmul.f32 0.01, %v2934_v62  ;;  %v2897_v42 = vadd.f32 %v2802_v32, %v2591_v63  ;;  %v2812_v53 = vpop.f32.mrf.mxu0  ;;  %v4781_v54 = vpop.f32.mrf.mxu1 }
 0x20d   : > { %v3174_v13 = vsel %vm6590_vm6, %v3125_v5, 0.0  ;;  %v2937_v21 = vadd.f32 %v6574_v44, %v2898_v45  ;;  %v2594_v55 = vadd.f32 %v4778_v30, %v6522_v47  ;;  %v2593_v4 = vadd.f32 %v2506_v43, %v6529_v36 }
 0x20e   : > { %v3191_v27 = vadd.f32 %v3190_v51, %v3174_v13  ;;  %v3091_v25 = vrot.slane %v3055_v12, 1  ;;  %v3030_v20 = vsel %vm2966_vm4, %v2934_v62, %v2998_v39  ;;  %v2936_v6 = vadd.f32 %v6574_v44, %v2897_v42  ;;  %v4861_v28 = vpop.f32.mrf.mxu0  ;;  %v2516_v14 = vpop.f32.mrf.mxu1 }
 0x20f   : > { %v3054_v29 = vmax.f32 %v3028_v8, %v3030_v20  ;;  %vm2969_vm7 = vcmp.ge.f32.partialorder %v2937_v21, 0.0  ;;  %v3001_v0 = vmul.f32 0.01, %v2937_v21  ;;  %v2900_v23 = vadd.f32 %v4858_v1, %v2594_v55 }
 0x210   : > { %v3128_v22 = vmax.f32 %v3055_v12, %v3091_v25  ;;  %v3193_v31 = vadd.f32 %v3192_v26, %v3191_v27  ;;  %vm2968_vm8 = vcmp.ge.f32.partialorder %v2936_v6, 0.0  ;;  %v3000_v9 = vmul.f32 0.01, %v2936_v6  ;;  %v2822_v61 = vpop.f32.mrf.mxu0  ;;  %v4784_v56 = vpop.f32.mrf.mxu1 }
 0x211   : > { %v3090_v47 = vrot.slane %v3054_v29, 1  ;;  %v3033_v3 = vsel %vm2969_vm7, %v2937_v21, %v3001_v0  ;;  %v2939_v36 = vadd.f32 %v6574_v44, %v2900_v23  ;;  %v2899_v51 = vadd.f32 %v2812_v53, %v2593_v4 }
 0x212   : > { %v3177_v18 = vsel %vm6584_vm5, %v3128_v22, 0.0  ;;  %v3032_v24 = vsel %vm2968_vm8, %v2936_v6, %v3000_v9  ;;  %v2596_v50 = vadd.f32 %v4781_v54, %v6533_v52  ;;  %v2595_v15 = vadd.f32 %v2516_v14, %v6536_v60  ;;  %v4864_v32 = vpop.f32.mrf.mxu0  ;;  %v2526_v30 = vpop.f32.mrf.mxu1 }
 0x213   : > { %v3195_v8 = vsel %vm3080_vm2, %v3177_v18, 0.0  ;;  %v3092_v37 = vsel %vm3080_vm2, %v3090_v47, %v3091_v25  ;;  %vm2971_vm9 = vcmp.ge.f32.partialorder %v2939_v36, 0.0  ;;  %v3003_v7 = vmul.f32 0.01, %v2939_v36 }
 0x214   : > { %v3127_v38 = vmax.f32 %v3054_v29, %v3092_v37  ;;  %v2938_v16 = vadd.f32 %v6574_v44, %v2899_v51  ;;  %v2902_v62 = vadd.f32 %v4861_v28, %v2596_v50  ;;  %v2901_v63 = vadd.f32 %v2822_v61, %v2595_v15  ;;  %v2832_v1 = vpop.f32.mrf.mxu0  ;;  %v4787_v43 = vpop.f32.mrf.mxu1 }
 0x215   : > { %v3035_v26 = vsel %vm2971_vm9, %v2939_v36, %v3003_v7  ;;  %v2598_v52 = vadd.f32 %v4784_v56, %v6539_v11  ;;  %v2597_v60 = vadd.f32 %v2526_v30, %v6542_v41  ;;  %v2600_v5 = vadd.f32 %v4787_v43, %v6545_v10 }
 0x216   : > { %v3176_v19 = vsel %vm6590_vm6, %v3127_v38, 0.0  ;;  %v3057_v45 = vmax.f32 %v3033_v3, %v3035_v26  ;;  %vm2970_vm10 = vcmp.ge.f32.partialorder %v2938_v16, 0.0  ;;  %v3002_v12 = vmul.f32 0.01, %v2938_v16  ;;  %v4867_v39 = vpop.f32.mrf.mxu0  ;;  %v2536_v42 = vpop.f32.mrf.mxu1 }
 0x217   : > { %v3194_v53 = vadd.f32 %v3193_v31, %v3176_v19  ;;  %v2941_v54 = vadd.f32 %v6574_v44, %v2902_v62  ;;  %v2940_v13 = vadd.f32 %v6574_v44, %v2901_v63  ;;  %v2904_v21 = vadd.f32 %v4864_v32, %v2598_v52 }
 0x218   : > { %v3094_v55 = vrot.slane %v3057_v45, 1  ;;  %v3034_v11 = vsel %vm2970_vm10, %v2938_v16, %v3002_v12  ;;  %v2903_v4 = vadd.f32 %v2832_v1, %v2597_v60  ;;  %v2906_v41 = vadd.f32 %v4867_v39, %v2600_v5  ;;  %v2842_v27 = vpop.f32.mrf.mxu0  ;;  %v4790_v10 = vpop.f32.mrf.mxu1 }
 0x219   : > { %v6662_v25 = vadd.f32 %v6564_v35, %v6602_v46  ;;  %v3056_v20 = vmax.f32 %v3032_v24, %v3034_v11  ;;  %v3196_v6 = vadd.f32 %v3195_v8, %v3194_v53  ;;  %v3005_v28 = vmul.f32 0.01, %v2941_v54 }
 0x21a   : > { %v3130_v14 = vmax.f32 %v3057_v45, %v3094_v55  ;;  %vm2973_vm11 = vcmp.ge.f32.partialorder %v2941_v54, 0.0  ;;  %v3004_v29 = vmul.f32 0.01, %v2940_v13  ;;  %v2943_v0 = vadd.f32 %v6574_v44, %v2904_v21  ;;  %v4870_v23 = vpop.f32.mrf.mxu0  ;;  %v2546_v22 = vpop.f32.mrf.mxu1 }
 0x21b   : > { %v1992_v31 = vadd.f32 %v6566_v57, %v6417_v34  ;;  %v3093_v9 = vrot.slane %v3056_v20, 1  ;;  %vm2972_vm12 = vcmp.ge.f32.partialorder %v2940_v13, 0.0  ;;  %v2942_v61 = vadd.f32 %v6574_v44, %v2903_v4 }
 0x21c   : > { %v3179_v35 = vsel %vm6584_vm5, %v3130_v14, 0.0  ;;  %vm2975_vm13 = vcmp.ge.f32.partialorder %v2943_v0, 0.0  ;;  %v3007_v46 = vmul.f32 0.01, %v2943_v0  ;;  %v2945_v56 = vadd.f32 %v6574_v44, %v2906_v41  ;;  %v2852_v47 = vpop.f32.mrf.mxu0  ;;  %v4793_v3 = vpop.f32.mrf.mxu1 }
 0x21d   : > { %v3095_v36 = vsel %vm3080_vm2, %v3093_v9, %v3094_v55  ;;  %v3037_v51 = vsel %vm2973_vm11, %v2941_v54, %v3005_v28  ;;  %vm2974_vm14 = vcmp.ge.f32.partialorder %v2942_v61, 0.0  ;;  %v3006_v18 = vmul.f32 0.01, %v2942_v61 }
 0x21e   : > { %v3198_v34 = vsel %vm3080_vm2, %v3179_v35, 0.0  ;;  %v3129_v57 = vmax.f32 %v3056_v20, %v3095_v36  ;;  %v3036_v24 = vsel %vm2972_vm12, %v2940_v13, %v3004_v29  ;;  %v3039_v50 = vsel %vm2975_vm13, %v2943_v0, %v3007_v46  ;;  %v2556_v37 = vpop.f32.mrf.mxu1  ;;  %v4873_v63 = vpop.f32.mrf.mxu0 }
 0x21f   : > { %v3059_v15 = vmax.f32 %v3037_v51, %v3039_v50  ;;  %v3038_v32 = vsel %vm2974_vm14, %v2942_v61, %v3006_v18  ;;  %v2599_v30 = vadd.f32 %v2536_v42, %v6548_v48  ;;  %v2602_v8 = vadd.f32 %v4790_v10, %v6551_v59 }
 0x220   : > { %v3178_v7 = vsel %vm6590_vm6, %v3129_v57, 0.0  ;;  %v3058_v38 = vmax.f32 %v3036_v24, %v3038_v32  ;;  %v3009_v16 = vmul.f32 0.01, %v2945_v56  ;;  %v2601_v62 = vadd.f32 %v2546_v22, %v6554_v33  ;;  %v2862_v54 = vpop.f32.mrf.mxu0  ;;  %v4796_v13 = vpop.f32.mrf.mxu1 }
 0x221   : > { %v3197_v1 = vadd.f32 %v3196_v6, %v3178_v7  ;;  %v3097_v43 = vrot.slane %v3059_v15, 1  ;;  %v2905_v26 = vadd.f32 %v2842_v27, %v2599_v30  ;;  %v2908_v52 = vadd.f32 %v4870_v23, %v2602_v8 }
 0x222   : > { %v3096_v60 = vrot.slane %v3058_v38, 1  ;;  %v2907_v5 = vadd.f32 %v2852_v47, %v2601_v62  ;;  %v2604_v19 = vadd.f32 %v4793_v3, %v6557_v58  ;;  %v2603_v48 = vadd.f32 %v2556_v37, %v6562_v2  ;;  %v4876_v14 = vpop.f32.mrf.mxu0  ;;  %v2566_v29 = vpop.f32.mrf.mxu1 }
 0x223   : > { %v3132_v59 = vmax.f32 %v3059_v15, %v3097_v43  ;;  %v3199_v45 = vadd.f32 %v3198_v34, %v3197_v1  ;;  %v2944_v12 = vadd.f32 %v6574_v44, %v2905_v26  ;;  %v2947_v39 = vadd.f32 %v6574_v44, %v2908_v52 }
 0x224   : > { %v2299_v42 = vadd.f32 %v6568_v17, %v1992_v31  ;;  %v3098_v33 = vsel %vm3080_vm2, %v3096_v60, %v3097_v43  ;;  %vm2977_vm15 = vcmp.ge.f32.partialorder %v2945_v56, 0.0  ;;  %v2946_v53 = vadd.f32 %v6574_v44, %v2907_v5  ;;  %v2872_v36 = vpop.f32.mrf.mxu0 }
 0x225   : > { %v3181_v58 = vsel %vm6584_vm5, %v3132_v59, 0.0  ;;  %v3131_v21 = vmax.f32 %v3058_v38, %v3098_v33  ;;  %v3008_v2 = vmul.f32 0.01, %v2944_v12  ;;  %v2910_v55 = vadd.f32 %v4873_v63, %v2604_v19 }
 0x226   : > { %vm2976_vm0 = vcmp.ge.f32.partialorder %v2944_v12, 0.0  ;;  %vm2979_vm1 = vcmp.ge.f32.partialorder %v2947_v39, 0.0  ;;  %v3011_v11 = vmul.f32 0.01, %v2947_v39  ;;  %vm2978_vm3 = vcmp.ge.f32.partialorder %v2946_v53, 0.0 }
 0x227   : > { %v3180_v17 = vsel %vm6590_vm6, %v3131_v21, 0.0  ;;  %v3041_v4 = vsel %vm2977_vm15, %v2945_v56, %v3009_v16  ;;  %v3010_v41 = vmul.f32 0.01, %v2946_v53  ;;  %v2909_v27 = vadd.f32 %v2862_v54, %v2603_v48 }
 0x228   : > { %v3201_v10 = vsel %vm3080_vm2, %v3181_v58, 0.0  ;;  %v3200_v20 = vadd.f32 %v3199_v45, %v3180_v17  ;;  %v3043_v6 = vsel %vm2979_vm1, %v2947_v39, %v3011_v11  ;;  %v2606_v28 = vadd.f32 %v4796_v13, %v6662_v25 }
 0x229   : > { %v3040_v0 = vsel %vm2976_vm0, %v2944_v12, %v3008_v2  ;;  %v3061_v23 = vmax.f32 %v3041_v4, %v3043_v6  ;;  %v3042_v22 = vsel %vm2978_vm3, %v2946_v53, %v3010_v41  ;;  %v2949_v31 = vadd.f32 %v6574_v44, %v2910_v55 }
 0x22a   : > { %v3060_v9 = vmax.f32 %v3040_v0, %v3042_v22  ;;  %v3202_v61 = vadd.f32 %v3201_v10, %v3200_v20  ;;  %v2912_v46 = vadd.f32 %v4876_v14, %v2606_v28  ;;  %v2605_v56 = vadd.f32 %v2566_v29, %v2299_v42 }
 0x22b   : > { %v3100_v35 = vrot.slane %v3061_v23, 1  ;;  %v2948_v3 = vadd.f32 %v6574_v44, %v2909_v27  ;;  %v3013_v18 = vmul.f32 0.01, %v2949_v31  ;;  %vm2981_vm4 = vcmp.ge.f32.partialorder %v2949_v31, 0.0 }
 0x22c   : > { %v3099_v47 = vrot.slane %v3060_v9, 1  ;;  %v2951_v25 = vadd.f32 %v6574_v44, %v2912_v46  ;;  %v2911_v34 = vadd.f32 %v2872_v36, %v2605_v56 }
 0x22d   : > { %v3134_v51 = vmax.f32 %v3061_v23, %v3100_v35  ;;  %v3012_v32 = vmul.f32 0.01, %v2948_v3  ;;  %v3045_v37 = vsel %vm2981_vm4, %v2949_v31, %v3013_v18  ;;  %vm2980_vm8 = vcmp.ge.f32.partialorder %v2948_v3, 0.0 }
 0x22e   : > { %v3101_v57 = vsel %vm3080_vm2, %v3099_v47, %v3100_v35  ;;  %vm2983_vm7 = vcmp.ge.f32.partialorder %v2951_v25, 0.0  ;;  %v3015_v50 = vmul.f32 0.01, %v2951_v25  ;;  %v2950_v30 = vadd.f32 %v6574_v44, %v2911_v34 }
 0x22f   : > { %v3133_v24 = vmax.f32 %v3060_v9, %v3101_v57  ;;  %v3183_v15 = vsel %vm6584_vm5, %v3134_v51, 0.0  ;;  %v3044_v1 = vsel %vm2980_vm8, %v2948_v3, %v3012_v32 }
 0x230   : > { %v3047_v7 = vsel %vm2983_vm7, %v2951_v25, %v3015_v50  ;;  %vm2982_vm9 = vcmp.ge.f32.partialorder %v2950_v30, 0.0  ;;  %v3014_v62 = vmul.f32 0.01, %v2950_v30  ;;  %v3204_v63 = vsel %vm3080_vm2, %v3183_v15, 0.0 }
 0x231   : > { %v3182_v8 = vsel %vm6590_vm6, %v3133_v24, 0.0  ;;  %v3063_v16 = vmax.f32 %v3045_v37, %v3047_v7 }
 0x232   : > { %v3203_v38 = vadd.f32 %v3202_v61, %v3182_v8  ;;  %v3046_v26 = vsel %vm2982_vm9, %v2950_v30, %v3014_v62 }
 0x233   : > { %v3103_v43 = vrot.slane %v3063_v16, 1  ;;  %v3062_v60 = vmax.f32 %v3044_v1, %v3046_v26 }
 0x234   : > { %v3205_v52 = vadd.f32 %v3204_v63, %v3203_v38 }
 0x235   : > { %v3136_v5 = vmax.f32 %v3063_v16, %v3103_v43  ;;  %v3102_v19 = vrot.slane %v3062_v60, 1 }
 0x237   : > { %v3104_v44 = vsel %vm3080_vm2, %v3102_v19, %v3103_v43  ;;  %v3185_v59 = vsel %vm6584_vm5, %v3136_v5, 0.0 }
 0x238   : > { %v3135_v48 = vmax.f32 %v3062_v60, %v3104_v44  ;;  %v3207_v39 = vsel %vm3080_vm2, %v3185_v59, 0.0  ;;  %vm3309_vm2 = vcmask 73728  }
 0x23a   : > { %v3184_v45 = vsel %vm6590_vm6, %v3135_v48, 0.0 }
 0x23b   : > { %v3206_v12 = vadd.f32 %v3205_v52, %v3184_v45 }
 0x23d   : > { %v3208_v42 = vadd.f32 %v3207_v39, %v3206_v12 }
 0x23f   : > { %v3209_v33 = vrot.slane %v3208_v42, 4 }
 0x241   : > { %v3210_v53 = vadd.f32 %v3209_v33, %v3208_v42 }
 0x243   : > { %v3211_v54 = vrot.slane %v3210_v53, 2 }
 0x245   : > { %v3212_v13 = vadd.f32 %v3211_v54, %v3210_v53 }
 0x247   : > { %v3213_v58 = vrot.slane %v3212_v13, 1 }
 0x249   : > { %v3214_v21 = vadd.f32 %v3213_v58, %v3212_v13 }
 0x24b   : > { %v3215_v2 = vmul.f32 0.015625, %v3214_v21 }
 0x24d   : > { %4910 = vmatmul.mubr.f32.vlgmr.msra.gmra.mxu1 %v3215_v2 }
 0x30d   : > { %v3299_v40 = vpop.f32.mrf.mxu1 }
 0x30e   : > { %v3300_v55 = vadd.f32 %v3299_v40, %v3232_v49 }
 0x30f   : > { %v4911_v11 = vpop.f32.mrf.mxu1 }
 0x310   : > { %v3303_v17 = vsub.f32 0.0, %v3300_v55 }
 0x312   : > { %v3304_v4 = vmul.f32 1.442695, %v3303_v17 }
 0x314   : > { %4986 = vpow2.f32 %v3304_v4 }
 0x321   : > { %v4987_v41 = vpop.eup %4986 }
 0x322   : > { %v3306_v27 = vadd.f32 1.0, %v4987_v41 }
 0x324   : > { %4988 = vrcp.f32 %v3306_v27 }
 0x331   : > { %v4989_v10 = vpop.eup %4988 }
 0x332   : > { %3310 = vst.msk [vmem:[%s216_s16] sm:$0x1] %vm3309_vm2, %v4989_v10 }
 0x333   : > { %5003 = shalt.err (!%p5000_p3)
}
 0x334   : > { %s5004_s10 = scalar_lea.hbm %s6716_s26, 16  ;;  %s5008_s12 = scalar_lea.hbm %s6756_s5, 32 }
 0x335   : > { %p5005_p4 = scmp.ne.s32.totalorder %s6716_s26, %s5004_s10  ;;  %p5009_p9 = scmp.lt.s32.totalorder %s6716_s26, %s6756_s5 }
 0x336   : > { %p5010_p10 = scmp.lt.s32.totalorder %s5008_s12, %s5004_s10 }
 0x337   : > { %p5006_p7 = pnand %p5005_p4, %p5123_p5 }
 0x338   : > { %p5011_p11 = por %p5010_p10, %p5009_p9 }
 0x339   : > { %p5007_p8 = pneg %p5006_p7 }
 0x33b   : > { %p5012_p12 = pnand %p5011_p11, %p5007_p8 }
 0x33d   : > { %5015 = shalt.err (!%p5012_p12)
}
 0x33e   : > { %4945 = dma.vmem_to_hbm [thread:$0]  (%p5123_p5), %s3325_s17, 16, %s6716_s26, %s3312_s30  }
 0x33f PF: > { %p4951_p13 = scmp.ge.s32.totalorder %s5050_s21, 2  ;;  %s3336_s15 = sand.u32 1, %s5038_s18  }
 0x340   : > { %s3337_s16 = scalar_lea.sflag [#allocation3], %s3336_s15 }
 0x341   : > { %p4948_p0 = pnand %p4951_p13, %p5127_p6 }
 0x343   : > { %p4949_p1 = pneg %p4948_p0 }
 0x345   : > { %5033 = dma.done.wait (%p4949_p1), %s3337_s16, 16  }
 0x346   : > { %5035 = vsyncadd (%p4949_p1), %s3337_s16, 4294967280  ;;  %p15_p2 = scmp.ge.s32.totalorder %s5110_s24, 4   ;;  %s6853_s18 = smov %s5042_s19 }
 0x347   : > { %s6854_s19 = smov %s5046_s20  ;;  %s6855_s20 = smov %s5121_s27 }
 0x348   : > { %s6856_s21 = smov %s5110_s24  ;;  %17 = sbr.rel (!%p15_p2) target bundleno = 3 (0x3), region = 85 }
 0x34d   :  { %3341 = vsyncpa [#allocation3], 1 }
 0x34e   :  { %3343 = vsyncpa [#allocation3 + $0x1], 1 }

</bundles_post_ra>
